<compile_context>
chip_gen: v7x
topology: tpu7x:2x2x1
jax: 0.10.0
libtpu: 0.0.40
codegen_flags: <defaults>
</compile_context>

<pallas_src>
import numpy as np
import jax
import jax.numpy as jnp
from jax.experimental import pallas as pl
from jax.experimental.pallas import tpu as pltpu

_INV_SQRT2 = 0.7071067811865476


# ----------------------------------------------------------------------------
# Device-dependent elementwise dtype (bf16 VPU/EUP exists on v6e/v7x only).
# ----------------------------------------------------------------------------
def _default_act_dtype():
    try:
        kind = jax.devices()[0].device_kind.lower()
    except Exception:
        return jnp.float32
    if ("v6" in kind) or ("v7" in kind) or ("tpu7" in kind):
        return jnp.bfloat16
    return jnp.float32   # v5e and older: no bf16 VPU/EUP path, keep f32


def _softplus_beta100(h):
    # PyTorch Softplus(beta=100, threshold=20):
    #   x                         if 100*x > 20
    #   log1p(exp(100*x)) / 100   otherwise
    z = h * 100.0
    soft = jnp.log1p(jnp.exp(jnp.minimum(z, 20.0))) * 0.01
    return jnp.where(z > 20.0, h, soft)


# ----------------------------------------------------------------------------
# Kernel
# ----------------------------------------------------------------------------
def make_mlp_kernel(n_layers, skip_in, act_dtype):
    """n_layers = num_layers - 1 (number of nn.Linear layers).

    Kernel refs: (x, *flat_params, out).
    flat_params per layer: (W, b) or, for a skip layer, (W_main, W_skip, b).
    Everything is in the transposed (features, points) layout.  The 1/sqrt(2)
    skip scale is pre-folded into W_main / W_skip on the host.
    """
    skip_in = tuple(skip_in)

    def kernel(*refs):
        x_ref = refs[0]
        o_ref = refs[-1]
        params = refs[1:-1]

        xin = x_ref[...]                       # (d_in, tile_n), f32
        h = xin
        idx = 0
        for l in range(n_layers):
            if l in skip_in:
                # x = cat([h, input], 1)/sqrt(2); x = lin(x)   (scale folded in W)
                w_main = params[idx][...]      # (out, h_in)
                w_skip = params[idx + 1][...]  # (out, d_in)
                b = params[idx + 2][...]       # (out, 1)  f32
                idx += 3
                h = (jnp.dot(w_main, h.astype(w_main.dtype),
                             preferred_element_type=jnp.float32)
                     + jnp.dot(w_skip, xin.astype(w_skip.dtype),
                               preferred_element_type=jnp.float32)
                     + b)
            else:
                w = params[idx][...]           # (out, in)
                b = params[idx + 1][...]       # (out, 1)  f32
                idx += 2
                h = jnp.dot(w, h.astype(w.dtype),
                            preferred_element_type=jnp.float32) + b
            if l < n_layers - 1:
                h = _softplus_beta100(h.astype(act_dtype))
        o_ref[...] = h.astype(o_ref.dtype)

    return kernel


# ----------------------------------------------------------------------------
# Parameter construction (geometric init, multires=0, weight_norm == identity)
# Weights are stored (out_dim, in_dim), biases (out_dim, 1).
# ----------------------------------------------------------------------------
def init_implicit_network(key, feature_vector_size, d_in, d_out, dims,
                          bias=1.0, skip_in=()):
    dims_full = [d_in] + list(dims) + [d_out + feature_vector_size]
    num_layers = len(dims_full)
    layers = []
    for l in range(num_layers - 1):
        if (l + 1) in skip_in:
            out_dim = dims_full[l + 1] - dims_full[0]
        else:
            out_dim = dims_full[l + 1]
        in_dim = dims_full[l]

        key, wkey = jax.random.split(key)
        if l == num_layers - 2:
            # final layer: N(sqrt(pi)/sqrt(dims[l]), 1e-4), bias = -bias
            mean = np.sqrt(np.pi) / np.sqrt(dims_full[l])
            w = mean + 1e-4 * jax.random.normal(wkey, (out_dim, in_dim), jnp.float32)
            b = jnp.full((out_dim, 1), -bias, jnp.float32)
        else:
            std = np.sqrt(2.0) / np.sqrt(out_dim)
            w = std * jax.random.normal(wkey, (out_dim, in_dim), jnp.float32)
            b = jnp.zeros((out_dim, 1), jnp.float32)

        if l in skip_in:
            # layer input at forward time is cat([h, input]); split W accordingly
            main_in = in_dim - d_in
            layers.append((w[:, :main_in], w[:, main_in:], b))
        else:
            layers.append((w, b))
    return layers, dims_full


def prepare_params(layers, compute_dtype=jnp.bfloat16):
    """One-time host-side prep (do NOT call per forward):
      * fold the 1/sqrt(2) skip scale into the skip-layer weights,
      * cast matmul operands to compute_dtype for the middle layers,
      * keep first/last layer weights and all biases in f32 (the final layer's
        geometric init has 1e-4 noise that bf16 would quantize away)."""
    n_layers = len(layers)
    flat = []
    for l, lp in enumerate(layers):
        *ws, b = lp
        wdt = jnp.float32 if (l == 0 or l == n_layers - 1) else compute_dtype
        scale = _INV_SQRT2 if len(ws) == 2 else 1.0     # skip layer -> fold scale
        flat.extend((w * scale).astype(wdt) for w in ws)
        flat.append(b.astype(jnp.float32))
    return tuple(flat)


# ----------------------------------------------------------------------------
# Tiling / VMEM budgeting
# ----------------------------------------------------------------------------
def _round_up(v, m):
    return ((v + m - 1) // m) * m


def select_tiling(N, dims_full, tile_n=8192, vmem_budget_bytes=24 << 20):
    """Pick a lane-dense point tile.  Per-point VMEM (double-buffered f32 in/out
    blocks + ~3 live copies of the widest activation) caps tile_n so the full
    512-wide IDR config still fits v7x's 64 MiB VMEM; the grid is kept >= 2
    steps (when there is enough work) so v7x's two TensorCores both get tiles."""
    d_in, out_dim = dims_full[0], dims_full[-1]
    max_width = max(dims_full)
    per_point = 4 * (2 * d_in + 2 * out_dim + 3 * max_width)
    cap = max(128, (vmem_budget_bytes // per_point) // 128 * 128)
    t = min(_round_up(int(tile_n), 128), cap, _round_up(N, 128))
    if N > 128 and pl.cdiv(N, t) < 2:
        t = _round_up(pl.cdiv(N, 2), 128)
    n_pad = pl.cdiv(N, t) * t
    return t, n_pad


# ----------------------------------------------------------------------------
# Forward (transposed-layout core + convenience wrapper)
# ----------------------------------------------------------------------------
def implicit_network_forward_t(x_t, kparams, dims_full, skip_in, tile_n, *,
                               act_dtype=None, single_buffer_weights=True):
    """Core entry point.  x_t: (d_in, n_pad) f32, n_pad a multiple of tile_n.
    Returns (out_dim, n_pad) f32.  No layout ops: callers that can produce and
    consume the (features, points) layout should use this directly."""
    d_in, n_pad = x_t.shape
    assert d_in == dims_full[0]
    assert tile_n % 128 == 0 and n_pad % tile_n == 0
    n_layers = len(dims_full) - 1
    out_dim = dims_full[-1]
    if act_dtype is None:
        act_dtype = _default_act_dtype()

    grid = (n_pad // tile_n,)
    kernel = make_mlp_kernel(n_layers, skip_in, act_dtype)

    # VMEM budget: double-buffered x/out blocks + live activations + weights.
    weight_bytes = sum(int(np.prod(p.shape)) * p.dtype.itemsize for p in kparams)
    act_bytes = 4 * tile_n * (2 * d_in + 2 * out_dim + 3 * max(dims_full))
    vmem_limit = int(min(max(3 * (act_bytes + 2 * weight_bytes) // 2, 32 << 20),
                         48 << 20))

    def build_in_specs(single_buffer):
        specs = [pl.BlockSpec((d_in, tile_n), lambda i: (0, i))]
        for p in kparams:
            if single_buffer:
                # Grid-invariant weight/bias block: DMA'd once; single-buffer so
                # it doesn't hold 2x VMEM at the 512-wide IDR config.
                specs.append(pl.BlockSpec(p.shape, lambda i: (0, 0),
                                          pipeline_mode=pl.Buffered(1)))
            else:
                specs.append(pl.BlockSpec(p.shape, lambda i: (0, 0)))
        return specs

    out_spec = pl.BlockSpec((out_dim, tile_n), lambda i: (0, i))

    def run(single_buffer):
        return pl.pallas_call(
            kernel,
            out_shape=jax.ShapeDtypeStruct((out_dim, n_pad), jnp.float32),
            grid_spec=pltpu.PrefetchScalarGridSpec(
                num_scalar_prefetch=0,
                grid=grid,
                in_specs=build_in_specs(single_buffer),
                out_specs=out_spec,
            ),
            compiler_params=pltpu.CompilerParams(
                dimension_semantics=("parallel",),
                vmem_limit_bytes=vmem_limit,
            ),
        )(x_t, *kparams)

    if not single_buffer_weights:
        return run(False)
    try:
        return run(True)
    except Exception:
        # pl.Buffered(1) on a top-level pallas_call BlockSpec is not accepted by
        # every JAX/Mosaic version; fall back to default double-buffered weights
        # (correctness identical, costs ~weight-size extra VMEM).
        return run(False)


def implicit_network_forward(x, kparams, dims_full, skip_in, *, tile_n=8192,
                             act_dtype=None, single_buffer_weights=True):
    """x: (N, d_in) f32  ->  (N, d_out + feature_vector_size) f32.

    TODO(synk): the pad/transpose on the way in and the [:, :N].T on the way out
    are wrapper-side XLA ops; callers that can supply/consume the
    (features, points) layout should call implicit_network_forward_t directly
    to avoid those extra HBM round trips.
    """
    N, d_in = x.shape
    assert d_in == dims_full[0]
    t, n_pad = select_tiling(N, dims_full, tile_n=tile_n)
    # single fused pad+transpose into the lane-dense (d_in, n_pad) layout
    x_t = jnp.pad(x.astype(jnp.float32), ((0, n_pad - N), (0, 0))).T
    out_t = implicit_network_forward_t(
        x_t, kparams, dims_full, skip_in, t,
        act_dtype=act_dtype, single_buffer_weights=single_buffer_weights)
    return out_t[:, :N].T  # back to (N, out_dim)


# ----------------------------------------------------------------------------
# Pure-JAX reference (PyTorch math: scale applied after the dots; same per-layer
# operand dtypes as the kernel).
# ----------------------------------------------------------------------------
def reference_forward(x, layers, dims_full, skip_in, *, act_dtype=None,
                      compute_dtype=jnp.bfloat16):
    if act_dtype is None:
        act_dtype = _default_act_dtype()
    n_layers = len(dims_full) - 1
    xin = x.astype(jnp.float32).T
    h = xin
    for l in range(n_layers):
        lp = layers[l]
        wdt = jnp.float32 if (l == 0 or l == n_layers - 1) else compute_dtype
        if l in skip_in:
            wm, ws, b = lp
            h = (jnp.dot(wm.astype(wdt), h.astype(wdt),
                         preferred_element_type=jnp.float32)
                 + jnp.dot(ws.astype(wdt), xin.astype(wdt),
                           preferred_element_type=jnp.float32)) * _INV_SQRT2 + b
        else:
            w, b = lp
            h = jnp.dot(w.astype(wdt), h.astype(wdt),
                        preferred_element_type=jnp.float32) + b
        if l < n_layers - 1:
            h = _softplus_beta100(h.astype(act_dtype))
    return h.astype(jnp.float32).T


# ----------------------------------------------------------------------------
if __name__ == "__main__":
    # Small config consistent with the module:
    #   feature_vector_size=4, d_in=3, d_out=1, dims=[32, 32], skip_in=(1,)
    feature_vector_size = 4
    d_in, d_out = 3, 1
    dims = [32, 32]
    skip_in = (1,)
    N = 4099  # not a multiple of 128 -> exercises padding and a 2-step grid

    key = jax.random.PRNGKey(0)
    key, pkey, xkey = jax.random.split(key, 3)

    layers, dims_full = init_implicit_network(
        pkey, feature_vector_size, d_in, d_out, dims, bias=1.0, skip_in=skip_in)
    kparams = prepare_params(layers)   # one-time cast + 1/sqrt(2) fold

    x = jax.random.normal(xkey, (N, d_in), jnp.float32)

    out = implicit_network_forward(x, kparams, dims_full, skip_in)
    out = jax.block_until_ready(out)
    assert out.shape == (N, d_out + feature_vector_size)

    ref = reference_forward(x, layers, dims_full, skip_in)
    np.testing.assert_allclose(np.asarray(out), np.asarray(ref),
                               rtol=2e-2, atol=2e-2)

    print("KERNEL_OK")
</pallas_src>

<mosaic_0001>
module attributes {stable_mosaic.version = 11 : i64} {
  func.func @kernel(%arg0: i32, %arg1: memref<3x2176xf32, #tpu.memory_space<vmem>>, %arg2: memref<29x3xf32, #tpu.memory_space<vmem>>, %arg3: memref<29x1xf32, #tpu.memory_space<vmem>>, %arg4: memref<32x29xbf16, #tpu.memory_space<vmem>>, %arg5: memref<32x3xbf16, #tpu.memory_space<vmem>>, %arg6: memref<32x1xf32, #tpu.memory_space<vmem>>, %arg7: memref<5x32xf32, #tpu.memory_space<vmem>>, %arg8: memref<5x1xf32, #tpu.memory_space<vmem>>, %arg9: memref<5x2176xf32, #tpu.memory_space<vmem>>) attributes {dimension_semantics = [#tpu.dimension_semantics<parallel>], iteration_bounds = array<i64: 2>, scalar_prefetch = 0 : i64, scratch_operands = 0 : i64, tpu.core_type = #tpu.core_type<tc>, window_params = [{transform_indices = @transform_0, window_bounds = array<i64: 3, 2176>}, {pipeline_mode = #tpu.pipeline_mode<synchronous>, transform_indices = @transform_1, window_bounds = array<i64: 29, 3>}, {pipeline_mode = #tpu.pipeline_mode<synchronous>, transform_indices = @transform_2, window_bounds = array<i64: 29, 1>}, {pipeline_mode = #tpu.pipeline_mode<synchronous>, transform_indices = @transform_3, window_bounds = array<i64: 32, 29>}, {pipeline_mode = #tpu.pipeline_mode<synchronous>, transform_indices = @transform_4, window_bounds = array<i64: 32, 3>}, {pipeline_mode = #tpu.pipeline_mode<synchronous>, transform_indices = @transform_5, window_bounds = array<i64: 32, 1>}, {pipeline_mode = #tpu.pipeline_mode<synchronous>, transform_indices = @transform_6, window_bounds = array<i64: 5, 32>}, {pipeline_mode = #tpu.pipeline_mode<synchronous>, transform_indices = @transform_7, window_bounds = array<i64: 5, 1>}, {transform_indices = @transform_8, window_bounds = array<i64: 5, 2176>}]} {
    %c0 = arith.constant 0 : index
    %c0_0 = arith.constant 0 : index
    %0 = vector.load %arg1[%c0, %c0_0] : memref<3x2176xf32, #tpu.memory_space<vmem>>, vector<3x2176xf32>
    %c0_1 = arith.constant 0 : index
    %c0_2 = arith.constant 0 : index
    %1 = vector.load %arg2[%c0_1, %c0_2] : memref<29x3xf32, #tpu.memory_space<vmem>>, vector<29x3xf32>
    %c0_3 = arith.constant 0 : index
    %c0_4 = arith.constant 0 : index
    %2 = vector.load %arg3[%c0_3, %c0_4] : memref<29x1xf32, #tpu.memory_space<vmem>>, vector<29x1xf32>
    %cst = arith.constant dense<0.000000e+00> : vector<29x2176xf32>
    %3 = tpu.matmul %1, %0, %cst {dimension_numbers = #tpu.dot_dimension_numbers<[1], [0], [0], [1], [0, 0, 1, 1], [], []>} : vector<29x3xf32>, vector<3x2176xf32>, vector<29x2176xf32> -> vector<29x2176xf32>
    %4 = vector.broadcast %2 : vector<29x1xf32> to vector<29x2176xf32>
    %5 = arith.addf %3, %4 : vector<29x2176xf32>
    %cst_5 = arith.constant 1.000000e+02 : f32
    %6 = vector.broadcast %cst_5 : f32 to vector<29x2176xf32>
    %7 = arith.mulf %5, %6 : vector<29x2176xf32>
    %cst_6 = arith.constant 2.000000e+01 : f32
    %8 = vector.broadcast %cst_6 : f32 to vector<29x2176xf32>
    %9 = arith.minimumf %7, %8 : vector<29x2176xf32>
    %10 = math.exp %9 : vector<29x2176xf32>
    %11 = math.log1p %10 : vector<29x2176xf32>
    %cst_7 = arith.constant 0.00999999977 : f32
    %12 = vector.broadcast %cst_7 : f32 to vector<29x2176xf32>
    %13 = arith.mulf %11, %12 : vector<29x2176xf32>
    %cst_8 = arith.constant 2.000000e+01 : f32
    %14 = vector.broadcast %cst_8 : f32 to vector<29x2176xf32>
    %15 = arith.cmpf ogt, %7, %14 : vector<29x2176xf32>
    %16 = arith.select %15, %5, %13 : vector<29x2176xi1>, vector<29x2176xf32>
    %c0_9 = arith.constant 0 : index
    %c0_10 = arith.constant 0 : index
    %17 = vector.load %arg4[%c0_9, %c0_10] : memref<32x29xbf16, #tpu.memory_space<vmem>>, vector<32x29xbf16>
    %c0_11 = arith.constant 0 : index
    %c0_12 = arith.constant 0 : index
    %18 = vector.load %arg5[%c0_11, %c0_12] : memref<32x3xbf16, #tpu.memory_space<vmem>>, vector<32x3xbf16>
    %c0_13 = arith.constant 0 : index
    %c0_14 = arith.constant 0 : index
    %19 = vector.load %arg6[%c0_13, %c0_14] : memref<32x1xf32, #tpu.memory_space<vmem>>, vector<32x1xf32>
    %20 = arith.truncf %16 : vector<29x2176xf32> to vector<29x2176xbf16>
    %cst_15 = arith.constant dense<0.000000e+00> : vector<32x2176xf32>
    %21 = tpu.matmul %17, %20, %cst_15 {dimension_numbers = #tpu.dot_dimension_numbers<[1], [0], [0], [1], [0, 0, 1, 1], [], []>} : vector<32x29xbf16>, vector<29x2176xbf16>, vector<32x2176xf32> -> vector<32x2176xf32>
    %22 = arith.truncf %0 : vector<3x2176xf32> to vector<3x2176xbf16>
    %cst_16 = arith.constant dense<0.000000e+00> : vector<32x2176xf32>
    %23 = tpu.matmul %18, %22, %cst_16 {dimension_numbers = #tpu.dot_dimension_numbers<[1], [0], [0], [1], [0, 0, 1, 1], [], []>} : vector<32x3xbf16>, vector<3x2176xbf16>, vector<32x2176xf32> -> vector<32x2176xf32>
    %24 = arith.addf %21, %23 : vector<32x2176xf32>
    %25 = vector.broadcast %19 : vector<32x1xf32> to vector<32x2176xf32>
    %26 = arith.addf %24, %25 : vector<32x2176xf32>
    %cst_17 = arith.constant 1.000000e+02 : f32
    %27 = vector.broadcast %cst_17 : f32 to vector<32x2176xf32>
    %28 = arith.mulf %26, %27 : vector<32x2176xf32>
    %cst_18 = arith.constant 2.000000e+01 : f32
    %29 = vector.broadcast %cst_18 : f32 to vector<32x2176xf32>
    %30 = arith.minimumf %28, %29 : vector<32x2176xf32>
    %31 = math.exp %30 : vector<32x2176xf32>
    %32 = math.log1p %31 : vector<32x2176xf32>
    %cst_19 = arith.constant 0.00999999977 : f32
    %33 = vector.broadcast %cst_19 : f32 to vector<32x2176xf32>
    %34 = arith.mulf %32, %33 : vector<32x2176xf32>
    %cst_20 = arith.constant 2.000000e+01 : f32
    %35 = vector.broadcast %cst_20 : f32 to vector<32x2176xf32>
    %36 = arith.cmpf ogt, %28, %35 : vector<32x2176xf32>
    %37 = arith.select %36, %26, %34 : vector<32x2176xi1>, vector<32x2176xf32>
    %c0_21 = arith.constant 0 : index
    %c0_22 = arith.constant 0 : index
    %38 = vector.load %arg7[%c0_21, %c0_22] : memref<5x32xf32, #tpu.memory_space<vmem>>, vector<5x32xf32>
    %c0_23 = arith.constant 0 : index
    %c0_24 = arith.constant 0 : index
    %39 = vector.load %arg8[%c0_23, %c0_24] : memref<5x1xf32, #tpu.memory_space<vmem>>, vector<5x1xf32>
    %cst_25 = arith.constant dense<0.000000e+00> : vector<5x2176xf32>
    %40 = tpu.matmul %38, %37, %cst_25 {dimension_numbers = #tpu.dot_dimension_numbers<[1], [0], [0], [1], [0, 0, 1, 1], [], []>} : vector<5x32xf32>, vector<32x2176xf32>, vector<5x2176xf32> -> vector<5x2176xf32>
    %41 = vector.broadcast %39 : vector<5x1xf32> to vector<5x2176xf32>
    %42 = arith.addf %40, %41 : vector<5x2176xf32>
    %c0_26 = arith.constant 0 : index
    %c0_27 = arith.constant 0 : index
    %43 = vector.load %arg9[%c0_26, %c0_27] : memref<5x2176xf32, #tpu.memory_space<vmem>>, vector<5x2176xf32>
    tpu.vector_store %arg9[%c0_26, %c0_27], %42 {strides = array<i32>} : memref<5x2176xf32, #tpu.memory_space<vmem>>, vector<5x2176xf32>,
    return
  }
  func.func @transform_0(%arg0: i32) -> (i32, i32) {
    %c0_i32 = arith.constant 0 : i32
    %c0_i32_0 = arith.constant 0 : i32
    return %c0_i32, %arg0 : i32, i32
  }
  func.func @transform_1(%arg0: i32) -> (i32, i32) {
    %c0_i32 = arith.constant 0 : i32
    %c0_i32_0 = arith.constant 0 : i32
    %c0_i32_1 = arith.constant 0 : i32
    return %c0_i32, %c0_i32_0 : i32, i32
  }
  func.func @transform_2(%arg0: i32) -> (i32, i32) {
    %c0_i32 = arith.constant 0 : i32
    %c0_i32_0 = arith.constant 0 : i32
    %c0_i32_1 = arith.constant 0 : i32
    return %c0_i32, %c0_i32_0 : i32, i32
  }
  func.func @transform_3(%arg0: i32) -> (i32, i32) {
    %c0_i32 = arith.constant 0 : i32
    %c0_i32_0 = arith.constant 0 : i32
    %c0_i32_1 = arith.constant 0 : i32
    return %c0_i32, %c0_i32_0 : i32, i32
  }
  func.func @transform_4(%arg0: i32) -> (i32, i32) {
    %c0_i32 = arith.constant 0 : i32
    %c0_i32_0 = arith.constant 0 : i32
    %c0_i32_1 = arith.constant 0 : i32
    return %c0_i32, %c0_i32_0 : i32, i32
  }
  func.func @transform_5(%arg0: i32) -> (i32, i32) {
    %c0_i32 = arith.constant 0 : i32
    %c0_i32_0 = arith.constant 0 : i32
    %c0_i32_1 = arith.constant 0 : i32
    return %c0_i32, %c0_i32_0 : i32, i32
  }
  func.func @transform_6(%arg0: i32) -> (i32, i32) {
    %c0_i32 = arith.constant 0 : i32
    %c0_i32_0 = arith.constant 0 : i32
    %c0_i32_1 = arith.constant 0 : i32
    return %c0_i32, %c0_i32_0 : i32, i32
  }
  func.func @transform_7(%arg0: i32) -> (i32, i32) {
    %c0_i32 = arith.constant 0 : i32
    %c0_i32_0 = arith.constant 0 : i32
    %c0_i32_1 = arith.constant 0 : i32
    return %c0_i32, %c0_i32_0 : i32, i32
  }
  func.func @transform_8(%arg0: i32) -> (i32, i32) {
    %c0_i32 = arith.constant 0 : i32
    %c0_i32_0 = arith.constant 0 : i32
    return %c0_i32, %arg0 : i32, i32
  }
}

module attributes {stable_mosaic.version = 11 : i64} {
  func.func @kernel(%arg0: i32, %arg1: memref<3x2176xf32, #tpu.memory_space<vmem>>, %arg2: memref<29x3xf32, #tpu.memory_space<vmem>>, %arg3: memref<29x1xf32, #tpu.memory_space<vmem>>, %arg4: memref<32x29xbf16, #tpu.memory_space<vmem>>, %arg5: memref<32x3xbf16, #tpu.memory_space<vmem>>, %arg6: memref<32x1xf32, #tpu.memory_space<vmem>>, %arg7: memref<5x32xf32, #tpu.memory_space<vmem>>, %arg8: memref<5x1xf32, #tpu.memory_space<vmem>>, %arg9: memref<5x2176xf32, #tpu.memory_space<vmem>>) attributes {dimension_semantics = [#tpu.dimension_semantics<parallel>], iteration_bounds = array<i64: 2>, scalar_prefetch = 0 : i64, scratch_operands = 0 : i64, tpu.core_type = #tpu.core_type<tc>, window_params = [{transform_indices = @transform_0, window_bounds = array<i64: 3, 2176>}, {pipeline_mode = #tpu.pipeline_mode<synchronous>, transform_indices = @transform_1, window_bounds = array<i64: 29, 3>}, {pipeline_mode = #tpu.pipeline_mode<synchronous>, transform_indices = @transform_2, window_bounds = array<i64: 29, 1>}, {pipeline_mode = #tpu.pipeline_mode<synchronous>, transform_indices = @transform_3, window_bounds = array<i64: 32, 29>}, {pipeline_mode = #tpu.pipeline_mode<synchronous>, transform_indices = @transform_4, window_bounds = array<i64: 32, 3>}, {pipeline_mode = #tpu.pipeline_mode<synchronous>, transform_indices = @transform_5, window_bounds = array<i64: 32, 1>}, {pipeline_mode = #tpu.pipeline_mode<synchronous>, transform_indices = @transform_6, window_bounds = array<i64: 5, 32>}, {pipeline_mode = #tpu.pipeline_mode<synchronous>, transform_indices = @transform_7, window_bounds = array<i64: 5, 1>}, {transform_indices = @transform_8, window_bounds = array<i64: 5, 2176>}]} {
    %c0 = arith.constant 0 : index
    %c0_0 = arith.constant 0 : index
    %0 = vector.load %arg1[%c0, %c0_0] : memref<3x2176xf32, #tpu.memory_space<vmem>>, vector<3x2176xf32>
    %c0_1 = arith.constant 0 : index
    %c0_2 = arith.constant 0 : index
    %1 = vector.load %arg2[%c0_1, %c0_2] : memref<29x3xf32, #tpu.memory_space<vmem>>, vector<29x3xf32>
    %c0_3 = arith.constant 0 : index
    %c0_4 = arith.constant 0 : index
    %2 = vector.load %arg3[%c0_3, %c0_4] : memref<29x1xf32, #tpu.memory_space<vmem>>, vector<29x1xf32>
    %cst = arith.constant dense<0.000000e+00> : vector<29x2176xf32>
    %3 = tpu.matmul %1, %0, %cst {dimension_numbers = #tpu.dot_dimension_numbers<[1], [0], [0], [1], [0, 0, 1, 1], [], []>} : vector<29x3xf32>, vector<3x2176xf32>, vector<29x2176xf32> -> vector<29x2176xf32>
    %4 = vector.broadcast %2 : vector<29x1xf32> to vector<29x2176xf32>
    %5 = arith.addf %3, %4 : vector<29x2176xf32>
    %cst_5 = arith.constant 1.000000e+02 : f32
    %6 = vector.broadcast %cst_5 : f32 to vector<29x2176xf32>
    %7 = arith.mulf %5, %6 : vector<29x2176xf32>
    %cst_6 = arith.constant 2.000000e+01 : f32
    %8 = vector.broadcast %cst_6 : f32 to vector<29x2176xf32>
    %9 = arith.minimumf %7, %8 : vector<29x2176xf32>
    %10 = math.exp %9 : vector<29x2176xf32>
    %11 = math.log1p %10 : vector<29x2176xf32>
    %cst_7 = arith.constant 0.00999999977 : f32
    %12 = vector.broadcast %cst_7 : f32 to vector<29x2176xf32>
    %13 = arith.mulf %11, %12 : vector<29x2176xf32>
    %cst_8 = arith.constant 2.000000e+01 : f32
    %14 = vector.broadcast %cst_8 : f32 to vector<29x2176xf32>
    %15 = arith.cmpf ogt, %7, %14 : vector<29x2176xf32>
    %16 = arith.select %15, %5, %13 : vector<29x2176xi1>, vector<29x2176xf32>
    %c0_9 = arith.constant 0 : index
    %c0_10 = arith.constant 0 : index
    %17 = vector.load %arg4[%c0_9, %c0_10] : memref<32x29xbf16, #tpu.memory_space<vmem>>, vector<32x29xbf16>
    %c0_11 = arith.constant 0 : index
    %c0_12 = arith.constant 0 : index
    %18 = vector.load %arg5[%c0_11, %c0_12] : memref<32x3xbf16, #tpu.memory_space<vmem>>, vector<32x3xbf16>
    %c0_13 = arith.constant 0 : index
    %c0_14 = arith.constant 0 : index
    %19 = vector.load %arg6[%c0_13, %c0_14] : memref<32x1xf32, #tpu.memory_space<vmem>>, vector<32x1xf32>
    %20 = arith.truncf %16 : vector<29x2176xf32> to vector<29x2176xbf16>
    %cst_15 = arith.constant dense<0.000000e+00> : vector<32x2176xf32>
    %21 = tpu.matmul %17, %20, %cst_15 {dimension_numbers = #tpu.dot_dimension_numbers<[1], [0], [0], [1], [0, 0, 1, 1], [], []>} : vector<32x29xbf16>, vector<29x2176xbf16>, vector<32x2176xf32> -> vector<32x2176xf32>
    %22 = arith.truncf %0 : vector<3x2176xf32> to vector<3x2176xbf16>
    %cst_16 = arith.constant dense<0.000000e+00> : vector<32x2176xf32>
    %23 = tpu.matmul %18, %22, %cst_16 {dimension_numbers = #tpu.dot_dimension_numbers<[1], [0], [0], [1], [0, 0, 1, 1], [], []>} : vector<32x3xbf16>, vector<3x2176xbf16>, vector<32x2176xf32> -> vector<32x2176xf32>
    %24 = arith.addf %21, %23 : vector<32x2176xf32>
    %25 = vector.broadcast %19 : vector<32x1xf32> to vector<32x2176xf32>
    %26 = arith.addf %24, %25 : vector<32x2176xf32>
    %cst_17 = arith.constant 1.000000e+02 : f32
    %27 = vector.broadcast %cst_17 : f32 to vector<32x2176xf32>
    %28 = arith.mulf %26, %27 : vector<32x2176xf32>
    %cst_18 = arith.constant 2.000000e+01 : f32
    %29 = vector.broadcast %cst_18 : f32 to vector<32x2176xf32>
    %30 = arith.minimumf %28, %29 : vector<32x2176xf32>
    %31 = math.exp %30 : vector<32x2176xf32>
    %32 = math.log1p %31 : vector<32x2176xf32>
    %cst_19 = arith.constant 0.00999999977 : f32
    %33 = vector.broadcast %cst_19 : f32 to vector<32x2176xf32>
    %34 = arith.mulf %32, %33 : vector<32x2176xf32>
    %cst_20 = arith.constant 2.000000e+01 : f32
    %35 = vector.broadcast %cst_20 : f32 to vector<32x2176xf32>
    %36 = arith.cmpf ogt, %28, %35 : vector<32x2176xf32>
    %37 = arith.select %36, %26, %34 : vector<32x2176xi1>, vector<32x2176xf32>
    %c0_21 = arith.constant 0 : index
    %c0_22 = arith.constant 0 : index
    %38 = vector.load %arg7[%c0_21, %c0_22] : memref<5x32xf32, #tpu.memory_space<vmem>>, vector<5x32xf32>
    %c0_23 = arith.constant 0 : index
    %c0_24 = arith.constant 0 : index
    %39 = vector.load %arg8[%c0_23, %c0_24] : memref<5x1xf32, #tpu.memory_space<vmem>>, vector<5x1xf32>
    %cst_25 = arith.constant dense<0.000000e+00> : vector<5x2176xf32>
    %40 = tpu.matmul %38, %37, %cst_25 {dimension_numbers = #tpu.dot_dimension_numbers<[1], [0], [0], [1], [0, 0, 1, 1], [], []>} : vector<5x32xf32>, vector<32x2176xf32>, vector<5x2176xf32> -> vector<5x2176xf32>
    %41 = vector.broadcast %39 : vector<5x1xf32> to vector<5x2176xf32>
    %42 = arith.addf %40, %41 : vector<5x2176xf32>
    %c0_26 = arith.constant 0 : index
    %c0_27 = arith.constant 0 : index
    %43 = vector.load %arg9[%c0_26, %c0_27] : memref<5x2176xf32, #tpu.memory_space<vmem>>, vector<5x2176xf32>
    tpu.vector_store %arg9[%c0_26, %c0_27], %42 {strides = array<i32>} : memref<5x2176xf32, #tpu.memory_space<vmem>>, vector<5x2176xf32>,
    return
  }
  func.func @transform_0(%arg0: i32) -> (i32, i32) {
    %c0_i32 = arith.constant 0 : i32
    %c0_i32_0 = arith.constant 0 : i32
    return %c0_i32, %arg0 : i32, i32
  }
  func.func @transform_1(%arg0: i32) -> (i32, i32) {
    %c0_i32 = arith.constant 0 : i32
    %c0_i32_0 = arith.constant 0 : i32
    %c0_i32_1 = arith.constant 0 : i32
    return %c0_i32, %c0_i32_0 : i32, i32
  }
  func.func @transform_2(%arg0: i32) -> (i32, i32) {
    %c0_i32 = arith.constant 0 : i32
    %c0_i32_0 = arith.constant 0 : i32
    %c0_i32_1 = arith.constant 0 : i32
    return %c0_i32, %c0_i32_0 : i32, i32
  }
  func.func @transform_3(%arg0: i32) -> (i32, i32) {
    %c0_i32 = arith.constant 0 : i32
    %c0_i32_0 = arith.constant 0 : i32
    %c0_i32_1 = arith.constant 0 : i32
    return %c0_i32, %c0_i32_0 : i32, i32
  }
  func.func @transform_4(%arg0: i32) -> (i32, i32) {
    %c0_i32 = arith.constant 0 : i32
    %c0_i32_0 = arith.constant 0 : i32
    %c0_i32_1 = arith.constant 0 : i32
    return %c0_i32, %c0_i32_0 : i32, i32
  }
  func.func @transform_5(%arg0: i32) -> (i32, i32) {
    %c0_i32 = arith.constant 0 : i32
    %c0_i32_0 = arith.constant 0 : i32
    %c0_i32_1 = arith.constant 0 : i32
    return %c0_i32, %c0_i32_0 : i32, i32
  }
  func.func @transform_6(%arg0: i32) -> (i32, i32) {
    %c0_i32 = arith.constant 0 : i32
    %c0_i32_0 = arith.constant 0 : i32
    %c0_i32_1 = arith.constant 0 : i32
    return %c0_i32, %c0_i32_0 : i32, i32
  }
  func.func @transform_7(%arg0: i32) -> (i32, i32) {
    %c0_i32 = arith.constant 0 : i32
    %c0_i32_0 = arith.constant 0 : i32
    %c0_i32_1 = arith.constant 0 : i32
    return %c0_i32, %c0_i32_0 : i32, i32
  }
  func.func @transform_8(%arg0: i32) -> (i32, i32) {
    %c0_i32 = arith.constant 0 : i32
    %c0_i32_0 = arith.constant 0 : i32
    return %c0_i32, %arg0 : i32, i32
  }
}

</mosaic_0001>

<bundles_post_ra>
// kernel: tpu_custom_call.1
= control target key start
LH: loop header
LB: loop body
LE: loop exit
PB: predicated region body
PF: predicated region fallthrough
CT: control target
= control target key end

     0   :  { %13 = vsyncpa [#allocation3], 0  ;;  %s10771_s0 = inlined_call_operand.hbm [shape: f32[3,4352], index: 0, kind: input, shape index: {}]   ;;  %s10772_s1 = inlined_call_operand.vmem [shape: f32[29,3], index: 1, kind: input, shape index: {}]   ;;  %s10773_s2 = inlined_call_operand.vmem [shape: f32[29,1], index: 2, kind: input, shape index: {}]   ;;  %s10774_s3 = inlined_call_operand.vmem [shape: bf16[32,29], index: 3, kind: input, shape index: {}]   ;;  %s10775_s4 = inlined_call_operand.vmem [shape: bf16[32,3], index: 4, kind: input, shape index: {}]   ;;  %s10776_s5 = inlined_call_operand.vmem [shape: f32[32,1], index: 5, kind: input, shape index: {}]   ;;  %s10777_s6 = inlined_call_operand.vmem [shape: f32[5,32], index: 6, kind: input, shape index: {}]   ;;  %s10778_s7 = inlined_call_operand.vmem [shape: f32[5,1], index: 7, kind: input, shape index: {}]   ;;  %s10779_s8 = inlined_call_operand.hbm [shape: f32[5,4352], index: 8, kind: output, shape index: {}]  }
   0x1   :  { %15 = vsyncpa [#allocation3 + $0x1], 0 }
   0x2   :  { %16 = vsyncpa [#allocation4], 0 }
   0x3   :  { %18 = vsyncpa [#allocation4 + $0x1], 0  ;;  %s6465_s27 = smov 0   ;;  %s6467_s28 = smov 0  }
   0x4   :  { %s6469_s29 = smov 0   ;;  %s6471_s30 = smov 0  }
   0x5 LB: > { %s6486_s9 = sadd.s32 4294967295, %s6411_s30   ;;  %s5399_s10 = sadd.s32 4294967294, %s6411_s30   ;;  %s6411_s30 = sphi %s6471_s30, %s11805_s30   ;;  %s6407_s29 = sphi %s6469_s29, %s11804_s29   ;;  %s6403_s28 = sphi %s6467_s28, %s11803_s28   ;;  %s6399_s27 = sphi %s6465_s27, %s11802_s27  }
   0x6   : > { %s6490_s11 = sadd.s32 1, %s6411_s30   ;;  %s31_s12 = sadd.s32 1, %s6407_s29 }
   0x7   : > { %s28_s13 = ssub.s32 %s6411_s30, %s6490_s11  ;;  %p38_p0 = scmp.ne.s32.totalorder %s6407_s29, %s6403_s28 }
   0x8   : > { %p29_p1 = scmp.eq.s32.totalorder %s28_s13, 0  ;;  %p39_p2 = scmp.eq.s32.totalorder %s6411_s30, 0 }
   0x9   : > { %p44_p3 = scmp.ne.s32.totalorder %s6403_s28, %s6399_s27  ;;  %p45_p4 = scmp.eq.s32.totalorder %s6486_s9, 0 }
   0xa   : > { %s6502_s14 = scalar_select %p29_p1, %s6407_s29, %s31_s12  }
   0xb   : > { %p40_p5 = por %p39_p2, %p38_p0  ;;  %p6504_p6 = por %p45_p4, %p44_p3 }
   0xc   : > { %11029 = sst [smem:[#allocation8_spill]] %s6502_s14  ;;  %p215_p7 = scmp.eq.s32.totalorder %s6486_s9, 1 }
   0xd   : > { %p221_p8 = scmp.eq.s32.totalorder %s5399_s10, 1  ;;  %p5714_p10 = scmp.lt.s32.totalorder %s6411_s30, 2 }
   0xe   : > { %p6511_p11 = por %p215_p7, %p38_p0  ;;  %s262_s18 = sand.u32 1, %s6407_s29  }
   0xf   : > { %p6515_p12 = por %p221_p8, %p44_p3  ;;  %s5509_s19 = smul.u32 1088, %s6411_s30 }
  0x10   : > { %s11031_s16 = scalar_select %p6511_p11, 1, 0 }
  0x11   : > { %s11032_s17 = scalar_select %p6515_p12, 1, 0 }
  0x12   : > { %s5699_s20 = smul.u32 68, %s262_s18  ;;  %s6524_s23 = scalar_lea.hbm %s10771_s0, %s5509_s19 }
  0x13   : > { %p6526_p13 = pnand %p5714_p10, %p40_p5  ;;  %s263_s10 = scalar_lea.sflag [#allocation3], %s262_s18 }
  0x14   : > { %s266_s25 = scalar_lea.vmem [#allocation2], %s5699_s20  ;;  %s6315_s12 = scalar_lea.hbm %s6524_s23, 1088 }
  0x15   : > { %s274_s26 = sshll.u32 %s266_s25, 4  ;;  %p6316_p2 = scmp.ne.s32.totalorder %s6524_s23, %s6315_s12  ;;  %s6531_s26 = int_to_ptr.vmem [resolvable:$true] %s274_s26 }
  0x16   : > { %p6317_p3 = pneg %p6526_p13  ;;  %s6320_s21 = scalar_lea.hbm %s10771_s0, 2176 }
  0x17   : > { %p6321_p7 = scmp.lt.u32.totalorder %s6524_s23, %s10771_s0  ;;  %p6322_p8 = scmp.lt.u32.totalorder %s6320_s21, %s6315_s12 }
  0x18   : > { %p6318_p4 = pnand %p6317_p3, %p6316_p2  ;;  %p6324_p9 = scmp.lt.u32.totalorder %s6315_s12, %s6524_s23 }
  0x19   : > { %p6323_p10 = por %p6322_p8, %p6321_p7 }
  0x1a   : > { %p6319_p5 = pneg %p6318_p4 }
  0x1b   : > { %p6325_p0 = por %p6324_p9, %p6323_p10 }
  0x1d   : > { %p6326_p1 = pnand %p6325_p0, %p6319_p5 }
  0x1f   : > { %6329 = shalt.err (!%p6326_p1)
}
  0x20   : > { %s6330_s18 = scalar_lea.vmem %s6531_s26, 1088  ;;  %s6413_s20 = smov [#allocation2]  }
  0x21   : > { %p6331_p2 = scmp.ne.s32.totalorder %s6531_s26, %s6330_s18  ;;  %s6335_s25 = sshll.u32 %s6413_s20, 4  ;;  %s6336_s25 = int_to_ptr.vmem [resolvable:$false] %s6335_s25 }
  0x22   : > { %s6337_s14 = scalar_lea.vmem %s6336_s25, 2176  ;;  %p6338_p11 = scmp.lt.s32.totalorder %s6531_s26, %s6336_s25 }
  0x23   : > { %p6333_p4 = pnand %p6331_p2, %p6317_p3  ;;  %p6339_p7 = scmp.lt.s32.totalorder %s6337_s14, %s6330_s18 }
  0x25   : > { %p6334_p12 = pneg %p6333_p4  ;;  %p6340_p8 = por %p6339_p7, %p6338_p11 }
  0x27   : > { %p6341_p9 = pnand %p6340_p8, %p6334_p12 }
  0x29   : > { %6344 = shalt.err (!%p6341_p9)
}
  0x2a   : > { %5709 = dma.hbm_to_vmem [thread:$0]  (!%p6526_p13), %s6524_s23, 1088, %s6531_s26, %s263_s10  }
  0x2b   : > { %p11034_p0 = scmp.lt.s32.totalorder %s6411_s30, 3  ;;  %p11035_p1 = scmp.ge.s32.totalorder %s6411_s30, 1 }
  0x2d   : > { %p280_p3 = pnand %p11035_p1, %p11034_p0 }
  0x2f   : > { %283 = sbr.rel (%p280_p3) target bundleno = 1272 (0x4f8), region = 52 }
  0x36   : > { %s6564_s12 = sand.u32 1, %s6403_s28  }
  0x37   : > { %s5700_s13 = smul.u32 68, %s6564_s12  ;;  %s286_s19 = scalar_lea.sflag [#allocation3], %s6564_s12 }
  0x39   : > { %s6568_s21 = scalar_lea.vmem [#allocation2], %s5700_s13 }
  0x3a   : > { %6390 = dma.done.wait (%p6504_p6), %s286_s19, 1088  }
  0x3b   : > { %6392 = vsyncadd (%p6504_p6), %s286_s19, 4294966208  ;;  %v10781_v0 = vmov 0.0   ;;  %v10784_v1 = vmov 0   ;;  %v6579_v2 = vld [vmem:[%s6568_s21] sm:$0x77]  ;;  %vm392_vm0 = vcmask 1042432  }
  0x3c   : > { %491 = vmatprep.mubr.f32.mxu0 %v10781_v0  ;;  %580 = vmatprep.mubr.f32.mxu1 %v10781_v0  ;;  %v6582_v3 = vld [vmem:[%s6568_s21 + $0x8] sm:$0x77]  ;;  %v6586_v4 = vcombine.high %v6579_v2, %v6579_v2  ;;  %v6593_v6 = vld [vmem:[%s6568_s21 + $0x10] sm:$0x77]  ;;  %v6598_v7 = vld [vmem:[%s10772_s1] sm:$0xff]  ;;  %vm379_vm1 = vcmask 23552   ;;  %v2366_v37 = vpack.c.bf16 %v6579_v2, %v6579_v2 }
  0x3d   : > { %5753 = vset.pattern.permute.xlu0 %v10784_v1  ;;  %5754 = vset.pattern.permute.xlu1 %v10784_v1  ;;  %v6590_v5 = vcombine.high %v6582_v3, %v6582_v3  ;;  %v6601_v8 = vld [vmem:[%s6568_s21 + $0x18] sm:$0x77]  ;;  %v6609_v9 = vcombine.high %v6593_v6, %v6593_v6  ;;  %v6620_v11 = vld [vmem:[%s6568_s21 + $0x20] sm:$0x77]  ;;  %v6623_v12 = vld [vmem:[%s6568_s21 + $0x28] sm:$0x77]  ;;  %v2368_v43 = vpack.c.bf16 %v6582_v3, %v6582_v3 }
  0x3e   : > { %5404 = vmatprep.subr.msk.mxu0 %vm392_vm0, %v6586_v4  ;;  %v6613_v10 = vcombine.high %v6601_v8, %v6601_v8  ;;  %v6634_v13 = vld [vmem:[%s10772_s1 + $0x8] sm:$0xff]  ;;  %v6642_v14 = vcombine.high %v6620_v11, %v6620_v11  ;;  %v6646_v15 = vcombine.high %v6623_v12, %v6623_v12  ;;  %v338_v16 = vld [vmem:[%s10773_s2] sm:$0xff]  ;;  %v340_v17 = vld [vmem:[%s10773_s2 + $0x10] sm:$0xff]  ;;  %vm2399_vm2 = vcmask 1040384   ;;  %s5701_s22 = smul.u32 136, %s6564_s12  ;;  %p11798_p11 = scmp.ne.s32.totalorder %s11031_s16, 0 }
  0x3f   : > { %5410 = vmatprep.subr.msk.mxu1 %vm392_vm0, %v6590_v5  ;;  %5405 = vmatpush1.msk.msra.mxu0 %vm392_vm0, %v6579_v2  ;;  %v6667_v18 = vld [vmem:[%s10772_s1 + $0x10] sm:$0xff]  ;;  %v339_v19 = vld [vmem:[%s10773_s2 + $0x8] sm:$0xff]  ;;  %v341_v20 = vld [vmem:[%s10773_s2 + $0x18] sm:$0x1f]  ;;  %vm2400_vm3 = vcmask 1041408   ;;  %v10783_v31 = vmov 65535   ;;  %v2367_v33 = vpack.c.bf16 %v6586_v4, %v6586_v4  ;;  %v2369_v38 = vpack.c.bf16 %v6590_v5, %v6590_v5 }
  0x40   : > { %5411 = vmatpush1.msk.msra.mxu1 %vm392_vm0, %v6582_v3  ;;  %5406 = vmatmul.mubr.msk.f32.vlgmr.msra.gmra.mrb[0].mxu0 %vm379_vm1, %v6598_v7  ;;  %v6688_v21 = vld [vmem:[%s10772_s1 + $0x18] sm:$0x1f]  ;;  %v2320_v24 = vld [vmem:[%s10776_s5] sm:$0xff]  ;;  %v2321_v25 = vld [vmem:[%s10776_s5 + $0x8] sm:$0xff]  ;;  %v2401_v32 = vsel %vm2399_vm2, 4294967295, %v10783_v31  ;;  %v2371_v39 = vpack.c.bf16 %v6609_v9, %v6609_v9  ;;  %v2370_v44 = vpack.c.bf16 %v6593_v6, %v6593_v6  ;;  %v2373_v49 = vpack.c.bf16 %v6613_v10, %v6613_v10  ;;  %s5510_s18 = smul.u32 2176, %s6486_s9 }
  0x41   : > { %5412 = vmatmul.mubr.msk.f32.vlgmr.msra.gmra.mrb[0].mxu1 %vm379_vm1, %v6598_v7  ;;  %497 = vmatprep.mubr.f32.mxu0 %v10781_v0  ;;  %v6691_v22 = vld [vmem:[%s6568_s21 + $0x30] sm:$0x77]  ;;  %v332_v23 = vld [vmem:[%s6568_s21 + $0x38] sm:$0x77]  ;;  %v6754_v34 = vsel %vm2400_vm3, %v2401_v32, 0  ;;  %v5764_v48 = vld [vmem:[%s10775_s4 + $0x8] sm:$0xff]   ;;  %v2375_v51 = vpack.c.bf16 %v6642_v14, %v6642_v14  ;;  %v2372_v53 = vpack.c.bf16 %v6601_v8, %v6601_v8  ;;  %v2374_v55 = vpack.c.bf16 %v6620_v11, %v6620_v11 }
  0x42   : > { %586 = vmatprep.mubr.f32.mxu1 %v10781_v0  ;;  %5416 = vmatprep.subr.msk.mxu0 %vm392_vm0, %v6609_v9  ;;  %v6708_v26 = vcombine.high %v6691_v22, %v6691_v22  ;;  %v6710_v27 = vcombine.high %v332_v23, %v332_v23  ;;  %v2322_v28 = vld [vmem:[%s10776_s5 + $0x10] sm:$0xff]  ;;  %v2323_v29 = vld [vmem:[%s10776_s5 + $0x18] sm:$0xff]  ;;  %v4649_v30 = vld [vmem:[%s10778_s7] sm:$0x1f]  ;;  %11036 = vst [vmem:[#allocation9_spill] sm:$0xff] %v6754_v34  ;;  %s10725_s13 = scalar_lea.hbm %s10779_s8, %s5510_s18  ;;  %s5315_s9 = scalar_lea.sflag [#allocation4], %s6564_s12 }
  0x43   : > { %5422 = vmatprep.subr.msk.mxu1 %vm392_vm0, %v6613_v10  ;;  %5417 = vmatpush1.msk.msra.mxu0 %vm392_vm0, %v6593_v6  ;;  %v2407_v35 = vand.u32 %v6754_v34, %v2367_v33  ;;  %v6764_v36 = vld [vmem:[%s6568_s21 + $0x40] sm:$0x7]  ;;  %v2404_v40 = vand.u32 %v6754_v34, %v2366_v37  ;;  %v2413_v41 = vand.u32 %v6754_v34, %v2369_v38  ;;  %s6419_s15 = smov [#allocation5]  }
  0x44   : > { %5423 = vmatpush1.msk.msra.mxu1 %vm392_vm0, %v6601_v8  ;;  %5407 = vmatmul.mubr.msk.f32.gmra.mrb[2].mxu0 %vm379_vm1, %v6634_v13  ;;  %11037 = vst [vmem:[#allocation10_spill] sm:$0xff] %v6764_v36  ;;  %v2419_v42 = vand.u32 %v6754_v34, %v2371_v39  ;;  %v6831_v45 = vld [vmem:[%s10775_s4] sm:$0xff]   ;;  %v2410_v46 = vand.u32 %v6754_v34, %v2368_v43  ;;  %s6349_s23 = sshll.u32 %s6419_s15, 4  ;;  %s6350_s23 = int_to_ptr.vmem [resolvable:$false] %s6349_s23 }
  0x45   : > { %5413 = vmatmul.mubr.msk.f32.gmra.mrb[2].mxu1 %vm379_vm1, %v6634_v13  ;;  %503 = vmatprep.mubr.f32.mxu0 %v10781_v0  ;;  %v2416_v47 = vand.u32 %v6754_v34, %v2370_v44  ;;  %v2425_v50 = vand.u32 %v6754_v34, %v2373_v49  ;;  %v2431_v52 = vand.u32 %v6754_v34, %v2375_v51  ;;  %s6351_s24 = scalar_lea.vmem %s6350_s23, 4352 }
  0x46   : > { %592 = vmatprep.mubr.f32.mxu1 %v10781_v0  ;;  %5428 = vmatprep.subr.msk.mxu0 %vm392_vm0, %v6642_v14  ;;  %v2422_v54 = vand.u32 %v6754_v34, %v2372_v53  ;;  %v2428_v56 = vand.u32 %v6754_v34, %v2374_v55  ;;  %v2377_v57 = vpack.c.bf16 %v6646_v15, %v6646_v15 }
  0x47   : > { %5434 = vmatprep.subr.msk.mxu1 %vm392_vm0, %v6646_v15  ;;  %344 = vperm.xlu0 %5753, %v338_v16   ;;  %v2379_v59 = vpack.c.bf16 %v6708_v26, %v6708_v26  ;;  %v2376_v60 = vpack.c.bf16 %v6623_v12, %v6623_v12  ;;  %v2378_v63 = vpack.c.bf16 %v6691_v22, %v6691_v22 }
  0x48   : > { %354 = vperm.xlu1 %5754, %v340_v17   ;;  %5408 = vmatmul.mubr.msk.f32.gmra.mrb[4].mxu0 %vm379_vm1, %v6667_v18  ;;  %v2437_v58 = vand.u32 %v6754_v34, %v2377_v57  ;;  %v2381_v10 = vpack.c.bf16 %v6710_v27, %v6710_v27 }
  0x49   : > { %5414 = vmatmul.mubr.msk.f32.gmra.mrb[4].mxu1 %vm379_vm1, %v6667_v18  ;;  %509 = vmatprep.mubr.f32.mxu0 %v10781_v0  ;;  %v2443_v61 = vand.u32 %v6754_v34, %v2379_v59  ;;  %v2434_v62 = vand.u32 %v6754_v34, %v2376_v60  ;;  %v2440_v2 = vand.u32 %v6754_v34, %v2378_v63 }
  0x4a   : > { %598 = vmatprep.mubr.f32.mxu1 %v10781_v0 }
  0x4b   : > { %349 = vperm.xlu0 %5753, %v339_v19  }
  0x4c   : > { %359 = vperm.xlu1 %5754, %v341_v20   ;;  %5409 = vmatmul.mubr.msk.f32.gmra.mrb[6].mxu0 %vm379_vm1, %v6688_v21 }
  0x4d   : > { %5415 = vmatmul.mubr.msk.f32.gmra.mrb[6].mxu1 %vm379_vm1, %v6688_v21  ;;  %669 = vmatprep.mubr.f32.mxu0 %v10781_v0 }
  0x4e   : > { %758 = vmatprep.mubr.f32.mxu1 %v10781_v0 }
  0x4f   : > { %3474 = vperm.xlu0 %5753, %v2320_v24  }
  0x50   : > { %3479 = vperm.xlu1 %5754, %v2321_v25   ;;  %5418 = vmatmul.mubr.msk.f32.vlgmr.msra.gmra.mrb[8].mxu0 %vm379_vm1, %v6598_v7 }
  0x51   : > { %5424 = vmatmul.mubr.msk.f32.vlgmr.msra.gmra.mrb[8].mxu1 %vm379_vm1, %v6598_v7  ;;  %675 = vmatprep.mubr.f32.mxu0 %v10781_v0 }
  0x52   : > { %764 = vmatprep.mubr.f32.mxu1 %v10781_v0  ;;  %5429 = vmatpush1.msk.msra.mxu0 %vm392_vm0, %v6620_v11 }
  0x53   : > { %5435 = vmatpush1.msk.msra.mxu1 %vm392_vm0, %v6623_v12  ;;  %5440 = vmatprep.subr.msk.mxu0 %vm392_vm0, %v6708_v26 }
  0x54   : > { %5446 = vmatprep.subr.msk.mxu1 %vm392_vm0, %v6710_v27  ;;  %5419 = vmatmul.mubr.msk.f32.gmra.mrb[10].mxu0 %vm379_vm1, %v6634_v13 }
  0x55   : > { %5425 = vmatmul.mubr.msk.f32.gmra.mrb[10].mxu1 %vm379_vm1, %v6634_v13  ;;  %681 = vmatprep.mubr.f32.mxu0 %v10781_v0 }
  0x56   : > { %770 = vmatprep.mubr.f32.mxu1 %v10781_v0  ;;  %3484 = vperm.xlu0 %5753, %v2322_v28  }
  0x57   : > { %3489 = vperm.xlu1 %5754, %v2323_v29  }
  0x58   : > { %5420 = vmatmul.mubr.msk.f32.gmra.mrb[12].mxu0 %vm379_vm1, %v6667_v18 }
  0x59   : > { %5426 = vmatmul.mubr.msk.f32.gmra.mrb[12].mxu1 %vm379_vm1, %v6667_v18  ;;  %687 = vmatprep.mubr.f32.mxu0 %v10781_v0 }
  0x5a   : > { %776 = vmatprep.mubr.f32.mxu1 %v10781_v0  ;;  %4652 = vperm.xlu0 %5753, %v4649_v30  }
  0x5c   : > { %5421 = vmatmul.mubr.msk.f32.gmra.mrb[14].mxu0 %vm379_vm1, %v6688_v21 }
  0x5d   : > { %5427 = vmatmul.mubr.msk.f32.gmra.mrb[14].mxu1 %vm379_vm1, %v6688_v21  ;;  %847 = vmatprep.mubr.f32.mxu0 %v10781_v0 }
  0x5e   : > { %936 = vmatprep.mubr.f32.mxu1 %v10781_v0 }
  0x60   : > { %5430 = vmatmul.mubr.msk.f32.vlgmr.msra.gmra.mrb[16].mxu0 %vm379_vm1, %v6598_v7 }
  0x61   : > { %5436 = vmatmul.mubr.msk.f32.vlgmr.msra.gmra.mrb[16].mxu1 %vm379_vm1, %v6598_v7  ;;  %853 = vmatprep.mubr.f32.mxu0 %v10781_v0 }
  0x62   : > { %942 = vmatprep.mubr.f32.mxu1 %v10781_v0  ;;  %5441 = vmatpush1.msk.msra.mxu0 %vm392_vm0, %v6691_v22 }
  0x63   : > { %5447 = vmatpush1.msk.msra.mxu1 %vm392_vm0, %v332_v23  ;;  %5528 = vmatprep.subr.msk.mxu0 %vm392_vm0, %v6764_v36 }
  0x64   : > { %2454 = vmatprep.subr.bf16.mxu1 %v2407_v35  ;;  %5431 = vmatmul.mubr.msk.f32.gmra.mrb[18].mxu0 %vm379_vm1, %v6634_v13 }
  0x65   : > { %5437 = vmatmul.mubr.msk.f32.gmra.mrb[18].mxu1 %vm379_vm1, %v6634_v13  ;;  %859 = vmatprep.mubr.f32.mxu0 %v10781_v0 }
  0x66   : > { %948 = vmatprep.mubr.f32.mxu1 %v10781_v0 }
  0x68   : > { %5432 = vmatmul.mubr.msk.f32.gmra.mrb[20].mxu0 %vm379_vm1, %v6667_v18 }
  0x69   : > { %5438 = vmatmul.mubr.msk.f32.gmra.mrb[20].mxu1 %vm379_vm1, %v6667_v18  ;;  %865 = vmatprep.mubr.f32.mxu0 %v10781_v0 }
  0x6a   : > { %954 = vmatprep.mubr.f32.mxu1 %v10781_v0 }
  0x6c   : > { %5433 = vmatmul.mubr.msk.f32.gmra.mrb[22].mxu0 %vm379_vm1, %v6688_v21 }
  0x6d   : > { %5439 = vmatmul.mubr.msk.f32.gmra.mrb[22].mxu1 %vm379_vm1, %v6688_v21  ;;  %1025 = vmatprep.mubr.f32.mxu0 %v10781_v0 }
  0x6e   : > { %1114 = vmatprep.mubr.f32.mxu1 %v10781_v0 }
  0x70   : > { %5442 = vmatmul.mubr.msk.f32.vlgmr.msra.gmra.mrb[24].mxu0 %vm379_vm1, %v6598_v7 }
  0x71   : > { %5448 = vmatmul.mubr.msk.f32.vlgmr.msra.gmra.mrb[24].mxu1 %vm379_vm1, %v6598_v7  ;;  %1031 = vmatprep.mubr.f32.mxu0 %v10781_v0 }
  0x72   : > { %1120 = vmatprep.mubr.f32.mxu1 %v10781_v0  ;;  %5529 = vmatpush3.msk.msra.mxu0 %vm392_vm0, %v6764_v36 }
  0x73   : > { %2455 = vmatpush1.bf16.msra.mxu1 %v2404_v40  ;;  %2507 = vmatprep.subr.bf16.mxu0 %v2413_v41 }
  0x74   : > { %2560 = vmatprep.subr.bf16.mxu1 %v2419_v42  ;;  %5443 = vmatmul.mubr.msk.f32.gmra.mrb[26].mxu0 %vm379_vm1, %v6634_v13 }
  0x75   : > { %5449 = vmatmul.mubr.msk.f32.gmra.mrb[26].mxu1 %vm379_vm1, %v6634_v13  ;;  %1037 = vmatprep.mubr.f32.mxu0 %v10781_v0 }
  0x76   : > { %1126 = vmatprep.mubr.f32.mxu1 %v10781_v0 }
  0x78   : > { %5444 = vmatmul.mubr.msk.f32.gmra.mrb[28].mxu0 %vm379_vm1, %v6667_v18 }
  0x79   : > { %5450 = vmatmul.mubr.msk.f32.gmra.mrb[28].mxu1 %vm379_vm1, %v6667_v18  ;;  %1043 = vmatprep.mubr.f32.mxu0 %v10781_v0 }
  0x7a   : > { %1132 = vmatprep.mubr.f32.mxu1 %v10781_v0 }
  0x7c   : > { %5445 = vmatmul.mubr.msk.f32.gmra.mrb[30].mxu0 %vm379_vm1, %v6688_v21 }
  0x7d   : > { %5451 = vmatmul.mubr.msk.f32.gmra.mrb[30].mxu1 %vm379_vm1, %v6688_v21  ;;  %5530 = vmatprep.mubr.msk.f32.mxu0 %vm379_vm1, %v6598_v7 }
  0x7e   : > { %2486 = vmatprep.mubr.bf16.mxu1 %v10784_v1 }
  0x80   : > { %5531 = vmatmul.mubr.msk.f32.vlgmr.msra.gmra.mrb[32].mxu0 %vm379_vm1, %v6634_v13  ;;  %v2449_v13 = vand.u32 %v6754_v34, %v2381_v10 }
  0x81   : > { %5459 = vmatmul.mubr.msk.bf16.vlgmr.msra.gmra.mrb[32].mxu1 %vm379_vm1, %v6831_v45  ;;  %5533 = vmatprep.mubr.msk.f32.mxu0 %vm379_vm1, %v6667_v18 }
  0x82   : > { %2496 = vmatprep.mubr.bf16.mxu1 %v10784_v1  ;;  %2508 = vmatpush1.bf16.msra.mxu0 %v2410_v46 }
  0x83   : > { %2561 = vmatpush1.bf16.msra.mxu1 %v2416_v47  ;;  %2613 = vmatprep.subr.bf16.mxu0 %v2425_v50 }
  0x84   : > { %5534 = vmatmul.mubr.msk.f32.gmra.mrb[34].mxu0 %vm379_vm1, %v6688_v21  ;;  %2666 = vmatprep.subr.bf16.mxu1 %v2431_v52 }
  0x85   : > { %2539 = vmatprep.mubr.bf16.mxu0 %v10784_v1 }
  0x88   : > { %5461 = vmatmul.mubr.msk.bf16.vlgmr.msra.gmra.mrb[36].mxu0 %vm379_vm1, %v6831_v45 }
  0x89   : > { %5460 = vmatmul.mubr.msk.bf16.gmra.mrb[36].mxu1 %vm379_vm1, %v5764_v48  ;;  %2549 = vmatprep.mubr.bf16.mxu0 %v10784_v1 }
  0x8a   : > { %2592 = vmatprep.mubr.bf16.mxu1 %v10784_v1  ;;  %2614 = vmatpush1.bf16.msra.mxu0 %v2422_v54 }
  0x8b   : > { %2719 = vmatprep.subr.bf16.mxu0 %v2437_v58 }
  0x90   : > { %5462 = vmatmul.mubr.msk.bf16.gmra.mrb[40].mxu0 %vm379_vm1, %v5764_v48 }
  0x91   : > { %5463 = vmatmul.mubr.msk.bf16.vlgmr.msra.gmra.mrb[40].mxu1 %vm379_vm1, %v6831_v45  ;;  %2645 = vmatprep.mubr.bf16.mxu0 %v10784_v1 }
  0x92   : > { %2602 = vmatprep.mubr.bf16.mxu1 %v10784_v1  ;;  %2667 = vmatpush1.bf16.msra.mxu1 %v2428_v56 }
  0x93   : > { %2772 = vmatprep.subr.bf16.mxu1 %v2443_v61 }
  0x98   : > { %5465 = vmatmul.mubr.msk.bf16.vlgmr.msra.gmra.mrb[44].mxu0 %vm379_vm1, %v6831_v45 }
  0x99   : > { %5464 = vmatmul.mubr.msk.bf16.gmra.mrb[44].mxu1 %vm379_vm1, %v5764_v48  ;;  %2655 = vmatprep.mubr.bf16.mxu0 %v10784_v1 }
  0x9a   : > { %2698 = vmatprep.mubr.bf16.mxu1 %v10784_v1  ;;  %2720 = vmatpush1.bf16.msra.mxu0 %v2434_v62 }
  0x9b   : > { %2825 = vmatprep.subr.bf16.mxu0 %v2449_v13 }
  0xa0   : > { %5466 = vmatmul.mubr.msk.bf16.gmra.mrb[48].mxu0 %vm379_vm1, %v5764_v48 }
  0xa1   : > { %5467 = vmatmul.mubr.msk.bf16.vlgmr.msra.gmra.mrb[48].mxu1 %vm379_vm1, %v6831_v45  ;;  %2751 = vmatprep.mubr.bf16.mxu0 %v10784_v1 }
  0xa2   : > { %2708 = vmatprep.mubr.bf16.mxu1 %v10784_v1  ;;  %2773 = vmatpush1.bf16.msra.mxu1 %v2440_v2 }
  0xa8   : > { %5469 = vmatmul.mubr.msk.bf16.vlgmr.msra.gmra.mrb[52].mxu0 %vm379_vm1, %v6831_v45 }
  0xa9   : > { %5468 = vmatmul.mubr.msk.bf16.gmra.mrb[52].mxu1 %vm379_vm1, %v5764_v48  ;;  %2761 = vmatprep.mubr.bf16.mxu0 %v10784_v1 }
  0xaa   : > { %2804 = vmatprep.mubr.bf16.mxu1 %v10784_v1 }
  0xb0   : > { %5470 = vmatmul.mubr.msk.bf16.gmra.mrb[56].mxu0 %vm379_vm1, %v5764_v48 }
  0xb1   : > { %5471 = vmatmul.mubr.msk.bf16.vlgmr.msra.gmra.mrb[56].mxu1 %vm379_vm1, %v6831_v45  ;;  %2857 = vmatprep.mubr.bf16.mxu0 %v10784_v1 }
  0xb2   : > { %2814 = vmatprep.mubr.bf16.mxu1 %v10784_v1 }
  0xb9   : > { %5472 = vmatmul.mubr.msk.bf16.gmra.mrb[60].mxu1 %vm379_vm1, %v5764_v48 }
  0xba   : > { %5538 = vmatprep.mubr.msk.bf16.mxu1 %vm379_vm1, %v6831_v45 }
  0xc6   : > { %v6908_v3 = vpop.permute.xlu0 %344 }
  0xc7   : > { %v6937_v23 = vpop.permute.xlu1 %354 }
  0xca   : > { %v6935_v20 = vpop.permute.xlu0 %349 }
  0xcb   : > { %v6966_v46 = vpop.permute.xlu1 %359 }
 0x113   : > { %v493_v4 = vpop.f32.mrb[0].mxu0 }
 0x114   : > { %v582_v5 = vpop.f32.mrb[0].mxu1  ;;  %v6911_v6 = vadd.f32 %v493_v4, %v6908_v3  ;;  %v6916_v8 = vpop.f32.mrb[1].mxu0 }
 0x115   : > { %v6914_v7 = vadd.f32 %v582_v5, %v6908_v3  ;;  %v6918_v9 = vpop.f32.mrb[1].mxu1 }
 0x116   : > { %v6923_v11 = vmul.f32 100.0, %v6911_v6 }
 0x117   : > { %v6926_v12 = vmul.f32 100.0, %v6914_v7  ;;  %v499_v14 = vpop.f32.mrb[2].mxu0 }
 0x118   : > { %v588_v15 = vpop.f32.mrb[2].mxu1  ;;  %v1292_v16 = vmin.f32 %v6923_v11, 20.0  ;;  %v6931_v18 = vpop.f32.mrb[3].mxu0  ;;  %v6940_v24 = vadd.f32 %v499_v14, %v6935_v20  ;;  %vm2176_vm6 = vcmp.gt.f32.partialorder %v6923_v11, 20.0 }
 0x119   : > { %v1294_v17 = vmin.f32 %v6926_v12, 20.0  ;;  %v6933_v19 = vpop.f32.mrb[3].mxu1  ;;  %v6943_v25 = vadd.f32 %v588_v15, %v6935_v20  ;;  %vm2178_vm9 = vcmp.gt.f32.partialorder %v6926_v12, 20.0 }
 0x11a   : > { %v1360_v21 = vmul.f32 1.442695, %v1292_v16  ;;  %v6946_v28 = vmul.f32 100.0, %v6940_v24 }
 0x11b   : > { %v1364_v22 = vmul.f32 1.442695, %v1294_v17  ;;  %v505_v26 = vpop.f32.mrb[4].mxu0  ;;  %v6949_v29 = vmul.f32 100.0, %v6943_v25 }
 0x11c   : > { %v594_v27 = vpop.f32.mrb[4].mxu1  ;;  %5767 = vpow2.f32 %v1360_v21  ;;  %v507_v30 = vpop.f32.mrb[5].mxu0  ;;  %v6952_v33 = vadd.f32 %v505_v26, %v6937_v23  ;;  %v1309_v35 = vmin.f32 %v6946_v28, 20.0  ;;  %vm2193_vm10 = vcmp.gt.f32.partialorder %v6946_v28, 20.0 }
 0x11d   : > { %v596_v32 = vpop.f32.mrb[5].mxu1  ;;  %5769 = vpow2.f32 %v1364_v22  ;;  %v1311_v37 = vmin.f32 %v6949_v29, 20.0  ;;  %v6957_v38 = vadd.f32 %v594_v27, %v6937_v23  ;;  %v6990_v59 = vadd.f32 %v507_v30, %v6937_v23 }
 0x11e   : > { %v1394_v41 = vmul.f32 1.442695, %v1309_v35  ;;  %v6960_v43 = vmul.f32 100.0, %v6952_v33  ;;  %v7001_v2 = vadd.f32 %v596_v32, %v6937_v23  ;;  %vm2195_vm11 = vcmp.gt.f32.partialorder %v6949_v29, 20.0 }
 0x11f   : > { %v511_v39 = vpop.f32.mrb[6].mxu0  ;;  %v1398_v42 = vmul.f32 1.442695, %v1311_v37  ;;  %v6969_v47 = vmul.f32 100.0, %v6957_v38  ;;  %11038 = vst [vmem:[#allocation11_spill] sm:$0xff] %v6990_v59  ;;  %v7008_v13 = vmul.f32 100.0, %v6990_v59 }
 0x120   : > { %v600_v40 = vpop.f32.mrb[6].mxu1  ;;  %v6962_v44 = vpop.f32.mrb[7].mxu0  ;;  %5771 = vpow2.f32 %v1394_v41  ;;  %v1326_v48 = vmin.f32 %v6960_v43, 20.0  ;;  %v6973_v49 = vadd.f32 %v511_v39, %v6966_v46  ;;  %11039 = vst [vmem:[#allocation12_spill] sm:$0xff] %v7001_v2  ;;  %v7018_v21 = vmul.f32 100.0, %v7001_v2 }
 0x121   : > { %v6964_v45 = vpop.f32.mrb[7].mxu1  ;;  %5773 = vpow2.f32 %v1398_v42  ;;  %v1328_v56 = vmin.f32 %v6969_v47, 20.0  ;;  %11042 = vst [vmem:[#allocation15_spill] sm:$0xff] %v7008_v13  ;;  %v7021_v22 = vadd.f32 %v600_v40, %v6966_v46  ;;  %v1327_v40 = vmin.f32 %v7008_v13, 20.0 }
 0x122   : > { %v1428_v54 = vmul.f32 1.442695, %v1326_v48  ;;  %v6993_v60 = vmul.f32 100.0, %v6973_v49  ;;  %11043 = vst [vmem:[#allocation16_spill] sm:$0xff] %v7018_v21  ;;  %vm2210_vm13 = vcmp.gt.f32.partialorder %v6960_v43, 20.0  ;;  %vm2212_vm3 = vcmp.gt.f32.partialorder %v6969_v47, 20.0 }
 0x123   : > { %v6975_v50 = vpop.f32.mrb[8].mxu0  ;;  %v1432_v10 = vmul.f32 1.442695, %v1328_v56  ;;  %v7036_v48 = vmul.f32 100.0, %v7021_v22 }
 0x124   : > { %v6977_v51 = vpop.f32.mrb[8].mxu1  ;;  %v6979_v52 = vpop.f32.mrb[9].mxu0  ;;  %5775 = vpow2.f32 %v1428_v54  ;;  %v1343_v14 = vmin.f32 %v6993_v60, 20.0  ;;  %vm2227_vm15 = vcmp.gt.f32.partialorder %v6993_v60, 20.0 }
 0x125   : > { %v6981_v53 = vpop.f32.mrb[9].mxu1 }
 0x126   : > { %v6983_v55 = vpop.eup %5767  ;;  %v1462_v35 = vmul.f32 1.442695, %v1343_v14 }
 0x127   : > { %v6986_v57 = vpop.eup %5769  ;;  %v1496_v58 = vadd.f32 1.0, %v6983_v55  ;;  %v6995_v61 = vpop.f32.mrb[10].mxu0  ;;  %v1499_v37 = vmul.f32 -0.5, %v6983_v55  ;;  %v1502_v39 = vand.u32 2147483647, %v6983_v55 }
 0x128   : > { %v6997_v62 = vpop.f32.mrb[10].mxu1  ;;  %v1514_v63 = vadd.f32 1.0, %v6986_v57  ;;  %v7003_v4 = vpop.f32.mrb[11].mxu0  ;;  %v1517_v42 = vmul.f32 -0.5, %v6986_v57 }
 0x129   : > { %11040 = vst [vmem:[#allocation13_spill] sm:$0xff] %v7003_v4  ;;  %v7005_v5 = vpop.f32.mrb[11].mxu1  ;;  %5777 = vlog2.f32 %v1496_v58  ;;  %v1329_v58 = vmin.f32 %v7018_v21, 20.0  ;;  %v1500_v0 = vadd.f32 1.0, %v1499_v37  ;;  %vm7050_vm4 = vcmp.lt.f32.partialorder %v1502_v39, 0.0004427343 }
 0x12a   : > { %11041 = vst [vmem:[#allocation14_spill] sm:$0xff] %v7005_v5  ;;  %5779 = vlog2.f32 %v1514_v63  ;;  %v7015_v17 = vpop.eup %5771  ;;  %v1518_v2 = vadd.f32 1.0, %v1517_v42  ;;  %v7066_v5 = vadd.f32 %v6918_v9, %v6908_v3 }
 0x12b   : > { %v7011_v15 = vpop.f32.mrb[12].mxu0  ;;  %v7027_v30 = vpop.eup %5773  ;;  %v1649_v32 = vadd.f32 1.0, %v7015_v17  ;;  %5781 = vpow2.f32 %v1432_v10  ;;  %v1652_v1 = vmul.f32 -0.5, %v7015_v17  ;;  %v1434_v37 = vmul.f32 1.442695, %v1329_v58 }
 0x12c   : > { %v7013_v16 = vpop.f32.mrb[12].mxu1  ;;  %v7023_v26 = vpop.f32.mrb[13].mxu0  ;;  %v1667_v41 = vadd.f32 1.0, %v7027_v30  ;;  %v1670_v59 = vmul.f32 -0.5, %v7027_v30  ;;  %11054 = vst [vmem:[#allocation25_spill] sm:$0xff] %v7066_v5  ;;  %v7101_v31 = vmul.f32 100.0, %v7066_v5 }
 0x12d   : > { %11044 = vst [vmem:[#allocation17_spill] sm:$0xff] %v7023_v26  ;;  %v7025_v27 = vpop.f32.mrb[13].mxu1  ;;  %5783 = vlog2.f32 %v1649_v32  ;;  %v1520_v32 = vand.u32 2147483647, %v6986_v57  ;;  %v1655_v42 = vand.u32 2147483647, %v7015_v17 }
 0x12e   : > { %11045 = vst [vmem:[#allocation18_spill] sm:$0xff] %v7025_v27  ;;  %5785 = vlog2.f32 %v1667_v41  ;;  %v7047_v10 = vpop.eup %5775  ;;  %v1653_v4 = vadd.f32 1.0, %v1652_v1  ;;  %11061 = vst [vmem:[#allocation30_spill] sm:$0xff] %v7101_v31 }
 0x12f   : > { %v7038_v54 = vpop.f32.mrb[14].mxu0  ;;  %5787 = vpow2.f32 %v1462_v35  ;;  %v1802_v41 = vadd.f32 1.0, %v7047_v10  ;;  %v7060_v35 = vadd.f32 %v6916_v8, %v6908_v3  ;;  %vm7086_vm5 = vcmp.lt.f32.partialorder %v1520_v32, 0.0004427343 }
 0x130   : > { %11046 = vst [vmem:[#allocation19_spill] sm:$0xff] %v7038_v54  ;;  %v7040_v56 = vpop.f32.mrb[14].mxu1  ;;  %v7043_v63 = vpop.f32.mrb[15].mxu0  ;;  %vm1656_vm7 = vcmp.lt.f32.partialorder %v1655_v42, 0.0004427343 }
 0x131   : > { %11047 = vst [vmem:[#allocation20_spill] sm:$0xff] %v7040_v56  ;;  %11048 = vst [vmem:[#allocation21_spill] sm:$0xff] %v7043_v63  ;;  %v7045_v14 = vpop.f32.mrb[15].mxu1  ;;  %v1430_v63 = vmul.f32 1.442695, %v1327_v40  ;;  %v1501_v40 = vmul.f32 %v6983_v55, %v1500_v0  ;;  %5789 = vlog2.f32 %v1802_v41  ;;  %v7091_v55 = vmul.f32 100.0, %v7060_v35 }
 0x132   : > { %11049 = vst [vmem:[#allocation22_spill] sm:$0xff] %v7045_v14  ;;  %v1345_v14 = vmin.f32 %v7036_v48, 20.0  ;;  %11052 = vst [vmem:[#allocation23_spill] sm:$0xff] %v7060_v35  ;;  %v1654_v41 = vmul.f32 %v7015_v17, %v1653_v4 }
 0x133   : > { %v5778_v34 = vpop.eup %5777  ;;  %v7062_v39 = vpop.f32.mrb[16].mxu0  ;;  %11058 = vst [vmem:[#allocation27_spill] sm:$0xff] %v7091_v55  ;;  %5791 = vpow2.f32 %v1430_v63 }
 0x134   : > { %v5780_v21 = vpop.eup %5779  ;;  %v1498_v13 = vmul.f32 0.6931472, %v5778_v34  ;;  %11053 = vst [vmem:[#allocation24_spill] sm:$0xff] %v7062_v39  ;;  %v7069_v54 = vpop.f32.mrb[16].mxu1  ;;  %v1673_v34 = vand.u32 2147483647, %v7027_v30  ;;  %5793 = vpow2.f32 %v1434_v37 }
 0x135   : > { %v1516_v56 = vmul.f32 0.6931472, %v5780_v21  ;;  %v7073_v8 = vpop.f32.mrb[17].mxu0  ;;  %v7075_v58 = vpop.f32.mrb[17].mxu1  ;;  %v1519_v21 = vmul.f32 %v6986_v57, %v1518_v2  ;;  %v1671_v39 = vadd.f32 1.0, %v1670_v59 }
 0x136   : > { %11055 = vst [vmem:[#allocation26_spill] sm:$0xff] %v7075_v58  ;;  %v1466_v36 = vmul.f32 1.442695, %v1345_v14  ;;  %v7082_v26 = vpop.eup %5781  ;;  %v1504_v0 = vsel %vm7050_vm4, %v1501_v40, %v1498_v13  ;;  %vm7104_vm8 = vcmp.lt.f32.partialorder %v1673_v34, 0.0004427343  ;;  %vm2229_vm4 = vcmp.gt.f32.partialorder %v7036_v48, 20.0 }
 0x137   : > { %v7078_v9 = vpop.f32.mrb[18].mxu0  ;;  %v5784_v2 = vpop.eup %5783  ;;  %v1522_v14 = vsel %vm7086_vm5, %v1519_v21, %v1516_v56  ;;  %v2108_v35 = vmul.f32 0.01, %v1504_v0  ;;  %v1672_v1 = vmul.f32 %v7027_v30, %v1671_v39  ;;  %v1293_v39 = vmin.f32 %v7091_v55, 20.0  ;;  %v11132_v58 = vld [vmem:[#allocation16_spill] sm:$0xff] }
 0x138   : > { %v7080_v27 = vpop.f32.mrb[18].mxu1  ;;  %v7093_v57 = vpop.f32.mrb[19].mxu0  ;;  %v1651_v32 = vmul.f32 0.6931472, %v5784_v2  ;;  %5795 = vpow2.f32 %v1466_v36  ;;  %v2110_v21 = vmul.f32 0.01, %v1522_v14 }
 0x139   : > { %11059 = vst [vmem:[#allocation28_spill] sm:$0xff] %v7093_v57  ;;  %v7095_v59 = vpop.f32.mrb[19].mxu1  ;;  %v5786_v13 = vpop.eup %5785  ;;  %v1820_v2 = vadd.f32 1.0, %v7082_v26  ;;  %v1805_v36 = vmul.f32 -0.5, %v7047_v10  ;;  %v11117_v57 = vld [vmem:[#allocation14_spill] sm:$0xff] }
 0x13a   : > { %11060 = vst [vmem:[#allocation29_spill] sm:$0xff] %v7095_v59  ;;  %v7108_v40 = vpop.eup %5787  ;;  %v1669_v59 = vmul.f32 0.6931472, %v5786_v13  ;;  %v1657_v37 = vsel %vm1656_vm7, %v1654_v41, %v1651_v32  ;;  %v7130_v13 = vsel %vm2176_vm6, %v6911_v6, %v2108_v35  ;;  %v1295_v32 = vmin.f32 %v7101_v31, 20.0 }
 0x13b   : > { %v7111_v56 = vpop.f32.mrb[20].mxu0  ;;  %v1955_v4 = vadd.f32 1.0, %v7108_v40  ;;  %v2125_v34 = vmul.f32 0.01, %v1657_v37  ;;  %11068 = vst [vmem:[#allocation35_spill] sm:$0xff] %v7130_v13  ;;  %v7144_v28 = vsel %vm2178_vm9, %v6914_v7, %v2110_v21  ;;  %v1806_v37 = vadd.f32 1.0, %v1805_v36 }
 0x13c   : > { %11064 = vst [vmem:[#allocation31_spill] sm:$0xff] %v7111_v56  ;;  %v7115_v17 = vpop.f32.mrb[20].mxu1  ;;  %v7117_v42 = vpop.f32.mrb[21].mxu0  ;;  %v1675_v0 = vsel %vm7104_vm8, %v1672_v1, %v1669_v59  ;;  %11072 = vst [vmem:[#allocation39_spill] sm:$0xff] %v7144_v28  ;;  %v7160_v7 = vadd.f32 %v6975_v50, %v6908_v3  ;;  %v1823_v50 = vmul.f32 -0.5, %v7082_v26 }
 0x13d   : > { %11065 = vst [vmem:[#allocation32_spill] sm:$0xff] %v7115_v17  ;;  %11066 = vst [vmem:[#allocation33_spill] sm:$0xff] %v7117_v42  ;;  %v7123_v30 = vpop.f32.mrb[21].mxu1  ;;  %v2127_v14 = vmul.f32 0.01, %v1675_v0  ;;  %5797 = vlog2.f32 %v1955_v4  ;;  %v7134_v41 = vsel %vm2193_vm10, %v6940_v24, %v2125_v34  ;;  %v5790_v1 = vpop.eup %5789  ;;  %v1958_v4 = vmul.f32 -0.5, %v7108_v40 }
 0x13e   : > { %11067 = vst [vmem:[#allocation34_spill] sm:$0xff] %v7123_v30  ;;  %11069 = vst [vmem:[#allocation36_spill] sm:$0xff] %v7134_v41  ;;  %5799 = vlog2.f32 %v1820_v2  ;;  %v7162_v12 = vpop.eup %5791  ;;  %v7169_v2 = vadd.f32 %v6931_v18, %v6935_v20  ;;  %v1804_v34 = vmul.f32 0.6931472, %v5790_v1  ;;  %v7173_v0 = vadd.f32 %v6962_v44, %v6966_v46 }
 0x13f   : > { %v7137_v59 = vpop.f32.mrb[22].mxu0  ;;  %v7149_v11 = vsel %vm2195_vm11, %v6943_v25, %v2127_v14  ;;  %v1808_v25 = vand.u32 2147483647, %v7047_v10  ;;  %v7165_v21 = vpop.eup %5793  ;;  %v7176_v36 = vmul.f32 100.0, %v7160_v7  ;;  %v7181_v14 = vadd.f32 %v6977_v51, %v6908_v3 }
 0x140   : > { %11070 = vst [vmem:[#allocation37_spill] sm:$0xff] %v7137_v59  ;;  %v7139_v63 = vpop.f32.mrb[22].mxu1  ;;  %11073 = vst [vmem:[#allocation40_spill] sm:$0xff] %v7149_v11  ;;  %v7151_v24 = vpop.f32.mrb[23].mxu0  ;;  %v1362_v6 = vmul.f32 1.442695, %v1293_v39  ;;  %v1807_v18 = vmul.f32 %v7047_v10, %v1806_v37  ;;  %v7188_v44 = vadd.f32 %v6933_v19, %v6935_v20 }
 0x141   : > { %11071 = vst [vmem:[#allocation38_spill] sm:$0xff] %v7139_v63  ;;  %11074 = vst [vmem:[#allocation41_spill] sm:$0xff] %v7151_v24  ;;  %v7153_v29 = vpop.f32.mrb[23].mxu1  ;;  %v1366_v28 = vmul.f32 1.442695, %v1295_v32  ;;  %v1959_v1 = vadd.f32 1.0, %v1958_v4 }
 0x142   : > { %11075 = vst [vmem:[#allocation42_spill] sm:$0xff] %v7153_v29  ;;  %11076 = vst [vmem:[#allocation43_spill] sm:$0xff] %v7169_v2  ;;  %v7183_v35 = vpop.eup %5795  ;;  %vm7190_vm12 = vcmp.lt.f32.partialorder %v1808_v25, 0.0004427343  ;;  %v1961_v5 = vand.u32 2147483647, %v7108_v40 }
 0x143   : > { %11077 = vst [vmem:[#allocation44_spill] sm:$0xff] %v7188_v44  ;;  %v1973_v51 = vadd.f32 1.0, %v7183_v35  ;;  %v7197_v13 = vmul.f32 100.0, %v7169_v2  ;;  %v1810_v39 = vsel %vm7190_vm12, %v1807_v18, %v1804_v34  ;;  %v7202_v10 = vmul.f32 100.0, %v7173_v0 }
 0x144   : > { %v1296_v19 = vmin.f32 %v7176_v36, 20.0  ;;  %v1824_v37 = vadd.f32 1.0, %v1823_v50  ;;  %v1811_v4 = vadd.f32 1.0, %v7162_v12  ;;  %v7207_v25 = vmul.f32 100.0, %v7181_v14 }
 0x145   : > { %11080 = vst [vmem:[#allocation45_spill] sm:$0xff] %v7197_v13  ;;  %5801 = vlog2.f32 %v1973_v51  ;;  %v1829_v41 = vadd.f32 1.0, %v7165_v21  ;;  %v1960_v31 = vmul.f32 %v7108_v40, %v1959_v1  ;;  %v2142_v18 = vmul.f32 0.01, %v1810_v39 }
 0x146   : > { %v1368_v11 = vmul.f32 1.442695, %v1296_v19  ;;  %5803 = vpow2.f32 %v1362_v6  ;;  %vm1962_vm14 = vcmp.lt.f32.partialorder %v1961_v5, 0.0004427343  ;;  %v1976_v50 = vmul.f32 -0.5, %v7183_v35 }
 0x147   : > { %v5798_v32 = vpop.eup %5797  ;;  %v1826_v51 = vand.u32 2147483647, %v7082_v26  ;;  %v1825_v1 = vmul.f32 %v7082_v26, %v1824_v37  ;;  %v1344_v6 = vmin.f32 %v7202_v10, 20.0  ;;  %v7219_v43 = vsel %vm2210_vm13, %v6952_v33, %v2142_v18 }
 0x148   : > { %v1957_v2 = vmul.f32 0.6931472, %v5798_v32  ;;  %v5800_v34 = vpop.eup %5799  ;;  %5805 = vpow2.f32 %v1368_v11  ;;  %v1298_v32 = vmin.f32 %v7207_v25, 20.0  ;;  %11081 = vst [vmem:[#allocation46_spill] sm:$0xff] %v7219_v43  ;;  %v7226_v5 = vadd.f32 %v6964_v45, %v6966_v46 }
 0x149   : > { %5807 = vlog2.f32 %v1811_v4  ;;  %v1822_v40 = vmul.f32 0.6931472, %v5800_v34  ;;  %v7232_v26 = vadd.f32 %v6995_v61, %v6935_v20  ;;  %v7236_v33 = vadd.f32 %v6997_v62, %v6935_v20 }
 0x14a   : > { %v1963_v55 = vsel %vm1962_vm14, %v1960_v31, %v1957_v2  ;;  %5809 = vlog2.f32 %v1829_v41  ;;  %11083 = vst [vmem:[#allocation48_spill] sm:$0xff] %v7226_v5  ;;  %v1372_v31 = vmul.f32 1.442695, %v1298_v32  ;;  %v1977_v2 = vadd.f32 1.0, %v1976_v50 }
 0x14b   : > { %v2159_v29 = vmul.f32 0.01, %v1963_v55  ;;  %vm7241_vm0 = vcmp.lt.f32.partialorder %v1826_v51, 0.0004427343  ;;  %v1979_v45 = vand.u32 2147483647, %v7183_v35 }
 0x14c   : > { %5811 = vpow2.f32 %v1372_v31  ;;  %v1464_v39 = vmul.f32 1.442695, %v1344_v6  ;;  %v7249_v61 = vmul.f32 100.0, %v7232_v26  ;;  %v7252_v62 = vmul.f32 100.0, %v7236_v33 }
 0x14d   : > { %v7222_v60 = vsel %vm2227_vm15, %v6973_v49, %v2159_v29  ;;  %v7239_v49 = vmul.f32 100.0, %v7188_v44  ;;  %v1828_v29 = vsel %vm7241_vm0, %v1825_v1, %v1822_v40  ;;  %5813 = vpow2.f32 %v1366_v28 }
 0x14e   : > { %11082 = vst [vmem:[#allocation47_spill] sm:$0xff] %v7222_v60  ;;  %v1310_v37 = vmin.f32 %v7197_v13, 20.0  ;;  %v1814_v4 = vmul.f32 -0.5, %v7162_v12  ;;  %v7257_v11 = vmul.f32 100.0, %v7226_v5  ;;  %v1978_v18 = vmul.f32 %v7183_v35, %v1977_v2 }
 0x14f   : > { %11084 = vst [vmem:[#allocation49_spill] sm:$0xff] %v7239_v49  ;;  %v5802_v19 = vpop.eup %5801  ;;  %v1313_v50 = vmin.f32 %v7249_v61, 20.0  ;;  %v1315_v51 = vmin.f32 %v7252_v62, 20.0  ;;  %v1312_v40 = vmin.f32 %v7239_v49, 20.0  ;;  %v2144_v1 = vmul.f32 0.01, %v1828_v29 }
 0x150   : > { %v1975_v34 = vmul.f32 0.6931472, %v5802_v19  ;;  %v7262_v32 = vpop.eup %5803  ;;  %v1832_v28 = vmul.f32 -0.5, %v7165_v21  ;;  %vm1980_vm2 = vcmp.lt.f32.partialorder %v1979_v45, 0.0004427343  ;;  %5815 = vpow2.f32 %v1464_v39 }
 0x151   : > { %11087 = vst [vmem:[#allocation50_spill] sm:$0xff] %v7262_v32  ;;  %v1402_v41 = vmul.f32 1.442695, %v1313_v50  ;;  %v1346_v19 = vmin.f32 %v7257_v11, 20.0  ;;  %v1406_v55 = vmul.f32 1.442695, %v1315_v51  ;;  %v7275_v47 = vsel %vm2212_vm3, %v6957_v38, %v2144_v1 }
 0x152   : > { %v7266_v6 = vpop.eup %5805  ;;  %v1981_v31 = vsel %vm1980_vm2, %v1978_v18, %v1975_v34  ;;  %v1815_v60 = vadd.f32 1.0, %v1814_v4  ;;  %v1817_v29 = vand.u32 2147483647, %v7162_v12  ;;  %v1835_v45 = vand.u32 2147483647, %v7165_v21  ;;  %11088 = vst [vmem:[#allocation51_spill] sm:$0xff] %v7275_v47 }
 0x153   : > { %v5808_v35 = vpop.eup %5807  ;;  %v2161_v2 = vmul.f32 0.01, %v1981_v31  ;;  %v1532_v44 = vadd.f32 1.0, %v7266_v6  ;;  %v1833_v39 = vadd.f32 1.0, %v1832_v28  ;;  %5817 = vpow2.f32 %v1402_v41 }
 0x154   : > { %v5810_v43 = vpop.eup %5809  ;;  %v1813_v48 = vmul.f32 0.6931472, %v5808_v35  ;;  %v7284_v4 = vadd.f32 %v6979_v52, %v6908_v3  ;;  %v7288_v50 = vadd.f32 %v7011_v15, %v6937_v23  ;;  %v1468_v1 = vmul.f32 1.442695, %v1346_v19 }
 0x155   : > { %v7278_v34 = vsel %vm2229_vm4, %v7021_v22, %v2161_v2  ;;  %v1831_v38 = vmul.f32 0.6931472, %v5810_v43  ;;  %5819 = vpow2.f32 %v1406_v55  ;;  %v7294_v22 = vadd.f32 %v7013_v16, %v6937_v23  ;;  %v7330_v2 = vpop.f32.mrb[24].mxu0 }
 0x156   : > { %11089 = vst [vmem:[#allocation52_spill] sm:$0xff] %v7278_v34  ;;  %11090 = vst [vmem:[#allocation53_spill] sm:$0xff] %v7284_v4  ;;  %v7290_v51 = vpop.eup %5811  ;;  %v1816_v28 = vmul.f32 %v7162_v12, %v1815_v60  ;;  %5821 = vlog2.f32 %v1532_v44  ;;  %v7300_v52 = vadd.f32 %v6981_v53, %v6908_v3  ;;  %v1396_v41 = vmul.f32 1.442695, %v1310_v37  ;;  %v7352_v18 = vpop.f32.mrb[25].mxu0 }
 0x157   : > { %v1550_v31 = vadd.f32 1.0, %v7290_v51  ;;  %v7302_v15 = vpop.eup %5813  ;;  %v1400_v35 = vmul.f32 1.442695, %v1312_v40  ;;  %vm7304_vm5 = vcmp.lt.f32.partialorder %v1817_v29, 0.0004427343  ;;  %v1834_v16 = vmul.f32 %v7165_v21, %v1833_v39  ;;  %v11098_v21 = vld [vmem:[#allocation17_spill] sm:$0xff] }
 0x158   : > { %11091 = vst [vmem:[#allocation54_spill] sm:$0xff] %v7300_v52  ;;  %11092 = vst [vmem:[#allocation55_spill] sm:$0xff] %v7302_v15  ;;  %v1819_v12 = vsel %vm7304_vm5, %v1816_v28, %v1813_v48  ;;  %vm7311_vm6 = vcmp.lt.f32.partialorder %v1835_v45, 0.0004427343  ;;  %v7316_v53 = vmul.f32 100.0, %v7284_v4  ;;  %v7319_v60 = vmul.f32 100.0, %v7288_v50 }
 0x159   : > { %v1837_v55 = vsel %vm7311_vm6, %v1834_v16, %v1831_v38  ;;  %5823 = vpow2.f32 %v1468_v1  ;;  %v7324_v37 = vmul.f32 100.0, %v7294_v22  ;;  %v7328_v40 = vadd.f32 %v11098_v21, %v6937_v23  ;;  %11100 = vst [vmem:[#allocation57_spill] sm:$0xff] %v7330_v2  ;;  %v11102_v39 = vld [vmem:[#allocation18_spill] sm:$0xff]  ;;  %v7347_v16 = vpop.f32.mrb[24].mxu1  ;;  %11106 = vst [vmem:[#allocation60_spill] sm:$0xff] %v7352_v18  ;;  %v7379_v13 = vpop.f32.mrb[26].mxu0 }
 0x15a   : > { %11097 = vst [vmem:[#allocation56_spill] sm:$0xff] %v7316_v53  ;;  %v7332_v19 = vpop.eup %5815  ;;  %5825 = vlog2.f32 %v1550_v31  ;;  %v7335_v29 = vmul.f32 100.0, %v7300_v52  ;;  %v1330_v45 = vmin.f32 %v7319_v60, 20.0  ;;  %v7340_v48 = vadd.f32 %v11102_v39, %v6937_v23  ;;  %11105 = vst [vmem:[#allocation59_spill] sm:$0xff] %v7347_v16  ;;  %v7362_v4 = vpop.f32.mrb[25].mxu1 }
 0x15b   : > { %11099 = vst [vmem:[#allocation17_spill] sm:$0xff] %v7328_v40  ;;  %5827 = vpow2.f32 %v1396_v41  ;;  %v7344_v28 = vmul.f32 0.01, %v1819_v12  ;;  %v1332_v43 = vmin.f32 %v7324_v37, 20.0  ;;  %v7349_v31 = vmul.f32 0.01, %v1837_v55 }
 0x15c   : > { %11101 = vst [vmem:[#allocation58_spill] sm:$0xff] %v7335_v29  ;;  %11103 = vst [vmem:[#allocation18_spill] sm:$0xff] %v7340_v48  ;;  %5829 = vpow2.f32 %v1400_v35  ;;  %v1535_v44 = vmul.f32 -0.5, %v7266_v6  ;;  %v1436_v21 = vmul.f32 1.442695, %v1330_v45  ;;  %v1964_v52 = vadd.f32 1.0, %v7332_v19 }
 0x15d   : > { %v7354_v39 = vpop.eup %5817  ;;  %v1967_v41 = vmul.f32 -0.5, %v7332_v19  ;;  %v7360_v1 = vmul.f32 100.0, %v7328_v40  ;;  %11108 = vst [vmem:[#allocation62_spill] sm:$0xff] %v7362_v4  ;;  %v1297_v35 = vmin.f32 %v7316_v53, 20.0  ;;  %v1299_v55 = vmin.f32 %v7335_v29, 20.0  ;;  %v11110_v12 = vld [vmem:[#allocation13_spill] sm:$0xff] }
 0x15e   : > { %v1685_v45 = vadd.f32 1.0, %v7354_v39  ;;  %v7368_v47 = vmul.f32 100.0, %v7340_v48  ;;  %v1538_v49 = vand.u32 2147483647, %v7266_v6  ;;  %v7375_v18 = vadd.f32 %v11110_v12, %v6935_v20  ;;  %11112 = vst [vmem:[#allocation64_spill] sm:$0xff] %v7379_v13  ;;  %v7381_v15 = vpop.f32.mrb[26].mxu1 }
 0x15f   : > { %11107 = vst [vmem:[#allocation61_spill] sm:$0xff] %v7360_v1  ;;  %v7370_v34 = vpop.eup %5819  ;;  %5831 = vpow2.f32 %v1436_v21  ;;  %v1440_v16 = vmul.f32 1.442695, %v1332_v43  ;;  %v1536_v2 = vadd.f32 1.0, %v1535_v44  ;;  %v1553_v53 = vmul.f32 -0.5, %v7290_v51  ;;  %11113 = vst [vmem:[#allocation65_spill] sm:$0xff] %v7381_v15 }
 0x160   : > { %11109 = vst [vmem:[#allocation63_spill] sm:$0xff] %v7368_v47  ;;  %11111 = vst [vmem:[#allocation13_spill] sm:$0xff] %v7375_v18  ;;  %v5822_v4 = vpop.eup %5821  ;;  %5833 = vlog2.f32 %v1685_v45  ;;  %v1703_v29 = vadd.f32 1.0, %v7370_v34  ;;  %v7383_v32 = vadd.f32 1.0, %v1967_v41  ;;  %v1331_v24 = vmin.f32 %v7360_v1, 20.0  ;;  %v11114_v12 = vld [vmem:[#allocation19_spill] sm:$0xff] }
 0x161   : > { %5835 = vlog2.f32 %v1964_v52  ;;  %v7388_v21 = vadd.f32 %v11114_v12, %v6966_v46  ;;  %v7390_v43 = vpop.f32.mrb[27].mxu0  ;;  %v7392_v44 = vpop.f32.mrb[27].mxu1  ;;  %v7394_v45 = vmul.f32 1.442695, %v1297_v35  ;;  %v1688_v63 = vmul.f32 -0.5, %v7354_v39 }
 0x162   : > { %11115 = vst [vmem:[#allocation19_spill] sm:$0xff] %v7390_v43  ;;  %11116 = vst [vmem:[#allocation66_spill] sm:$0xff] %v7392_v44  ;;  %5837 = vlog2.f32 %v1703_v29  ;;  %v1333_v15 = vmin.f32 %v7368_v47, 20.0  ;;  %v1534_v41 = vmul.f32 0.6931472, %v5822_v4  ;;  %v7404_v12 = vadd.f32 %v11117_v57, %v6935_v20  ;;  %v7406_v43 = vpop.f32.mrb[28].mxu0 }
 0x163   : > { %v7398_v52 = vpop.eup %5823  ;;  %v7400_v13 = vmul.f32 1.442695, %v1299_v55  ;;  %5839 = vpow2.f32 %v1440_v16  ;;  %11119 = vst [vmem:[#allocation67_spill] sm:$0xff] %v7406_v43  ;;  %v1537_v35 = vmul.f32 %v7266_v6, %v1536_v2  ;;  %vm7409_vm7 = vcmp.lt.f32.partialorder %v1538_v49, 0.0004427343  ;;  %v7416_v4 = vpop.f32.mrb[28].mxu1 }
 0x164   : > { %11118 = vst [vmem:[#allocation14_spill] sm:$0xff] %v7404_v12  ;;  %v5826_v44 = vpop.eup %5825  ;;  %v1554_v29 = vadd.f32 1.0, %v1553_v53  ;;  %v7414_v30 = vmul.f32 100.0, %v7375_v18  ;;  %11123 = vst [vmem:[#allocation69_spill] sm:$0xff] %v7416_v4  ;;  %v7418_v55 = vpop.f32.mrb[29].mxu0  ;;  %v1706_v16 = vmul.f32 -0.5, %v7370_v34 }
 0x165   : > { %11124 = vst [vmem:[#allocation70_spill] sm:$0xff] %v7418_v55  ;;  %v7420_v57 = vpop.eup %5827  ;;  %v1438_v43 = vmul.f32 1.442695, %v1331_v24  ;;  %v7424_v42 = vmul.f32 100.0, %v7388_v21  ;;  %v11126_v49 = vld [vmem:[#allocation20_spill] sm:$0xff]  ;;  %v7430_v53 = vpop.f32.mrb[29].mxu1  ;;  %v1540_v24 = vsel %vm7409_vm7, %v1537_v35, %v1534_v41 }
 0x166   : > { %11122 = vst [vmem:[#allocation68_spill] sm:$0xff] %v7414_v30  ;;  %11125 = vst [vmem:[#allocation71_spill] sm:$0xff] %v7420_v57  ;;  %v7428_v6 = vadd.f32 %v11126_v49, %v6966_v46  ;;  %v7432_v2 = vpop.eup %5829  ;;  %v1982_v18 = vadd.f32 1.0, %v7398_v52  ;;  %vm2180_vm8 = vcmp.gt.f32.partialorder %v7176_v36, 20.0  ;;  %v1556_v55 = vand.u32 2147483647, %v7290_v51 }
 0x167   : > { %11127 = vst [vmem:[#allocation20_spill] sm:$0xff] %v7430_v53  ;;  %11128 = vst [vmem:[#allocation72_spill] sm:$0xff] %v7432_v2  ;;  %v1689_v4 = vadd.f32 1.0, %v1688_v63  ;;  %v1442_v57 = vmul.f32 1.442695, %v1333_v15  ;;  %vm2197_vm9 = vcmp.gt.f32.partialorder %v7249_v61, 20.0  ;;  %v1555_v48 = vmul.f32 %v7290_v51, %v1554_v29 }
 0x168   : > { %v1552_v38 = vmul.f32 0.6931472, %v5826_v44  ;;  %v1347_v49 = vmin.f32 %v7424_v42, 20.0  ;;  %v7442_v53 = vmul.f32 100.0, %v7428_v6  ;;  %v7445_v2 = vmul.f32 -0.5, %v7398_v52  ;;  %v11129_v47 = vld [vmem:[#allocation15_spill] sm:$0xff] }
 0x169   : > { %v1691_v40 = vand.u32 2147483647, %v7354_v39  ;;  %v1709_v63 = vand.u32 2147483647, %v7370_v34  ;;  %v7450_v15 = vpop.eup %5831  ;;  %vm2182_vm10 = vcmp.gt.f32.partialorder %v7207_v25, 20.0  ;;  %v1707_v59 = vadd.f32 1.0, %v1706_v16 }
 0x16a   : > { %5841 = vpow2.f32 %v1438_v43  ;;  %v1470_v44 = vmul.f32 1.442695, %v1347_v49  ;;  %v1349_v41 = vmin.f32 %v7442_v53, 20.0  ;;  %v5834_v35 = vpop.eup %5833  ;;  %vm2211_vm11 = vcmp.gt.f32.partialorder %v11129_v47, 20.0  ;;  %v11143_v61 = vld [vmem:[#allocation22_spill] sm:$0xff] }
 0x16b   : > { %v2112_v5 = vmul.f32 0.01, %v1540_v24  ;;  %vm7455_vm12 = vcmp.lt.f32.partialorder %v1556_v55, 0.0004427343  ;;  %v1690_v51 = vmul.f32 %v7354_v39, %v1689_v4  ;;  %5843 = vpow2.f32 %v1442_v57  ;;  %v5836_v29 = vpop.eup %5835 }
 0x16c   : > { %vm2213_vm13 = vcmp.gt.f32.partialorder %v11132_v58, 20.0  ;;  %v1558_v43 = vsel %vm7455_vm12, %v1555_v48, %v1552_v38  ;;  %v1687_v16 = vmul.f32 0.6931472, %v5834_v35  ;;  %5845 = vpow2.f32 %v1470_v44  ;;  %v5838_v1 = vpop.eup %5837  ;;  %v7472_v48 = vpop.f32.mrb[30].mxu0 }
 0x16d   : > { %v1474_v49 = vmul.f32 1.442695, %v1349_v41  ;;  %vm1692_vm14 = vcmp.lt.f32.partialorder %v1691_v40, 0.0004427343  ;;  %vm7463_vm15 = vcmp.lt.f32.partialorder %v1709_v63, 0.0004427343  ;;  %v7469_v4 = vpop.eup %5839  ;;  %v1708_v17 = vmul.f32 %v7370_v34, %v1707_v59 }
 0x16e   : > { %vm2199_vm0 = vcmp.gt.f32.partialorder %v7252_v62, 20.0  ;;  %v1838_v39 = vadd.f32 1.0, %v7450_v15  ;;  %v1693_v55 = vsel %vm1692_vm14, %v1690_v51, %v1687_v16  ;;  %v1705_v57 = vmul.f32 0.6931472, %v5838_v1  ;;  %11135 = vst [vmem:[#allocation15_spill] sm:$0xff] %v7472_v48  ;;  %v7474_v38 = vpop.f32.mrb[30].mxu1 }
 0x16f   : > { %5847 = vpow2.f32 %v1474_v49  ;;  %11136 = vst [vmem:[#allocation16_spill] sm:$0xff] %v7474_v38  ;;  %v1969_v40 = vmul.f32 %v7332_v19, %v7383_v32  ;;  %v2114_v63 = vmul.f32 0.01, %v1558_v43  ;;  %v2129_v44 = vmul.f32 0.01, %v1693_v55  ;;  %v7479_v35 = vpop.f32.mrb[31].mxu0 }
 0x170   : > { %v1856_v41 = vadd.f32 1.0, %v7469_v4  ;;  %11137 = vst [vmem:[#allocation73_spill] sm:$0xff] %v7479_v35  ;;  %v1966_v56 = vmul.f32 0.6931472, %v5836_v29  ;;  %5849 = vlog2.f32 %v1982_v18  ;;  %v7484_v34 = vsel %vm2180_vm8, %v7160_v7, %v2112_v5  ;;  %v11140_v51 = vld [vmem:[#allocation21_spill] sm:$0xff]  ;;  %v7497_v18 = vpop.f32.mrb[31].mxu1 }
 0x171   : > { %11138 = vst [vmem:[#allocation74_spill] sm:$0xff] %v7484_v34  ;;  %v1711_v1 = vsel %vm7463_vm15, %v1708_v17, %v1705_v57  ;;  %v7491_v32 = vsel %vm2197_vm9, %v7232_v26, %v2129_v44  ;;  %5851 = vlog2.f32 %v1838_v39  ;;  %v7495_v43 = vadd.f32 %v11140_v51, %v6966_v46  ;;  %11141 = vst [vmem:[#allocation21_spill] sm:$0xff] %v7497_v18  ;;  %v11146_v49 = vld [vmem:[#allocation24_spill] sm:$0xff]  ;;  %v11147_v55 = vld [vmem:[#allocation11_spill] sm:$0xff] }
 0x172   : > { %11139 = vst [vmem:[#allocation75_spill] sm:$0xff] %v7491_v32  ;;  %v2131_v59 = vmul.f32 0.01, %v1711_v1  ;;  %v1314_v36 = vmin.f32 %v7414_v30, 20.0  ;;  %v7503_v5 = vmul.f32 100.0, %v7404_v12  ;;  %v7507_v26 = vadd.f32 %v11143_v61, %v6966_v46  ;;  %v11151_v17 = vld [vmem:[#allocation12_spill] sm:$0xff] }
 0x173   : > { %v7512_v29 = vsel %vm2182_vm10, %v7181_v14, %v2114_v63  ;;  %5853 = vlog2.f32 %v1856_v41  ;;  %v7521_v24 = vadd.f32 %v11146_v49, %v6908_v3  ;;  %v7529_v57 = vsel %vm2211_vm11, %v11147_v55, %v7344_v28  ;;  %v6313_v30 = vld [vmem:[%s10775_s4] sm:$0xff]  }
 0x174   : > { %11142 = vst [vmem:[#allocation76_spill] sm:$0xff] %v7503_v5  ;;  %11144 = vst [vmem:[#allocation22_spill] sm:$0xff] %v7512_v29  ;;  %v7517_v16 = vsel %vm2199_vm0, %v7236_v33, %v2131_v59  ;;  %v7523_v39 = vpop.eup %5841  ;;  %v11148_v14 = vand.u32 2147483647, %v7332_v19  ;;  %vm2228_vm3 = vcmp.gt.f32.partialorder %v7202_v10, 20.0  ;;  %v7546_v47 = vsel %vm2213_vm13, %v11151_v17, %v7349_v31 }
 0x175   : > { %11145 = vst [vmem:[#allocation77_spill] sm:$0xff] %v7517_v16  ;;  %v7540_v62 = vpop.eup %5843  ;;  %5855 = vpow2.f32 %v7394_v45  ;;  %v7552_v28 = vmul.f32 100.0, %v7495_v43  ;;  %v1988_v44 = vand.u32 2147483647, %v7398_v52  ;;  %v1404_v41 = vmul.f32 1.442695, %v1314_v36 }
 0x176   : > { %vm7533_vm2 = vcmp.lt.f32.partialorder %v11148_v14, 0.0004427343  ;;  %v7554_v63 = vpop.eup %5845  ;;  %5857 = vpow2.f32 %v7400_v13  ;;  %v7559_v1 = vmul.f32 100.0, %v7507_v26  ;;  %v1986_v58 = vadd.f32 1.0, %v7445_v2 }
 0x177   : > { %v1972_v19 = vsel %vm7533_vm2, %v1969_v40, %v1966_v56  ;;  %v1316_v31 = vmin.f32 %v7503_v5, 20.0  ;;  %v1991_v56 = vadd.f32 1.0, %v7554_v63  ;;  %v7565_v45 = vmul.f32 100.0, %v7521_v24 }
 0x178   : > { %v2160_v59 = vmul.f32 0.01, %v1972_v19  ;;  %v1841_v51 = vmul.f32 -0.5, %v7450_v15  ;;  %v1847_v13 = vadd.f32 1.0, %v7523_v39  ;;  %v7573_v36 = vadd.f32 %v7069_v54, %v6908_v3 }
 0x179   : > { %v7567_v40 = vpop.eup %5847  ;;  %v1865_v2 = vadd.f32 1.0, %v7540_v62  ;;  %5859 = vlog2.f32 %v1991_v56  ;;  %v1348_v49 = vmin.f32 %v7552_v28, 20.0  ;;  %vm7578_vm4 = vcmp.lt.f32.partialorder %v1988_v44, 0.0004427343 }
 0x17a   : > { %v2009_v61 = vadd.f32 1.0, %v7567_v40  ;;  %v5850_v55 = vpop.eup %5849  ;;  %5861 = vpow2.f32 %v1404_v41  ;;  %v1859_v25 = vmul.f32 -0.5, %v7469_v4  ;;  %v1350_v17 = vmin.f32 %v7559_v1, 20.0 }
 0x17b   : > { %v5852_v19 = vpop.eup %5851  ;;  %v7585_v54 = vmul.f32 %v7398_v52, %v1986_v58  ;;  %v1408_v33 = vmul.f32 1.442695, %v1316_v31  ;;  %v1300_v56 = vmin.f32 %v7565_v45, 20.0  ;;  %v1842_v7 = vadd.f32 1.0, %v1841_v51 }
 0x17c   : > { %5863 = vlog2.f32 %v2009_v61  ;;  %v1994_v44 = vmul.f32 -0.5, %v7554_v63  ;;  %v7590_v29 = vmul.f32 100.0, %v7573_v36  ;;  %v7595_v16 = vsel %vm2228_vm3, %v7173_v0, %v2160_v59 }
 0x17d   : > { %5865 = vlog2.f32 %v1847_v13  ;;  %v5854_v41 = vpop.eup %5853  ;;  %v1844_v52 = vand.u32 2147483647, %v7450_v15  ;;  %v1472_v58 = vmul.f32 1.442695, %v1348_v49  ;;  %v1840_v31 = vmul.f32 0.6931472, %v5852_v19 }
 0x17e   : > { %5867 = vlog2.f32 %v1865_v2  ;;  %v1860_v61 = vadd.f32 1.0, %v1859_v25  ;;  %v2012_v51 = vmul.f32 -0.5, %v7567_v40  ;;  %v1476_v13 = vmul.f32 1.442695, %v1350_v17 }
 0x17f   : > { %v7599_v12 = vpop.eup %5855  ;;  %v7601_v34 = vmul.f32 0.6931472, %v5850_v55  ;;  %5869 = vpow2.f32 %v1408_v33  ;;  %v1862_v32 = vand.u32 2147483647, %v7469_v4  ;;  %v1376_v5 = vmul.f32 1.442695, %v1300_v56 }
 0x180   : > { %11154 = vst [vmem:[#allocation24_spill] sm:$0xff] %v7599_v12  ;;  %v7604_v10 = vpop.eup %5857  ;;  %v1843_v0 = vmul.f32 %v7450_v15, %v1842_v7  ;;  %vm2214_vm5 = vcmp.gt.f32.partialorder %v7319_v60, 20.0  ;;  %v1858_v59 = vmul.f32 0.6931472, %v5854_v41  ;;  %v1995_v2 = vadd.f32 1.0, %v1994_v44 }
 0x181   : > { %11155 = vst [vmem:[#allocation11_spill] sm:$0xff] %v7604_v10  ;;  %v1302_v49 = vmin.f32 %v7590_v29, 20.0  ;;  %vm7609_vm6 = vcmp.lt.f32.partialorder %v1844_v52, 0.0004427343  ;;  %v1850_v55 = vmul.f32 -0.5, %v7523_v39  ;;  %5871 = vpow2.f32 %v1472_v58  ;;  %v11203_v10 = vld [vmem:[#allocation41_spill] sm:$0xff] }
 0x182   : > { %v1997_v33 = vand.u32 2147483647, %v7554_v63  ;;  %v1846_v17 = vsel %vm7609_vm6, %v1843_v0, %v1840_v31  ;;  %v1861_v15 = vmul.f32 %v7469_v4, %v1860_v61  ;;  %vm2216_vm7 = vcmp.gt.f32.partialorder %v7324_v37, 20.0 }
 0x183   : > { %v2013_v7 = vadd.f32 1.0, %v2012_v51  ;;  %5873 = vpow2.f32 %v1476_v13  ;;  %v5860_v19 = vpop.eup %5859  ;;  %v1990_v56 = vsel %vm7578_vm4, %v7585_v54, %v7601_v34  ;;  %vm7623_vm8 = vcmp.lt.f32.partialorder %v1862_v32, 0.0004427343 }
 0x184   : > { %v2015_v41 = vand.u32 2147483647, %v7567_v40  ;;  %5875 = vpow2.f32 %v1376_v5  ;;  %v7628_v52 = vpop.eup %5861  ;;  %v1864_v4 = vsel %vm7623_vm8, %v1861_v15, %v1858_v59  ;;  %v1993_v58 = vmul.f32 0.6931472, %v5860_v19 }
 0x185   : > { %11160 = vst [vmem:[#allocation12_spill] sm:$0xff] %v7628_v52  ;;  %v1996_v31 = vmul.f32 %v7554_v63, %v1995_v2  ;;  %v1380_v61 = vmul.f32 1.442695, %v1302_v49  ;;  %v2146_v13 = vmul.f32 0.01, %v1846_v17  ;;  %v1868_v34 = vmul.f32 -0.5, %v7540_v62 }
 0x186   : > { %v5864_v51 = vpop.eup %5863  ;;  %vm1998_vm9 = vcmp.lt.f32.partialorder %v1997_v33, 0.0004427343  ;;  %vm2231_vm10 = vcmp.gt.f32.partialorder %v7424_v42, 20.0  ;;  %v1851_v14 = vadd.f32 1.0, %v1850_v55  ;;  %v2014_v0 = vmul.f32 %v7567_v40, %v2013_v7 }
 0x187   : > { %v5866_v32 = vpop.eup %5865  ;;  %v1999_v54 = vsel %vm1998_vm9, %v1996_v31, %v1993_v58  ;;  %v2011_v5 = vmul.f32 0.6931472, %v5864_v51  ;;  %v2148_v44 = vmul.f32 0.01, %v1864_v4  ;;  %vm2016_vm11 = vcmp.lt.f32.partialorder %v2015_v41, 0.0004427343 }
 0x188   : > { %v5868_v25 = vpop.eup %5867  ;;  %v2163_v59 = vmul.f32 0.01, %v1999_v54  ;;  %v7638_v63 = vadd.f32 %v7078_v9, %v6935_v20  ;;  %v1853_v2 = vand.u32 2147483647, %v7523_v39  ;;  %v1871_v49 = vand.u32 2147483647, %v7540_v62 }
 0x189   : > { %v2017_v33 = vsel %vm2016_vm11, %v2014_v0, %v2011_v5  ;;  %5877 = vpow2.f32 %v1380_v61  ;;  %v7642_v17 = vpop.eup %5869  ;;  %v7647_v40 = vsel %vm2214_vm5, %v7288_v50, %v2146_v13  ;;  %v1869_v55 = vadd.f32 1.0, %v1868_v34  ;;  %v11176_v61 = vld [vmem:[#allocation32_spill] sm:$0xff] }
 0x18a   : > { %11161 = vst [vmem:[#allocation78_spill] sm:$0xff] %v7642_v17  ;;  %11162 = vst [vmem:[#allocation79_spill] sm:$0xff] %v7647_v40  ;;  %v7652_v15 = vsel %vm2231_vm10, %v7388_v21, %v2163_v59  ;;  %v2165_v9 = vmul.f32 0.01, %v2017_v33  ;;  %v1849_v7 = vmul.f32 0.6931472, %v5866_v32  ;;  %v7663_v50 = vsel %vm2216_vm7, %v7294_v22, %v2148_v44 }
 0x18b   : > { %11163 = vst [vmem:[#allocation80_spill] sm:$0xff] %v7652_v15  ;;  %v1867_v19 = vmul.f32 0.6931472, %v5868_v25  ;;  %vm2233_vm12 = vcmp.gt.f32.partialorder %v7442_v53, 20.0  ;;  %v7657_v4 = vpop.eup %5871  ;;  %vm2230_vm13 = vcmp.gt.f32.partialorder %v7257_v11, 20.0  ;;  %11164 = vst [vmem:[#allocation81_spill] sm:$0xff] %v7663_v50  ;;  %v7673_v21 = vadd.f32 %v7080_v27, %v6935_v20 }
 0x18c   : > { %v7666_v42 = vsel %vm2233_vm12, %v7428_v6, %v2165_v9  ;;  %v7669_v60 = vmul.f32 100.0, %v7638_v63  ;;  %v1852_v58 = vmul.f32 %v7523_v39, %v1851_v14  ;;  %vm7678_vm14 = vcmp.lt.f32.partialorder %v1853_v2, 0.0004427343  ;;  %v11171_v32 = vld [vmem:[#allocation31_spill] sm:$0xff]  ;;  %v11172_v44 = vld [vmem:[#allocation61_spill] sm:$0xff]  ;;  %v11174_v2 = vld [vmem:[#allocation26_spill] sm:$0xff] }
 0x18d   : > { %11165 = vst [vmem:[#allocation82_spill] sm:$0xff] %v7666_v42  ;;  %v7675_v53 = vpop.eup %5873  ;;  %v7686_v37 = vadd.f32 %v7073_v8, %v6908_v3  ;;  %v1870_v27 = vmul.f32 %v7540_v62, %v1869_v55  ;;  %vm7691_vm15 = vcmp.lt.f32.partialorder %v1871_v49, 0.0004427343  ;;  %v7697_v51 = vmul.f32 100.0, %v7673_v21  ;;  %v11186_v22 = vld [vmem:[#allocation9_spill] sm:$0xff]  ;;  %v11214_v42 = vld [vmem:[#allocation42_spill] sm:$0xff] }
 0x18e   : > { %v7688_v6 = vpop.eup %5875  ;;  %v1317_v39 = vmin.f32 %v7669_v60, 20.0  ;;  %v1855_v13 = vsel %vm7678_vm14, %v1852_v58, %v1849_v7  ;;  %v2000_v34 = vadd.f32 1.0, %v7657_v4  ;;  %v2003_v8 = vmul.f32 -0.5, %v7657_v4  ;;  %v11187_v11 = vld [vmem:[#allocation33_spill] sm:$0xff] }
 0x18f   : > { %11168 = vst [vmem:[#allocation83_spill] sm:$0xff] %v7686_v37  ;;  %v7705_v14 = vadd.f32 %v11171_v32, %v6937_v23  ;;  %v1873_v62 = vsel %vm7691_vm15, %v1870_v27, %v1867_v19  ;;  %v2018_v54 = vadd.f32 1.0, %v7675_v53  ;;  %v1319_v0 = vmin.f32 %v7697_v51, 20.0 }
 0x190   : > { %v1410_v5 = vmul.f32 1.442695, %v1317_v39  ;;  %v2162_v25 = vmul.f32 0.01, %v1990_v56  ;;  %vm2215_vm0 = vcmp.gt.f32.partialorder %v11172_v44, 20.0  ;;  %v7713_v59 = vmul.f32 100.0, %v7686_v37 }
 0x191   : > { %v7717_v49 = vadd.f32 %v11174_v2, %v6908_v3  ;;  %v2147_v33 = vmul.f32 0.01, %v1855_v13  ;;  %v1568_v55 = vadd.f32 1.0, %v7688_v6  ;;  %v1414_v9 = vmul.f32 1.442695, %v1319_v0  ;;  %v11177_v13 = vld [vmem:[#allocation48_spill] sm:$0xff] }
 0x192   : > { %11173 = vst [vmem:[#allocation31_spill] sm:$0xff] %v7713_v59  ;;  %5879 = vpow2.f32 %v1410_v5  ;;  %v2149_v19 = vmul.f32 0.01, %v1873_v62  ;;  %v2021_v56 = vmul.f32 -0.5, %v7675_v53  ;;  %v7724_v58 = vmul.f32 100.0, %v7705_v14  ;;  %v11178_v62 = vld [vmem:[#allocation63_spill] sm:$0xff] }
 0x193   : > { %11175 = vst [vmem:[#allocation61_spill] sm:$0xff] %v7717_v49  ;;  %v7720_v7 = vpop.eup %5877  ;;  %5881 = vlog2.f32 %v2000_v34  ;;  %v2004_v31 = vadd.f32 1.0, %v2003_v8  ;;  %v1571_v27 = vmul.f32 -0.5, %v7688_v6  ;;  %v7729_v39 = vadd.f32 %v11176_v61, %v6937_v23  ;;  %v11179_v5 = vld [vmem:[#allocation17_spill] sm:$0xff] }
 0x194   : > { %5883 = vlog2.f32 %v2018_v54  ;;  %v7734_v32 = vsel %vm2230_vm13, %v11177_v13, %v2162_v25  ;;  %vm2217_vm2 = vcmp.gt.f32.partialorder %v11178_v62, 20.0  ;;  %v1301_v34 = vmin.f32 %v7713_v59, 20.0 }
 0x195   : > { %5885 = vpow2.f32 %v1414_v9  ;;  %v7741_v8 = vsel %vm2215_vm0, %v11179_v5, %v2147_v33  ;;  %v2006_v54 = vand.u32 2147483647, %v7657_v4  ;;  %v1586_v0 = vadd.f32 1.0, %v7720_v7  ;;  %v11182_v9 = vld [vmem:[#allocation18_spill] sm:$0xff] }
 0x196   : > { %11180 = vst [vmem:[#allocation26_spill] sm:$0xff] %v7741_v8  ;;  %5887 = vlog2.f32 %v1568_v55  ;;  %v2022_v2 = vadd.f32 1.0, %v2021_v56  ;;  %v7747_v25 = vmul.f32 100.0, %v7717_v49  ;;  %v1334_v61 = vmin.f32 %v7724_v58, 20.0  ;;  %v11184_v5 = vld [vmem:[#allocation10_spill] sm:$0xff] }
 0x197   : > { %v7751_v13 = vsel %vm2217_vm2, %v11182_v9, %v2149_v19  ;;  %v7754_v44 = vmul.f32 %v7657_v4, %v2004_v31  ;;  %v1572_v33 = vadd.f32 1.0, %v1571_v27  ;;  %v7757_v55 = vmul.f32 100.0, %v7729_v39  ;;  %v11189_v19 = vld [vmem:[#allocation34_spill] sm:$0xff] }
 0x198   : > { %11181 = vst [vmem:[#allocation32_spill] sm:$0xff] %v7747_v25  ;;  %11183 = vst [vmem:[#allocation48_spill] sm:$0xff] %v7751_v13  ;;  %v1444_v62 = vmul.f32 1.442695, %v1334_v61  ;;  %v11185_v56 = vpack.c.bf16 %v11184_v5, %v11184_v5  ;;  %v7765_v49 = vadd.f32 %v11187_v11, %v6937_v23  ;;  %v7769_v9 = vadd.f32 %v11189_v19, %v6937_v23  ;;  %v6311_v31 = vld [vmem:[%s6568_s21 + $0x38] sm:$0x77] }
 0x199   : > { %5889 = vlog2.f32 %v1586_v0  ;;  %v1336_v4 = vmin.f32 %v7757_v55, 20.0  ;;  %v2380_v27 = vpack.c.bf16 %v6311_v31, %v6311_v31  ;;  %v11191_v61 = vld [vmem:[#allocation37_spill] sm:$0xff]  ;;  %v1574_v5 = vand.u32 2147483647, %v7688_v6  ;;  %s10703_s21 = scalar_lea.vmem [#allocation5], %s5701_s22 }
 0x19a   : > { %v2452_v41 = vand.u32 %v11186_v22, %v11185_v56  ;;  %11188 = vst [vmem:[#allocation63_spill] sm:$0xff] %v7765_v49  ;;  %11190 = vst [vmem:[#allocation17_spill] sm:$0xff] %v7769_v9  ;;  %v7775_v37 = vadd.f32 %v11191_v61, %v6966_v46  ;;  %v1303_v56 = vmin.f32 %v7747_v25, 20.0  ;;  %5891 = vpow2.f32 %v1444_v62  ;;  %v11194_v25 = vld [vmem:[#allocation28_spill] sm:$0xff]  ;;  %s5329_s20 = sshll.u32 %s10703_s21, 4  ;;  %s10727_s20 = int_to_ptr.vmem [resolvable:$true] %s5329_s20 }
 0x19b   : > { %v7780_v11 = vmul.f32 100.0, %v7765_v49  ;;  %v1378_v0 = vmul.f32 1.442695, %v1301_v34  ;;  %v1448_v59 = vmul.f32 1.442695, %v1336_v4  ;;  %v7785_v50 = vmul.f32 100.0, %v7769_v9  ;;  %p6352_p5 = scmp.lt.s32.totalorder %s10727_s20, %s6350_s23 }
 0x19c   : > { %5536 = vmatprep.subr.bf16.mxu1 %v2452_v41  ;;  %v7782_v19 = vpop.eup %5879  ;;  %v2446_v31 = vand.u32 %v11186_v22, %v2380_v27  ;;  %vm7788_vm3 = vcmp.lt.f32.partialorder %v2006_v54, 0.0004427343  ;;  %v7795_v40 = vadd.f32 %v11194_v25, %v6935_v20  ;;  %v7799_v4 = vmul.f32 100.0, %v7775_v37  ;;  %v11196_v54 = vld [vmem:[#allocation29_spill] sm:$0xff]  ;;  %s6345_s19 = scalar_lea.vmem %s10727_s20, 2176 }
 0x19d   : > { %5537 = vmatpush3.bf16.msra.mxu1 %v2452_v41  ;;  %v5882_v61 = vpop.eup %5881  ;;  %v1721_v62 = vadd.f32 1.0, %v7782_v19  ;;  %v1335_v34 = vmin.f32 %v7780_v11, 20.0  ;;  %v7802_v22 = vmul.f32 %v7675_v53, %v2022_v2  ;;  %v7805_v41 = vmul.f32 %v7688_v6, %v1572_v33  ;;  %v11200_v2 = vld [vmem:[#allocation38_spill] sm:$0xff]  ;;  %v6312_v6 = vld [vmem:[%s10775_s4 + $0x8] sm:$0xff]   ;;  %p6346_p6 = scmp.ne.s32.totalorder %s10727_s20, %s6345_s19  ;;  %p6353_p10 = scmp.lt.s32.totalorder %s6351_s24, %s6345_s19 }
 0x19e   : > { %11195 = vst [vmem:[#allocation18_spill] sm:$0xff] %v7795_v40  ;;  %v5884_v15 = vpop.eup %5883  ;;  %v7809_v27 = vadd.f32 %v11196_v54, %v6935_v20  ;;  %5893 = vpow2.f32 %v1448_v59  ;;  %2826 = vmatpush1.bf16.msra.mxu0 %v2446_v31  ;;  %vm7813_vm4 = vcmp.lt.f32.partialorder %v1574_v5, 0.0004427343  ;;  %v1382_v8 = vmul.f32 1.442695, %v1303_v56 }
 0x19f   : > { %v7811_v25 = vpop.eup %5885  ;;  %5895 = vlog2.f32 %v1721_v62  ;;  %v7819_v17 = vadd.f32 %v11200_v2, %v6966_v46  ;;  %v1589_v33 = vmul.f32 -0.5, %v7720_v7  ;;  %v1446_v31 = vmul.f32 1.442695, %v1335_v34  ;;  %v7841_v34 = vpop.f32.mrb[32].mxu0  ;;  %p6347_p12 = pnand %p6346_p6, %p11798_p11  ;;  %p6354_p2 = por %p6353_p10, %p6352_p5 }
 0x1a0   : > { %11197 = vst [vmem:[#allocation10_spill] sm:$0xff] %v7809_v27  ;;  %5539 = vmatmul.mubr.msk.bf16.vlgmr.msra.gmra.mrb[64].mxu1 %vm379_vm1, %v6312_v6  ;;  %v5888_v59 = vpop.eup %5887  ;;  %v1739_v5 = vadd.f32 1.0, %v7811_v25  ;;  %v1337_v54 = vmin.f32 %v7785_v50, 20.0  ;;  %v11201_v56 = vmov 0   ;;  %5897 = vpow2.f32 %v1378_v0  ;;  %11205 = vst [vmem:[#allocation34_spill] sm:$0xff] %v7841_v34  ;;  %v7850_v18 = vpop.f32.mrb[33].mxu0 }
 0x1a1   : > { %3031 = vmatprep.mubr.bf16.mxu1 %v11201_v56  ;;  %v7830_v62 = vmul.f32 100.0, %v7795_v40  ;;  %v1351_v2 = vmin.f32 %v7799_v4, 20.0  ;;  %5473 = vmatmul.mubr.msk.bf16.vlgmr.msra.gmra.mrb[60].mxu0 %vm379_vm1, %v6313_v30  ;;  %v7839_v52 = vadd.f32 %v11203_v10, %v6966_v46  ;;  %v7843_v12 = vmul.f32 0.6931472, %v5882_v61  ;;  %11207 = vst [vmem:[#allocation28_spill] sm:$0xff] %v7850_v18  ;;  %p6348_p13 = pneg %p6347_p12 }
 0x1a2   : > { %v1724_v0 = vmul.f32 -0.5, %v7782_v19  ;;  %5899 = vlog2.f32 %v1739_v5  ;;  %v7847_v40 = vmul.f32 100.0, %v7809_v27  ;;  %2867 = vmatprep.mubr.bf16.mxu0 %v11201_v56  ;;  %v11208_v30 = vand.u32 2147483647, %v7675_v53  ;;  %v7861_v5 = vpop.f32.mrb[34].mxu0 }
 0x1a3   : > { %11202 = vst [vmem:[#allocation9_spill] sm:$0xff] %v7830_v62  ;;  %11204 = vst [vmem:[#allocation33_spill] sm:$0xff] %v7839_v52  ;;  %v1570_v10 = vmul.f32 0.6931472, %v5888_v59  ;;  %5901 = vpow2.f32 %v1382_v8  ;;  %v1478_v61 = vmul.f32 1.442695, %v1351_v2  ;;  %v5890_v27 = vpop.eup %5889  ;;  %v2008_v2 = vsel %vm7788_vm3, %v7754_v44, %v7843_v12  ;;  %p6355_p4 = pnand %p6354_p2, %p6348_p13 }
 0x1a4   : > { %11206 = vst [vmem:[#allocation37_spill] sm:$0xff] %v7847_v40  ;;  %vm7854_vm5 = vcmp.lt.f32.partialorder %v11208_v30, 0.0004427343  ;;  %v7859_v34 = vmul.f32 100.0, %v7819_v17  ;;  %11211 = vst [vmem:[#allocation29_spill] sm:$0xff] %v7861_v5  ;;  %v1590_v38 = vadd.f32 1.0, %v1589_v33  ;;  %5903 = vpow2.f32 %v1446_v31  ;;  %v7864_v9 = vpop.eup %5891 }
 0x1a5   : > { %v1592_v48 = vand.u32 2147483647, %v7720_v7  ;;  %v1450_v18 = vmul.f32 1.442695, %v1337_v54  ;;  %v1742_v53 = vmul.f32 -0.5, %v7811_v25  ;;  %5905 = vpow2.f32 %v1478_v61 }
 0x1a6   : > { %v1353_v59 = vmin.f32 %v7859_v34, 20.0  ;;  %v7869_v8 = vmul.f32 100.0, %v7839_v52  ;;  %v2020_v33 = vmul.f32 0.6931472, %v5884_v15  ;;  %vm2184_vm6 = vcmp.gt.f32.partialorder %v7565_v45, 20.0 }
 0x1a7   : > { %v1725_v31 = vadd.f32 1.0, %v1724_v0  ;;  %vm2201_vm7 = vcmp.gt.f32.partialorder %v7669_v60, 20.0  ;;  %v1874_v54 = vadd.f32 1.0, %v7864_v9  ;;  %v1576_v30 = vsel %vm7813_vm4, %v7805_v41, %v1570_v10 }
 0x1a8   : > { %v1588_v61 = vmul.f32 0.6931472, %v5890_v27  ;;  %v1727_v5 = vand.u32 2147483647, %v7782_v19  ;;  %v1482_v52 = vmul.f32 1.442695, %v1353_v59  ;;  %v7882_v49 = vpop.eup %5893  ;;  %v1591_v12 = vmul.f32 %v7720_v7, %v1590_v38 }
 0x1a9   : > { %vm7885_vm8 = vcmp.lt.f32.partialorder %v1592_v48, 0.0004427343  ;;  %5907 = vpow2.f32 %v1450_v18  ;;  %v7891_v44 = vadd.f32 %v11214_v42, %v6966_v46  ;;  %v5896_v0 = vpop.eup %5895  ;;  %vm2186_vm9 = vcmp.gt.f32.partialorder %v7590_v29, 20.0  ;;  %5474 = vmatmul.mubr.msk.bf16.gmra.mrb[64].mxu0 %vm379_vm1, %v6312_v6  ;;  %v7907_v6 = vpop.f32.mrb[35].mxu0 }
 0x1aa   : > { %v1743_v13 = vadd.f32 1.0, %v1742_v53  ;;  %vm2203_vm10 = vcmp.gt.f32.partialorder %v7697_v51, 20.0  ;;  %v1892_v41 = vadd.f32 1.0, %v7882_v49  ;;  %5909 = vpow2.f32 %v1482_v52  ;;  %3084 = vmatprep.mubr.bf16.mxu0 %v11201_v56  ;;  %v7901_v27 = vpop.eup %5897 }
 0x1ab   : > { %v1352_v38 = vmin.f32 %v7869_v8, 20.0  ;;  %v1723_v48 = vmul.f32 0.6931472, %v5896_v0  ;;  %v1726_v18 = vmul.f32 %v7782_v19, %v1725_v31  ;;  %v1745_v7 = vand.u32 2147483647, %v7811_v25 }
 0x1ac   : > { %5911 = vlog2.f32 %v1874_v54  ;;  %vm2232_vm11 = vcmp.gt.f32.partialorder %v7552_v28, 20.0  ;;  %v2116_v10 = vmul.f32 0.01, %v1576_v30  ;;  %v1594_v52 = vsel %vm7885_vm8, %v1591_v12, %v1588_v61  ;;  %v5900_v59 = vpop.eup %5899 }
 0x1ad   : > { %vm1728_vm12 = vcmp.lt.f32.partialorder %v1727_v5, 0.0004427343  ;;  %v1318_v53 = vmin.f32 %v7830_v62, 20.0  ;;  %v2026_v19 = vsel %vm7854_vm5, %v7802_v22, %v2020_v33  ;;  %vm2234_vm1 = vcmp.gt.f32.partialorder %v7559_v1, 20.0  ;;  %v7916_v30 = vpop.eup %5901  ;;  %v11215_v22 = vld [vmem:[#allocation50_spill] sm:$0xff] }
 0x1ae   : > { %v1729_v31 = vsel %vm1728_vm12, %v1726_v18, %v1723_v48  ;;  %5913 = vlog2.f32 %v1892_v41  ;;  %v7914_v54 = vmul.f32 100.0, %v7891_v44  ;;  %v1741_v5 = vmul.f32 0.6931472, %v5900_v59  ;;  %v7919_v42 = vpop.eup %5903 }
 0x1af   : > { %v2133_v61 = vmul.f32 0.01, %v1729_v31  ;;  %v1744_v12 = vmul.f32 %v7811_v25, %v1743_v13  ;;  %v1480_v15 = vmul.f32 1.442695, %v1352_v38  ;;  %v2118_v0 = vmul.f32 0.01, %v1594_v52  ;;  %v7923_v48 = vpop.eup %5905 }
 0x1b0   : > { %vm1746_vm13 = vcmp.lt.f32.partialorder %v1745_v7, 0.0004427343  ;;  %v1320_v35 = vmin.f32 %v7847_v40, 20.0  ;;  %v1505_v33 = vadd.f32 1.0, %v11215_v22  ;;  %v2164_v41 = vmul.f32 0.01, %v2008_v2 }
 0x1b1   : > { %v7928_v18 = vsel %vm2184_vm6, %v7521_v24, %v2116_v10  ;;  %v7933_v25 = vsel %vm2201_vm7, %v7638_v63, %v2133_v61  ;;  %v1747_v13 = vsel %vm1746_vm13, %v1744_v12, %v1741_v5  ;;  %v2166_v38 = vmul.f32 0.01, %v2026_v19  ;;  %v11270_v40 = vld [vmem:[#allocation44_spill] sm:$0xff] }
 0x1b2   : > { %11216 = vst [vmem:[#allocation38_spill] sm:$0xff] %v7928_v18  ;;  %11217 = vst [vmem:[#allocation41_spill] sm:$0xff] %v7933_v25  ;;  %v2135_v52 = vmul.f32 0.01, %v1747_v13  ;;  %v1877_v59 = vmul.f32 -0.5, %v7864_v9  ;;  %v1883_v2 = vadd.f32 1.0, %v7919_v42  ;;  %5915 = vpow2.f32 %v1480_v15 }
 0x1b3   : > { %v2027_v31 = vadd.f32 1.0, %v7923_v48  ;;  %v1354_v24 = vmin.f32 %v7914_v54, 20.0  ;;  %v7941_v45 = vpop.eup %5907  ;;  %v7946_v63 = vsel %vm2186_vm9, %v7573_v36, %v2118_v0  ;;  %v1895_v10 = vmul.f32 -0.5, %v7882_v49  ;;  %v11230_v18 = vld [vmem:[#allocation27_spill] sm:$0xff] }
 0x1b4   : > { %11218 = vst [vmem:[#allocation42_spill] sm:$0xff] %v7946_v63  ;;  %v7951_v60 = vsel %vm2203_vm10, %v7673_v21, %v2135_v52  ;;  %5917 = vlog2.f32 %v1505_v33  ;;  %v7954_v19 = vpop.eup %5909  ;;  %v1412_v5 = vmul.f32 1.442695, %v1318_v53  ;;  %v1880_v12 = vand.u32 2147483647, %v7864_v9 }
 0x1b5   : > { %11219 = vst [vmem:[#allocation50_spill] sm:$0xff] %v7951_v60  ;;  %5919 = vlog2.f32 %v2027_v31  ;;  %v7962_v36 = vsel %vm2232_vm11, %v7495_v43, %v2164_v41  ;;  %v1878_v21 = vadd.f32 1.0, %v1877_v59  ;;  %v1886_v51 = vmul.f32 -0.5, %v7919_v42 }
 0x1b6   : > { %v5912_v29 = vpop.eup %5911  ;;  %v2045_v15 = vadd.f32 1.0, %v7954_v19  ;;  %v7969_v0 = vsel %vm2234_vm1, %v7507_v26, %v2166_v38  ;;  %v1898_v53 = vand.u32 2147483647, %v7882_v49  ;;  %5921 = vlog2.f32 %v1883_v2 }
 0x1b7   : > { %v1484_v33 = vmul.f32 1.442695, %v1354_v24  ;;  %v7972_v52 = vmul.f32 1.442695, %v1320_v35  ;;  %v1896_v28 = vadd.f32 1.0, %v1895_v10  ;;  %v2030_v43 = vmul.f32 -0.5, %v7923_v48 }
 0x1b8   : > { %v5914_v13 = vpop.eup %5913  ;;  %5923 = vlog2.f32 %v2045_v15  ;;  %v1876_v41 = vmul.f32 0.6931472, %v5912_v29  ;;  %vm7975_vm14 = vcmp.lt.f32.partialorder %v1880_v12, 0.0004427343  ;;  %v1901_v26 = vadd.f32 1.0, %v7941_v45  ;;  %v11224_v29 = vld [vmem:[#allocation71_spill] sm:$0xff] }
 0x1b9   : > { %5925 = vpow2.f32 %v1412_v5  ;;  %v1879_v1 = vmul.f32 %v7864_v9, %v1878_v21  ;;  %v1887_v38 = vadd.f32 1.0, %v1886_v51  ;;  %v1904_v2 = vmul.f32 -0.5, %v7941_v45 }
 0x1ba   : > { %v1508_v35 = vmul.f32 -0.5, %v11215_v22  ;;  %vm2218_vm15 = vcmp.gt.f32.partialorder %v7724_v58, 20.0  ;;  %v1894_v31 = vmul.f32 0.6931472, %v5914_v13  ;;  %vm7984_vm0 = vcmp.lt.f32.partialorder %v1898_v53, 0.0004427343 }
 0x1bb   : > { %v2048_v10 = vmul.f32 -0.5, %v7954_v19  ;;  %5927 = vpow2.f32 %v1484_v33  ;;  %v1897_v5 = vmul.f32 %v7882_v49, %v1896_v28  ;;  %v1889_v12 = vand.u32 2147483647, %v7919_v42 }
 0x1bc   : > { %v2031_v9 = vadd.f32 1.0, %v2030_v43  ;;  %vm2235_vm2 = vcmp.gt.f32.partialorder %v7799_v4, 20.0  ;;  %v1658_v21 = vadd.f32 1.0, %v11224_v29  ;;  %v7993_v51 = vpop.eup %5915  ;;  %v1882_v15 = vsel %vm7975_vm14, %v1879_v1, %v1876_v41  ;;  %v11225_v1 = vld [vmem:[#allocation55_spill] sm:$0xff] }
 0x1bd   : > { %5929 = vlog2.f32 %v1901_v26  ;;  %v2033_v53 = vand.u32 2147483647, %v7923_v48  ;;  %v2051_v13 = vand.u32 2147483647, %v7954_v19  ;;  %vm2220_vm3 = vcmp.gt.f32.partialorder %v7757_v55, 20.0 }
 0x1be   : > { %v5918_v33 = vpop.eup %5917  ;;  %v8001_v49 = vmul.f32 %v7919_v42, %v1887_v38  ;;  %v8003_v28 = vadd.f32 1.0, %v1904_v2  ;;  %5931 = vlog2.f32 %v1658_v21  ;;  %v1900_v41 = vsel %vm7984_vm0, %v1897_v5, %v1894_v31 }
 0x1bf   : > { %v5920_v61 = vpop.eup %5919  ;;  %v2049_v59 = vadd.f32 1.0, %v2048_v10  ;;  %vm2237_vm4 = vcmp.gt.f32.partialorder %v7859_v34, 20.0  ;;  %v1509_v26 = vadd.f32 1.0, %v1508_v35  ;;  %v1523_v7 = vadd.f32 1.0, %v11225_v1 }
 0x1c0   : > { %v2150_v63 = vmul.f32 0.01, %v1882_v15  ;;  %v2029_v60 = vmul.f32 0.6931472, %v5920_v61  ;;  %v2032_v42 = vmul.f32 %v7923_v48, %v2031_v9  ;;  %v1661_v38 = vmul.f32 -0.5, %v11224_v29  ;;  %v5922_v2 = vpop.eup %5921 }
 0x1c1   : > { %vm2034_vm5 = vcmp.lt.f32.partialorder %v2033_v53, 0.0004427343  ;;  %vm8012_vm6 = vcmp.lt.f32.partialorder %v2051_v13, 0.0004427343  ;;  %v1511_v31 = vand.u32 2147483647, %v11215_v22  ;;  %5933 = vlog2.f32 %v1523_v7 }
 0x1c2   : > { %v5924_v24 = vpop.eup %5923  ;;  %v2152_v10 = vmul.f32 0.01, %v1900_v41  ;;  %v2035_v35 = vsel %vm2034_vm5, %v2032_v42, %v2029_v60  ;;  %v2036_v5 = vadd.f32 1.0, %v7993_v51  ;;  %v1507_v15 = vmul.f32 0.6931472, %v5918_v33  ;;  %v11232_v42 = vld [vmem:[#allocation45_spill] sm:$0xff] }
 0x1c3   : > { %v8018_v61 = vpop.eup %5925  ;;  %vm8020_vm7 = vcmp.lt.f32.partialorder %v1889_v12, 0.0004427343  ;;  %v2167_v9 = vmul.f32 0.01, %v2035_v35  ;;  %v2047_v53 = vmul.f32 0.6931472, %v5924_v24  ;;  %v2050_v13 = vmul.f32 %v7954_v19, %v2049_v59 }
 0x1c4   : > { %v1664_v43 = vand.u32 2147483647, %v11224_v29  ;;  %vm2177_vm8 = vcmp.gt.f32.partialorder %v11230_v18, 20.0  ;;  %v8030_v7 = vsel %vm2218_vm15, %v7705_v14, %v2150_v63  ;;  %v2039_v60 = vmul.f32 -0.5, %v7993_v51  ;;  %v11242_v14 = vld [vmem:[#allocation59_spill] sm:$0xff] }
 0x1c5   : > { %11231 = vst [vmem:[#allocation71_spill] sm:$0xff] %v8030_v7  ;;  %v1510_v12 = vmul.f32 %v11215_v22, %v1509_v26  ;;  %v1662_v33 = vadd.f32 1.0, %v1661_v38  ;;  %v8034_v41 = vpop.eup %5927  ;;  %vm2194_vm9 = vcmp.gt.f32.partialorder %v11232_v42, 20.0  ;;  %v1885_v24 = vmul.f32 0.6931472, %v5922_v2  ;;  %v11239_v2 = vld [vmem:[#allocation72_spill] sm:$0xff] }
 0x1c6   : > { %v8040_v19 = vsel %vm2235_vm2, %v7775_v37, %v2167_v9  ;;  %v2053_v58 = vsel %vm8012_vm6, %v2050_v13, %v2047_v53  ;;  %vm8044_vm10 = vcmp.lt.f32.partialorder %v1511_v31, 0.0004427343  ;;  %v1526_v26 = vmul.f32 -0.5, %v11225_v1  ;;  %v11300_v7 = vld [vmem:[#allocation15_spill] sm:$0xff] }
 0x1c7   : > { %11233 = vst [vmem:[#allocation55_spill] sm:$0xff] %v8040_v19  ;;  %v2169_v63 = vmul.f32 0.01, %v2053_v58  ;;  %v1513_v59 = vsel %vm8044_vm10, %v1510_v12, %v1507_v15  ;;  %v5930_v38 = vpop.eup %5929  ;;  %v8056_v37 = vsel %vm2220_vm3, %v7729_v39, %v2152_v10  ;;  %5935 = vlog2.f32 %v2036_v5  ;;  %v11241_v39 = vld [vmem:[#allocation57_spill] sm:$0xff] }
 0x1c8   : > { %11236 = vst [vmem:[#allocation27_spill] sm:$0xff] %v8056_v37  ;;  %vm8058_vm11 = vcmp.lt.f32.partialorder %v1664_v43, 0.0004427343  ;;  %v1676_v21 = vadd.f32 1.0, %v11239_v2  ;;  %v5932_v31 = vpop.eup %5931  ;;  %v2054_v15 = vadd.f32 1.0, %v8034_v41  ;;  %v1663_v9 = vmul.f32 %v11224_v29, %v1662_v33  ;;  %v11251_v43 = vld [vmem:[#allocation49_spill] sm:$0xff] }
 0x1c9   : > { %v8066_v35 = vsel %vm2237_vm4, %v7819_v17, %v2169_v63  ;;  %v8072_v55 = vadd.f32 %v11241_v39, %v6908_v3  ;;  %v1660_v10 = vmul.f32 0.6931472, %v5932_v31  ;;  %v2109_v5 = vmul.f32 0.01, %v1513_v59  ;;  %v11243_v39 = vld [vmem:[#allocation23_spill] sm:$0xff] }
 0x1ca   : > { %11240 = vst [vmem:[#allocation45_spill] sm:$0xff] %v8066_v35  ;;  %5937 = vlog2.f32 %v1676_v21  ;;  %v1527_v53 = vadd.f32 1.0, %v1526_v26  ;;  %v1529_v13 = vand.u32 2147483647, %v11225_v1  ;;  %v1679_v17 = vmul.f32 -0.5, %v11239_v2 }
 0x1cb   : > { %v8079_v34 = vmul.f32 100.0, %v8072_v55  ;;  %v5934_v12 = vpop.eup %5933  ;;  %v2040_v29 = vadd.f32 1.0, %v2039_v60  ;;  %v2042_v33 = vand.u32 2147483647, %v7993_v51  ;;  %v1666_v58 = vsel %vm8058_vm11, %v1663_v9, %v1660_v10  ;;  %v11244_v10 = vld [vmem:[#allocation30_spill] sm:$0xff] }
 0x1cc   : > { %v8086_v63 = vadd.f32 %v11242_v14, %v6908_v3  ;;  %v1891_v59 = vsel %vm8020_vm7, %v8001_v49, %v1885_v24  ;;  %v8091_v26 = vmul.f32 0.6931472, %v5930_v38  ;;  %v2126_v21 = vmul.f32 0.01, %v1666_v58  ;;  %v11245_v14 = vld [vmem:[#allocation43_spill] sm:$0xff]  ;;  %v11250_v58 = vld [vmem:[#allocation64_spill] sm:$0xff] }
 0x1cd   : > { %v1525_v31 = vmul.f32 0.6931472, %v5934_v12  ;;  %5939 = vlog2.f32 %v2054_v15  ;;  %v2245_v60 = vsel %vm2177_vm8, %v11243_v39, %v2109_v5  ;;  %v1304_v4 = vmin.f32 %v8079_v34, 20.0  ;;  %v11248_v5 = vld [vmem:[#allocation60_spill] sm:$0xff] }
 0x1ce   : > { %v8098_v9 = vmul.f32 100.0, %v8086_v63  ;;  %vm2179_vm12 = vcmp.gt.f32.partialorder %v11244_v10, 20.0  ;;  %v2262_v49 = vsel %vm2194_vm9, %v11245_v14, %v2126_v21  ;;  %v1528_v48 = vmul.f32 %v11225_v1, %v1527_v53 }
 0x1cf   : > { %vm8105_vm1 = vcmp.lt.f32.partialorder %v1529_v13, 0.0004427343  ;;  %v1680_v38 = vadd.f32 1.0, %v1679_v17  ;;  %v2325_v18 = vpack.c.bf16 %v2262_v49, %v2245_v60  ;;  %v1384_v15 = vmul.f32 1.442695, %v1304_v4  ;;  %v11252_v13 = vld [vmem:[#allocation62_spill] sm:$0xff] }
 0x1d0   : > { %v8111_v12 = vadd.f32 %v11248_v5, %v6908_v3  ;;  %v8115_v39 = vadd.f32 %v11250_v58, %v6935_v20  ;;  %vm2196_vm13 = vcmp.gt.f32.partialorder %v11251_v43, 20.0  ;;  %v1906_v1 = vmul.f32 %v7941_v45, %v8003_v28  ;;  %v11260_v5 = vld [vmem:[#allocation65_spill] sm:$0xff] }
 0x1d1   : > { %v1531_v42 = vsel %vm8105_vm1, %v1528_v48, %v1525_v31  ;;  %v1306_v53 = vmin.f32 %v8098_v9, 20.0  ;;  %v8125_v17 = vadd.f32 %v11252_v13, %v6908_v3  ;;  %v5936_v21 = vpop.eup %5935  ;;  %v8127_v60 = vmul.f32 0.01, %v1891_v59  ;;  %2999 = vmatprep.subr.bf16.mxu1 %v2325_v18  ;;  %v11257_v48 = vld [vmem:[#allocation36_spill] sm:$0xff]  ;;  %v11258_v59 = vld [vmem:[#allocation35_spill] sm:$0xff] }
 0x1d2   : > { %11249 = vst [vmem:[#allocation72_spill] sm:$0xff] %v8111_v12  ;;  %v11254_v4 = vand.u32 2147483647, %v7941_v45  ;;  %v1682_v28 = vand.u32 2147483647, %v11239_v2  ;;  %5941 = vpow2.f32 %v1384_v15  ;;  %v8140_v49 = vmul.f32 %v7993_v51, %v2040_v29 }
 0x1d3   : > { %11253 = vst [vmem:[#allocation57_spill] sm:$0xff] %v8125_v17  ;;  %v11259_v24 = vpack.c.bf16 %v11257_v48, %v11258_v59  ;;  %v1388_v45 = vmul.f32 1.442695, %v1306_v53  ;;  %v8147_v58 = vadd.f32 %v11260_v5, %v6935_v20  ;;  %vm8149_vm15 = vcmp.lt.f32.partialorder %v2042_v33, 0.0004427343 }
 0x1d4   : > { %vm8131_vm14 = vcmp.lt.f32.partialorder %v11254_v4, 0.0004427343  ;;  %v5938_v18 = vpop.eup %5937  ;;  %v1681_v15 = vmul.f32 %v11239_v2, %v1680_v38  ;;  %v8155_v51 = vmul.f32 100.0, %v8111_v12  ;;  %v8158_v29 = vmul.f32 100.0, %v8115_v39  ;;  %v11265_v38 = vld [vmem:[#allocation19_spill] sm:$0xff] }
 0x1d5   : > { %v1909_v31 = vsel %vm8131_vm14, %v1906_v1, %v8091_v26  ;;  %3000 = vmatpush1.bf16.msra.mxu1 %v11259_v24  ;;  %v2111_v26 = vmul.f32 0.01, %v1531_v42  ;;  %v1678_v1 = vmul.f32 0.6931472, %v5938_v18  ;;  %5943 = vpow2.f32 %v1388_v45  ;;  %v11267_v18 = vld [vmem:[#allocation25_spill] sm:$0xff] }
 0x1d6   : > { %11263 = vst [vmem:[#allocation59_spill] sm:$0xff] %v8155_v51  ;;  %v8161_v53 = vmul.f32 100.0, %v8125_v17  ;;  %v8164_v4 = vmul.f32 100.0, %v8147_v58  ;;  %v2057_v33 = vmul.f32 -0.5, %v8034_v41  ;;  %vm1683_vm0 = vcmp.lt.f32.partialorder %v1682_v28, 0.0004427343 }
 0x1d7   : > { %v1321_v2 = vmin.f32 %v8158_v29, 20.0  ;;  %v8170_v42 = vadd.f32 %v11265_v38, %v6935_v20  ;;  %v2038_v14 = vmul.f32 0.6931472, %v5936_v21  ;;  %v2060_v48 = vand.u32 2147483647, %v8034_v41  ;;  %v5940_v45 = vpop.eup %5939  ;;  %v11268_v38 = vld [vmem:[#allocation67_spill] sm:$0xff] }
 0x1d8   : > { %11264 = vst [vmem:[#allocation23_spill] sm:$0xff] %v8161_v53  ;;  %v1684_v59 = vsel %vm1683_vm0, %v1681_v15, %v1678_v1  ;;  %v1323_v24 = vmin.f32 %v8164_v4, 20.0  ;;  %v2247_v22 = vsel %vm2179_vm12, %v11267_v18, %v2111_v26  ;;  %v1305_v28 = vmin.f32 %v8155_v51, 20.0  ;;  %v11269_v15 = vld [vmem:[#allocation69_spill] sm:$0xff]  ;;  %v11297_v51 = vld [vmem:[#allocation52_spill] sm:$0xff] }
 0x1d9   : > { %11266 = vst [vmem:[#allocation30_spill] sm:$0xff] %v8170_v42  ;;  %v2128_v5 = vmul.f32 0.01, %v1684_v59  ;;  %v1418_v17 = vmul.f32 1.442695, %v1321_v2  ;;  %v1307_v12 = vmin.f32 %v8161_v53, 20.0  ;;  %v8181_v21 = vadd.f32 %v11268_v38, %v6937_v23 }
 0x1da   : > { %v1422_v25 = vmul.f32 1.442695, %v1323_v24  ;;  %v8185_v1 = vadd.f32 %v11269_v15, %v6937_v23  ;;  %v8191_v10 = vmul.f32 100.0, %v8170_v42  ;;  %v2342_v26 = vpack.c.bf16 %v7595_v16, %v7529_v57 }
 0x1db   : > { %v2264_v59 = vsel %vm2196_vm13, %v11270_v40, %v2128_v5  ;;  %5945 = vpow2.f32 %v1418_v17  ;;  %v2058_v2 = vadd.f32 1.0, %v2057_v33  ;;  %v8196_v18 = vmul.f32 100.0, %v8181_v21  ;;  %v11273_v17 = vld [vmem:[#allocation39_spill] sm:$0xff]  ;;  %v11275_v5 = vld [vmem:[#allocation66_spill] sm:$0xff] }
 0x1dc   : > { %11271 = vst [vmem:[#allocation43_spill] sm:$0xff] %v8191_v10  ;;  %v2327_v24 = vpack.c.bf16 %v2264_v59, %v2247_v22  ;;  %5947 = vpow2.f32 %v1422_v25  ;;  %v8198_v38 = vpop.eup %5941  ;;  %v2153_v15 = vmul.f32 0.01, %v1909_v31  ;;  %v1386_v43 = vmul.f32 1.442695, %v1305_v28 }
 0x1dd   : > { %5949 = vpow2.f32 %v7972_v52  ;;  %v8202_v40 = vmul.f32 100.0, %v8185_v1  ;;  %vm2219_vm2 = vcmp.gt.f32.partialorder %v7780_v11, 20.0  ;;  %v2044_v16 = vsel %vm8149_vm15, %v8140_v49, %v2038_v14  ;;  %v11272_v52 = vld [vmem:[#allocation40_spill] sm:$0xff] }
 0x1de   : > { %v2056_v57 = vmul.f32 0.6931472, %v5940_v45  ;;  %3052 = vmatprep.subr.bf16.mxu0 %v2327_v24  ;;  %v1604_v25 = vadd.f32 1.0, %v8198_v38  ;;  %v1390_v22 = vmul.f32 1.442695, %v1307_v12  ;;  %vm2221_vm3 = vcmp.gt.f32.partialorder %v7785_v50, 20.0 }
 0x1df   : > { %vm2236_vm4 = vcmp.gt.f32.partialorder %v7869_v8, 20.0  ;;  %v11274_v31 = vpack.c.bf16 %v11272_v52, %v11273_v17  ;;  %v1322_v33 = vmin.f32 %v8191_v10, 20.0  ;;  %v8217_v28 = vadd.f32 %v11275_v5, %v6935_v20  ;;  %v8221_v14 = vpop.eup %5943 }
 0x1e0   : > { %v1338_v49 = vmin.f32 %v8196_v18, 20.0  ;;  %v1340_v13 = vmin.f32 %v8202_v40, 20.0  ;;  %v2059_v12 = vmul.f32 %v8034_v41, %v2058_v2  ;;  %vm8224_vm5 = vcmp.lt.f32.partialorder %v2060_v48, 0.0004427343 }
 0x1e1   : > { %3053 = vmatpush1.bf16.msra.mxu0 %v11274_v31  ;;  %11276 = vst [vmem:[#allocation60_spill] sm:$0xff] %v8217_v28  ;;  %5951 = vlog2.f32 %v1604_v25  ;;  %vm2944_vm6 = vcmask 1045504   ;;  %v1622_v59 = vadd.f32 1.0, %v8221_v14  ;;  %vm2945_vm7 = vcmask 1046528  }
 0x1e2   : > { %5953 = vpow2.f32 %v1386_v43  ;;  %v1452_v24 = vmul.f32 1.442695, %v1338_v49  ;;  %v2168_v52 = vmul.f32 0.01, %v2044_v16  ;;  %v2062_v17 = vsel %vm8224_vm5, %v2059_v12, %v2056_v57  ;;  %v11281_v16 = vld [vmem:[#allocation70_spill] sm:$0xff] }
 0x1e3   : > { %5955 = vpow2.f32 %v1390_v22  ;;  %v1456_v31 = vmul.f32 1.442695, %v1340_v13  ;;  %v1420_v5 = vmul.f32 1.442695, %v1322_v33  ;;  %v8232_v41 = vmul.f32 100.0, %v8217_v28  ;;  %v11282_v13 = vld [vmem:[#allocation20_spill] sm:$0xff] }
 0x1e4   : > { %5957 = vlog2.f32 %v1622_v59  ;;  %v11280_v48 = vmov 65535   ;;  %v2344_v43 = vpack.c.bf16 %v7734_v32, %v7546_v47  ;;  %v8241_v49 = vadd.f32 %v11281_v16, %v6937_v23 }
 0x1e5   : > { %11279 = vst [vmem:[#allocation64_spill] sm:$0xff] %v8232_v41  ;;  %v2946_v2 = vsel %vm2944_vm6, 4294967295, %v11280_v48  ;;  %5959 = vpow2.f32 %v1452_v24  ;;  %v8243_v57 = vpop.eup %5945  ;;  %v1607_v22 = vmul.f32 -0.5, %v8198_v38  ;;  %v8249_v12 = vadd.f32 %v11282_v13, %v6937_v23  ;;  %v11286_v13 = vld [vmem:[#allocation17_spill] sm:$0xff] }
 0x1e6   : > { %v8235_v25 = vsel %vm2945_vm7, %v2946_v2, 0  ;;  %5961 = vpow2.f32 %v1456_v31  ;;  %v8251_v45 = vpop.eup %5947  ;;  %v1610_v59 = vand.u32 2147483647, %v8198_v38  ;;  %v1625_v47 = vmul.f32 -0.5, %v8221_v14  ;;  %v11284_v31 = vld [vmem:[#allocation63_spill] sm:$0xff] }
 0x1e7   : > { %v2952_v33 = vand.u32 %v8235_v25, %v2342_v26  ;;  %11283 = vst [vmem:[#allocation49_spill] sm:$0xff] %v8249_v12  ;;  %v1757_v32 = vadd.f32 1.0, %v8243_v57  ;;  %v2958_v24 = vand.u32 %v8235_v25, %v2344_v43  ;;  %v8257_v48 = vpop.eup %5949  ;;  %v8263_v26 = vsel %vm2219_vm2, %v11284_v31, %v8127_v60  ;;  %v11288_v43 = vld [vmem:[#allocation33_spill] sm:$0xff] }
 0x1e8   : > { %11285 = vst [vmem:[#allocation62_spill] sm:$0xff] %v8263_v26  ;;  %v1775_v2 = vadd.f32 1.0, %v8251_v45  ;;  %5963 = vpow2.f32 %v1420_v5  ;;  %v8267_v16 = vmul.f32 100.0, %v8241_v49  ;;  %v8272_v28 = vsel %vm2221_vm3, %v11286_v13, %v2153_v15  ;;  %v11293_v13 = vld [vmem:[#allocation47_spill] sm:$0xff] }
 0x1e9   : > { %3001 = vmatprep.subr.bf16.mxu1 %v2952_v33  ;;  %11287 = vst [vmem:[#allocation36_spill] sm:$0xff] %v8272_v28  ;;  %v8277_v53 = vsel %vm2236_vm4, %v11288_v43, %v2168_v52  ;;  %5965 = vlog2.f32 %v1757_v32  ;;  %3054 = vmatprep.subr.bf16.mxu0 %v2958_v24  ;;  %v8280_v11 = vmul.f32 100.0, %v8249_v12  ;;  %v8282_v60 = vmul.f32 0.01, %v2062_v17  ;;  %v11294_v43 = vld [vmem:[#allocation46_spill] sm:$0xff] }
 0x1ea   : > { %11289 = vst [vmem:[#allocation35_spill] sm:$0xff] %v8277_v53  ;;  %5967 = vlog2.f32 %v1775_v2  ;;  %v1324_v5 = vmin.f32 %v8232_v41, 20.0  ;;  %v1339_v33 = vmin.f32 %v8267_v16, 20.0  ;;  %v1608_v15 = vadd.f32 1.0, %v1607_v22 }
 0x1eb   : > { %v5952_v50 = vpop.eup %5951  ;;  %vm8286_vm8 = vcmp.lt.f32.partialorder %v1610_v59, 0.0004427343  ;;  %v1626_v8 = vadd.f32 1.0, %v1625_v47  ;;  %v1341_v52 = vmin.f32 %v8280_v11, 20.0  ;;  %v1760_v24 = vmul.f32 -0.5, %v8243_v57  ;;  %v11298_v47 = vld [vmem:[#allocation51_spill] sm:$0xff] }
 0x1ec   : > { %v8291_v32 = vpop.eup %5953  ;;  %v1778_v17 = vmul.f32 -0.5, %v8251_v45  ;;  %v1454_v2 = vmul.f32 1.442695, %v1339_v33  ;;  %v11295_v41 = vpack.c.bf16 %v11293_v13, %v11294_v43  ;;  %v1606_v59 = vmul.f32 0.6931472, %v5952_v50  ;;  %v8312_v33 = vld [vmem:[%s10774_s3] sm:$0xff]  }
 0x1ed   : > { %11292 = vst [vmem:[#allocation65_spill] sm:$0xff] %v8291_v32  ;;  %v8299_v22 = vpop.eup %5955  ;;  %v1458_v10 = vmul.f32 1.442695, %v1341_v52  ;;  %v11299_v37 = vpack.c.bf16 %v11297_v51, %v11298_v47  ;;  %v8307_v19 = vadd.f32 %v11300_v7, %v6966_v46  ;;  %v11301_v50 = vld [vmem:[#allocation16_spill] sm:$0xff]  ;;  %vm2937_vm9 = vcmask 236544  }
 0x1ee   : > { %v2949_v42 = vand.u32 %v8235_v25, %v11295_v41  ;;  %11296 = vst [vmem:[#allocation19_spill] sm:$0xff] %v8299_v22  ;;  %v5958_v13 = vpop.eup %5957  ;;  %v1628_v41 = vand.u32 2147483647, %v8221_v14  ;;  %5969 = vpow2.f32 %v1454_v2  ;;  %v8317_v52 = vadd.f32 %v11301_v50, %v6966_v46 }
 0x1ef   : > { %v2955_v35 = vand.u32 %v8235_v25, %v11299_v37  ;;  %v8319_v37 = vpop.eup %5959  ;;  %v1609_v7 = vmul.f32 %v8198_v38, %v1608_v15  ;;  %vm2188_vm10 = vcmp.gt.f32.partialorder %v8079_v34, 20.0  ;;  %v1624_v51 = vmul.f32 0.6931472, %v5958_v13 }
 0x1f0   : > { %3002 = vmatpush1.bf16.msra.mxu1 %v2949_v42  ;;  %5971 = vpow2.f32 %v1458_v10  ;;  %v8324_v43 = vmul.f32 100.0, %v8307_v19  ;;  %v8326_v47 = vpop.eup %5961  ;;  %v1627_v42 = vmul.f32 %v8221_v14, %v1626_v8  ;;  %v1761_v2 = vadd.f32 1.0, %v1760_v24  ;;  %v11305_v24 = vld [vmem:[#allocation73_spill] sm:$0xff] }
 0x1f1   : > { %3055 = vmatpush1.bf16.msra.mxu0 %v2955_v35  ;;  %v1763_v50 = vand.u32 2147483647, %v8243_v57  ;;  %vm2205_vm11 = vcmp.gt.f32.partialorder %v8158_v29, 20.0  ;;  %v1910_v22 = vadd.f32 1.0, %v8319_v37  ;;  %v1612_v38 = vsel %vm8286_vm8, %v1609_v7, %v1606_v59  ;;  %v8363_v7 = vld [vmem:[%s10774_s3 + $0x8] sm:$0xff]  }
 0x1f2   : > { %vm2190_vm12 = vcmp.gt.f32.partialorder %v8098_v9, 20.0  ;;  %v1779_v35 = vadd.f32 1.0, %v1778_v17  ;;  %v1781_v10 = vand.u32 2147483647, %v8251_v45  ;;  %vm2207_vm1 = vcmp.gt.f32.partialorder %v8164_v4, 20.0  ;;  %v8340_v14 = vpop.eup %5963  ;;  %11306 = vst [vmem:[#allocation67_spill] sm:$0xff] %v8363_v7 }
 0x1f3   : > { %v1928_v15 = vadd.f32 1.0, %v8326_v47  ;;  %5479 = vmatmul.mubr.msk.bf16.vlgmr.msra.gmra.mrb[32].mxu1 %vm2937_vm9, %v8312_v33  ;;  %11302 = vst [vmem:[#allocation25_spill] sm:$0xff] %v8340_v14  ;;  %vm8342_vm13 = vcmp.lt.f32.partialorder %v1628_v41, 0.0004427343  ;;  %5973 = vlog2.f32 %v1910_v22  ;;  %v8347_v31 = vmul.f32 100.0, %v8317_v52  ;;  %v5966_v59 = vpop.eup %5965 }
 0x1f4   : > { %5481 = vmatmul.mubr.msk.bf16.vlgmr.msra.gmra.mrb[36].mxu0 %vm2937_vm9, %v8312_v33  ;;  %v8353_v17 = vadd.f32 %v11305_v24, %v6966_v46  ;;  %3041 = vmatprep.mubr.bf16.mxu1 %v11201_v56  ;;  %v1630_v13 = vsel %vm8342_vm13, %v1627_v42, %v1624_v51  ;;  %v1424_v41 = vmul.f32 1.442695, %v1324_v5  ;;  %v1355_v22 = vmin.f32 %v8324_v43, 20.0  ;;  %v5968_v14 = vpop.eup %5967 }
 0x1f5   : > { %5975 = vlog2.f32 %v1928_v15  ;;  %3094 = vmatprep.mubr.bf16.mxu0 %v11201_v56  ;;  %vm2238_vm14 = vcmp.gt.f32.partialorder %v7914_v54, 20.0  ;;  %v2120_v24 = vmul.f32 0.01, %v1612_v38  ;;  %v1759_v62 = vmul.f32 0.6931472, %v5966_v59 }
 0x1f6   : > { %v1762_v32 = vmul.f32 %v8243_v57, %v1761_v2  ;;  %vm1764_vm15 = vcmp.lt.f32.partialorder %v1763_v50, 0.0004427343  ;;  %v1777_v51 = vmul.f32 0.6931472, %v5968_v14  ;;  %v1780_v5 = vmul.f32 %v8251_v45, %v1779_v35  ;;  %v11309_v14 = vld [vmem:[#allocation21_spill] sm:$0xff] }
 0x1f7   : > { %vm1782_vm0 = vcmp.lt.f32.partialorder %v1781_v10, 0.0004427343  ;;  %v1486_v42 = vmul.f32 1.442695, %v1355_v22  ;;  %v2122_v15 = vmul.f32 0.01, %v1630_v13  ;;  %v8378_v57 = vsel %vm2188_vm10, %v8072_v55, %v2120_v24 }
 0x1f8   : > { %v1765_v8 = vsel %vm1764_vm15, %v1762_v32, %v1759_v62  ;;  %v1357_v28 = vmin.f32 %v8347_v31, 20.0  ;;  %v8370_v12 = vmul.f32 100.0, %v8353_v17  ;;  %v1783_v26 = vsel %vm1782_vm0, %v1780_v5, %v1777_v51  ;;  %v8373_v59 = vpop.eup %5969  ;;  %11307 = vst [vmem:[#allocation69_spill] sm:$0xff] %v8378_v57  ;;  %v11335_v57 = vld [vmem:[#allocation78_spill] sm:$0xff] }
 0x1f9   : > { %v2137_v53 = vmul.f32 0.01, %v1765_v8  ;;  %v1913_v38 = vmul.f32 -0.5, %v8319_v37  ;;  %5977 = vpow2.f32 %v1486_v42  ;;  %v2139_v45 = vmul.f32 0.01, %v1783_v26 }
 0x1fa   : > { %v1931_v62 = vmul.f32 -0.5, %v8326_v47  ;;  %v1356_v32 = vmin.f32 %v8370_v12, 20.0  ;;  %v8382_v2 = vpop.eup %5971  ;;  %v1919_v35 = vadd.f32 1.0, %v8373_v59  ;;  %v1490_v10 = vmul.f32 1.442695, %v1357_v28 }
 0x1fb   : > { %v8387_v50 = vsel %vm2205_vm11, %v8115_v39, %v2137_v53  ;;  %v8392_v34 = vadd.f32 %v11309_v14, %v6966_v46  ;;  %5480 = vmatmul.mubr.msk.bf16.gmra.mrb[36].mxu1 %vm2937_vm9, %v8363_v7  ;;  %v8399_v55 = vsel %vm2190_vm12, %v8086_v63, %v2122_v15  ;;  %v8406_v39 = vsel %vm2207_vm1, %v8147_v58, %v2139_v45  ;;  %v11318_v14 = vld [vmem:[#allocation12_spill] sm:$0xff] }
 0x1fc   : > { %11308 = vst [vmem:[#allocation44_spill] sm:$0xff] %v8387_v50  ;;  %11311 = vst [vmem:[#allocation39_spill] sm:$0xff] %v8399_v55  ;;  %v1937_v53 = vadd.f32 1.0, %v8382_v2  ;;  %5482 = vmatmul.mubr.msk.bf16.gmra.mrb[40].mxu0 %vm2937_vm9, %v8363_v7  ;;  %3137 = vmatprep.mubr.bf16.mxu1 %v11201_v56  ;;  %v1914_v63 = vadd.f32 1.0, %v1913_v38  ;;  %v1916_v28 = vand.u32 2147483647, %v8319_v37  ;;  %5979 = vlog2.f32 %v1919_v35 }
 0x1fd   : > { %11310 = vst [vmem:[#allocation40_spill] sm:$0xff] %v8392_v34  ;;  %11312 = vst [vmem:[#allocation66_spill] sm:$0xff] %v8406_v39  ;;  %3190 = vmatprep.mubr.bf16.mxu0 %v11201_v56  ;;  %v5974_v26 = vpop.eup %5973  ;;  %v1932_v4 = vadd.f32 1.0, %v1931_v62  ;;  %v1934_v58 = vand.u32 2147483647, %v8326_v47  ;;  %v8421_v24 = vsel %vm2238_vm14, %v7891_v44, %v8282_v60  ;;  %v8424_v5 = vmul.f32 100.0, %v8392_v34 }
 0x1fe   : > { %5981 = vlog2.f32 %v1937_v53  ;;  %v1488_v13 = vmul.f32 1.442695, %v1356_v32  ;;  %v1912_v51 = vmul.f32 0.6931472, %v5974_v26  ;;  %v1922_v15 = vmul.f32 -0.5, %v8373_v59  ;;  %v11313_v62 = vld [vmem:[#allocation24_spill] sm:$0xff] }
 0x1ff   : > { %v5976_v22 = vpop.eup %5975  ;;  %5983 = vpow2.f32 %v1490_v10  ;;  %v1940_v8 = vmul.f32 -0.5, %v8382_v2  ;;  %v1915_v38 = vmul.f32 %v8319_v37, %v1914_v63  ;;  %v1358_v45 = vmin.f32 %v8424_v5, 20.0 }
 0x200   : > { %v1930_v42 = vmul.f32 0.6931472, %v5976_v22  ;;  %5985 = vpow2.f32 %v1488_v13  ;;  %v1541_v54 = vadd.f32 1.0, %v11313_v62  ;;  %vm8431_vm2 = vcmp.lt.f32.partialorder %v1916_v28, 0.0004427343 }
 0x201   : > { %5987 = vpow2.f32 %v1424_v41  ;;  %v1933_v60 = vmul.f32 %v8326_v47, %v1932_v4  ;;  %vm8436_vm3 = vcmp.lt.f32.partialorder %v1934_v58, 0.0004427343  ;;  %v1925_v35 = vand.u32 2147483647, %v8373_v59 }
 0x202   : > { %v1918_v37 = vsel %vm8431_vm2, %v1915_v38, %v1912_v51  ;;  %v1492_v41 = vmul.f32 1.442695, %v1358_v45  ;;  %5989 = vlog2.f32 %v1541_v54  ;;  %v1694_v53 = vadd.f32 1.0, %v11318_v14 }
 0x203   : > { %v5978_v10 = vpop.eup %5977  ;;  %v1936_v63 = vsel %vm8436_vm3, %v1933_v60, %v1930_v42  ;;  %v1923_v28 = vadd.f32 1.0, %v1922_v15  ;;  %v1941_v26 = vadd.f32 1.0, %v1940_v8  ;;  %vm2222_vm4 = vcmp.gt.f32.partialorder %v8196_v18, 20.0  ;;  %v11321_v42 = vld [vmem:[#allocation11_spill] sm:$0xff] }
 0x204   : > { %v2063_v47 = vadd.f32 1.0, %v5978_v10  ;;  %v1943_v4 = vand.u32 2147483647, %v8382_v2  ;;  %5991 = vpow2.f32 %v1492_v41  ;;  %v1544_v58 = vmul.f32 -0.5, %v11313_v62 }
 0x205   : > { %v2154_v13 = vmul.f32 0.01, %v1918_v37  ;;  %vm2224_vm5 = vcmp.gt.f32.partialorder %v8202_v40, 20.0  ;;  %v2066_v22 = vmul.f32 -0.5, %v5978_v10  ;;  %v2156_v38 = vmul.f32 0.01, %v1936_v63 }
 0x206   : > { %5993 = vlog2.f32 %v2063_v47  ;;  %v5980_v51 = vpop.eup %5979  ;;  %vm8450_vm6 = vcmp.lt.f32.partialorder %v1925_v35, 0.0004427343  ;;  %v1559_v15 = vadd.f32 1.0, %v11321_v42  ;;  %v1924_v54 = vmul.f32 %v8373_v59, %v1923_v28  ;;  %v11363_v63 = vld [vmem:[#allocation82_spill] sm:$0xff] }
 0x207   : > { %5995 = vlog2.f32 %v1694_v53  ;;  %v8457_v44 = vmul.f32 %v8382_v2, %v1941_v26  ;;  %v2069_v60 = vand.u32 2147483647, %v5978_v10  ;;  %v1547_v32 = vand.u32 2147483647, %v11313_v62 }
 0x208   : > { %v5982_v8 = vpop.eup %5981  ;;  %v1921_v41 = vmul.f32 0.6931472, %v5980_v51  ;;  %vm8460_vm7 = vcmp.lt.f32.partialorder %v1943_v4, 0.0004427343  ;;  %v1545_v35 = vadd.f32 1.0, %v1544_v58  ;;  %5997 = vlog2.f32 %v1559_v15 }
 0x209   : > { %v5984_v37 = vpop.eup %5983  ;;  %v8469_v59 = vsel %vm2222_vm4, %v8181_v21, %v2154_v13  ;;  %v2067_v2 = vadd.f32 1.0, %v2066_v22  ;;  %v1697_v26 = vmul.f32 -0.5, %v11318_v14  ;;  %v8477_v4 = vsel %vm2224_vm5, %v8185_v1, %v2156_v38  ;;  %v11336_v21 = vld [vmem:[#allocation34_spill] sm:$0xff] }
 0x20a   : > { %v8464_v53 = vpop.eup %5985  ;;  %v2081_v28 = vadd.f32 1.0, %v5984_v37  ;;  %v2084_v58 = vmul.f32 -0.5, %v5984_v37  ;;  %v1700_v15 = vand.u32 2147483647, %v11318_v14  ;;  %v8481_v9 = vmul.f32 0.6931472, %v5982_v8 }
 0x20b   : > { %v8472_v47 = vpop.eup %5987  ;;  %v2072_v51 = vadd.f32 1.0, %v8464_v53  ;;  %vm8483_vm8 = vcmp.lt.f32.partialorder %v2069_v60, 0.0004427343  ;;  %vm8487_vm10 = vcmp.lt.f32.partialorder %v1547_v32, 0.0004427343  ;;  %v1927_v1 = vsel %vm8450_vm6, %v1924_v54, %v1921_v41  ;;  %v11329_v8 = vld [vmem:[#allocation56_spill] sm:$0xff] }
 0x20c   : > { %11324 = vst [vmem:[#allocation70_spill] sm:$0xff] %v8472_v47  ;;  %5999 = vlog2.f32 %v2081_v28  ;;  %v5990_v13 = vpop.eup %5989  ;;  %vm2239_vm11 = vcmp.gt.f32.partialorder %v8324_v43, 20.0  ;;  %v2087_v40 = vand.u32 2147483647, %v5984_v37  ;;  %v2075_v22 = vmul.f32 -0.5, %v8464_v53  ;;  %v11330_v60 = vld [vmem:[#allocation68_spill] sm:$0xff] }
 0x20d   : > { %v1546_v38 = vmul.f32 %v11313_v62, %v1545_v35  ;;  %vm2181_vm12 = vcmp.gt.f32.partialorder %v11329_v8, 20.0  ;;  %vm2198_vm1 = vcmp.gt.f32.partialorder %v11330_v60, 20.0  ;;  %v2068_v28 = vmul.f32 %v5978_v10, %v2067_v2  ;;  %v11340_v43 = vld [vmem:[#allocation13_spill] sm:$0xff] }
 0x20e   : > { %v1543_v32 = vmul.f32 0.6931472, %v5990_v13  ;;  %v1698_v29 = vadd.f32 1.0, %v1697_v26  ;;  %v1562_v55 = vmul.f32 -0.5, %v11321_v42  ;;  %v8499_v39 = vpop.eup %5991  ;;  %v2085_v45 = vadd.f32 1.0, %v2084_v58 }
 0x20f   : > { %6001 = vlog2.f32 %v2072_v51  ;;  %vm8501_vm13 = vcmp.lt.f32.partialorder %v1700_v15, 0.0004427343  ;;  %v1565_v41 = vand.u32 2147483647, %v11321_v42  ;;  %v8506_v35 = vmul.f32 0.01, %v1927_v1 }
 0x210   : > { %v5994_v62 = vpop.eup %5993  ;;  %v2090_v2 = vadd.f32 1.0, %v8499_v39  ;;  %v1549_v26 = vsel %vm8487_vm10, %v1546_v38, %v1543_v32  ;;  %vm8515_vm14 = vcmp.lt.f32.partialorder %v2087_v40, 0.0004427343  ;;  %v2076_v13 = vadd.f32 1.0, %v2075_v22 }
 0x211   : > { %v5996_v58 = vpop.eup %5995  ;;  %v2065_v51 = vmul.f32 0.6931472, %v5994_v62  ;;  %v1712_v1 = vadd.f32 1.0, %v11335_v57  ;;  %v2078_v50 = vand.u32 2147483647, %v8464_v53  ;;  %v1699_v10 = vmul.f32 %v11318_v14, %v1698_v29 }
 0x212   : > { %6003 = vlog2.f32 %v2090_v2  ;;  %v1696_v47 = vmul.f32 0.6931472, %v5996_v58  ;;  %v5998_v7 = vpop.eup %5997  ;;  %v2086_v38 = vmul.f32 %v5984_v37, %v2085_v45  ;;  %vm2241_vm15 = vcmp.gt.f32.partialorder %v8347_v31, 20.0  ;;  %v11339_v58 = vld [vmem:[#allocation53_spill] sm:$0xff] }
 0x213   : > { %v2071_v18 = vsel %vm8483_vm8, %v2068_v28, %v2065_v51  ;;  %v2113_v40 = vmul.f32 0.01, %v1549_v26  ;;  %6005 = vlog2.f32 %v1712_v1  ;;  %v1563_v62 = vadd.f32 1.0, %v1562_v55  ;;  %v11337_v55 = vld [vmem:[#allocation28_spill] sm:$0xff] }
 0x214   : > { %v2171_v32 = vmul.f32 0.01, %v2071_v18  ;;  %v1702_v22 = vsel %vm8501_vm13, %v1699_v10, %v1696_v47  ;;  %v1715_v34 = vmul.f32 -0.5, %v11335_v57  ;;  %v8529_v2 = vmul.f32 %v8464_v53, %v2076_v13  ;;  %v11338_v53 = vld [vmem:[#allocation29_spill] sm:$0xff] }
 0x215   : > { %v2093_v29 = vmul.f32 -0.5, %v8499_v39  ;;  %v2130_v14 = vmul.f32 0.01, %v1702_v22  ;;  %v8534_v37 = vadd.f32 %v11336_v21, %v6935_v20  ;;  %v1561_v47 = vmul.f32 0.6931472, %v5998_v7  ;;  %v11356_v7 = vld [vmem:[#allocation79_spill] sm:$0xff] }
 0x216   : > { %v6000_v28 = vpop.eup %5999  ;;  %v8539_v45 = vsel %vm2239_vm11, %v8307_v19, %v2171_v32  ;;  %v8543_v54 = vadd.f32 %v11337_v55, %v6908_v3  ;;  %v8547_v10 = vadd.f32 %v11338_v53, %v6966_v46  ;;  %v2249_v51 = vsel %vm2181_vm12, %v11339_v58, %v2113_v40  ;;  %v11345_v32 = vld [vmem:[#allocation58_spill] sm:$0xff] }
 0x217   : > { %v2353_v26 = vpack.c.bf16 %v8539_v45, %v8469_v59  ;;  %v2083_v20 = vmul.f32 0.6931472, %v6000_v28  ;;  %v2266_v19 = vsel %vm2198_vm1, %v11340_v43, %v2130_v14  ;;  %vm8557_vm0 = vcmp.lt.f32.partialorder %v2078_v50, 0.0004427343  ;;  %v11348_v14 = vld [vmem:[#allocation74_spill] sm:$0xff] }
 0x218   : > { %v2329_v3 = vpack.c.bf16 %v2266_v19, %v2249_v51  ;;  %v1564_v46 = vmul.f32 %v11321_v42, %v1563_v62  ;;  %vm8562_vm2 = vcmp.lt.f32.partialorder %v1565_v41, 0.0004427343  ;;  %v1716_v1 = vadd.f32 1.0, %v1715_v34  ;;  %v11346_v42 = vld [vmem:[#allocation76_spill] sm:$0xff]  ;;  %v11347_v62 = vld [vmem:[#allocation75_spill] sm:$0xff] }
 0x219   : > { %v6002_v18 = vpop.eup %6001  ;;  %vm2183_vm3 = vcmp.gt.f32.partialorder %v11345_v32, 20.0  ;;  %v2089_v8 = vsel %vm8515_vm14, %v2086_v38, %v2083_v20  ;;  %v8570_v60 = vmul.f32 100.0, %v8534_v37  ;;  %v8573_v50 = vmul.f32 100.0, %v8543_v54 }
 0x21a   : > { %v8576_v40 = vmul.f32 100.0, %v8547_v10  ;;  %vm2200_vm4 = vcmp.gt.f32.partialorder %v11346_v42, 20.0  ;;  %v2173_v41 = vmul.f32 0.01, %v2089_v8  ;;  %v2094_v22 = vadd.f32 1.0, %v2093_v29  ;;  %3105 = vmatprep.subr.bf16.mxu1 %v2329_v3 }
 0x21b   : > { %v2096_v34 = vand.u32 2147483647, %v8499_v39  ;;  %v1567_v15 = vsel %vm8562_vm2, %v1564_v46, %v1561_v47  ;;  %v1718_v38 = vand.u32 2147483647, %v11335_v57  ;;  %v11349_v21 = vpack.c.bf16 %v11347_v62, %v11348_v14  ;;  %v11350_v62 = vld [vmem:[#allocation26_spill] sm:$0xff] }
 0x21c   : > { %v1325_v28 = vmin.f32 %v8570_v60, 20.0  ;;  %v1308_v55 = vmin.f32 %v8573_v50, 20.0  ;;  %v8590_v53 = vadd.f32 %v7907_v6, %v6937_v23  ;;  %v6004_v29 = vpop.eup %6003  ;;  %vm2223_vm5 = vcmp.gt.f32.partialorder %v8267_v16, 20.0 }
 0x21d   : > { %3106 = vmatpush1.bf16.msra.mxu1 %v11349_v21  ;;  %v8596_v47 = vsel %vm2241_vm15, %v8317_v52, %v2173_v41  ;;  %v2074_v20 = vmul.f32 0.6931472, %v6002_v18  ;;  %v1717_v58 = vmul.f32 %v11335_v57, %v1716_v1  ;;  %v1359_v51 = vmin.f32 %v8576_v40, 20.0  ;;  %v6006_v43 = vpop.eup %6005  ;;  %v11353_v1 = vld [vmem:[#allocation48_spill] sm:$0xff]  ;;  %v11360_v52 = vld [vmem:[#allocation77_spill] sm:$0xff] }
 0x21e   : > { %v2355_v19 = vpack.c.bf16 %v8596_v47, %v8477_v4  ;;  %v2092_v3 = vmul.f32 0.6931472, %v6004_v29  ;;  %v2115_v23 = vmul.f32 0.01, %v1567_v15  ;;  %v1426_v6 = vmul.f32 1.442695, %v1325_v28 }
 0x21f   : > { %v1714_v46 = vmul.f32 0.6931472, %v6006_v43  ;;  %v1392_v13 = vmul.f32 1.442695, %v1308_v55  ;;  %v1494_v8 = vmul.f32 1.442695, %v1359_v51  ;;  %v2346_v31 = vpack.c.bf16 %v7962_v36, %v11350_v62 }
 0x220   : > { %vm8604_vm6 = vcmp.lt.f32.partialorder %v2096_v34, 0.0004427343  ;;  %vm1719_vm8 = vcmp.lt.f32.partialorder %v1718_v38, 0.0004427343  ;;  %v8609_v57 = vmul.f32 100.0, %v8590_v53  ;;  %v2348_v18 = vpack.c.bf16 %v7969_v0, %v11353_v1  ;;  %v11355_v21 = vld [vmem:[#allocation80_spill] sm:$0xff] }
 0x221   : > { %v2095_v41 = vmul.f32 %v8499_v39, %v2094_v22  ;;  %v1720_v15 = vsel %vm1719_vm8, %v1717_v58, %v1714_v46  ;;  %6007 = vpow2.f32 %v1426_v6  ;;  %v2964_v14 = vand.u32 %v8235_v25, %v2346_v31  ;;  %v11354_v39 = vld [vmem:[#allocation54_spill] sm:$0xff] }
 0x222   : > { %vm2225_vm10 = vcmp.gt.f32.partialorder %v8280_v11, 20.0  ;;  %v2080_v36 = vsel %vm8557_vm0, %v8529_v2, %v2074_v20  ;;  %vm2240_vm11 = vcmp.gt.f32.partialorder %v8370_v12, 20.0  ;;  %v2132_v34 = vmul.f32 0.01, %v1720_v15  ;;  %v11358_v55 = vld [vmem:[#allocation14_spill] sm:$0xff] }
 0x223   : > { %6009 = vpow2.f32 %v1494_v8  ;;  %v1342_v38 = vmin.f32 %v8609_v57, 20.0  ;;  %v2098_v0 = vsel %vm8604_vm6, %v2095_v41, %v2092_v3  ;;  %vm2242_vm12 = vcmp.gt.f32.partialorder %v8424_v5, 20.0  ;;  %3107 = vmatprep.subr.bf16.mxu1 %v2964_v14  ;;  %v11361_v1 = vld [vmem:[#allocation22_spill] sm:$0xff] }
 0x224   : > { %v2251_v22 = vsel %vm2183_vm3, %v11354_v39, %v2115_v23  ;;  %6011 = vpow2.f32 %v1392_v13  ;;  %v11357_v2 = vpack.c.bf16 %v11355_v21, %v11356_v7  ;;  %v2268_v29 = vsel %vm2200_vm4, %v11358_v55, %v2132_v34  ;;  %v11367_v39 = vld [vmem:[#allocation35_spill] sm:$0xff]  ;;  %v11368_v7 = vld [vmem:[#allocation49_spill] sm:$0xff]  ;;  %v11369_v55 = vld [vmem:[#allocation36_spill] sm:$0xff] }
 0x225   : > { %v1460_v20 = vmul.f32 1.442695, %v1342_v38  ;;  %v1577_v58 = vadd.f32 1.0, %v7901_v27  ;;  %v1580_v51 = vmul.f32 -0.5, %v7901_v27  ;;  %v2331_v43 = vpack.c.bf16 %v2268_v29, %v2251_v22 }
 0x226   : > { %v2961_v28 = vand.u32 %v8235_v25, %v11357_v2  ;;  %v2970_v32 = vand.u32 %v8235_v25, %v2348_v18  ;;  %v1730_v3 = vadd.f32 1.0, %v8018_v61  ;;  %v1733_v23 = vmul.f32 -0.5, %v8018_v61 }
 0x227   : > { %v8643_v6 = vsel %vm2223_vm5, %v8241_v49, %v8506_v35  ;;  %v11359_v42 = vsel %vm8460_vm7, %v8457_v44, %v8481_v9  ;;  %6013 = vpow2.f32 %v1460_v20  ;;  %v1595_v13 = vadd.f32 1.0, %v7916_v30  ;;  %3158 = vmatprep.subr.bf16.mxu0 %v2331_v43  ;;  %v11364_v35 = vld [vmem:[#allocation81_spill] sm:$0xff] }
 0x228   : > { %3108 = vmatpush1.bf16.msra.mxu1 %v2961_v28  ;;  %v2157_v46 = vmul.f32 0.01, %v11359_v42  ;;  %v2172_v8 = vmul.f32 0.01, %v2080_v36  ;;  %v2174_v62 = vmul.f32 0.01, %v2098_v0  ;;  %6015 = vlog2.f32 %v1577_v58 }
 0x229   : > { %v1598_v31 = vmul.f32 -0.5, %v7916_v30  ;;  %v11362_v16 = vpack.c.bf16 %v11360_v52, %v11361_v1  ;;  %v1581_v49 = vadd.f32 1.0, %v1580_v51  ;;  %v1583_v9 = vand.u32 2147483647, %v7901_v27  ;;  %v11366_v0 = vld [vmem:[#allocation62_spill] sm:$0xff]  ;;  %v11370_v58 = vld [vmem:[#allocation40_spill] sm:$0xff] }
 0x22a   : > { %6017 = vlog2.f32 %v1730_v3  ;;  %v1736_v44 = vand.u32 2147483647, %v8018_v61  ;;  %v11365_v18 = vpack.c.bf16 %v11363_v63, %v11364_v35  ;;  %v1734_v15 = vadd.f32 1.0, %v1733_v23  ;;  %v11375_v23 = vld [vmem:[#allocation31_spill] sm:$0xff]  ;;  %v11380_v52 = vld [vmem:[#allocation25_spill] sm:$0xff] }
 0x22b   : > { %3159 = vmatpush1.bf16.msra.mxu0 %v11362_v16  ;;  %5483 = vmatmul.mubr.msk.bf16.vlgmr.msra.gmra.mrb[40].mxu1 %vm2937_vm9, %v8312_v33  ;;  %6019 = vlog2.f32 %v1595_v13  ;;  %v1748_v14 = vadd.f32 1.0, %v8257_v48  ;;  %v1599_v36 = vadd.f32 1.0, %v1598_v31  ;;  %v1601_v34 = vand.u32 2147483647, %v7916_v30  ;;  %v8669_v21 = vpop.eup %6007  ;;  %v11378_v13 = vld [vmem:[#allocation65_spill] sm:$0xff] }
 0x22c   : > { %3160 = vmatprep.subr.bf16.mxu0 %v2970_v32  ;;  %v2967_v41 = vand.u32 %v8235_v25, %v11365_v18  ;;  %3147 = vmatprep.mubr.bf16.mxu1 %v11201_v56  ;;  %v1751_v38 = vmul.f32 -0.5, %v8257_v48  ;;  %v2350_v22 = vpack.c.bf16 %v11367_v39, %v11366_v0  ;;  %v8674_v2 = vsel %vm2225_vm10, %v11368_v7, %v2157_v46 }
 0x22d   : > { %v8679_v28 = vsel %vm2240_vm11, %v8353_v17, %v2172_v8  ;;  %6021 = vlog2.f32 %v1748_v14  ;;  %v2352_v29 = vpack.c.bf16 %v8421_v24, %v11369_v55  ;;  %v6010_v20 = vpop.eup %6009  ;;  %v8686_v51 = vsel %vm2242_vm12, %v11370_v58, %v2174_v62  ;;  %v11379_v62 = vld [vmem:[#allocation9_spill] sm:$0xff]  ;;  %v11390_v55 = vld [vmem:[#allocation32_spill] sm:$0xff]  ;;  %v11415_v14 = vld [vmem:[#allocation30_spill] sm:$0xff] }
 0x22e   : > { %v1582_v11 = vmul.f32 %v7901_v27, %v1581_v49  ;;  %vm8689_vm7 = vcmp.lt.f32.partialorder %v1583_v9, 0.0004427343  ;;  %vm8693_vm1 = vcmp.lt.f32.partialorder %v1736_v44, 0.0004427343  ;;  %v8697_v17 = vpop.eup %6011  ;;  %v2099_v24 = vadd.f32 1.0, %v6010_v20  ;;  %v11381_v49 = vld [vmem:[#allocation67_spill] sm:$0xff] }
 0x22f   : > { %3161 = vmatpush1.bf16.msra.mxu0 %v2967_v41  ;;  %v2102_v32 = vmul.f32 -0.5, %v6010_v20  ;;  %v1735_v3 = vmul.f32 %v8018_v61, %v1734_v15  ;;  %v1754_v5 = vand.u32 2147483647, %v8257_v48  ;;  %vm2185_vm13 = vcmp.gt.f32.partialorder %v11375_v23, 20.0  ;;  %v11382_v9 = vld [vmem:[#allocation55_spill] sm:$0xff]  ;;  %v11391_v58 = vld [vmem:[#allocation37_spill] sm:$0xff] }
 0x230   : > { %v1600_v27 = vmul.f32 %v7916_v30, %v1599_v36  ;;  %vm8703_vm14 = vcmp.lt.f32.partialorder %v1601_v34, 0.0004427343  ;;  %v1752_v46 = vadd.f32 1.0, %v1751_v38  ;;  %v1613_v8 = vadd.f32 1.0, %v11378_v13  ;;  %v11383_v44 = vld [vmem:[#allocation71_spill] sm:$0xff]  ;;  %v11387_v34 = vld [vmem:[#allocation45_spill] sm:$0xff] }
 0x231   : > { %vm2202_vm15 = vcmp.gt.f32.partialorder %v11379_v62, 20.0  ;;  %6023 = vlog2.f32 %v2099_v24  ;;  %v2105_v31 = vand.u32 2147483647, %v6010_v20  ;;  %v1616_v61 = vmul.f32 -0.5, %v11378_v13  ;;  %v8713_v16 = vpop.eup %6013  ;;  %v11388_v38 = vld [vmem:[#allocation27_spill] sm:$0xff]  ;;  %v11399_v23 = vld [vmem:[#allocation70_spill] sm:$0xff] }
 0x232   : > { %5485 = vmatmul.mubr.msk.bf16.vlgmr.msra.gmra.mrb[44].mxu0 %vm2937_vm9, %v8312_v33  ;;  %v1766_v1 = vadd.f32 1.0, %v11380_v52  ;;  %v2103_v30 = vadd.f32 1.0, %v2102_v32  ;;  %v11384_v63 = vpack.c.bf16 %v11382_v9, %v11383_v44  ;;  %6025 = vlog2.f32 %v1613_v8  ;;  %v6016_v41 = vpop.eup %6015 }
 0x233   : > { %3200 = vmatprep.mubr.bf16.mxu0 %v11201_v56  ;;  %5484 = vmatmul.mubr.msk.bf16.gmra.mrb[44].mxu1 %vm2937_vm9, %v11381_v49  ;;  %v1619_v18 = vand.u32 2147483647, %v11378_v13  ;;  %v1946_v15 = vadd.f32 1.0, %v8713_v16  ;;  %vm8726_vm0 = vcmp.lt.f32.partialorder %v1754_v5, 0.0004427343  ;;  %v8731_v36 = vand.u32 %v8235_v25, %v2350_v22 }
 0x234   : > { %v8722_v35 = vand.u32 %v8235_v25, %v11384_v63  ;;  %v11389_v0 = vpack.c.bf16 %v11387_v34, %v11388_v38  ;;  %3243 = vmatprep.mubr.bf16.mxu1 %v11201_v56  ;;  %v6018_v7 = vpop.eup %6017  ;;  %vm2187_vm2 = vcmp.gt.f32.partialorder %v11390_v55, 20.0  ;;  %vm2204_vm3 = vcmp.gt.f32.partialorder %v11391_v58, 20.0 }
 0x235   : > { %v1579_v24 = vmul.f32 0.6931472, %v6016_v41  ;;  %v1753_v32 = vmul.f32 %v8257_v48, %v1752_v46  ;;  %v8744_v5 = vand.u32 %v8235_v25, %v2352_v29  ;;  %6027 = vlog2.f32 %v1766_v1  ;;  %v6020_v22 = vpop.eup %6019 }
 0x236   : > { %v8737_v39 = vand.u32 %v8235_v25, %v11389_v0  ;;  %vm8746_vm4 = vcmp.lt.f32.partialorder %v2105_v31, 0.0004427343  ;;  %6029 = vlog2.f32 %v1946_v15  ;;  %v1732_v9 = vmul.f32 0.6931472, %v6018_v7  ;;  %v11396_v15 = vld [vmem:[#allocation19_spill] sm:$0xff] }
 0x237   : > { %v1617_v44 = vadd.f32 1.0, %v1616_v61  ;;  %v2104_v63 = vmul.f32 %v6010_v20, %v2103_v30  ;;  %v1585_v34 = vsel %vm8689_vm7, %v1582_v11, %v1579_v24  ;;  %v1597_v38 = vmul.f32 0.6931472, %v6020_v22  ;;  %v6022_v29 = vpop.eup %6021 }
 0x238   : > { %vm8752_vm5 = vcmp.lt.f32.partialorder %v1619_v18, 0.0004427343  ;;  %v1769_v48 = vmul.f32 -0.5, %v11380_v52  ;;  %v1949_v46 = vmul.f32 -0.5, %v8713_v16  ;;  %v1738_v31 = vsel %vm8693_vm1, %v1735_v3, %v1732_v9  ;;  %v11397_v18 = vld [vmem:[#allocation83_spill] sm:$0xff]  ;;  %v11398_v3 = vld [vmem:[#allocation18_spill] sm:$0xff] }
 0x239   : > { %v2117_v1 = vmul.f32 0.01, %v1585_v34  ;;  %v1631_v61 = vadd.f32 1.0, %v11396_v15  ;;  %v1952_v20 = vand.u32 2147483647, %v8713_v16  ;;  %v1603_v11 = vsel %vm8703_vm14, %v1600_v27, %v1597_v38  ;;  %v11400_v34 = vld [vmem:[#allocation59_spill] sm:$0xff] }
 0x23a   : > { %v2134_v43 = vmul.f32 0.01, %v1738_v31  ;;  %v1750_v30 = vmul.f32 0.6931472, %v6022_v29  ;;  %v2119_v7 = vmul.f32 0.01, %v1603_v11  ;;  %5486 = vmatmul.mubr.msk.bf16.gmra.mrb[48].mxu0 %vm2937_vm9, %v11381_v49  ;;  %v1618_v12 = vmul.f32 %v11378_v13, %v1617_v44 }
 0x23b   : > { %v2253_v0 = vsel %vm2185_vm13, %v11397_v18, %v2117_v1  ;;  %6031 = vlog2.f32 %v1631_v61  ;;  %3296 = vmatprep.mubr.bf16.mxu0 %v11201_v56  ;;  %v1634_v27 = vmul.f32 -0.5, %v11396_v15  ;;  %v1784_v22 = vadd.f32 1.0, %v11399_v23  ;;  %v6024_v9 = vpop.eup %6023  ;;  %v11401_v38 = vld [vmem:[#allocation43_spill] sm:$0xff]  ;;  %v11404_v61 = vld [vmem:[#allocation61_spill] sm:$0xff] }
 0x23c   : > { %v2270_v24 = vsel %vm2202_vm15, %v11398_v3, %v2134_v43  ;;  %v1756_v42 = vsel %vm8726_vm0, %v1753_v32, %v1750_v30  ;;  %vm2189_vm6 = vcmp.gt.f32.partialorder %v11400_v34, 20.0  ;;  %vm2206_vm8 = vcmp.gt.f32.partialorder %v11401_v38, 20.0  ;;  %v6026_v62 = vpop.eup %6025  ;;  %v11405_v43 = vld [vmem:[#allocation10_spill] sm:$0xff]  ;;  %v11406_v3 = vld [vmem:[#allocation41_spill] sm:$0xff] }
 0x23d   : > { %v1950_v13 = vadd.f32 1.0, %v1949_v46  ;;  %v2333_v44 = vpack.c.bf16 %v2270_v24, %v2253_v0  ;;  %v2136_v29 = vmul.f32 0.01, %v1756_v42  ;;  %v1770_v31 = vadd.f32 1.0, %v1769_v48  ;;  %v11407_v24 = vld [vmem:[#allocation38_spill] sm:$0xff] }
 0x23e   : > { %v2101_v1 = vmul.f32 0.6931472, %v6024_v9  ;;  %vm2243_vm10 = vcmp.gt.f32.partialorder %v8576_v40, 20.0  ;;  %vm8781_vm11 = vcmp.lt.f32.partialorder %v1952_v20, 0.0004427343  ;;  %vm2226_vm12 = vcmp.gt.f32.partialorder %v8609_v57, 20.0 }
 0x23f   : > { %v1772_v32 = vand.u32 2147483647, %v11380_v52  ;;  %6033 = vlog2.f32 %v1784_v22  ;;  %3211 = vmatprep.subr.bf16.mxu1 %v2333_v44  ;;  %v2255_v46 = vsel %vm2187_vm2, %v11404_v61, %v2119_v7  ;;  %v2272_v48 = vsel %vm2204_vm3, %v11405_v43, %v2136_v29  ;;  %v6028_v30 = vpop.eup %6027  ;;  %v11416_v57 = vld [vmem:[#allocation44_spill] sm:$0xff] }
 0x240   : > { %v1615_v11 = vmul.f32 0.6931472, %v6026_v62  ;;  %v1637_v20 = vand.u32 2147483647, %v11396_v15  ;;  %v2107_v18 = vsel %vm8746_vm4, %v2104_v63, %v2101_v1  ;;  %v2335_v0 = vpack.c.bf16 %v2272_v48, %v2255_v46  ;;  %v6030_v7 = vpop.eup %6029  ;;  %v11409_v1 = vld [vmem:[#allocation50_spill] sm:$0xff] }
 0x241   : > { %v11408_v42 = vpack.c.bf16 %v11406_v3, %v11407_v24  ;;  %v1635_v22 = vadd.f32 1.0, %v1634_v27  ;;  %v2354_v55 = vpack.c.bf16 %v8679_v28, %v8643_v6  ;;  %v1768_v9 = vmul.f32 0.6931472, %v6028_v30  ;;  %v11410_v6 = vld [vmem:[#allocation42_spill] sm:$0xff] }
 0x242   : > { %v1621_v58 = vsel %vm8752_vm5, %v1618_v12, %v1615_v11  ;;  %v1771_v44 = vmul.f32 %v11380_v52, %v1770_v31  ;;  %v1787_v8 = vmul.f32 -0.5, %v11399_v23  ;;  %v1948_v63 = vmul.f32 0.6931472, %v6030_v7  ;;  %3264 = vmatprep.subr.bf16.mxu0 %v2335_v0  ;;  %v11420_v7 = vld [vmem:[#allocation64_spill] sm:$0xff] }
 0x243   : > { %3212 = vmatpush1.bf16.msra.mxu1 %v11408_v42  ;;  %v1951_v29 = vmul.f32 %v8713_v16, %v1950_v13  ;;  %vm1773_vm7 = vcmp.lt.f32.partialorder %v1772_v32, 0.0004427343  ;;  %v2121_v27 = vmul.f32 0.01, %v1621_v58  ;;  %v2175_v62 = vmul.f32 0.01, %v2107_v18 }
 0x244   : > { %3213 = vmatprep.subr.bf16.mxu1 %v8731_v36  ;;  %v11411_v28 = vpack.c.bf16 %v11409_v1, %v11410_v6  ;;  %v1774_v36 = vsel %vm1773_vm7, %v1771_v44, %v1768_v9  ;;  %vm8810_vm1 = vcmp.lt.f32.partialorder %v1637_v20, 0.0004427343  ;;  %v2356_v52 = vpack.c.bf16 %v8686_v51, %v8674_v2  ;;  %v11414_v2 = vld [vmem:[#allocation72_spill] sm:$0xff]  ;;  %v11421_v58 = vld [vmem:[#allocation57_spill] sm:$0xff]  ;;  %v11423_v6 = vld [vmem:[#allocation66_spill] sm:$0xff] }
 0x245   : > { %v1954_v12 = vsel %vm8781_vm11, %v1951_v29, %v1948_v63  ;;  %v2138_v16 = vmul.f32 0.01, %v1774_v36  ;;  %v1636_v13 = vmul.f32 %v11396_v15, %v1635_v22  ;;  %v1790_v31 = vand.u32 2147483647, %v11399_v23  ;;  %v6032_v32 = vpop.eup %6031  ;;  %v11422_v44 = vld [vmem:[#allocation60_spill] sm:$0xff] }
 0x246   : > { %3265 = vmatpush1.bf16.msra.mxu0 %v11411_v28  ;;  %v2158_v61 = vmul.f32 0.01, %v1954_v12  ;;  %v1788_v46 = vadd.f32 1.0, %v1787_v8  ;;  %v2988_v43 = vand.u32 %v8235_v25, %v2354_v55  ;;  %v1640_v48 = vadd.f32 1.0, %v8697_v17  ;;  %v11419_v55 = vld [vmem:[#allocation23_spill] sm:$0xff] }
 0x247   : > { %3266 = vmatprep.subr.bf16.mxu0 %v8744_v5  ;;  %3214 = vmatpush1.bf16.msra.mxu1 %v8722_v35  ;;  %v2257_v51 = vsel %vm2189_vm6, %v11414_v2, %v2121_v27  ;;  %v2274_v35 = vsel %vm2206_vm8, %v11415_v14, %v2138_v16  ;;  %v1633_v5 = vmul.f32 0.6931472, %v6032_v32  ;;  %v1793_v15 = vadd.f32 1.0, %v8669_v21  ;;  %v11424_v28 = vld [vmem:[#allocation39_spill] sm:$0xff] }
 0x248   : > { %v8834_v11 = vsel %vm2243_vm10, %v8547_v10, %v2175_v62  ;;  %v8839_v20 = vsel %vm2226_vm12, %v8590_v53, %v2158_v61  ;;  %v2337_v34 = vpack.c.bf16 %v2274_v35, %v2257_v51  ;;  %6035 = vlog2.f32 %v1640_v48 }
 0x249   : > { %v6034_v38 = vpop.eup %6033  ;;  %v1639_v30 = vsel %vm8810_vm1, %v1636_v13, %v1633_v5  ;;  %6037 = vlog2.f32 %v1793_v15  ;;  %v1789_v40 = vmul.f32 %v11399_v23, %v1788_v46  ;;  %vm1791_vm13 = vcmp.lt.f32.partialorder %v1790_v31, 0.0004427343 }
 0x24a   : > { %3267 = vmatpush1.bf16.msra.mxu0 %v8737_v39  ;;  %5487 = vmatmul.mubr.msk.bf16.vlgmr.msra.gmra.mrb[48].mxu1 %vm2937_vm9, %v8312_v33  ;;  %v1786_v10 = vmul.f32 0.6931472, %v6034_v38  ;;  %v2123_v53 = vmul.f32 0.01, %v1639_v30  ;;  %v11417_v39 = vld [vmem:[#allocation69_spill] sm:$0xff]  ;;  %v1643_v0 = vmul.f32 -0.5, %v8697_v17  ;;  %v2357_v3 = vpack.c.bf16 %v8834_v11, %v8839_v20 }
 0x24b   : > { %3253 = vmatprep.mubr.bf16.mxu1 %v11201_v56  ;;  %3317 = vmatprep.subr.bf16.mxu1 %v2337_v34  ;;  %v11418_v18 = vpack.c.bf16 %v11416_v57, %v11417_v39  ;;  %v1796_v23 = vmul.f32 -0.5, %v8669_v21  ;;  %v2985_v22 = vand.u32 %v8235_v25, %v2353_v26  ;;  %vm2191_vm14 = vcmp.gt.f32.partialorder %v11419_v55, 20.0 }
 0x24c   : > { %v1792_v24 = vsel %vm1791_vm13, %v1789_v40, %v1786_v10  ;;  %vm2208_vm15 = vcmp.gt.f32.partialorder %v11420_v7, 20.0  ;;  %v2259_v9 = vsel %vm2191_vm14, %v11421_v58, %v2123_v53  ;;  %v1644_v63 = vadd.f32 1.0, %v1643_v0 }
 0x24d   : > { %5489 = vmatmul.mubr.msk.bf16.vlgmr.msra.gmra.mrb[52].mxu0 %vm2937_vm9, %v8312_v33  ;;  %3318 = vmatpush1.bf16.msra.mxu1 %v11418_v18  ;;  %v2140_v42 = vmul.f32 0.01, %v1792_v24  ;;  %v2994_v27 = vand.u32 %v8235_v25, %v2356_v52  ;;  %v1646_v59 = vand.u32 2147483647, %v8697_v17  ;;  %v1797_v45 = vadd.f32 1.0, %v1796_v23 }
 0x24e   : > { %3306 = vmatprep.mubr.bf16.mxu0 %v11201_v56  ;;  %3319 = vmatprep.subr.bf16.mxu1 %v2988_v43  ;;  %v1799_v26 = vand.u32 2147483647, %v8669_v21  ;;  %v11425_v36 = vpack.c.bf16 %v11423_v6, %v11424_v28  ;;  %v1645_v12 = vmul.f32 %v8697_v17, %v1644_v63  ;;  %v2991_v13 = vand.u32 %v8235_v25, %v2355_v19 }
 0x24f   : > { %v2276_v8 = vsel %vm2208_vm15, %v11422_v44, %v2140_v42  ;;  %vm1647_vm0 = vcmp.lt.f32.partialorder %v1646_v59, 0.0004427343  ;;  %v1798_v16 = vmul.f32 %v8669_v21, %v1797_v45  ;;  %vm2192_vm3 = vcmp.gt.f32.partialorder %v8573_v50, 20.0 }
 0x250   : > { %v2339_v29 = vpack.c.bf16 %v2276_v8, %v2259_v9  ;;  %vm1800_vm2 = vcmp.lt.f32.partialorder %v1799_v26, 0.0004427343  ;;  %vm2209_vm4 = vcmp.gt.f32.partialorder %v8570_v60, 20.0  ;;  %v2997_v19 = vand.u32 %v8235_v25, %v2357_v3  ;;  %v8905_v25 = vpop.permute.xlu0 %3474 }
 0x251   : > { %3320 = vmatpush1.bf16.msra.mxu1 %v2985_v22 }
 0x252   : > { %5488 = vmatmul.mubr.msk.bf16.gmra.mrb[52].mxu1 %vm2937_vm9, %v11381_v49  ;;  %v6036_v62 = vpop.eup %6035  ;;  %3370 = vmatprep.subr.bf16.mxu0 %v2339_v29 }
 0x253   : > { %3349 = vmatprep.mubr.bf16.mxu1 %v11201_v56  ;;  %v6038_v1 = vpop.eup %6037  ;;  %3371 = vmatpush1.bf16.msra.mxu0 %v11425_v36  ;;  %v1642_v41 = vmul.f32 0.6931472, %v6036_v62 }
 0x254   : > { %3372 = vmatprep.subr.bf16.mxu0 %v2994_v27  ;;  %v1795_v52 = vmul.f32 0.6931472, %v6038_v1  ;;  %v8940_v53 = vpop.permute.xlu0 %3484 }
 0x255   : > { %5490 = vmatmul.mubr.msk.bf16.gmra.mrb[56].mxu0 %vm2937_vm9, %v11381_v49  ;;  %v1648_v31 = vsel %vm1647_vm0, %v1645_v12, %v1642_v41 }
 0x256   : > { %3402 = vmatprep.mubr.bf16.mxu0 %v11201_v56  ;;  %v1801_v32 = vsel %vm1800_vm2, %v1798_v16, %v1795_v52  ;;  %v2124_v61 = vmul.f32 0.01, %v1648_v31 }
 0x257   : > { %3373 = vmatpush1.bf16.msra.mxu0 %v2991_v13  ;;  %v2141_v17 = vmul.f32 0.01, %v1801_v32 }
 0x258   : > { %v2260_v46 = vsel %vm2192_vm3, %v8543_v54, %v2124_v61 }
 0x259   : > { %v2277_v4 = vsel %vm2209_vm4, %v8534_v37, %v2141_v17  ;;  %v11426_v37 = vmov 0.0  }
 0x25a   : > { %5491 = vmatmul.mubr.msk.bf16.vlgmr.msra.gmra.mrb[56].mxu1 %vm2937_vm9, %v8312_v33  ;;  %v2340_v47 = vpack.c.bf16 %v2277_v4, %v2260_v46 }
 0x25b   : > { %3359 = vmatprep.mubr.bf16.mxu1 %v11201_v56 }
 0x25c   : > { %5542 = vmatprep.subr.bf16.mxu1 %v2340_v47 }
 0x25d   : > { %5493 = vmatmul.mubr.msk.bf16.vlgmr.msra.gmra.mrb[60].mxu0 %vm2937_vm9, %v8312_v33  ;;  %5543 = vmatpush3.bf16.msra.mxu1 %v2340_v47 }
 0x25e   : > { %3412 = vmatprep.mubr.bf16.mxu0 %v11201_v56  ;;  %5544 = vmatprep.subr.bf16.mxu1 %v2997_v19  ;;  %v8907_v56 = vpop.permute.xlu1 %3479 }
 0x261   : > { %5545 = vmatpush3.bf16.msra.mxu1 %v2997_v19 }
 0x262   : > { %5492 = vmatmul.mubr.msk.bf16.gmra.mrb[60].mxu1 %vm2937_vm9, %v11381_v49  ;;  %v8963_v59 = vpop.permute.xlu1 %3489 }
 0x263   : > { %5546 = vmatprep.mubr.msk.bf16.mxu1 %vm2937_vm9, %v8312_v33 }
 0x265   : > { %5494 = vmatmul.mubr.msk.bf16.gmra.mrb[64].mxu0 %vm2937_vm9, %v11381_v49 }
 0x266   : > { %4723 = vmatprep.mubr.f32.mxu0 %v11426_v37 }
 0x26a   : > { %5547 = vmatmul.mubr.msk.bf16.vlgmr.msra.gmra.mrb[64].mxu1 %vm2937_vm9, %v11381_v49 }
 0x26b   : > { %4865 = vmatprep.mubr.f32.mxu1 %v11426_v37 }
 0x2c6   : > { %v3033_v54 = vpop.f32.mrb[32].mxu1 }
 0x2c7   : > { %v8910_v60 = vadd.f32 %v8905_v25, %v3033_v54  ;;  %v3086_v50 = vpop.f32.mrb[36].mxu0  ;;  %v3035_v33 = vpop.f32.mrb[33].mxu1 }
 0x2c8   : > { %v8913_v21 = vadd.f32 %v8905_v25, %v3086_v50  ;;  %v3088_v43 = vpop.f32.mrb[37].mxu0  ;;  %v3037_v48 = vpop.f32.mrb[34].mxu1  ;;  %v8969_v41 = vadd.f32 %v8905_v25, %v3035_v33 }
 0x2c9   : > { %v8916_v2 = vmul.f32 100.0, %v8910_v60  ;;  %v8919_v49 = vadd.f32 %v8907_v56, %v3037_v48  ;;  %v3090_v51 = vpop.f32.mrb[38].mxu0  ;;  %v8921_v14 = vpop.f32.mrb[35].mxu1  ;;  %v8981_v17 = vadd.f32 %v8905_v25, %v3088_v43 }
 0x2ca   : > { %v8924_v35 = vmul.f32 100.0, %v8913_v21  ;;  %v8927_v5 = vadd.f32 %v8907_v56, %v3090_v51  ;;  %v8929_v15 = vpop.f32.mrb[39].mxu0  ;;  %11427 = vst [vmem:[#allocation20_spill] sm:$0xff] %v8969_v41  ;;  %v8984_v46 = vmul.f32 100.0, %v8969_v41  ;;  %v8994_v48 = vadd.f32 %v8907_v56, %v8921_v14 }
 0x2cb   : > { %v3628_v11 = vmin.f32 %v8916_v2, 20.0  ;;  %v8933_v20 = vmul.f32 100.0, %v8919_v49  ;;  %11428 = vst [vmem:[#allocation63_spill] sm:$0xff] %v8981_v17  ;;  %vm4512_vm5 = vcmp.gt.f32.partialorder %v8916_v2, 20.0 }
 0x2cc   : > { %v3630_v34 = vmin.f32 %v8924_v35, 20.0  ;;  %v8938_v40 = vmul.f32 100.0, %v8927_v5  ;;  %11429 = vst [vmem:[#allocation17_spill] sm:$0xff] %v8994_v48  ;;  %vm4514_vm6 = vcmp.gt.f32.partialorder %v8924_v35, 20.0 }
 0x2cd   : > { %v3696_v38 = vmul.f32 1.442695, %v3628_v11  ;;  %v3645_v30 = vmin.f32 %v8933_v20, 20.0  ;;  %vm4529_vm10 = vcmp.gt.f32.partialorder %v8933_v20, 20.0 }
 0x2ce   : > { %v3700_v10 = vmul.f32 1.442695, %v3630_v34  ;;  %v3043_v39 = vpop.f32.mrb[36].mxu1  ;;  %v3647_v18 = vmin.f32 %v8938_v40, 20.0  ;;  %v8999_v34 = vmul.f32 100.0, %v8981_v17  ;;  %vm4531_vm7 = vcmp.gt.f32.partialorder %v8938_v40, 20.0 }
 0x2cf   : > { %6039 = vpow2.f32 %v3696_v38  ;;  %v3730_v57 = vmul.f32 1.442695, %v3645_v30  ;;  %v3096_v0 = vpop.f32.mrb[40].mxu0  ;;  %v3045_v3 = vpop.f32.mrb[37].mxu1  ;;  %v8944_v24 = vadd.f32 %v8940_v53, %v3043_v39 }
 0x2d0   : > { %6041 = vpow2.f32 %v3700_v10  ;;  %v8946_v23 = vpop.f32.mrb[41].mxu0  ;;  %v3047_v42 = vpop.f32.mrb[38].mxu1  ;;  %v3734_v22 = vmul.f32 1.442695, %v3647_v18  ;;  %v8949_v55 = vadd.f32 %v8940_v53, %v3096_v0  ;;  %11430 = vst [vmem:[#allocation33_spill] sm:$0xff] %v8999_v34  ;;  %v9005_v39 = vadd.f32 %v8940_v53, %v3045_v3 }
 0x2d1   : > { %v3100_v7 = vpop.f32.mrb[42].mxu0  ;;  %v8951_v58 = vpop.f32.mrb[39].mxu1  ;;  %6043 = vpow2.f32 %v3730_v57  ;;  %v8954_v9 = vmul.f32 100.0, %v8944_v24  ;;  %v8966_v62 = vadd.f32 %v8963_v59, %v3047_v42  ;;  %v3629_v57 = vmin.f32 %v8984_v46, 20.0 }
 0x2d2   : > { %v8956_v44 = vpop.f32.mrb[43].mxu0  ;;  %6045 = vpow2.f32 %v3734_v22  ;;  %v8959_v8 = vmul.f32 100.0, %v8949_v55  ;;  %v8977_v31 = vadd.f32 %v8963_v59, %v3100_v7  ;;  %11431 = vst [vmem:[#allocation47_spill] sm:$0xff] %v9005_v39 }
 0x2d3   : > { %v3662_v63 = vmin.f32 %v8954_v9, 20.0  ;;  %v8972_v12 = vmul.f32 100.0, %v8966_v62  ;;  %vm4546_vm1 = vcmp.gt.f32.partialorder %v8954_v9, 20.0 }
 0x2d4   : > { %v3664_v29 = vmin.f32 %v8959_v8, 20.0  ;;  %v8988_v54 = vmul.f32 100.0, %v8977_v31  ;;  %vm4548_vm0 = vcmp.gt.f32.partialorder %v8959_v8, 20.0 }
 0x2d5   : > { %v3764_v27 = vmul.f32 1.442695, %v3662_v63  ;;  %v3679_v4 = vmin.f32 %v8972_v12, 20.0  ;;  %vm4563_vm15 = vcmp.gt.f32.partialorder %v8972_v12, 20.0 }
 0x2d6   : > { %v3768_v45 = vmul.f32 1.442695, %v3664_v29  ;;  %v3681_v30 = vmin.f32 %v8988_v54, 20.0  ;;  %vm4565_vm3 = vcmp.gt.f32.partialorder %v8988_v54, 20.0 }
 0x2d7   : > { %6047 = vpow2.f32 %v3764_v27  ;;  %v3798_v43 = vmul.f32 1.442695, %v3679_v4 }
 0x2d8   : > { %6049 = vpow2.f32 %v3768_v45  ;;  %v3802_v22 = vmul.f32 1.442695, %v3681_v30 }
 0x2d9   : > { %v6040_v26 = vpop.eup %6039 }
 0x2da   : > { %v6042_v1 = vpop.eup %6041  ;;  %v3832_v6 = vadd.f32 1.0, %v6040_v26  ;;  %v3835_v16 = vmul.f32 -0.5, %v6040_v26  ;;  %v3838_v19 = vand.u32 2147483647, %v6040_v26 }
 0x2db   : > { %v3850_v28 = vadd.f32 1.0, %v6042_v1  ;;  %v6044_v36 = vpop.eup %6043  ;;  %v3853_v61 = vmul.f32 -0.5, %v6042_v1  ;;  %v3856_v10 = vand.u32 2147483647, %v6042_v1 }
 0x2dc   : > { %6051 = vlog2.f32 %v3832_v6  ;;  %v8974_v52 = vpop.eup %6045  ;;  %v3985_v13 = vadd.f32 1.0, %v6044_v36  ;;  %v3836_v47 = vadd.f32 1.0, %v3835_v16  ;;  %v3988_v33 = vmul.f32 -0.5, %v6044_v36 }
 0x2dd   : > { %6053 = vlog2.f32 %v3850_v28  ;;  %v4003_v32 = vadd.f32 1.0, %v8974_v52  ;;  %v3854_v11 = vadd.f32 1.0, %v3853_v61  ;;  %v4006_v38 = vmul.f32 -0.5, %v8974_v52 }
 0x2de   : > { %6055 = vlog2.f32 %v3985_v13  ;;  %v3837_v18 = vmul.f32 %v6040_v26, %v3836_v47  ;;  %vm9007_vm9 = vcmp.lt.f32.partialorder %v3838_v19, 0.0004427343  ;;  %v3989_v29 = vadd.f32 1.0, %v3988_v33 }
 0x2df   : > { %6057 = vlog2.f32 %v4003_v32  ;;  %v3991_v27 = vand.u32 2147483647, %v6044_v36  ;;  %v3855_v6 = vmul.f32 %v6042_v1, %v3854_v11  ;;  %v4007_v26 = vadd.f32 1.0, %v4006_v38 }
 0x2e0   : > { %6059 = vpow2.f32 %v3798_v43  ;;  %vm9017_vm8 = vcmp.lt.f32.partialorder %v3856_v10, 0.0004427343  ;;  %v3698_v13 = vmul.f32 1.442695, %v3629_v57  ;;  %v4009_v32 = vand.u32 2147483647, %v8974_v52 }
 0x2e1   : > { %v8990_v50 = vpop.eup %6047  ;;  %6061 = vpow2.f32 %v3802_v22  ;;  %v9026_v1 = vmul.f32 100.0, %v8994_v48  ;;  %v3990_v33 = vmul.f32 %v6044_v36, %v3989_v29  ;;  %v9029_v43 = vmul.f32 100.0, %v9005_v39 }
 0x2e2   : > { %v8996_v51 = vpop.eup %6049  ;;  %v4138_v42 = vadd.f32 1.0, %v8990_v50  ;;  %vm3992_vm11 = vcmp.lt.f32.partialorder %v3991_v27, 0.0004427343  ;;  %v4008_v30 = vmul.f32 %v8974_v52, %v4007_v26  ;;  %vm4010_vm12 = vcmp.lt.f32.partialorder %v4009_v32, 0.0004427343 }
 0x2e3   : > { %v4156_v45 = vadd.f32 1.0, %v8996_v51  ;;  %11436 = vst [vmem:[#allocation46_spill] sm:$0xff] %v9026_v1  ;;  %11437 = vst [vmem:[#allocation52_spill] sm:$0xff] %v9029_v43  ;;  %v9035_v36 = vadd.f32 %v8907_v56, %v8929_v15  ;;  %v3646_v22 = vmin.f32 %v9026_v1, 20.0  ;;  %v9043_v52 = vadd.f32 %v8940_v53, %v8946_v23 }
 0x2e4   : > { %6063 = vlog2.f32 %v4138_v42  ;;  %v9058_v27 = vadd.f32 %v8963_v59, %v8951_v58  ;;  %v3631_v58 = vmin.f32 %v8999_v34, 20.0 }
 0x2e5   : > { %6065 = vlog2.f32 %v4156_v45  ;;  %11438 = vst [vmem:[#allocation51_spill] sm:$0xff] %v9035_v36  ;;  %11439 = vst [vmem:[#allocation15_spill] sm:$0xff] %v9043_v52  ;;  %v3732_v35 = vmul.f32 1.442695, %v3646_v22  ;;  %v9088_v32 = vmul.f32 100.0, %v9043_v52 }
 0x2e6   : > { %v6052_v14 = vpop.eup %6051  ;;  %6067 = vpow2.f32 %v3698_v13  ;;  %11442 = vst [vmem:[#allocation21_spill] sm:$0xff] %v9058_v27  ;;  %v9085_v26 = vmul.f32 100.0, %v9058_v27 }
 0x2e7   : > { %v6054_v7 = vpop.eup %6053  ;;  %v3834_v63 = vmul.f32 0.6931472, %v6052_v14  ;;  %11447 = vst [vmem:[#allocation68_spill] sm:$0xff] %v9088_v32 }
 0x2e8   : > { %v3852_v3 = vmul.f32 0.6931472, %v6054_v7  ;;  %v6056_v61 = vpop.eup %6055  ;;  %v3663_v7 = vmin.f32 %v9029_v43, 20.0  ;;  %11446 = vst [vmem:[#allocation56_spill] sm:$0xff] %v9085_v26 }
 0x2e9   : > { %v3840_v28 = vsel %vm9007_vm9, %v3837_v18, %v3834_v63  ;;  %v6058_v47 = vpop.eup %6057  ;;  %v3987_v19 = vmul.f32 0.6931472, %v6056_v61  ;;  %v9090_v61 = vmul.f32 1.442695, %v3631_v58 }
 0x2ea   : > { %v3858_v4 = vsel %vm9017_vm8, %v3855_v6, %v3852_v3  ;;  %v4444_v11 = vmul.f32 0.01, %v3840_v28  ;;  %v4005_v38 = vmul.f32 0.6931472, %v6058_v47  ;;  %v9037_v0 = vpop.eup %6059  ;;  %v9080_v3 = vmul.f32 100.0, %v9035_v36 }
 0x2eb   : > { %v4446_v10 = vmul.f32 0.01, %v3858_v4  ;;  %v3993_v57 = vsel %vm3992_vm11, %v3990_v33, %v3987_v19  ;;  %v4291_v29 = vadd.f32 1.0, %v9037_v0  ;;  %v9073_v20 = vpop.eup %6061  ;;  %v4294_v6 = vmul.f32 -0.5, %v9037_v0 }
 0x2ec   : > { %v4461_v14 = vmul.f32 0.01, %v3993_v57  ;;  %v4011_v18 = vsel %vm4010_vm12, %v4008_v30, %v4005_v38  ;;  %v9048_v63 = vsel %vm4512_vm5, %v8910_v60, %v4444_v11  ;;  %11445 = vst [vmem:[#allocation11_spill] sm:$0xff] %v9080_v3  ;;  %v4309_v40 = vadd.f32 1.0, %v9073_v20 }
 0x2ed   : > { %v4463_v42 = vmul.f32 0.01, %v4011_v18  ;;  %11440 = vst [vmem:[#allocation16_spill] sm:$0xff] %v9048_v63  ;;  %v9063_v23 = vsel %vm4514_vm6, %v8913_v21, %v4446_v10  ;;  %v4159_v21 = vmul.f32 -0.5, %v8996_v51  ;;  %6069 = vlog2.f32 %v4291_v29 }
 0x2ee   : > { %v9053_v15 = vsel %vm4529_vm10, %v8919_v49, %v4461_v14  ;;  %11443 = vst [vmem:[#allocation24_spill] sm:$0xff] %v9063_v23  ;;  %v4141_v49 = vmul.f32 -0.5, %v8990_v50  ;;  %v3766_v13 = vmul.f32 1.442695, %v3663_v7  ;;  %6071 = vlog2.f32 %v4309_v40 }
 0x2ef   : > { %11441 = vst [vmem:[#allocation73_spill] sm:$0xff] %v9053_v15  ;;  %v9070_v2 = vsel %vm4531_vm7, %v8927_v5, %v4463_v42  ;;  %v6064_v5 = vpop.eup %6063  ;;  %v4144_v4 = vand.u32 2147483647, %v8990_v50  ;;  %v4160_v47 = vadd.f32 1.0, %v4159_v21  ;;  %6073 = vpow2.f32 %v3732_v35 }
 0x2f0   : > { %11444 = vst [vmem:[#allocation12_spill] sm:$0xff] %v9070_v2  ;;  %v6066_v28 = vpop.eup %6065  ;;  %v4142_v16 = vadd.f32 1.0, %v4141_v49  ;;  %v3648_v19 = vmin.f32 %v9080_v3, 20.0  ;;  %v4140_v33 = vmul.f32 0.6931472, %v6064_v5  ;;  %v4295_v10 = vadd.f32 1.0, %v4294_v6 }
 0x2f1   : > { %v4162_v11 = vand.u32 2147483647, %v8996_v51  ;;  %v9095_v38 = vpop.eup %6067  ;;  %v4158_v30 = vmul.f32 0.6931472, %v6066_v28  ;;  %v4312_v57 = vmul.f32 -0.5, %v9073_v20  ;;  %v3680_v14 = vmin.f32 %v9085_v26, 20.0 }
 0x2f2   : > { %v4143_v18 = vmul.f32 %v8990_v50, %v4142_v16  ;;  %6075 = vpow2.f32 %v3766_v13  ;;  %v3665_v42 = vmin.f32 %v9088_v32, 20.0  ;;  %vm9102_vm13 = vcmp.lt.f32.partialorder %v4144_v4, 0.0004427343 }
 0x2f3   : > { %v4161_v7 = vmul.f32 %v8996_v51, %v4160_v47  ;;  %v4297_v29 = vand.u32 2147483647, %v9037_v0  ;;  %v9110_v49 = vadd.f32 %v8963_v59, %v8956_v44  ;;  %vm9114_vm14 = vcmp.lt.f32.partialorder %v4162_v11, 0.0004427343 }
 0x2f4   : > { %v4146_v50 = vsel %vm9102_vm13, %v4143_v18, %v4140_v33  ;;  %v4296_v5 = vmul.f32 %v9037_v0, %v4295_v10  ;;  %v4313_v6 = vadd.f32 1.0, %v4312_v57  ;;  %v3800_v28 = vmul.f32 1.442695, %v3680_v14 }
 0x2f5   : > { %11450 = vst [vmem:[#allocation78_spill] sm:$0xff] %v9110_v49  ;;  %v4164_v44 = vsel %vm9114_vm14, %v4161_v7, %v4158_v30  ;;  %v4315_v4 = vand.u32 2147483647, %v9073_v20  ;;  %v4478_v18 = vmul.f32 0.01, %v4146_v50  ;;  %v9139_v0 = vmul.f32 100.0, %v9110_v49 }
 0x2f6   : > { %vm4298_vm2 = vcmp.lt.f32.partialorder %v4297_v29, 0.0004427343  ;;  %v3841_v22 = vadd.f32 1.0, %v9095_v38  ;;  %v4480_v7 = vmul.f32 0.01, %v4164_v44  ;;  %v4314_v50 = vmul.f32 %v9073_v20, %v4313_v6 }
 0x2f7   : > { %v6070_v40 = vpop.eup %6069  ;;  %11453 = vst [vmem:[#allocation34_spill] sm:$0xff] %v9139_v0  ;;  %vm4316_vm4 = vcmp.lt.f32.partialorder %v4315_v4, 0.0004427343  ;;  %6077 = vpow2.f32 %v3800_v28  ;;  %v3770_v8 = vmul.f32 1.442695, %v3665_v42 }
 0x2f8   : > { %v4293_v13 = vmul.f32 0.6931472, %v6070_v40  ;;  %v6072_v30 = vpop.eup %6071 }
 0x2f9   : > { %v4311_v21 = vmul.f32 0.6931472, %v6072_v30  ;;  %v9147_v29 = vpop.eup %6073 }
 0x2fa   : > { %v4299_v10 = vsel %vm4298_vm2, %v4296_v5, %v4293_v13  ;;  %11454 = vst [vmem:[#allocation28_spill] sm:$0xff] %v9147_v29  ;;  %v9153_v13 = vsel %vm4546_vm1, %v8944_v24, %v4478_v18  ;;  %v3682_v24 = vmin.f32 %v9139_v0, 20.0 }
 0x2fb   : > { %11455 = vst [vmem:[#allocation29_spill] sm:$0xff] %v9153_v13  ;;  %v4317_v30 = vsel %vm4316_vm4, %v4314_v50, %v4311_v21 }
 0x2fc   : > { %v9165_v4 = vpop.eup %6075  ;;  %v4497_v9 = vmul.f32 0.01, %v4317_v30 }
 0x2fd   : > { %11457 = vst [vmem:[#allocation13_spill] sm:$0xff] %v9165_v4 }
 0x2fe   : > { %v3139_v58 = vpop.f32.mrb[40].mxu1 }
 0x2ff   : > { %v9120_v35 = vadd.f32 %v8905_v25, %v3139_v58  ;;  %v9122_v51 = vpop.f32.mrb[41].mxu1  ;;  %v4495_v58 = vmul.f32 0.01, %v4299_v10 }
 0x300   : > { %v3143_v16 = vpop.f32.mrb[42].mxu1 }
 0x301   : > { %v9130_v47 = vmul.f32 100.0, %v9120_v35  ;;  %v9133_v33 = vadd.f32 %v8907_v56, %v3143_v16  ;;  %v9135_v11 = vpop.f32.mrb[43].mxu1  ;;  %v9158_v44 = vsel %vm4563_vm15, %v8966_v62, %v4495_v58 }
 0x302   : > { %11456 = vst [vmem:[#allocation53_spill] sm:$0xff] %v9158_v44  ;;  %v9244_v49 = vadd.f32 %v8907_v56, %v9135_v11 }
 0x303   : > { %v3632_v57 = vmin.f32 %v9130_v47, 20.0  ;;  %v9143_v14 = vmul.f32 100.0, %v9133_v33  ;;  %vm4516_vm5 = vcmp.gt.f32.partialorder %v9130_v47, 20.0 }
 0x304   : > { %11463 = vst [vmem:[#allocation48_spill] sm:$0xff] %v9244_v49  ;;  %v9268_v37 = vmul.f32 100.0, %v9244_v49 }
 0x305   : > { %v3704_v40 = vmul.f32 1.442695, %v3632_v57  ;;  %v3192_v16 = vpop.f32.mrb[44].mxu0  ;;  %v3649_v5 = vmin.f32 %v9143_v14, 20.0  ;;  %vm4533_vm6 = vcmp.gt.f32.partialorder %v9143_v14, 20.0 }
 0x306   : > { %v9161_v20 = vadd.f32 %v8905_v25, %v3192_v16  ;;  %v9163_v6 = vpop.f32.mrb[45].mxu0  ;;  %v3149_v28 = vpop.f32.mrb[44].mxu1  ;;  %v3736_v16 = vmul.f32 1.442695, %v3648_v19  ;;  %11468 = vst [vmem:[#allocation79_spill] sm:$0xff] %v9268_v37 }
 0x307   : > { %6079 = vpow2.f32 %v3704_v40  ;;  %v3196_v18 = vpop.f32.mrb[46].mxu0  ;;  %v9170_v12 = vpop.f32.mrb[45].mxu1  ;;  %v3738_v57 = vmul.f32 1.442695, %v3649_v5  ;;  %v9187_v40 = vsel %vm4548_vm0, %v8949_v55, %v4480_v7  ;;  %v9192_v5 = vsel %vm4565_vm3, %v8977_v31, %v4497_v9 }
 0x308   : > { %v9173_v62 = vmul.f32 100.0, %v9161_v20  ;;  %v9176_v58 = vadd.f32 %v8907_v56, %v3196_v18  ;;  %v9178_v21 = vpop.f32.mrb[47].mxu0  ;;  %v9180_v50 = vpop.f32.mrb[46].mxu1  ;;  %6081 = vlog2.f32 %v3841_v22  ;;  %11458 = vst [vmem:[#allocation58_spill] sm:$0xff] %v9187_v40  ;;  %11459 = vst [vmem:[#allocation76_spill] sm:$0xff] %v9192_v5  ;;  %v3844_v18 = vmul.f32 -0.5, %v9095_v38 }
 0x309   : > { %v9194_v30 = vpop.f32.mrb[47].mxu1  ;;  %6083 = vpow2.f32 %v3738_v57  ;;  %v3804_v31 = vmul.f32 1.442695, %v3682_v24  ;;  %v9207_v19 = vadd.f32 %v8940_v53, %v3149_v28  ;;  %v9212_v57 = vadd.f32 %v8905_v25, %v9122_v51  ;;  %v9222_v28 = vpop.eup %6077 }
 0x30a   : > { %v3634_v45 = vmin.f32 %v9173_v62, 20.0  ;;  %v9203_v55 = vmul.f32 100.0, %v9176_v58  ;;  %6085 = vpow2.f32 %v9090_v61  ;;  %v3845_v22 = vadd.f32 1.0, %v3844_v18  ;;  %11461 = vst [vmem:[#allocation74_spill] sm:$0xff] %v9222_v28 }
 0x30b   : > { %6087 = vpow2.f32 %v3736_v16  ;;  %11460 = vst [vmem:[#allocation75_spill] sm:$0xff] %v9212_v57  ;;  %v9215_v42 = vmul.f32 100.0, %v9207_v19  ;;  %v3847_v18 = vand.u32 2147483647, %v9095_v38  ;;  %v9277_v3 = vadd.f32 %v8905_v25, %v9163_v6 }
 0x30c   : > { %v3708_v54 = vmul.f32 1.442695, %v3634_v45  ;;  %v3651_v7 = vmin.f32 %v9203_v55, 20.0  ;;  %v9239_v5 = vmul.f32 %v9095_v38, %v3845_v22  ;;  %v4147_v22 = vadd.f32 1.0, %v9165_v4 }
 0x30d   : > { %v3202_v9 = vpop.f32.mrb[48].mxu0  ;;  %v3666_v51 = vmin.f32 %v9215_v42, 20.0  ;;  %vm9247_vm9 = vcmp.lt.f32.partialorder %v3847_v18, 0.0004427343  ;;  %v4300_v18 = vadd.f32 1.0, %v9222_v28  ;;  %11470 = vst [vmem:[#allocation77_spill] sm:$0xff] %v9277_v3 }
 0x30e   : > { %6089 = vpow2.f32 %v3708_v54  ;;  %v9218_v61 = vadd.f32 %v8940_v53, %v3202_v9  ;;  %v9220_v45 = vpop.f32.mrb[49].mxu0  ;;  %v3742_v24 = vmul.f32 1.442695, %v3651_v7  ;;  %v3994_v54 = vadd.f32 1.0, %v9147_v29 }
 0x30f   : > { %6091 = vpow2.f32 %v3770_v8  ;;  %v3206_v16 = vpop.f32.mrb[50].mxu0  ;;  %v9236_v7 = vmul.f32 100.0, %v9212_v57  ;;  %v3772_v52 = vmul.f32 1.442695, %v3666_v51  ;;  %v4150_v57 = vmul.f32 -0.5, %v9165_v4 }
 0x310   : > { %6093 = vpow2.f32 %v3804_v31  ;;  %v9227_v10 = vpop.f32.mrb[51].mxu0  ;;  %v9232_v9 = vmul.f32 100.0, %v9218_v61  ;;  %v3997_v31 = vmul.f32 -0.5, %v9147_v29  ;;  %v3650_v6 = vmin.f32 %v9268_v37, 20.0 }
 0x311   : > { %v9229_v60 = vpop.eup %6079  ;;  %6095 = vpow2.f32 %v3742_v24  ;;  %11462 = vst [vmem:[#allocation26_spill] sm:$0xff] %v9236_v7  ;;  %vm4518_vm7 = vcmp.gt.f32.partialorder %v9173_v62, 20.0  ;;  %vm4535_vm1 = vcmp.gt.f32.partialorder %v9203_v55, 20.0  ;;  %vm4550_vm14 = vcmp.gt.f32.partialorder %v9215_v42, 20.0 }
 0x312   : > { %v6082_v40 = vpop.eup %6081  ;;  %v3868_v8 = vadd.f32 1.0, %v9229_v60  ;;  %v3668_v24 = vmin.f32 %v9232_v9, 20.0  ;;  %6097 = vlog2.f32 %v3994_v54  ;;  %v3633_v54 = vmin.f32 %v9236_v7, 20.0 }
 0x313   : > { %v9251_v32 = vpop.eup %6083  ;;  %v9257_v23 = vmul.f32 0.6931472, %v6082_v40  ;;  %v3998_v36 = vadd.f32 1.0, %v3997_v31  ;;  %v3871_v17 = vmul.f32 -0.5, %v9229_v60  ;;  %v9271_v40 = vmul.f32 -0.5, %v9222_v28 }
 0x314   : > { %6099 = vlog2.f32 %v3868_v8  ;;  %v4021_v11 = vadd.f32 1.0, %v9251_v32  ;;  %v9261_v2 = vpop.eup %6085  ;;  %v3776_v8 = vmul.f32 1.442695, %v3668_v24  ;;  %v9284_v31 = vadd.f32 %v8963_v59, %v3206_v16 }
 0x315   : > { %11466 = vst [vmem:[#allocation54_spill] sm:$0xff] %v9261_v2  ;;  %6101 = vpow2.f32 %v3772_v52  ;;  %v9264_v38 = vpop.eup %6087  ;;  %11469 = vst [vmem:[#allocation14_spill] sm:$0xff] %v9271_v40  ;;  %v9281_v52 = vadd.f32 %v8963_v59, %v9180_v50  ;;  %v9291_v7 = vadd.f32 1.0, %v4150_v57  ;;  %v4024_v50 = vmul.f32 -0.5, %v9251_v32 }
 0x316   : > { %11467 = vst [vmem:[#allocation80_spill] sm:$0xff] %v9264_v38  ;;  %6103 = vlog2.f32 %v4021_v11  ;;  %v9301_v16 = vmul.f32 100.0, %v9284_v31  ;;  %v3874_v57 = vand.u32 2147483647, %v9229_v60  ;;  %v4027_v27 = vand.u32 2147483647, %v9251_v32 }
 0x317   : > { %6105 = vpow2.f32 %v3776_v8  ;;  %11472 = vst [vmem:[#allocation82_spill] sm:$0xff] %v9291_v7  ;;  %v3706_v8 = vmul.f32 1.442695, %v3633_v54  ;;  %v9298_v13 = vmul.f32 100.0, %v9281_v52  ;;  %v9312_v54 = vmul.f32 100.0, %v9277_v3 }
 0x318   : > { %v9273_v51 = vpop.eup %6089  ;;  %6107 = vlog2.f32 %v4147_v22  ;;  %v3872_v22 = vadd.f32 1.0, %v3871_v17  ;;  %v9329_v43 = vmul.f32 %v9147_v29, %v3998_v36  ;;  %v4025_v15 = vadd.f32 1.0, %v4024_v50 }
 0x319   : > { %v9286_v24 = vpop.eup %6091  ;;  %v3886_v11 = vadd.f32 1.0, %v9273_v51  ;;  %11474 = vst [vmem:[#allocation62_spill] sm:$0xff] %v9312_v54  ;;  %v3889_v37 = vmul.f32 -0.5, %v9273_v51  ;;  %v3683_v26 = vmin.f32 %v9298_v13, 20.0  ;;  %v3685_v17 = vmin.f32 %v9301_v16, 20.0 }
 0x31a   : > { %11471 = vst [vmem:[#allocation22_spill] sm:$0xff] %v9286_v24  ;;  %v9294_v34 = vpop.eup %6093  ;;  %11476 = vst [vmem:[#allocation49_spill] sm:$0xff] %v9329_v43  ;;  %v9337_v1 = vmul.f32 1.442695, %v3650_v6  ;;  %vm9341_vm8 = vcmp.lt.f32.partialorder %v3874_v57, 0.0004427343 }
 0x31b   : > { %11473 = vst [vmem:[#allocation81_spill] sm:$0xff] %v9294_v34  ;;  %v9305_v44 = vpop.eup %6095  ;;  %6109 = vlog2.f32 %v3886_v11  ;;  %v3806_v41 = vmul.f32 1.442695, %v3683_v26  ;;  %v3635_v50 = vmin.f32 %v9312_v54, 20.0  ;;  %vm9346_vm10 = vcmp.lt.f32.partialorder %v4027_v27, 0.0004427343 }
 0x31c   : > { %v4039_v39 = vadd.f32 1.0, %v9305_v44  ;;  %v9322_v11 = vpop.eup %6097  ;;  %6111 = vlog2.f32 %v4300_v18  ;;  %v3890_v26 = vadd.f32 1.0, %v3889_v37  ;;  %v4042_v6 = vmul.f32 -0.5, %v9305_v44 }
 0x31d   : > { %v9289_v49 = vpop.f32.mrb[48].mxu1  ;;  %11475 = vst [vmem:[#allocation35_spill] sm:$0xff] %v9322_v11  ;;  %v3873_v11 = vmul.f32 %v9229_v60, %v3872_v22  ;;  %v4026_v27 = vmul.f32 %v9251_v32, %v4025_v15  ;;  %v3810_v29 = vmul.f32 1.442695, %v3685_v17  ;;  %v3892_v37 = vand.u32 2147483647, %v9273_v51 }
 0x31e   : > { %v9303_v24 = vpop.f32.mrb[49].mxu1  ;;  %v6100_v63 = vpop.eup %6099  ;;  %6113 = vlog2.f32 %v4039_v39  ;;  %v3710_v15 = vmul.f32 1.442695, %v3635_v50  ;;  %v4045_v32 = vand.u32 2147483647, %v9305_v44  ;;  %v9387_v50 = vadd.f32 %v8905_v25, %v9289_v49 }
 0x31f   : > { %v9309_v34 = vpop.f32.mrb[50].mxu1  ;;  %v3870_v48 = vmul.f32 0.6931472, %v6100_v63  ;;  %v9339_v36 = vpop.eup %6101  ;;  %6115 = vpow2.f32 %v3706_v8  ;;  %vm3893_vm11 = vcmp.lt.f32.partialorder %v3892_v37, 0.0004427343  ;;  %v9408_v49 = vadd.f32 %v8940_v53, %v9220_v45 }
 0x320   : > { %v3298_v38 = vpop.f32.mrb[52].mxu0  ;;  %v9316_v2 = vpop.f32.mrb[51].mxu1  ;;  %v4174_v22 = vadd.f32 1.0, %v9339_v36  ;;  %6117 = vpow2.f32 %v3806_v41  ;;  %vm4046_vm12 = vcmp.lt.f32.partialorder %v4045_v32, 0.0004427343  ;;  %vm4567_vm15 = vcmp.gt.f32.partialorder %v9298_v13, 20.0 }
 0x321   : > { %v9326_v3 = vpop.f32.mrb[53].mxu0  ;;  %v6104_v63 = vpop.eup %6103  ;;  %v3876_v60 = vsel %vm9341_vm8, %v3873_v11, %v3870_v48  ;;  %v9368_v48 = vadd.f32 %v8907_v56, %v9178_v21  ;;  %v9372_v11 = vadd.f32 %v8940_v53, %v9170_v12  ;;  %11489 = vst [vmem:[#allocation71_spill] sm:$0xff] %v9408_v49  ;;  %v4180_v62 = vand.u32 2147483647, %v9339_v36 }
 0x322   : > { %v9334_v28 = vpop.f32.mrb[54].mxu0  ;;  %v9358_v8 = vpop.eup %6105  ;;  %v4023_v54 = vmul.f32 0.6931472, %v6104_v63  ;;  %v4448_v18 = vmul.f32 0.01, %v3876_v60  ;;  %6119 = vlog2.f32 %v4174_v22  ;;  %vm4552_vm2 = vcmp.gt.f32.partialorder %v9232_v9, 20.0 }
 0x323   : > { %v9350_v43 = vpop.f32.mrb[55].mxu0  ;;  %v9363_v4 = vpop.eup %6107  ;;  %11484 = vst [vmem:[#allocation65_spill] sm:$0xff] %v9368_v48  ;;  %11485 = vst [vmem:[#allocation9_spill] sm:$0xff] %v9372_v11  ;;  %v4192_v7 = vadd.f32 1.0, %v9358_v8  ;;  %6121 = vpow2.f32 %v3810_v29  ;;  %v9418_v47 = vmul.f32 100.0, %v9372_v11  ;;  %v9618_v13 = vadd.f32 %v8907_v56, %v9316_v2 }
 0x324   : > { %11481 = vst [vmem:[#allocation36_spill] sm:$0xff] %v9350_v43  ;;  %11483 = vst [vmem:[#allocation31_spill] sm:$0xff] %v9363_v4  ;;  %v4029_v41 = vsel %vm9346_vm10, %v4026_v27, %v4023_v54  ;;  %v3891_v4 = vmul.f32 %v9273_v51, %v3890_v26  ;;  %v9390_v54 = vadd.f32 %v8905_v25, %v3298_v38  ;;  %vm9508_vm13 = vcmp.lt.f32.partialorder %v4180_v62, 0.0004427343 }
 0x325   : > { %v9356_v57 = vpop.f32.mrb[52].mxu1  ;;  %v6110_v60 = vpop.eup %6109  ;;  %v4465_v21 = vmul.f32 0.01, %v4029_v41  ;;  %v9399_v51 = vsel %vm4516_vm5, %v9120_v35, %v4448_v18  ;;  %v9415_v35 = vmul.f32 100.0, %v9368_v48  ;;  %11491 = vst [vmem:[#allocation27_spill] sm:$0xff] %v9418_v47  ;;  %6123 = vlog2.f32 %v4192_v7  ;;  %11525 = vst [vmem:[#allocation86_spill] sm:$0xff] %v9618_v13 }
 0x326   : > { %v9361_v40 = vpop.f32.mrb[53].mxu1  ;;  %v3888_v43 = vmul.f32 0.6931472, %v6110_v60  ;;  %v9394_v22 = vpop.eup %6111  ;;  %11487 = vst [vmem:[#allocation67_spill] sm:$0xff] %v9399_v51  ;;  %6125 = vpow2.f32 %v9337_v1  ;;  %v9437_v7 = vmul.f32 100.0, %v9408_v49  ;;  %v3667_v1 = vmin.f32 %v9418_v47, 20.0 }
 0x327   : > { %11482 = vst [vmem:[#allocation40_spill] sm:$0xff] %v9361_v40  ;;  %v9374_v63 = vpop.f32.mrb[54].mxu1  ;;  %v4043_v40 = vadd.f32 1.0, %v4042_v6  ;;  %11486 = vst [vmem:[#allocation25_spill] sm:$0xff] %v9394_v22  ;;  %v9404_v29 = vsel %vm4533_vm6, %v9133_v33, %v4465_v21  ;;  %6127 = vpow2.f32 %v3710_v15  ;;  %vm4513_vm5 = vcmp.gt.f32.partialorder %v8984_v46, 20.0 }
 0x328   : > { %v9379_v17 = vpop.f32.mrb[55].mxu1  ;;  %v9383_v12 = vpop.f32.mrb[56].mxu0  ;;  %11488 = vst [vmem:[#allocation55_spill] sm:$0xff] %v9404_v29  ;;  %v3894_v6 = vsel %vm3893_vm11, %v3891_v4, %v3888_v43  ;;  %11490 = vst [vmem:[#allocation45_spill] sm:$0xff] %v9415_v35  ;;  %v9427_v43 = vmul.f32 100.0, %v9387_v50  ;;  %v9430_v4 = vmul.f32 100.0, %v9390_v54 }
 0x329   : > { %v9392_v39 = vpop.f32.mrb[57].mxu0  ;;  %v6114_v26 = vpop.eup %6113  ;;  %v4044_v18 = vmul.f32 %v9305_v44, %v4043_v40  ;;  %v4450_v37 = vmul.f32 0.01, %v3894_v6  ;;  %v4177_v44 = vmul.f32 -0.5, %v9339_v36  ;;  %11493 = vst [vmem:[#allocation37_spill] sm:$0xff] %v9437_v7  ;;  %v3669_v47 = vmin.f32 %v9437_v7, 20.0 }
 0x32a   : > { %v9410_v38 = vpop.f32.mrb[58].mxu0  ;;  %v4041_v33 = vmul.f32 0.6931472, %v6114_v26  ;;  %v9423_v45 = vpop.eup %6115  ;;  %v3652_v26 = vmin.f32 %v9415_v35, 20.0  ;;  %v3636_v6 = vmin.f32 %v9427_v43, 20.0  ;;  %v3638_v27 = vmin.f32 %v9430_v4, 20.0 }
 0x32b   : > { %v9420_v14 = vpop.f32.mrb[59].mxu0  ;;  %11492 = vst [vmem:[#allocation32_spill] sm:$0xff] %v9423_v45  ;;  %v9441_v32 = vpop.eup %6117  ;;  %v4178_v15 = vadd.f32 1.0, %v4177_v44  ;;  %v9651_v9 = vmul.f32 100.0, %v9618_v13  ;;  %vm4520_vm10 = vcmp.gt.f32.partialorder %v9427_v43, 20.0 }
 0x32c   : > { %v4047_v60 = vsel %vm4046_vm12, %v4044_v18, %v4041_v33  ;;  %v4327_v33 = vadd.f32 1.0, %v9441_v32  ;;  %v6120_v49 = vpop.eup %6119  ;;  %v3712_v35 = vmul.f32 1.442695, %v3636_v6  ;;  %v3716_v51 = vmul.f32 1.442695, %v3638_v27 }
 0x32d   : > { %v9432_v41 = vpop.f32.mrb[56].mxu1  ;;  %v4467_v21 = vmul.f32 0.01, %v4047_v60  ;;  %v9456_v60 = vsel %vm4518_vm7, %v9161_v20, %v4450_v37  ;;  %v9468_v22 = vpop.eup %6121  ;;  %v3744_v20 = vmul.f32 1.442695, %v3652_v26  ;;  %v4330_v44 = vmul.f32 -0.5, %v9441_v32 }
 0x32e   : > { %v9439_v40 = vpop.f32.mrb[57].mxu1  ;;  %11494 = vst [vmem:[#allocation19_spill] sm:$0xff] %v9456_v60  ;;  %6129 = vlog2.f32 %v4327_v33  ;;  %v4176_v37 = vmul.f32 0.6931472, %v6120_v49  ;;  %v9478_v6 = vadd.f32 %v8907_v56, %v9309_v34  ;;  %v9484_v26 = vmul.f32 1.442695, %v3667_v1 }
 0x32f   : > { %v9446_v11 = vpop.f32.mrb[58].mxu1  ;;  %v9459_v48 = vsel %vm4535_vm1, %v9176_v58, %v4467_v21  ;;  %v4195_v58 = vmul.f32 -0.5, %v9358_v8  ;;  %6131 = vpow2.f32 %v3712_v35  ;;  %v4345_v21 = vadd.f32 1.0, %v9468_v22  ;;  %v6124_v60 = vpop.eup %6123  ;;  %11533 = vst [vmem:[#allocation92_spill] sm:$0xff] %v9651_v9 }
 0x330   : > { %v9451_v18 = vpop.f32.mrb[60].mxu0  ;;  %11495 = vst [vmem:[#allocation83_spill] sm:$0xff] %v9459_v48  ;;  %v9466_v45 = vpop.f32.mrb[59].mxu1  ;;  %v9488_v35 = vadd.f32 %v8963_v59, %v9194_v30  ;;  %6133 = vpow2.f32 %v3716_v51  ;;  %v11500_v49 = vsel %vm9247_vm9, %v9239_v5, %v9257_v23  ;;  %v4179_v48 = vmul.f32 %v9339_v36, %v4178_v15 }
 0x331   : > { %v9464_v29 = vpop.f32.mrb[61].mxu0  ;;  %11496 = vst [vmem:[#allocation18_spill] sm:$0xff] %v9466_v45  ;;  %v9495_v7 = vmul.f32 0.01, %v11500_v49  ;;  %6135 = vlog2.f32 %v4345_v21  ;;  %v9504_v30 = vadd.f32 %v8963_v59, %v9227_v10  ;;  %v4196_v23 = vadd.f32 1.0, %v4195_v58 }
 0x332   : > { %v9472_v27 = vpop.f32.mrb[62].mxu0  ;;  %11499 = vst [vmem:[#allocation43_spill] sm:$0xff] %v9488_v35  ;;  %6137 = vpow2.f32 %v3744_v20  ;;  %v4198_v5 = vand.u32 2147483647, %v9358_v8  ;;  %v4182_v10 = vsel %vm9508_vm13, %v4179_v48, %v4176_v37  ;;  %v4331_v1 = vadd.f32 1.0, %v4330_v44 }
 0x333   : > { %v9480_v33 = vpop.f32.mrb[63].mxu0  ;;  %11502 = vst [vmem:[#allocation10_spill] sm:$0xff] %v9504_v30  ;;  %v9521_v15 = vmul.f32 100.0, %v9478_v6  ;;  %v9525_v20 = vadd.f32 %v8907_v56, %v9334_v28  ;;  %v4194_v58 = vmul.f32 0.6931472, %v6124_v60  ;;  %v4348_v21 = vmul.f32 -0.5, %v9468_v22 }
 0x334   : > { %11497 = vst [vmem:[#allocation70_spill] sm:$0xff] %v9480_v33  ;;  %v9532_v49 = vmul.f32 100.0, %v9488_v35  ;;  %v4333_v37 = vand.u32 2147483647, %v9441_v32  ;;  %v9540_v44 = vmul.f32 100.0, %v9504_v30  ;;  %v4197_v35 = vmul.f32 %v9358_v8, %v4196_v23 }
 0x335   : > { %v9482_v55 = vpop.f32.mrb[60].mxu1  ;;  %v3653_v28 = vmin.f32 %v9521_v15, 20.0  ;;  %v9544_v60 = vmul.f32 100.0, %v9525_v20  ;;  %vm9549_vm0 = vcmp.lt.f32.partialorder %v4198_v5, 0.0004427343  ;;  %v4349_v33 = vadd.f32 1.0, %v4348_v21 }
 0x336   : > { %11498 = vst [vmem:[#allocation59_spill] sm:$0xff] %v9482_v55  ;;  %v9497_v34 = vpop.f32.mrb[61].mxu1  ;;  %v9500_v55 = vmul.f32 1.442695, %v3669_v47  ;;  %v9516_v47 = vpop.eup %6125  ;;  %11509 = vst [vmem:[#allocation72_spill] sm:$0xff] %v9532_v49  ;;  %vm4569_vm9 = vcmp.gt.f32.partialorder %v9301_v16, 20.0 }
 0x337   : > { %11501 = vst [vmem:[#allocation61_spill] sm:$0xff] %v9497_v34  ;;  %v9506_v51 = vpop.f32.mrb[62].mxu1  ;;  %11507 = vst [vmem:[#allocation50_spill] sm:$0xff] %v9516_v47  ;;  %v9536_v48 = vpop.eup %6127  ;;  %v4482_v47 = vmul.f32 0.01, %v4182_v10  ;;  %v4332_v34 = vmul.f32 %v9441_v32, %v4331_v1  ;;  %v3655_v8 = vmin.f32 %v9544_v60, 20.0 }
 0x338   : > { %11503 = vst [vmem:[#allocation41_spill] sm:$0xff] %v9506_v51  ;;  %v9514_v36 = vpop.f32.mrb[63].mxu1  ;;  %v9527_v62 = vpop.f32.mrb[64].mxu0  ;;  %11511 = vst [vmem:[#allocation44_spill] sm:$0xff] %v9536_v48  ;;  %v9555_v48 = vadd.f32 %v8905_v25, %v9303_v24  ;;  %v3746_v10 = vmul.f32 1.442695, %v3653_v28  ;;  %v4200_v24 = vsel %vm9549_vm0, %v4197_v35, %v4194_v58  ;;  %v9582_v35 = vadd.f32 %v8905_v25, %v9326_v3 }
 0x339   : > { %11506 = vst [vmem:[#allocation38_spill] sm:$0xff] %v9514_v36  ;;  %11508 = vst [vmem:[#allocation42_spill] sm:$0xff] %v9527_v62  ;;  %v9534_v0 = vpop.f32.mrb[65].mxu0  ;;  %vm4334_vm3 = vcmp.lt.f32.partialorder %v4333_v37, 0.0004427343  ;;  %v3684_v32 = vmin.f32 %v9532_v49, 20.0 }
 0x33a   : > { %11510 = vst [vmem:[#allocation30_spill] sm:$0xff] %v9534_v0  ;;  %11512 = vst [vmem:[#allocation69_spill] sm:$0xff] %v9540_v44  ;;  %v9546_v36 = vpop.f32.mrb[66].mxu0  ;;  %v6130_v0 = vpop.eup %6129  ;;  %6139 = vpow2.f32 %v3746_v10  ;;  %v9578_v45 = vmul.f32 100.0, %v9555_v48  ;;  %v3750_v51 = vmul.f32 1.442695, %v3655_v8  ;;  %v4350_v10 = vmul.f32 %v9468_v22, %v4349_v33 }
 0x33b   : > { %11513 = vst [vmem:[#allocation23_spill] sm:$0xff] %v9546_v36  ;;  %11516 = vst [vmem:[#allocation64_spill] sm:$0xff] %v9555_v48  ;;  %v9557_v30 = vpop.f32.mrb[67].mxu0  ;;  %v4351_v36 = vand.u32 2147483647, %v9468_v22  ;;  %v9565_v5 = vpop.eup %6131  ;;  %v3654_v48 = vmin.f32 %v9651_v9, 20.0 }
 0x33c   : > { %11517 = vst [vmem:[#allocation57_spill] sm:$0xff] %v9557_v30  ;;  %v4329_v62 = vmul.f32 0.6931472, %v6130_v0  ;;  %v9571_v30 = vadd.f32 %v8940_v53, %v9356_v57  ;;  %v3904_v1 = vadd.f32 1.0, %v9565_v5  ;;  %v9575_v28 = vpop.eup %6133  ;;  %11519 = vst [vmem:[#allocation66_spill] sm:$0xff] %v9578_v45  ;;  %v9587_v57 = vsel %vm4550_vm14, %v9207_v19, %v4482_v47 }
 0x33d   : > { %v9563_v23 = vpop.f32.mrb[64].mxu1  ;;  %11520 = vst [vmem:[#allocation39_spill] sm:$0xff] %v9582_v35  ;;  %v6136_v58 = vpop.eup %6135  ;;  %11521 = vst [vmem:[#allocation84_spill] sm:$0xff] %v9587_v57  ;;  %v4484_v21 = vmul.f32 0.01, %v4200_v24  ;;  %v3922_v42 = vadd.f32 1.0, %v9575_v28 }
 0x33e   : > { %11518 = vst [vmem:[#allocation60_spill] sm:$0xff] %v9563_v23  ;;  %v4335_v23 = vsel %vm4334_vm3, %v4332_v34, %v4329_v62  ;;  %vm9589_vm4 = vcmp.lt.f32.partialorder %v4351_v36, 0.0004427343  ;;  %v9593_v34 = vpop.eup %6137  ;;  %v4347_v62 = vmul.f32 0.6931472, %v6136_v58  ;;  %6141 = vlog2.f32 %v3904_v1  ;;  %v9609_v47 = vpop.f32.mrb[65].mxu1 }
 0x33f   : > { %v4499_v0 = vmul.f32 0.01, %v4335_v23  ;;  %v9597_v3 = vmul.f32 100.0, %v9571_v30  ;;  %6143 = vpow2.f32 %v3750_v51  ;;  %v9607_v36 = vadd.f32 %v8940_v53, %v9383_v12 }
 0x340   : > { %v4353_v33 = vsel %vm9589_vm4, %v4350_v10, %v4347_v62  ;;  %6145 = vpow2.f32 %v9484_v26  ;;  %v3808_v8 = vmul.f32 1.442695, %v3684_v32  ;;  %v3686_v23 = vmin.f32 %v9540_v44, 20.0  ;;  %v11531_v32 = vld [vmem:[#allocation36_spill] sm:$0xff]  ;;  %v11534_v10 = vld [vmem:[#allocation82_spill] sm:$0xff] }
 0x341   : > { %v9602_v19 = vsel %vm4567_vm15, %v9281_v52, %v4499_v0  ;;  %v9620_v52 = vpop.f32.mrb[66].mxu1  ;;  %v4501_v12 = vmul.f32 0.01, %v4353_v33  ;;  %v9630_v16 = vsel %vm4552_vm2, %v9218_v61, %v4484_v21  ;;  %v3637_v2 = vmin.f32 %v9578_v45, 20.0  ;;  %v11540_v45 = vld [vmem:[#allocation28_spill] sm:$0xff] }
 0x342   : > { %11524 = vst [vmem:[#allocation85_spill] sm:$0xff] %v9602_v19  ;;  %11526 = vst [vmem:[#allocation87_spill] sm:$0xff] %v9620_v52  ;;  %v9625_v24 = vpop.f32.mrb[67].mxu1  ;;  %v9634_v1 = vmul.f32 100.0, %v9582_v35  ;;  %v3670_v51 = vmin.f32 %v9597_v3, 20.0  ;;  %6147 = vlog2.f32 %v3922_v42  ;;  %v9642_v58 = vadd.f32 %v8907_v56, %v11531_v32  ;;  %v11535_v42 = vld [vmem:[#allocation13_spill] sm:$0xff] }
 0x343   : > { %11527 = vst [vmem:[#allocation88_spill] sm:$0xff] %v9625_v24  ;;  %11528 = vst [vmem:[#allocation89_spill] sm:$0xff] %v9630_v16  ;;  %v9638_v26 = vsel %vm4569_vm9, %v9284_v31, %v4501_v12  ;;  %v9645_v0 = vmul.f32 100.0, %v9607_v36  ;;  %6149 = vpow2.f32 %v9500_v55  ;;  %v3907_v31 = vmul.f32 -0.5, %v9565_v5  ;;  %v11536_v32 = vld [vmem:[#allocation14_spill] sm:$0xff] }
 0x344   : > { %11529 = vst [vmem:[#allocation90_spill] sm:$0xff] %v9634_v1  ;;  %11530 = vst [vmem:[#allocation91_spill] sm:$0xff] %v9638_v26  ;;  %v3780_v21 = vmul.f32 1.442695, %v3670_v51  ;;  %v9653_v37 = vpop.eup %6139  ;;  %6151 = vpow2.f32 %v3808_v8  ;;  %v9659_v33 = vmul.f32 %v11535_v42, %v11534_v10  ;;  %v3812_v12 = vmul.f32 1.442695, %v3686_v23 }
 0x345   : > { %11532 = vst [vmem:[#allocation36_spill] sm:$0xff] %v9642_v58  ;;  %v3672_v62 = vmin.f32 %v9645_v0, 20.0  ;;  %v4057_v55 = vadd.f32 1.0, %v9653_v37  ;;  %v9663_v61 = vadd.f32 1.0, %v11536_v32  ;;  %v3714_v22 = vmul.f32 1.442695, %v3637_v2 }
 0x346   : > { %6153 = vpow2.f32 %v3780_v21  ;;  %v3639_v51 = vmin.f32 %v9634_v1, 20.0  ;;  %v9667_v8 = vmul.f32 100.0, %v9642_v58  ;;  %v9672_v23 = vadd.f32 %v8963_v59, %v9374_v63  ;;  %v11538_v63 = vld [vmem:[#allocation20_spill] sm:$0xff] }
 0x347   : > { %v3784_v35 = vmul.f32 1.442695, %v3672_v62  ;;  %6155 = vlog2.f32 %v4057_v55  ;;  %v9676_v21 = vadd.f32 %v8963_v59, %v9410_v38  ;;  %v3908_v2 = vadd.f32 1.0, %v3907_v31 }
 0x348   : > { %11537 = vst [vmem:[#allocation82_spill] sm:$0xff] %v9667_v8  ;;  %v6142_v13 = vpop.eup %6141  ;;  %v3910_v32 = vand.u32 2147483647, %v9565_v5  ;;  %v3925_v58 = vmul.f32 -0.5, %v9575_v28  ;;  %v3928_v62 = vand.u32 2147483647, %v9575_v28  ;;  %v9688_v1 = vsel %vm4513_vm5, %v11538_v63, %v9495_v7 }
 0x349   : > { %v9678_v10 = vpop.eup %6143  ;;  %6157 = vpow2.f32 %v3784_v35  ;;  %v3906_v16 = vmul.f32 0.6931472, %v6142_v13  ;;  %v3718_v31 = vmul.f32 1.442695, %v3639_v51  ;;  %v4060_v26 = vmul.f32 -0.5, %v9653_v37 }
 0x34a   : > { %6159 = vpow2.f32 %v3812_v12  ;;  %v4075_v55 = vadd.f32 1.0, %v9678_v10  ;;  %v9690_v38 = vpop.eup %6145  ;;  %v3748_v35 = vmul.f32 1.442695, %v3654_v48  ;;  %v9694_v12 = vmul.f32 100.0, %v9672_v23 }
 0x34b   : > { %11539 = vst [vmem:[#allocation13_spill] sm:$0xff] %v9690_v38  ;;  %6161 = vpow2.f32 %v3714_v22  ;;  %v9697_v9 = vmul.f32 100.0, %v9676_v21  ;;  %v11541_v57 = vand.u32 2147483647, %v11540_v45  ;;  %v3909_v22 = vmul.f32 %v9565_v5, %v3908_v2 }
 0x34c   : > { %6163 = vlog2.f32 %v4075_v55  ;;  %v6148_v7 = vpop.eup %6147  ;;  %vm9706_vm8 = vcmp.lt.f32.partialorder %v3910_v32, 0.0004427343  ;;  %v3926_v48 = vadd.f32 1.0, %v3925_v58  ;;  %v3656_v51 = vmin.f32 %v9667_v8, 20.0 }
 0x34d   : > { %vm9701_vm6 = vcmp.lt.f32.partialorder %v11541_v57, 0.0004427343  ;;  %v9711_v55 = vpop.eup %6149  ;;  %vm9714_vm11 = vcmp.lt.f32.partialorder %v3928_v62, 0.0004427343  ;;  %v11549_v57 = vld [vmem:[#allocation40_spill] sm:$0xff]  ;;  %v9724_v5 = vadd.f32 %v8940_v53, %v9392_v39  ;;  %v3687_v58 = vmin.f32 %v9694_v12, 20.0 }
 0x34e   : > { %11546 = vst [vmem:[#allocation14_spill] sm:$0xff] %v9711_v55  ;;  %v9720_v63 = vadd.f32 %v8940_v53, %v11549_v57  ;;  %v9727_v2 = vpop.eup %6151  ;;  %v3912_v32 = vsel %vm9706_vm8, %v3909_v22, %v3906_v16  ;;  %v4061_v8 = vadd.f32 1.0, %v4060_v26  ;;  %vm4537_vm12 = vcmp.gt.f32.partialorder %v9521_v15, 20.0  ;;  %v11553_v55 = vld [vmem:[#allocation46_spill] sm:$0xff]  ;;  %v11554_v22 = vld [vmem:[#allocation35_spill] sm:$0xff] }
 0x34f   : > { %11551 = vst [vmem:[#allocation28_spill] sm:$0xff] %v9724_v5  ;;  %11552 = vst [vmem:[#allocation40_spill] sm:$0xff] %v9727_v2  ;;  %v4078_v62 = vmul.f32 -0.5, %v9678_v10  ;;  %v3689_v19 = vmin.f32 %v9697_v9, 20.0  ;;  %v3924_v44 = vmul.f32 0.6931472, %v6148_v7  ;;  %6165 = vpow2.f32 %v3718_v31 }
 0x350   : > { %11550 = vst [vmem:[#allocation20_spill] sm:$0xff] %v9720_v63  ;;  %v9734_v57 = vpop.eup %6153  ;;  %v4063_v39 = vand.u32 2147483647, %v9653_v37  ;;  %v3814_v49 = vmul.f32 1.442695, %v3687_v58  ;;  %vm4530_vm7 = vcmp.gt.f32.partialorder %v11553_v55, 20.0  ;;  %v3927_v2 = vmul.f32 %v9575_v28, %v3926_v48 }
 0x351   : > { %v4210_v16 = vadd.f32 1.0, %v9734_v57  ;;  %v3818_v26 = vmul.f32 1.442695, %v3689_v19  ;;  %v3996_v13 = vmul.f32 0.6931472, %v11554_v22  ;;  %v6156_v38 = vpop.eup %6155  ;;  %v9742_v52 = vmul.f32 100.0, %v9720_v63 }
 0x352   : > { %v4452_v24 = vmul.f32 0.01, %v3912_v32  ;;  %v9745_v7 = vmul.f32 100.0, %v9724_v5  ;;  %6167 = vpow2.f32 %v3814_v49  ;;  %vm4522_vm1 = vcmp.gt.f32.partialorder %v9430_v4, 20.0 }
 0x353   : > { %11555 = vst [vmem:[#allocation46_spill] sm:$0xff] %v9742_v52  ;;  %v9747_v31 = vpop.eup %6157  ;;  %v4059_v58 = vmul.f32 0.6931472, %v6156_v38  ;;  %v4062_v28 = vmul.f32 %v9653_v37, %v4061_v8  ;;  %v4079_v48 = vadd.f32 1.0, %v4078_v62  ;;  %v4081_v19 = vand.u32 2147483647, %v9678_v10 }
 0x354   : > { %11556 = vst [vmem:[#allocation35_spill] sm:$0xff] %v9745_v7  ;;  %vm4539_vm13 = vcmp.gt.f32.partialorder %v9544_v60, 20.0  ;;  %v9753_v32 = vpop.eup %6159  ;;  %v3930_v22 = vsel %vm9714_vm11, %v3927_v2, %v3924_v44  ;;  %vm4064_vm14 = vcmp.lt.f32.partialorder %v4063_v39, 0.0004427343  ;;  %6169 = vpow2.f32 %v3818_v26  ;;  %v11558_v8 = vld [vmem:[#allocation49_spill] sm:$0xff] }
 0x355   : > { %11557 = vst [vmem:[#allocation93_spill] sm:$0xff] %v9753_v32  ;;  %v9759_v49 = vadd.f32 %v8905_v25, %v9432_v41  ;;  %v9761_v5 = vpop.eup %6161  ;;  %v4065_v38 = vsel %vm4064_vm14, %v4062_v28, %v4059_v58  ;;  %6171 = vlog2.f32 %v4210_v16  ;;  %v4228_v37 = vadd.f32 1.0, %v9747_v31 }
 0x356   : > { %v4002_v62 = vsel %vm9701_vm6, %v11558_v8, %v3996_v13  ;;  %v6164_v63 = vpop.eup %6163  ;;  %v4469_v32 = vmul.f32 0.01, %v4065_v38  ;;  %6173 = vpow2.f32 %v3748_v35  ;;  %v3752_v44 = vmul.f32 1.442695, %v3656_v51  ;;  %v11560_v13 = vld [vmem:[#allocation17_spill] sm:$0xff] }
 0x357   : > { %v3671_v45 = vmin.f32 %v9742_v52, 20.0  ;;  %v9771_v41 = vsel %vm4520_vm10, %v9387_v50, %v4452_v24  ;;  %v4077_v2 = vmul.f32 0.6931472, %v6164_v63  ;;  %v4080_v39 = vmul.f32 %v9678_v10, %v4079_v48  ;;  %v11566_v8 = vld [vmem:[#allocation73_spill] sm:$0xff] }
 0x358   : > { %11559 = vst [vmem:[#allocation49_spill] sm:$0xff] %v9771_v41  ;;  %vm4082_vm15 = vcmp.lt.f32.partialorder %v4081_v19, 0.0004427343  ;;  %v4454_v16 = vmul.f32 0.01, %v3930_v22  ;;  %v9777_v46 = vsel %vm4537_vm12, %v9478_v6, %v4469_v32  ;;  %v9780_v35 = vmul.f32 100.0, %v9759_v49 }
 0x359   : > { %v4462_v26 = vmul.f32 0.01, %v4002_v62  ;;  %v4083_v43 = vsel %vm4082_vm15, %v4080_v39, %v4077_v2  ;;  %6175 = vlog2.f32 %v4228_v37  ;;  %v3673_v50 = vmin.f32 %v9745_v7, 20.0  ;;  %v9785_v24 = vpop.eup %6165 }
 0x35a   : > { %v4471_v10 = vmul.f32 0.01, %v4083_v43  ;;  %v3782_v63 = vmul.f32 1.442695, %v3671_v45  ;;  %v3640_v15 = vmin.f32 %v9780_v35, 20.0  ;;  %v4213_v58 = vmul.f32 -0.5, %v9734_v57 }
 0x35b   : > { %v4598_v6 = vsel %vm4530_vm7, %v11560_v13, %v4462_v26  ;;  %v9794_v28 = vadd.f32 %v8963_v59, %v9379_v17  ;;  %v9799_v19 = vadd.f32 %v8905_v25, %v9451_v18  ;;  %v9806_v55 = vsel %vm4522_vm1, %v9390_v54, %v4454_v16  ;;  %v11565_v54 = vld [vmem:[#allocation74_spill] sm:$0xff] }
 0x35c   : > { %v5561_v48 = vpack.c.bf16 %v4598_v6, %v9688_v1  ;;  %v9801_v32 = vpop.eup %6167  ;;  %11562 = vst [vmem:[#allocation94_spill] sm:$0xff] %v9806_v55  ;;  %v9811_v22 = vsel %vm4539_vm13, %v9525_v20, %v4471_v10  ;;  %v9815_v17 = vadd.f32 %v8963_v59, %v9420_v14  ;;  %v3720_v1 = vmul.f32 1.442695, %v3640_v15  ;;  %v11567_v14 = vld [vmem:[#allocation16_spill] sm:$0xff] }
 0x35d   : > { %11561 = vst [vmem:[#allocation17_spill] sm:$0xff] %v9794_v28  ;;  %11563 = vst [vmem:[#allocation95_spill] sm:$0xff] %v9811_v22  ;;  %6177 = vpow2.f32 %v3752_v44  ;;  %v4363_v38 = vadd.f32 1.0, %v9801_v32  ;;  %v9822_v4 = vmul.f32 %v11565_v54, %v9663_v61  ;;  %v4216_v20 = vand.u32 2147483647, %v9734_v57 }
 0x35e   : > { %11564 = vst [vmem:[#allocation96_spill] sm:$0xff] %v9815_v17  ;;  %5562 = vmatprep.subr.bf16.mxu0 %v5561_v48  ;;  %v9824_v37 = vpop.eup %6169  ;;  %v3786_v60 = vmul.f32 1.442695, %v3673_v50  ;;  %v11568_v62 = vpack.c.bf16 %v11566_v8, %v11567_v14  ;;  %6179 = vpow2.f32 %v3720_v1  ;;  %v9831_v45 = vmul.f32 100.0, %v9799_v19 }
 0x35f   : > { %v6172_v44 = vpop.eup %6171  ;;  %v4214_v2 = vadd.f32 1.0, %v4213_v58  ;;  %6181 = vlog2.f32 %v4363_v38  ;;  %v4381_v39 = vadd.f32 1.0, %v9824_v37  ;;  %v9835_v61 = vmul.f32 100.0, %v9794_v28  ;;  %v11589_v38 = vld [vmem:[#allocation18_spill] sm:$0xff] }
 0x360   : > { %5564 = vmatpush1.bf16.msra.mxu0 %v11568_v62  ;;  %v9837_v16 = vpop.eup %6173  ;;  %v4231_v26 = vmul.f32 -0.5, %v9747_v31  ;;  %6183 = vpow2.f32 %v3782_v63  ;;  %v9841_v43 = vmul.f32 100.0, %v9815_v17  ;;  %v3642_v50 = vmin.f32 %v9831_v45, 20.0 }
 0x361   : > { %11569 = vst [vmem:[#allocation74_spill] sm:$0xff] %v9835_v61  ;;  %v4234_v10 = vand.u32 2147483647, %v9747_v31  ;;  %v4366_v13 = vmul.f32 -0.5, %v9801_v32  ;;  %6185 = vlog2.f32 %v4381_v39  ;;  %v9848_v6 = vadd.f32 %v8907_v56, %v9446_v11 }
 0x362   : > { %11570 = vst [vmem:[#allocation73_spill] sm:$0xff] %v9841_v43  ;;  %v4212_v15 = vmul.f32 0.6931472, %v6172_v44  ;;  %6187 = vpow2.f32 %v3786_v60  ;;  %v3724_v58 = vmul.f32 1.442695, %v3642_v50  ;;  %v9852_v63 = vadd.f32 %v8905_v25, %v9439_v40 }
 0x363   : > { %v6176_v48 = vpop.eup %6175  ;;  %v4215_v1 = vmul.f32 %v9734_v57, %v4214_v2  ;;  %vm9855_vm0 = vcmp.lt.f32.partialorder %v4216_v20, 0.0004427343  ;;  %v4384_v8 = vmul.f32 -0.5, %v9824_v37  ;;  %v3688_v14 = vmin.f32 %v9835_v61, 20.0 }
 0x364   : > { %11571 = vst [vmem:[#allocation16_spill] sm:$0xff] %v9852_v63  ;;  %v4232_v11 = vadd.f32 1.0, %v4231_v26  ;;  %v4369_v62 = vand.u32 2147483647, %v9801_v32  ;;  %v3690_v60 = vmin.f32 %v9841_v43, 20.0  ;;  %6189 = vpow2.f32 %v3724_v58 }
 0x365   : > { %vm9863_vm2 = vcmp.lt.f32.partialorder %v4234_v10, 0.0004427343  ;;  %v4367_v44 = vadd.f32 1.0, %v4366_v13  ;;  %v9868_v57 = vmul.f32 100.0, %v9848_v6  ;;  %v9872_v20 = vadd.f32 %v8907_v56, %v9472_v27 }
 0x366   : > { %v4218_v2 = vsel %vm9855_vm0, %v4215_v1, %v4212_v15  ;;  %vm4554_vm3 = vcmp.gt.f32.partialorder %v9597_v3, 20.0  ;;  %v4230_v39 = vmul.f32 0.6931472, %v6176_v48  ;;  %vm4571_vm4 = vcmp.gt.f32.partialorder %v9694_v12, 20.0 }
 0x367   : > { %v9879_v26 = vmul.f32 100.0, %v9852_v63  ;;  %v9883_v50 = vadd.f32 %v8905_v25, %v9464_v29  ;;  %v9885_v10 = vpop.eup %6177  ;;  %v4385_v13 = vadd.f32 1.0, %v4384_v8  ;;  %v4387_v27 = vand.u32 2147483647, %v9824_v37 }
 0x368   : > { %v3657_v58 = vmin.f32 %v9868_v57, 20.0  ;;  %v9890_v15 = vmul.f32 100.0, %v9872_v20  ;;  %v9892_v48 = vpop.eup %6179  ;;  %v4233_v1 = vmul.f32 %v9747_v31, %v4232_v11  ;;  %vm4556_vm9 = vcmp.gt.f32.partialorder %v9645_v0, 20.0 }
 0x369   : > { %11576 = vst [vmem:[#allocation97_spill] sm:$0xff] %v9879_v26  ;;  %11577 = vst [vmem:[#allocation98_spill] sm:$0xff] %v9883_v50  ;;  %vm9896_vm5 = vcmp.lt.f32.partialorder %v4369_v62, 0.0004427343  ;;  %vm4573_vm6 = vcmp.gt.f32.partialorder %v9697_v9, 20.0  ;;  %v6182_v63 = vpop.eup %6181  ;;  %v4368_v31 = vmul.f32 %v9801_v32, %v4367_v44  ;;  %v3940_v11 = vadd.f32 1.0, %v9892_v48 }
 0x36a   : > { %v3816_v29 = vmul.f32 1.442695, %v3688_v14  ;;  %v3820_v8 = vmul.f32 1.442695, %v3690_v60  ;;  %v11580_v18 = vand.u32 2147483647, %v11535_v42  ;;  %v9909_v28 = vpop.eup %6183  ;;  %v4236_v55 = vsel %vm9863_vm2, %v4233_v1, %v4230_v39 }
 0x36b   : > { %v4486_v17 = vmul.f32 0.01, %v4218_v2  ;;  %v3754_v62 = vmul.f32 1.442695, %v3657_v58  ;;  %v4365_v14 = vmul.f32 0.6931472, %v6182_v63  ;;  %v4386_v22 = vmul.f32 %v9824_v37, %v4385_v13 }
 0x36c   : > { %vm9903_vm8 = vcmp.lt.f32.partialorder %v11580_v18, 0.0004427343  ;;  %v3641_v60 = vmin.f32 %v9879_v26, 20.0  ;;  %v3659_v42 = vmin.f32 %v9890_v15, 20.0  ;;  %v6186_v18 = vpop.eup %6185  ;;  %vm9916_vm10 = vcmp.lt.f32.partialorder %v4387_v27, 0.0004427343 }
 0x36d   : > { %6191 = vlog2.f32 %v3940_v11  ;;  %v9921_v32 = vmul.f32 100.0, %v9883_v50  ;;  %v9923_v44 = vpop.eup %6187  ;;  %v4371_v63 = vsel %vm9896_vm5, %v4368_v31, %v4365_v14  ;;  %v4383_v40 = vmul.f32 0.6931472, %v6186_v18  ;;  %v11586_v37 = vld [vmem:[#allocation31_spill] sm:$0xff]  ;;  %v11587_v26 = vld [vmem:[#allocation52_spill] sm:$0xff] }
 0x36e   : > { %6193 = vpow2.f32 %v3754_v62  ;;  %v3758_v39 = vmul.f32 1.442695, %v3659_v42  ;;  %v4488_v58 = vmul.f32 0.01, %v4236_v55  ;;  %v4503_v1 = vmul.f32 0.01, %v4371_v63  ;;  %v9928_v27 = vpop.eup %6189 }
 0x36f   : > { %11585 = vst [vmem:[#allocation99_spill] sm:$0xff] %v9921_v32  ;;  %6195 = vpow2.f32 %v3816_v29  ;;  %v4149_v13 = vmul.f32 0.6931472, %v11586_v37  ;;  %vm4547_vm11 = vcmp.gt.f32.partialorder %v11587_v26, 20.0  ;;  %v11588_v11 = vld [vmem:[#allocation56_spill] sm:$0xff]  ;;  %v4389_v50 = vsel %vm9916_vm10, %v4386_v22, %v4383_v40  ;;  %v11593_v42 = vld [vmem:[#allocation70_spill] sm:$0xff] }
 0x370   : > { %vm4564_vm12 = vcmp.gt.f32.partialorder %v11588_v11, 20.0  ;;  %v3722_v43 = vmul.f32 1.442695, %v3641_v60  ;;  %6197 = vpow2.f32 %v3758_v39  ;;  %v9936_v31 = vadd.f32 %v8907_v56, %v11589_v38  ;;  %v11602_v40 = vld [vmem:[#allocation80_spill] sm:$0xff] }
 0x371   : > { %v9941_v55 = vsel %vm4554_vm3, %v9571_v30, %v4486_v17  ;;  %v9946_v29 = vsel %vm4571_vm4, %v9672_v23, %v4503_v1  ;;  %v4505_v62 = vmul.f32 0.01, %v4389_v50  ;;  %v3958_v14 = vadd.f32 1.0, %v9928_v27 }
 0x372   : > { %11590 = vst [vmem:[#allocation31_spill] sm:$0xff] %v9936_v31  ;;  %11591 = vst [vmem:[#allocation52_spill] sm:$0xff] %v9941_v55  ;;  %6199 = vpow2.f32 %v3820_v8  ;;  %v3643_v60 = vmin.f32 %v9921_v32, 20.0  ;;  %v9954_v18 = vadd.f32 %v8907_v56, %v11593_v42  ;;  %v9959_v30 = vsel %vm4556_vm9, %v9607_v36, %v4488_v58  ;;  %v11598_v36 = vld [vmem:[#allocation25_spill] sm:$0xff]  ;;  %v11600_v8 = vld [vmem:[#allocation54_spill] sm:$0xff] }
 0x373   : > { %11592 = vst [vmem:[#allocation56_spill] sm:$0xff] %v9946_v29  ;;  %11595 = vst [vmem:[#allocation70_spill] sm:$0xff] %v9959_v30  ;;  %v9964_v3 = vsel %vm4573_vm6, %v9676_v21, %v4505_v62  ;;  %v3943_v23 = vmul.f32 -0.5, %v9892_v48  ;;  %v4155_v12 = vsel %vm9903_vm8, %v9659_v33, %v4149_v13  ;;  %6201 = vpow2.f32 %v3722_v43  ;;  %v11603_v42 = vld [vmem:[#allocation47_spill] sm:$0xff] }
 0x374   : > { %11594 = vst [vmem:[#allocation18_spill] sm:$0xff] %v9954_v18  ;;  %11596 = vst [vmem:[#allocation100_spill] sm:$0xff] %v9964_v3  ;;  %v9973_v50 = vmul.f32 100.0, %v9936_v31  ;;  %v4302_v0 = vmul.f32 0.6931472, %v11598_v36  ;;  %6203 = vlog2.f32 %v3958_v14  ;;  %v3859_v2 = vadd.f32 1.0, %v11600_v8 }
 0x375   : > { %v11599_v9 = vand.u32 2147483647, %v11565_v54  ;;  %v4479_v21 = vmul.f32 0.01, %v4155_v12  ;;  %v3726_v63 = vmul.f32 1.442695, %v3643_v60 }
 0x376   : > { %11597 = vst [vmem:[#allocation101_spill] sm:$0xff] %v9973_v50  ;;  %v9980_v51 = vmul.f32 100.0, %v9954_v18  ;;  %v4012_v43 = vadd.f32 1.0, %v11602_v40  ;;  %v3944_v58 = vadd.f32 1.0, %v3943_v23  ;;  %v3946_v1 = vand.u32 2147483647, %v9892_v48 }
 0x377   : > { %vm4307_vm7 = vcmp.lt.f32.partialorder %v11599_v9, 0.0004427343  ;;  %v6192_v39 = vpop.eup %6191  ;;  %6205 = vlog2.f32 %v3859_v2  ;;  %v3961_v54 = vmul.f32 -0.5, %v9928_v27  ;;  %v3964_v38 = vand.u32 2147483647, %v9928_v27  ;;  %v11604_v12 = vld [vmem:[#allocation21_spill] sm:$0xff] }
 0x378   : > { %11601 = vst [vmem:[#allocation25_spill] sm:$0xff] %v9980_v51  ;;  %v4308_v33 = vsel %vm4307_vm7, %v9822_v4, %v4302_v0  ;;  %v9985_v13 = vpop.eup %6193  ;;  %v3658_v62 = vmin.f32 %v9973_v50, 20.0  ;;  %6207 = vlog2.f32 %v4012_v43  ;;  %v3942_v4 = vmul.f32 0.6931472, %v6192_v39 }
 0x379   : > { %v4496_v37 = vmul.f32 0.01, %v4308_v33  ;;  %v9990_v14 = vpop.eup %6195  ;;  %v4093_v60 = vadd.f32 1.0, %v9985_v13  ;;  %v4615_v23 = vsel %vm4547_vm11, %v11603_v42, %v4479_v21  ;;  %6209 = vpow2.f32 %v3726_v63 }
 0x37a   : > { %v9999_v0 = vpop.eup %6197  ;;  %v3862_v2 = vmul.f32 -0.5, %v11600_v8  ;;  %v3865_v33 = vand.u32 2147483647, %v11600_v8  ;;  %v3945_v43 = vmul.f32 %v9892_v48, %v3944_v58  ;;  %vm10004_vm1 = vcmp.lt.f32.partialorder %v3946_v1, 0.0004427343 }
 0x37b   : > { %v4632_v36 = vsel %vm4564_vm12, %v11604_v12, %v4496_v37  ;;  %vm4524_vm13 = vcmp.gt.f32.partialorder %v9780_v35, 20.0  ;;  %6211 = vlog2.f32 %v4093_v60  ;;  %v4015_v26 = vmul.f32 -0.5, %v11602_v40  ;;  %v11609_v60 = vld [vmem:[#allocation53_spill] sm:$0xff] }
 0x37c   : > { %v5565_v9 = vpack.c.bf16 %v4632_v36, %v4615_v23  ;;  %v10010_v11 = vpop.eup %6199  ;;  %v3962_v21 = vadd.f32 1.0, %v3961_v54  ;;  %v4096_v63 = vmul.f32 -0.5, %v9985_v13  ;;  %v4111_v37 = vadd.f32 1.0, %v9999_v0  ;;  %v11610_v23 = vld [vmem:[#allocation29_spill] sm:$0xff]  ;;  %v11612_v54 = vld [vmem:[#allocation59_spill] sm:$0xff] }
 0x37d   : > { %v10014_v42 = vmul.f32 1.442695, %v3658_v62  ;;  %v3948_v48 = vsel %vm10004_vm1, %v3945_v43, %v3942_v4  ;;  %vm10018_vm14 = vcmp.lt.f32.partialorder %v3964_v38, 0.0004427343  ;;  %v4099_v1 = vand.u32 2147483647, %v9985_v13  ;;  %v10039_v4 = vpop.eup %6201 }
 0x37e   : > { %5566 = vmatprep.subr.bf16.mxu0 %v5565_v9  ;;  %v11611_v12 = vpack.c.bf16 %v11609_v60, %v11610_v23  ;;  %v10028_v36 = vadd.f32 %v8940_v53, %v11612_v54  ;;  %v11613_v62 = vld [vmem:[#allocation42_spill] sm:$0xff]  ;;  %6213 = vlog2.f32 %v4111_v37  ;;  %v4114_v43 = vmul.f32 -0.5, %v9999_v0  ;;  %v6204_v23 = vpop.eup %6203  ;;  %v11617_v54 = vld [vmem:[#allocation11_spill] sm:$0xff] }
 0x37f   : > { %v10032_v9 = vadd.f32 %v8940_v53, %v11613_v62  ;;  %v10037_v38 = vld [vmem:[%s10777_s6] sm:$0x1f]  ;;  %v3863_v39 = vadd.f32 1.0, %v3862_v2  ;;  %vm10042_vm15 = vcmp.lt.f32.partialorder %v3865_v33, 0.0004427343  ;;  %vm4532_vm2 = vcmp.gt.f32.partialorder %v11617_v54, 20.0 }
 0x380   : > { %5568 = vmatpush1.bf16.msra.mxu0 %v11611_v12  ;;  %v11616_v12 = vld [vmem:[#allocation33_spill] sm:$0xff]  ;;  %v4016_v62 = vadd.f32 1.0, %v4015_v26  ;;  %v10049_v17 = vmul.f32 100.0, %v10028_v36  ;;  %vm4655_vm3 = vcmask 261120   ;;  %v4456_v37 = vmul.f32 0.01, %v3948_v48 }
 0x381   : > { %vm4515_vm0 = vcmp.gt.f32.partialorder %v11616_v12, 20.0  ;;  %v10052_v22 = vmul.f32 100.0, %v10032_v9  ;;  %v3963_v2 = vmul.f32 %v9928_v27, %v3962_v21  ;;  %v4097_v33 = vadd.f32 1.0, %v4096_v63  ;;  %v6206_v32 = vpop.eup %6205  ;;  %v11627_v60 = vld [vmem:[#allocation23_spill] sm:$0xff] }
 0x382   : > { %v4018_v18 = vand.u32 2147483647, %v11602_v40  ;;  %vm10058_vm4 = vcmp.lt.f32.partialorder %v4099_v1, 0.0004427343  ;;  %v4117_v26 = vand.u32 2147483647, %v9999_v0  ;;  %v6208_v27 = vpop.eup %6207  ;;  %v3864_v55 = vmul.f32 %v11600_v8, %v3863_v39 }
 0x383   : > { %5497 = vmatmul.mubr.msk.f32.vlgmr.msra.gmra.mrb[68].mxu0 %vm4655_vm3, %v10037_v38  ;;  %v3674_v30 = vmin.f32 %v10049_v17, 20.0  ;;  %v3676_v3 = vmin.f32 %v10052_v22, 20.0  ;;  %v11620_v48 = vmov 0.0   ;;  %v3960_v21 = vmul.f32 0.6931472, %v6204_v23  ;;  %v10069_v52 = vpop.eup %6209 }
 0x384   : > { %4794 = vmatprep.mubr.f32.mxu0 %v11620_v48  ;;  %vm4541_vm9 = vcmp.gt.f32.partialorder %v9868_v57, 20.0  ;;  %v4115_v63 = vadd.f32 1.0, %v4114_v43  ;;  %v3861_v50 = vmul.f32 0.6931472, %v6206_v32  ;;  %v4014_v1 = vmul.f32 0.6931472, %v6208_v27 }
 0x385   : > { %v4017_v29 = vmul.f32 %v11602_v40, %v4016_v62  ;;  %v3788_v7 = vmul.f32 1.442695, %v3674_v30  ;;  %v3792_v61 = vmul.f32 1.442695, %v3676_v3  ;;  %v10074_v41 = vsel %vm4524_vm13, %v9759_v49, %v4456_v37  ;;  %v6212_v32 = vpop.eup %6211  ;;  %v11628_v62 = vld [vmem:[#allocation63_spill] sm:$0xff] }
 0x386   : > { %11621 = vst [vmem:[#allocation54_spill] sm:$0xff] %v10074_v41  ;;  %v4098_v23 = vmul.f32 %v9985_v13, %v4097_v33  ;;  %v3867_v43 = vsel %vm10042_vm15, %v3864_v55, %v3861_v50  ;;  %vm4019_vm5 = vcmp.lt.f32.partialorder %v4018_v18, 0.0004427343  ;;  %vm4526_vm6 = vcmp.gt.f32.partialorder %v9831_v45, 20.0  ;;  %v11624_v55 = vld [vmem:[#allocation61_spill] sm:$0xff] }
 0x387   : > { %vm10080_vm8 = vcmp.lt.f32.partialorder %v4117_v26, 0.0004427343  ;;  %v4020_v30 = vsel %vm4019_vm5, %v4017_v29, %v4014_v1  ;;  %v4447_v3 = vmul.f32 0.01, %v3867_v43  ;;  %6215 = vpow2.f32 %v3788_v7  ;;  %v11626_v50 = vld [vmem:[#allocation41_spill] sm:$0xff] }
 0x388   : > { %v3966_v49 = vsel %vm10018_vm14, %v3963_v2, %v3960_v21  ;;  %v4095_v35 = vmul.f32 0.6931472, %v6212_v32  ;;  %v4464_v40 = vmul.f32 0.01, %v4020_v30  ;;  %6217 = vpow2.f32 %v3792_v61  ;;  %v6214_v7 = vpop.eup %6213  ;;  %v11630_v2 = vld [vmem:[#allocation22_spill] sm:$0xff]  ;;  %v11634_v30 = vld [vmem:[#allocation81_spill] sm:$0xff] }
 0x389   : > { %v4116_v13 = vmul.f32 %v9999_v0, %v4115_v63  ;;  %v10089_v18 = vadd.f32 %v8940_v53, %v11624_v55  ;;  %v10093_v39 = vadd.f32 %v8963_v59, %v11626_v50  ;;  %v10097_v29 = vadd.f32 %v8963_v59, %v11627_v60  ;;  %v11629_v0 = vld [vmem:[#allocation51_spill] sm:$0xff]  ;;  %v11631_v63 = vld [vmem:[#allocation30_spill] sm:$0xff]  ;;  %v11636_v55 = vld [vmem:[#allocation24_spill] sm:$0xff] }
 0x38a   : > { %v4101_v58 = vsel %vm10058_vm4, %v4098_v23, %v4095_v35  ;;  %v4583_v61 = vsel %vm4515_vm0, %v11628_v62, %v4447_v3  ;;  %v4600_v37 = vsel %vm4532_vm2, %v11629_v0, %v4464_v40  ;;  %v4165_v33 = vadd.f32 1.0, %v11630_v2  ;;  %v11635_v40 = vld [vmem:[#allocation12_spill] sm:$0xff] }
 0x38b   : > { %11625 = vst [vmem:[#allocation80_spill] sm:$0xff] %v10089_v18  ;;  %v4473_v26 = vmul.f32 0.01, %v4101_v58  ;;  %v4113_v27 = vmul.f32 0.6931472, %v6214_v7  ;;  %v5569_v21 = vpack.c.bf16 %v4600_v37, %v4583_v61  ;;  %v10110_v1 = vadd.f32 %v8940_v53, %v11631_v63 }
 0x38c   : > { %v4458_v43 = vmul.f32 0.01, %v3966_v49  ;;  %v10113_v31 = vmul.f32 100.0, %v10093_v39  ;;  %v10116_v12 = vmul.f32 100.0, %v10097_v29  ;;  %6219 = vlog2.f32 %v4165_v33 }
 0x38d   : > { %11632 = vst [vmem:[#allocation47_spill] sm:$0xff] %v10110_v1  ;;  %v10121_v54 = vsel %vm4541_vm9, %v9848_v6, %v4473_v26  ;;  %v4119_v23 = vsel %vm10080_vm8, %v4116_v13, %v4113_v27  ;;  %5570 = vmatprep.subr.bf16.mxu0 %v5569_v21  ;;  %v10126_v32 = vmul.f32 100.0, %v10089_v18  ;;  %v4318_v3 = vadd.f32 1.0, %v11634_v30 }
 0x38e   : > { %v4475_v35 = vmul.f32 0.01, %v4119_v23  ;;  %v11637_v50 = vpack.c.bf16 %v11635_v40, %v11636_v55  ;;  %v3691_v6 = vmin.f32 %v10113_v31, 20.0  ;;  %v4168_v57 = vmul.f32 -0.5, %v11630_v2 }
 0x38f   : > { %11633 = vst [vmem:[#allocation21_spill] sm:$0xff] %v10126_v32  ;;  %vm4543_vm10 = vcmp.gt.f32.partialorder %v9890_v15, 20.0  ;;  %6221 = vpow2.f32 %v10014_v42  ;;  %v3660_v8 = vmin.f32 %v9980_v51, 20.0  ;;  %v3693_v13 = vmin.f32 %v10116_v12, 20.0  ;;  %v11646_v15 = vld [vmem:[#allocation50_spill] sm:$0xff] }
 0x390   : > { %5572 = vmatpush1.bf16.msra.mxu0 %v11637_v50  ;;  %v10143_v60 = vsel %vm4526_vm6, %v9799_v19, %v4458_v43  ;;  %v10146_v7 = vsel %vm4543_vm10, %v9872_v20, %v4475_v35  ;;  %v3822_v58 = vmul.f32 1.442695, %v3691_v6  ;;  %6223 = vlog2.f32 %v4318_v3  ;;  %v11641_v6 = vld [vmem:[#allocation68_spill] sm:$0xff] }
 0x391   : > { %11638 = vst [vmem:[#allocation53_spill] sm:$0xff] %v10143_v60  ;;  %11639 = vst [vmem:[#allocation29_spill] sm:$0xff] %v10146_v7  ;;  %v6216_v62 = vpop.eup %6215  ;;  %v3675_v42 = vmin.f32 %v10126_v32, 20.0  ;;  %v10152_v61 = vmul.f32 100.0, %v10110_v1  ;;  %v3826_v0 = vmul.f32 1.442695, %v3693_v13 }
 0x392   : > { %v6218_v37 = vpop.eup %6217  ;;  %v4246_v33 = vadd.f32 1.0, %v6216_v62  ;;  %6225 = vpow2.f32 %v3822_v58  ;;  %v4169_v19 = vadd.f32 1.0, %v4168_v57  ;;  %v4249_v45 = vmul.f32 -0.5, %v6216_v62  ;;  %v11642_v58 = vld [vmem:[#allocation32_spill] sm:$0xff]  ;;  %v11658_v7 = vld [vmem:[#allocation78_spill] sm:$0xff] }
 0x393   : > { %11640 = vst [vmem:[#allocation59_spill] sm:$0xff] %v10152_v61  ;;  %v4264_v26 = vadd.f32 1.0, %v6218_v37  ;;  %6227 = vpow2.f32 %v3826_v0  ;;  %v4321_v20 = vmul.f32 -0.5, %v11634_v30  ;;  %v3760_v27 = vmul.f32 1.442695, %v3660_v8 }
 0x394   : > { %6229 = vlog2.f32 %v4246_v33  ;;  %v4267_v21 = vmul.f32 -0.5, %v6218_v37  ;;  %v4171_v63 = vand.u32 2147483647, %v11630_v2  ;;  %v3790_v43 = vmul.f32 1.442695, %v3675_v42  ;;  %v11643_v33 = vld [vmem:[#allocation34_spill] sm:$0xff] }
 0x395   : > { %6231 = vlog2.f32 %v4264_v26  ;;  %v3677_v23 = vmin.f32 %v10152_v61, 20.0  ;;  %v4252_v35 = vand.u32 2147483647, %v6216_v62  ;;  %v4270_v40 = vand.u32 2147483647, %v6218_v37  ;;  %v11655_v61 = vld [vmem:[#allocation57_spill] sm:$0xff] }
 0x396   : > { %v6220_v3 = vpop.eup %6219  ;;  %v4170_v55 = vmul.f32 %v11630_v2, %v4169_v19  ;;  %v4324_v50 = vand.u32 2147483647, %v11634_v30  ;;  %vm4549_vm11 = vcmp.gt.f32.partialorder %v11641_v6, 20.0  ;;  %v4250_v57 = vadd.f32 1.0, %v4249_v45  ;;  %v11660_v6 = vld [vmem:[#allocation26_spill] sm:$0xff] }
 0x397   : > { %v4167_v13 = vmul.f32 0.6931472, %v6220_v3  ;;  %v4322_v8 = vadd.f32 1.0, %v4321_v20  ;;  %v3877_v0 = vadd.f32 1.0, %v11642_v58  ;;  %vm4566_vm12 = vcmp.gt.f32.partialorder %v11643_v33, 20.0  ;;  %v11647_v20 = vld [vmem:[#allocation38_spill] sm:$0xff] }
 0x398   : > { %6233 = vpow2.f32 %v3760_v27  ;;  %v4268_v42 = vadd.f32 1.0, %v4267_v21  ;;  %vm10162_vm7 = vcmp.lt.f32.partialorder %v4171_v63, 0.0004427343  ;;  %v4030_v49 = vadd.f32 1.0, %v11646_v15  ;;  %v11661_v21 = vld [vmem:[#allocation79_spill] sm:$0xff] }
 0x399   : > { %v10167_v2 = vpop.eup %6221  ;;  %v10169_v19 = vmul.f32 1.442695, %v3677_v23  ;;  %v4173_v45 = vsel %vm10162_vm7, %v4170_v55, %v4167_v13  ;;  %v10175_v3 = vadd.f32 %v8963_v59, %v11647_v20  ;;  %6235 = vlog2.f32 %v3877_v0 }
 0x39a   : > { %v6224_v27 = vpop.eup %6223  ;;  %vm10177_vm1 = vcmp.lt.f32.partialorder %v4252_v35, 0.0004427343  ;;  %vm10181_vm13 = vcmp.lt.f32.partialorder %v4270_v40, 0.0004427343  ;;  %6237 = vpow2.f32 %v3790_v43  ;;  %vm10185_vm14 = vcmp.lt.f32.partialorder %v4324_v50, 0.0004427343 }
 0x39b   : > { %11648 = vst [vmem:[#allocation42_spill] sm:$0xff] %v10175_v3  ;;  %v4251_v55 = vmul.f32 %v6216_v62, %v4250_v57  ;;  %v4320_v13 = vmul.f32 0.6931472, %v6224_v27  ;;  %v4323_v26 = vmul.f32 %v11634_v30, %v4322_v8  ;;  %v3880_v0 = vmul.f32 -0.5, %v11642_v58 }
 0x39c   : > { %v6226_v20 = vpop.eup %6225  ;;  %v4269_v35 = vmul.f32 %v6218_v37, %v4268_v42  ;;  %v4481_v1 = vmul.f32 0.01, %v4173_v45  ;;  %v10193_v40 = vadd.f32 %v8963_v59, %v11655_v61  ;;  %6239 = vlog2.f32 %v4030_v49 }
 0x39d   : > { %v6228_v18 = vpop.eup %6227  ;;  %v4399_v43 = vadd.f32 1.0, %v6226_v20  ;;  %v4402_v50 = vmul.f32 -0.5, %v6226_v20  ;;  %v4326_v32 = vsel %vm10185_vm14, %v4323_v26, %v4320_v13  ;;  %v10198_v62 = vmul.f32 100.0, %v10175_v3  ;;  %v11657_v13 = vld [vmem:[#allocation15_spill] sm:$0xff] }
 0x39e   : > { %11656 = vst [vmem:[#allocation33_spill] sm:$0xff] %v10193_v40  ;;  %v6230_v30 = vpop.eup %6229  ;;  %v4417_v57 = vadd.f32 1.0, %v6228_v18  ;;  %v4420_v8 = vmul.f32 -0.5, %v6228_v18  ;;  %v4498_v27 = vmul.f32 0.01, %v4326_v32  ;;  %vm4558_vm15 = vcmp.gt.f32.partialorder %v10049_v17, 20.0 }
 0x39f   : > { %v3883_v37 = vand.u32 2147483647, %v11642_v58  ;;  %v6232_v42 = vpop.eup %6231  ;;  %v4248_v45 = vmul.f32 0.6931472, %v6230_v30  ;;  %6241 = vlog2.f32 %v4399_v43  ;;  %v3881_v49 = vadd.f32 1.0, %v3880_v0 }
 0x3a0   : > { %v4033_v61 = vmul.f32 -0.5, %v11646_v15  ;;  %v4266_v60 = vmul.f32 0.6931472, %v6232_v42  ;;  %vm4560_vm0 = vcmp.gt.f32.partialorder %v10052_v22, 20.0  ;;  %v4405_v23 = vand.u32 2147483647, %v6226_v20 }
 0x3a1   : > { %6243 = vlog2.f32 %v4417_v57  ;;  %v4617_v26 = vsel %vm4549_vm11, %v11657_v13, %v4481_v1  ;;  %v4254_v32 = vsel %vm10177_vm1, %v4251_v55, %v4248_v45  ;;  %v4403_v3 = vadd.f32 1.0, %v4402_v50 }
 0x3a2   : > { %v4423_v30 = vand.u32 2147483647, %v6228_v18  ;;  %v4634_v0 = vsel %vm4566_vm12, %v11658_v7, %v4498_v27  ;;  %v10212_v43 = vpop.eup %6233  ;;  %v4272_v42 = vsel %vm10181_vm13, %v4269_v35, %v4266_v60  ;;  %v4421_v51 = vadd.f32 1.0, %v4420_v8  ;;  %v11664_v8 = vld [vmem:[#allocation44_spill] sm:$0xff] }
 0x3a3   : > { %v5573_v57 = vpack.c.bf16 %v4634_v0, %v4617_v26  ;;  %v10217_v41 = vmul.f32 100.0, %v10193_v40  ;;  %v6236_v1 = vpop.eup %6235  ;;  %vm4517_vm2 = vcmp.gt.f32.partialorder %v11660_v6, 20.0  ;;  %vm4534_vm4 = vcmp.gt.f32.partialorder %v11661_v21, 20.0 }
 0x3a4   : > { %v4490_v55 = vmul.f32 0.01, %v4254_v32  ;;  %v3882_v50 = vmul.f32 %v11642_v58, %v3881_v49  ;;  %vm10222_vm9 = vcmp.lt.f32.partialorder %v3883_v37, 0.0004427343  ;;  %v4034_v33 = vadd.f32 1.0, %v4033_v61  ;;  %v10226_v63 = vpop.eup %6237  ;;  %v11669_v37 = vld [vmem:[#allocation76_spill] sm:$0xff] }
 0x3a5   : > { %11659 = vst [vmem:[#allocation11_spill] sm:$0xff] %v10217_v41  ;;  %5574 = vmatprep.subr.bf16.mxu0 %v5573_v57  ;;  %v3879_v60 = vmul.f32 0.6931472, %v6236_v1  ;;  %v4036_v35 = vand.u32 2147483647, %v11646_v15  ;;  %v3895_v27 = vadd.f32 1.0, %v11664_v8  ;;  %v4404_v26 = vmul.f32 %v6226_v20, %v4403_v3 }
 0x3a6   : > { %v3898_v45 = vmul.f32 -0.5, %v11664_v8  ;;  %v4492_v13 = vmul.f32 0.01, %v4272_v42  ;;  %vm10231_vm5 = vcmp.lt.f32.partialorder %v4405_v23, 0.0004427343  ;;  %v11670_v49 = vld [vmem:[#allocation58_spill] sm:$0xff]  ;;  %v6240_v0 = vpop.eup %6239  ;;  %v4422_v57 = vmul.f32 %v6228_v18, %v4421_v51 }
 0x3a7   : > { %vm10235_vm6 = vcmp.lt.f32.partialorder %v4423_v30, 0.0004427343  ;;  %v11671_v61 = vpack.c.bf16 %v11669_v37, %v11670_v49  ;;  %vm4575_vm8 = vcmp.gt.f32.partialorder %v10113_v31, 20.0  ;;  %v3885_v42 = vsel %vm10222_vm9, %v3882_v50, %v3879_v60  ;;  %v11672_v1 = vld [vmem:[#allocation60_spill] sm:$0xff]  ;;  %v11683_v31 = vld [vmem:[#allocation67_spill] sm:$0xff] }
 0x3a8   : > { %6245 = vlog2.f32 %v3895_v27  ;;  %v4048_v3 = vadd.f32 1.0, %v9593_v34  ;;  %vm4577_vm10 = vcmp.gt.f32.partialorder %v10116_v12, 20.0  ;;  %v4032_v20 = vmul.f32 0.6931472, %v6240_v0 }
 0x3a9   : > { %5576 = vmatpush1.bf16.msra.mxu0 %v11671_v61  ;;  %v4035_v23 = vmul.f32 %v11646_v15, %v4034_v33  ;;  %v3899_v30 = vadd.f32 1.0, %v3898_v45  ;;  %v10250_v37 = vadd.f32 %v11672_v1, %v8940_v53  ;;  %v10255_v51 = vsel %vm4558_vm15, %v10028_v36, %v4490_v55  ;;  %v6242_v50 = vpop.eup %6241  ;;  %v11677_v61 = vld [vmem:[#allocation48_spill] sm:$0xff] }
 0x3aa   : > { %11673 = vst [vmem:[#allocation61_spill] sm:$0xff] %v10255_v51  ;;  %vm4037_vm11 = vcmp.lt.f32.partialorder %v4036_v35, 0.0004427343  ;;  %v4449_v18 = vmul.f32 0.01, %v3885_v42  ;;  %6247 = vlog2.f32 %v4048_v3  ;;  %v10262_v15 = vsel %vm4560_vm0, %v10032_v9, %v4492_v13  ;;  %v11675_v35 = vld [vmem:[#allocation87_spill] sm:$0xff] }
 0x3ab   : > { %11674 = vst [vmem:[#allocation41_spill] sm:$0xff] %v10262_v15  ;;  %v4038_v7 = vsel %vm4037_vm11, %v4035_v23, %v4032_v20  ;;  %v10265_v53 = vmul.f32 100.0, %v10250_v37  ;;  %v10269_v17 = vadd.f32 %v8905_v25, %v9609_v47  ;;  %v6244_v36 = vpop.eup %6243  ;;  %v4401_v55 = vmul.f32 0.6931472, %v6242_v50  ;;  %v11676_v47 = vld [vmem:[#allocation75_spill] sm:$0xff] }
 0x3ac   : > { %5498 = vmatmul.mubr.msk.f32.vlgmr.msra.gmra.mrb[70].mxu0 %vm4655_vm3, %v10037_v38  ;;  %v4466_v33 = vmul.f32 0.01, %v4038_v7  ;;  %v3901_v60 = vand.u32 2147483647, %v11664_v8  ;;  %v10275_v22 = vadd.f32 %v11675_v35, %v8963_v59  ;;  %v4419_v9 = vmul.f32 0.6931472, %v6244_v36 }
 0x3ad   : > { %4936 = vmatprep.mubr.f32.mxu0 %v11620_v48  ;;  %v3900_v27 = vmul.f32 %v11664_v8, %v3899_v30  ;;  %v4051_v45 = vmul.f32 -0.5, %v9593_v34  ;;  %v3678_v13 = vmin.f32 %v10265_v53, 20.0  ;;  %v4407_v25 = vsel %vm10231_vm5, %v4404_v26, %v4401_v55  ;;  %v11678_v30 = vld [vmem:[#allocation62_spill] sm:$0xff]  ;;  %v11682_v36 = vld [vmem:[#allocation55_spill] sm:$0xff] }
 0x3ae   : > { %v4585_v49 = vsel %vm4517_vm2, %v11676_v47, %v4449_v18  ;;  %v4602_v0 = vsel %vm4534_vm4, %v11677_v61, %v4466_v33  ;;  %v10289_v59 = vmul.f32 100.0, %v10269_v17  ;;  %v4507_v42 = vmul.f32 0.01, %v4407_v25 }
 0x3af   : > { %v4425_v8 = vsel %vm10235_vm6, %v4422_v57, %v4419_v9  ;;  %v5577_v3 = vpack.c.bf16 %v4602_v0, %v4585_v49  ;;  %v3796_v20 = vmul.f32 1.442695, %v3678_v13  ;;  %v4054_v26 = vand.u32 2147483647, %v9593_v34  ;;  %v11680_v57 = vld [vmem:[#allocation88_spill] sm:$0xff] }
 0x3b0   : > { %v4509_v23 = vmul.f32 0.01, %v4425_v8  ;;  %v3644_v32 = vmin.f32 %v10289_v59, 20.0  ;;  %v10296_v6 = vmul.f32 100.0, %v10275_v22  ;;  %vm4519_vm12 = vcmp.gt.f32.partialorder %v11678_v30, 20.0 }
 0x3b1   : > { %v10302_v21 = vsel %vm4575_vm8, %v10093_v39, %v4507_v42  ;;  %5578 = vmatprep.subr.bf16.mxu1 %v5577_v3  ;;  %v4052_v58 = vadd.f32 1.0, %v4051_v45  ;;  %6249 = vpow2.f32 %v3796_v20  ;;  %v10306_v1 = vadd.f32 %v8907_v56, %v11680_v57  ;;  %v11685_v45 = vld [vmem:[#allocation13_spill] sm:$0xff] }
 0x3b2   : > { %11679 = vst [vmem:[#allocation23_spill] sm:$0xff] %v10302_v21  ;;  %v6246_v18 = vpop.eup %6245  ;;  %v10313_v7 = vsel %vm4577_vm10, %v10097_v29, %v4509_v23  ;;  %v11684_v39 = vpack.c.bf16 %v11682_v36, %v11683_v31  ;;  %v3728_v55 = vmul.f32 1.442695, %v3644_v32  ;;  %v3695_v33 = vmin.f32 %v10296_v6, 20.0  ;;  %v11686_v42 = vld [vmem:[#allocation45_spill] sm:$0xff]  ;;  %v11687_v23 = vld [vmem:[#allocation40_spill] sm:$0xff] }
 0x3b3   : > { %11681 = vst [vmem:[#allocation63_spill] sm:$0xff] %v10313_v7  ;;  %v3897_v35 = vmul.f32 0.6931472, %v6246_v18  ;;  %v10322_v9 = vmul.f32 100.0, %v10306_v1  ;;  %v4183_v13 = vadd.f32 1.0, %v11685_v45  ;;  %v3692_v29 = vmin.f32 %v10198_v62, 20.0 }
 0x3b4   : > { %5580 = vmatpush1.bf16.msra.mxu1 %v11684_v39  ;;  %v6248_v25 = vpop.eup %6247  ;;  %vm3902_vm7 = vcmp.lt.f32.partialorder %v3901_v60, 0.0004427343  ;;  %6251 = vpow2.f32 %v3728_v55  ;;  %v3830_v12 = vmul.f32 1.442695, %v3695_v33  ;;  %v4053_v61 = vmul.f32 %v9593_v34, %v4052_v58  ;;  %v11688_v18 = vld [vmem:[#allocation14_spill] sm:$0xff]  ;;  %v11689_v36 = vld [vmem:[#allocation77_spill] sm:$0xff] }
 0x3b5   : > { %v3903_v47 = vsel %vm3902_vm7, %v3900_v27, %v3897_v35  ;;  %v4050_v49 = vmul.f32 0.6931472, %v6248_v25  ;;  %v3661_v0 = vmin.f32 %v10322_v9, 20.0  ;;  %vm4536_vm1 = vcmp.gt.f32.partialorder %v11686_v42, 20.0  ;;  %v11690_v39 = vld [vmem:[#allocation65_spill] sm:$0xff] }
 0x3b6   : > { %vm4055_vm13 = vcmp.lt.f32.partialorder %v4054_v26, 0.0004427343  ;;  %v4451_v8 = vmul.f32 0.01, %v3903_v47  ;;  %6253 = vpow2.f32 %v3830_v12  ;;  %v4336_v32 = vadd.f32 1.0, %v11687_v23 }
 0x3b7   : > { %v4056_v3 = vsel %vm4055_vm13, %v4053_v61, %v4050_v49  ;;  %v3762_v20 = vmul.f32 1.442695, %v3661_v0  ;;  %6255 = vlog2.f32 %v4183_v13  ;;  %v3694_v60 = vmin.f32 %v10217_v41, 20.0  ;;  %v11693_v61 = vld [vmem:[#allocation93_spill] sm:$0xff] }
 0x3b8   : > { %6257 = vpow2.f32 %v10169_v19  ;;  %v4468_v27 = vmul.f32 0.01, %v4056_v3  ;;  %v4186_v57 = vmul.f32 -0.5, %v11685_v45  ;;  %v3824_v34 = vmul.f32 1.442695, %v3692_v29  ;;  %v11695_v3 = vld [vmem:[#allocation19_spill] sm:$0xff] }
 0x3b9   : > { %6259 = vpow2.f32 %v3762_v20  ;;  %v4189_v58 = vand.u32 2147483647, %v11685_v45  ;;  %v4201_v26 = vadd.f32 1.0, %v11688_v18  ;;  %v4587_v31 = vsel %vm4519_vm12, %v11689_v36, %v4451_v8  ;;  %v11694_v8 = vld [vmem:[#allocation83_spill] sm:$0xff] }
 0x3ba   : > { %v4604_v55 = vsel %vm4536_vm1, %v11690_v39, %v4468_v27  ;;  %6261 = vlog2.f32 %v4336_v32  ;;  %v4339_v19 = vmul.f32 -0.5, %v11687_v23  ;;  %v4204_v13 = vmul.f32 -0.5, %v11688_v18 }
 0x3bb   : > { %v6250_v33 = vpop.eup %6249  ;;  %v5585_v35 = vpack.c.bf16 %v4604_v55, %v4587_v31  ;;  %6263 = vlog2.f32 %v4201_v26  ;;  %v4187_v12 = vadd.f32 1.0, %v4186_v57  ;;  %v4342_v47 = vand.u32 2147483647, %v11687_v23  ;;  %v11711_v55 = vld [vmem:[#allocation9_spill] sm:$0xff] }
 0x3bc   : > { %v4282_v25 = vadd.f32 1.0, %v6250_v33  ;;  %v4285_v29 = vmul.f32 -0.5, %v6250_v33  ;;  %6265 = vpow2.f32 %v3824_v34  ;;  %v10344_v30 = vmul.f32 1.442695, %v3694_v60 }
 0x3bd   : > { %5586 = vmatprep.subr.bf16.mxu0 %v5585_v35  ;;  %vm10346_vm14 = vcmp.lt.f32.partialorder %v4189_v58, 0.0004427343  ;;  %v4354_v0 = vadd.f32 1.0, %v11693_v61  ;;  %v11696_v20 = vpack.c.bf16 %v11694_v8, %v11695_v3  ;;  %v4340_v32 = vadd.f32 1.0, %v4339_v19  ;;  %v11699_v19 = vld [vmem:[#allocation27_spill] sm:$0xff] }
 0x3be   : > { %v6252_v42 = vpop.eup %6251  ;;  %6267 = vlog2.f32 %v4282_v25  ;;  %v4207_v27 = vand.u32 2147483647, %v11688_v18  ;;  %v4357_v57 = vmul.f32 -0.5, %v11693_v61  ;;  %v4205_v26 = vadd.f32 1.0, %v4204_v13  ;;  %v11700_v25 = vld [vmem:[#allocation72_spill] sm:$0xff] }
 0x3bf   : > { %5588 = vmatpush1.bf16.msra.mxu0 %v11696_v20  ;;  %v3976_v60 = vadd.f32 1.0, %v6252_v42  ;;  %v3979_v34 = vmul.f32 -0.5, %v6252_v42  ;;  %6269 = vlog2.f32 %v4354_v0  ;;  %v4286_v36 = vadd.f32 1.0, %v4285_v29 }
 0x3c0   : > { %v10356_v58 = vpop.eup %6253  ;;  %v4288_v31 = vand.u32 2147483647, %v6250_v33  ;;  %v4188_v39 = vmul.f32 %v11685_v45, %v4187_v12  ;;  %vm10359_vm15 = vcmp.lt.f32.partialorder %v4342_v47, 0.0004427343  ;;  %vm4551_vm0 = vcmp.gt.f32.partialorder %v11699_v19, 20.0 }
 0x3c1   : > { %v6256_v35 = vpop.eup %6255  ;;  %vm4568_vm2 = vcmp.gt.f32.partialorder %v11700_v25, 20.0  ;;  %6271 = vlog2.f32 %v3976_v60  ;;  %v4435_v8 = vadd.f32 1.0, %v10356_v58  ;;  %v4360_v13 = vand.u32 2147483647, %v11693_v61 }
 0x3c2   : > { %v3913_v0 = vadd.f32 1.0, %v9761_v5  ;;  %v10368_v29 = vpop.eup %6257  ;;  %v3982_v3 = vand.u32 2147483647, %v6252_v42  ;;  %v4185_v45 = vmul.f32 0.6931472, %v6256_v35  ;;  %v4341_v12 = vmul.f32 %v11687_v23, %v4340_v32 }
 0x3c3   : > { %v4358_v47 = vadd.f32 1.0, %v4357_v57  ;;  %v10371_v20 = vpop.eup %6259  ;;  %v3980_v56 = vadd.f32 1.0, %v3979_v34  ;;  %6273 = vlog2.f32 %v4435_v8  ;;  %v4206_v50 = vmul.f32 %v11688_v18, %v4205_v26  ;;  %v11705_v57 = vld [vmem:[#allocation37_spill] sm:$0xff]  ;;  %v11719_v34 = vld [vmem:[#allocation84_spill] sm:$0xff] }
 0x3c4   : > { %vm10374_vm4 = vcmp.lt.f32.partialorder %v4207_v27, 0.0004427343  ;;  %v6262_v15 = vpop.eup %6261  ;;  %v4287_v7 = vmul.f32 %v6250_v33, %v4286_v36  ;;  %vm10378_vm9 = vcmp.lt.f32.partialorder %v4288_v31, 0.0004427343  ;;  %v4438_v35 = vmul.f32 -0.5, %v10356_v58  ;;  %v11708_v33 = vld [vmem:[#allocation69_spill] sm:$0xff] }
 0x3c5   : > { %v4129_v23 = vadd.f32 1.0, %v10371_v20  ;;  %v6264_v32 = vpop.eup %6263  ;;  %vm4553_vm5 = vcmp.gt.f32.partialorder %v11705_v57, 20.0  ;;  %v4191_v18 = vsel %vm10346_vm14, %v4188_v39, %v4185_v45  ;;  %v4338_v27 = vmul.f32 0.6931472, %v6262_v15 }
 0x3c6   : > { %vm10387_vm6 = vcmp.lt.f32.partialorder %v4360_v13, 0.0004427343  ;;  %6275 = vlog2.f32 %v3913_v0  ;;  %vm4570_vm8 = vcmp.gt.f32.partialorder %v11708_v33, 20.0  ;;  %vm10392_vm10 = vcmp.lt.f32.partialorder %v3982_v3, 0.0004427343  ;;  %v10398_v49 = vpop.eup %6265 }
 0x3c7   : > { %v4441_v36 = vand.u32 2147483647, %v10356_v58  ;;  %6277 = vlog2.f32 %v4129_v23  ;;  %v4483_v31 = vmul.f32 0.01, %v4191_v18  ;;  %v4359_v8 = vmul.f32 %v11693_v61, %v4358_v47  ;;  %v11712_v47 = vld [vmem:[#allocation43_spill] sm:$0xff] }
 0x3c8   : > { %v3981_v15 = vmul.f32 %v6252_v42, %v3980_v56  ;;  %v4344_v39 = vsel %vm10359_vm15, %v4341_v12, %v4338_v27  ;;  %v4203_v13 = vmul.f32 0.6931472, %v6264_v32  ;;  %v3916_v0 = vmul.f32 -0.5, %v9761_v5  ;;  %v6268_v45 = vpop.eup %6267 }
 0x3c9   : > { %v4439_v3 = vadd.f32 1.0, %v4438_v35  ;;  %v4132_v41 = vmul.f32 -0.5, %v10371_v20  ;;  %v4500_v51 = vmul.f32 0.01, %v4344_v39  ;;  %v3919_v21 = vand.u32 2147483647, %v9761_v5  ;;  %v6270_v23 = vpop.eup %6269 }
 0x3ca   : > { %v4284_v18 = vmul.f32 0.6931472, %v6268_v45  ;;  %v4135_v61 = vand.u32 2147483647, %v10371_v20  ;;  %v4209_v56 = vsel %vm10374_vm4, %v4206_v50, %v4203_v13  ;;  %v4066_v42 = vadd.f32 1.0, %v9837_v16 }
 0x3cb   : > { %vm4562_vm11 = vcmp.gt.f32.partialorder %v10265_v53, 20.0  ;;  %vm4579_vm12 = vcmp.gt.f32.partialorder %v10296_v6, 20.0  ;;  %v4619_v12 = vsel %vm4551_vm0, %v11711_v55, %v4483_v31  ;;  %v4636_v35 = vsel %vm4568_vm2, %v11712_v47, %v4500_v51  ;;  %v6272_v39 = vpop.eup %6271 }
 0x3cc   : > { %v4356_v32 = vmul.f32 0.6931472, %v6270_v23  ;;  %v4485_v27 = vmul.f32 0.01, %v4209_v56  ;;  %v4290_v50 = vsel %vm10378_vm9, %v4287_v7, %v4284_v18  ;;  %vm10419_vm7 = vcmp.lt.f32.partialorder %v4441_v36, 0.0004427343 }
 0x3cd   : > { %v5581_v13 = vpack.c.bf16 %v4636_v35, %v4619_v12  ;;  %6279 = vlog2.f32 %v4066_v42  ;;  %v3978_v45 = vmul.f32 0.6931472, %v6272_v39  ;;  %v4440_v19 = vmul.f32 %v10356_v58, %v4439_v3  ;;  %v6274_v51 = vpop.eup %6273  ;;  %v11717_v42 = vld [vmem:[#allocation71_spill] sm:$0xff]  ;;  %v11718_v58 = vld [vmem:[#allocation85_spill] sm:$0xff]  ;;  %v11721_v12 = vld [vmem:[#allocation10_spill] sm:$0xff] }
 0x3ce   : > { %v4133_v31 = vadd.f32 1.0, %v4132_v41  ;;  %v4362_v25 = vsel %vm10387_vm6, %v4359_v8, %v4356_v32  ;;  %vm4528_vm1 = vcmp.gt.f32.partialorder %v10289_v59, 20.0  ;;  %vm10427_vm13 = vcmp.lt.f32.partialorder %v4135_v61, 0.0004427343 }
 0x3cf   : > { %5582 = vmatprep.subr.bf16.mxu1 %v5581_v13  ;;  %v4502_v40 = vmul.f32 0.01, %v4362_v25  ;;  %v3917_v7 = vadd.f32 1.0, %v3916_v0  ;;  %v3931_v36 = vadd.f32 1.0, %v9785_v24  ;;  %v4494_v18 = vmul.f32 0.01, %v4290_v50 }
 0x3d0   : > { %v4437_v56 = vmul.f32 0.6931472, %v6274_v51  ;;  %v4621_v41 = vsel %vm4553_vm5, %v11717_v42, %v4485_v27  ;;  %v11720_v8 = vpack.c.bf16 %v11718_v58, %v11719_v34  ;;  %v4069_v3 = vmul.f32 -0.5, %v9837_v16  ;;  %v6276_v61 = vpop.eup %6275  ;;  %v11724_v13 = vld [vmem:[#allocation66_spill] sm:$0xff] }
 0x3d1   : > { %v3984_v55 = vsel %vm10392_vm10, %v3981_v15, %v3978_v45  ;;  %v4638_v0 = vsel %vm4570_vm8, %v11721_v12, %v4502_v40  ;;  %6281 = vlog2.f32 %v3931_v36  ;;  %v3934_v47 = vmul.f32 -0.5, %v9785_v24  ;;  %v6278_v35 = vpop.eup %6277  ;;  %v11725_v45 = vld [vmem:[#allocation92_spill] sm:$0xff]  ;;  %v11726_v40 = vld [vmem:[#allocation91_spill] sm:$0xff] }
 0x3d2   : > { %5584 = vmatpush1.bf16.msra.mxu1 %v11720_v8  ;;  %v4443_v57 = vsel %vm10419_vm7, %v4440_v19, %v4437_v56  ;;  %v5589_v32 = vpack.c.bf16 %v4638_v0, %v4621_v41  ;;  %v3915_v27 = vmul.f32 0.6931472, %v6276_v61  ;;  %vm10447_vm14 = vcmp.lt.f32.partialorder %v3919_v21, 0.0004427343 }
 0x3d3   : > { %v4511_v50 = vmul.f32 0.01, %v4443_v57  ;;  %v4131_v26 = vmul.f32 0.6931472, %v6278_v35  ;;  %v4134_v15 = vmul.f32 %v10371_v20, %v4133_v31  ;;  %v4072_v33 = vand.u32 2147483647, %v9837_v16 }
 0x3d4   : > { %vm4521_vm15 = vcmp.gt.f32.partialorder %v11724_v13, 20.0  ;;  %vm4538_vm0 = vcmp.gt.f32.partialorder %v11725_v45, 20.0  ;;  %v4460_v60 = vmul.f32 0.01, %v3984_v55  ;;  %5590 = vmatprep.subr.bf16.mxu0 %v5589_v32  ;;  %v3918_v21 = vmul.f32 %v9761_v5, %v3917_v7  ;;  %v11727_v5 = vld [vmem:[#allocation89_spill] sm:$0xff] }
 0x3d5   : > { %5499 = vmatmul.mubr.msk.f32.vlgmr.msra.gmra.mrb[68].mxu1 %vm4655_vm3, %v10037_v38  ;;  %v4070_v19 = vadd.f32 1.0, %v4069_v3  ;;  %v4084_v25 = vadd.f32 1.0, %v9885_v10  ;;  %v10463_v20 = vsel %vm4562_vm11, %v10250_v37, %v4494_v18  ;;  %v10468_v31 = vsel %vm4579_vm12, %v10275_v22, %v4511_v50  ;;  %v11734_v50 = vld [vmem:[#allocation86_spill] sm:$0xff] }
 0x3d6   : > { %5007 = vmatprep.mubr.f32.mxu1 %v11620_v48  ;;  %v4137_v51 = vsel %vm10427_vm13, %v4134_v15, %v4131_v26  ;;  %v11728_v7 = vpack.c.bf16 %v11726_v40, %v11727_v5  ;;  %v3935_v36 = vadd.f32 1.0, %v3934_v47  ;;  %v5629_v56 = vpack.c.bf16 %v10468_v31, %v10463_v20  ;;  %v11731_v47 = vld [vmem:[#allocation90_spill] sm:$0xff]  ;;  %v11755_v5 = vld [vmem:[#allocation95_spill] sm:$0xff] }
 0x3d7   : > { %v4477_v42 = vmul.f32 0.01, %v4137_v51  ;;  %v3921_v37 = vsel %vm10447_vm14, %v3918_v21, %v3915_v27  ;;  %6283 = vlog2.f32 %v4084_v25  ;;  %v6280_v53 = vpop.eup %6279  ;;  %vm4545_vm2 = vcmp.gt.f32.partialorder %v10322_v9, 20.0  ;;  %v11733_v27 = vld [vmem:[#allocation64_spill] sm:$0xff] }
 0x3d8   : > { %5592 = vmatpush1.bf16.msra.mxu0 %v11728_v7  ;;  %vm10480_vm4 = vcmp.lt.f32.partialorder %v4072_v33, 0.0004427343  ;;  %v4087_v6 = vmul.f32 -0.5, %v9885_v10  ;;  %v4219_v23 = vadd.f32 1.0, %v9909_v28  ;;  %v10489_v18 = vsel %vm4528_vm1, %v10269_v17, %v4460_v60 }
 0x3d9   : > { %v10492_v41 = vsel %vm4545_vm2, %v10306_v1, %v4477_v42  ;;  %v4068_v9 = vmul.f32 0.6931472, %v6280_v53  ;;  %v4071_v58 = vmul.f32 %v9837_v16, %v4070_v19  ;;  %v4453_v8 = vmul.f32 0.01, %v3921_v37 }
 0x3da   : > { %v5626_v34 = vpack.c.bf16 %v10492_v41, %v10489_v18  ;;  %v3937_v3 = vand.u32 2147483647, %v9785_v24  ;;  %6285 = vlog2.f32 %v4219_v23  ;;  %v3936_v59 = vmul.f32 %v9785_v24, %v3935_v36  ;;  %v11732_v24 = vld [vmem:[#allocation82_spill] sm:$0xff]  ;;  %v4653_v18 = vpop.permute.xlu0 %4652 }
 0x3db   : > { %5500 = vmatmul.mubr.msk.f32.vlgmr.msra.gmra.mrb[72].mxu0 %vm4655_vm3, %v10037_v38  ;;  %v4074_v17 = vsel %vm10480_vm4, %v4071_v58, %v4068_v9  ;;  %v4222_v1 = vmul.f32 -0.5, %v9909_v28  ;;  %v4372_v38 = vadd.f32 1.0, %v9990_v14  ;;  %v6282_v61 = vpop.eup %6281  ;;  %v4088_v55 = vadd.f32 1.0, %v4087_v6  ;;  %v11745_v58 = vld [vmem:[#allocation46_spill] sm:$0xff] }
 0x3dc   : > { %5078 = vmatprep.mubr.f32.mxu0 %v11620_v48  ;;  %v4470_v16 = vmul.f32 0.01, %v4074_v17  ;;  %v4090_v12 = vand.u32 2147483647, %v9885_v10  ;;  %v4237_v0 = vadd.f32 1.0, %v9923_v44  ;;  %vm4523_vm9 = vcmp.gt.f32.partialorder %v11731_v47, 20.0 }
 0x3dd   : > { %v3933_v35 = vmul.f32 0.6931472, %v6282_v61  ;;  %v4225_v57 = vand.u32 2147483647, %v9909_v28  ;;  %6287 = vlog2.f32 %v4372_v38  ;;  %v4375_v32 = vmul.f32 -0.5, %v9990_v14 }
 0x3de   : > { %vm4540_vm5 = vcmp.gt.f32.partialorder %v11732_v24, 20.0  ;;  %v4589_v39 = vsel %vm4521_vm15, %v11733_v27, %v4453_v8  ;;  %v4606_v26 = vsel %vm4538_vm0, %v11734_v50, %v4470_v16  ;;  %vm10518_vm6 = vcmp.lt.f32.partialorder %v3937_v3, 0.0004427343  ;;  %v11746_v8 = vld [vmem:[#allocation74_spill] sm:$0xff]  ;;  %v11747_v16 = vld [vmem:[#allocation39_spill] sm:$0xff] }
 0x3df   : > { %6289 = vlog2.f32 %v4237_v0  ;;  %v5593_v33 = vpack.c.bf16 %v4606_v26, %v4589_v39  ;;  %v3939_v60 = vsel %vm10518_vm6, %v3936_v59, %v3933_v35  ;;  %v4223_v21 = vadd.f32 1.0, %v4222_v1 }
 0x3e0   : > { %v4378_v19 = vand.u32 2147483647, %v9990_v14  ;;  %6291 = vpow2.f32 %v10344_v30  ;;  %v4089_v13 = vmul.f32 %v9885_v10, %v4088_v55  ;;  %v4240_v25 = vmul.f32 -0.5, %v9923_v44  ;;  %v11741_v10 = vld [vmem:[#allocation49_spill] sm:$0xff] }
 0x3e1   : > { %v4390_v45 = vadd.f32 1.0, %v10010_v11  ;;  %v6284_v51 = vpop.eup %6283  ;;  %5594 = vmatprep.subr.bf16.mxu1 %v5593_v33  ;;  %vm10529_vm8 = vcmp.lt.f32.partialorder %v4090_v12, 0.0004427343  ;;  %vm10533_vm10 = vcmp.lt.f32.partialorder %v4225_v57, 0.0004427343  ;;  %v4376_v7 = vadd.f32 1.0, %v4375_v32 }
 0x3e2   : > { %v3949_v36 = vadd.f32 1.0, %v10039_v4  ;;  %v4086_v30 = vmul.f32 0.6931472, %v6284_v51  ;;  %v4455_v42 = vmul.f32 0.01, %v3939_v60  ;;  %v11742_v37 = vpack.c.bf16 %v9777_v46, %v11741_v10  ;;  %v11748_v57 = vld [vmem:[#allocation36_spill] sm:$0xff] }
 0x3e3   : > { %6293 = vlog2.f32 %v4390_v45  ;;  %v4393_v53 = vmul.f32 -0.5, %v10010_v11  ;;  %v4224_v22 = vmul.f32 %v9909_v28, %v4223_v21  ;;  %vm10543_vm11 = vcmp.lt.f32.partialorder %v4378_v19, 0.0004427343  ;;  %v11751_v60 = vld [vmem:[#allocation35_spill] sm:$0xff]  ;;  %v11752_v21 = vld [vmem:[#allocation73_spill] sm:$0xff]  ;;  %v11767_v33 = vld [vmem:[#allocation96_spill] sm:$0xff] }
 0x3e4   : > { %5596 = vmatpush1.bf16.msra.mxu1 %v11742_v37  ;;  %6295 = vlog2.f32 %v3949_v36  ;;  %v3952_v23 = vmul.f32 -0.5, %v10039_v4  ;;  %v6286_v9 = vpop.eup %6285  ;;  %vm4555_vm12 = vcmp.gt.f32.partialorder %v11745_v58, 20.0  ;;  %vm4572_vm7 = vcmp.gt.f32.partialorder %v11746_v8, 20.0 }
 0x3e5   : > { %v4092_v46 = vsel %vm10529_vm8, %v4089_v13, %v4086_v30  ;;  %v4241_v3 = vadd.f32 1.0, %v4240_v25  ;;  %v4243_v17 = vand.u32 2147483647, %v9923_v44  ;;  %v4102_v28 = vadd.f32 1.0, %v10167_v2 }
 0x3e6   : > { %v4472_v59 = vmul.f32 0.01, %v4092_v46  ;;  %v4221_v1 = vmul.f32 0.6931472, %v6286_v9  ;;  %v4377_v38 = vmul.f32 %v9990_v14, %v4376_v7  ;;  %v4396_v61 = vand.u32 2147483647, %v10010_v11 }
 0x3e7   : > { %v4591_v55 = vsel %vm4523_vm9, %v11747_v16, %v4455_v42  ;;  %v4394_v12 = vadd.f32 1.0, %v4393_v53  ;;  %6297 = vlog2.f32 %v4102_v28  ;;  %v3967_v0 = vadd.f32 1.0, %v10069_v52  ;;  %v6288_v35 = vpop.eup %6287  ;;  %v11756_v7 = vld [vmem:[#allocation94_spill] sm:$0xff]  ;;  %v11758_v9 = vld [vmem:[#allocation97_spill] sm:$0xff]  ;;  %v11759_v46 = vld [vmem:[#allocation20_spill] sm:$0xff] }
 0x3e8   : > { %v4608_v32 = vsel %vm4540_vm5, %v11748_v57, %v4472_v59  ;;  %v4227_v27 = vsel %vm10533_vm10, %v4224_v22, %v4221_v1  ;;  %v3953_v39 = vadd.f32 1.0, %v3952_v23  ;;  %v4105_v14 = vmul.f32 -0.5, %v10167_v2 }
 0x3e9   : > { %v6290_v50 = vpop.eup %6289  ;;  %v5601_v26 = vpack.c.bf16 %v4608_v32, %v4591_v55  ;;  %v4374_v15 = vmul.f32 0.6931472, %v6288_v35  ;;  %v4242_v47 = vmul.f32 %v9923_v44, %v4241_v3  ;;  %vm10567_vm1 = vcmp.lt.f32.partialorder %v4243_v17, 0.0004427343  ;;  %v11760_v17 = vld [vmem:[#allocation17_spill] sm:$0xff] }
 0x3ea   : > { %vm4557_vm13 = vcmp.gt.f32.partialorder %v11751_v60, 20.0  ;;  %vm4574_vm14 = vcmp.gt.f32.partialorder %v11752_v21, 20.0  ;;  %v4487_v24 = vmul.f32 0.01, %v4227_v27  ;;  %v4239_v19 = vmul.f32 0.6931472, %v6290_v50  ;;  %v10577_v25 = vpop.eup %6291 }
 0x3eb   : > { %vm10573_vm15 = vcmp.lt.f32.partialorder %v4396_v61, 0.0004427343  ;;  %6299 = vlog2.f32 %v3967_v0  ;;  %5602 = vmatprep.subr.bf16.mxu0 %v5601_v26  ;;  %v4380_v44 = vsel %vm10543_vm11, %v4377_v38, %v4374_v15  ;;  %v4395_v45 = vmul.f32 %v10010_v11, %v4394_v12  ;;  %v11763_v27 = vld [vmem:[#allocation56_spill] sm:$0xff]  ;;  %v10630_v60 = vld [vmem:[%s10777_s6] sm:$0x1f] }
 0x3ec   : > { %v3955_v51 = vand.u32 2147483647, %v10039_v4  ;;  %v4120_v40 = vadd.f32 1.0, %v10212_v43  ;;  %v11757_v36 = vpack.c.bf16 %v11755_v5, %v11756_v7  ;;  %v4504_v30 = vmul.f32 0.01, %v4380_v44  ;;  %v11766_v15 = vld [vmem:[#allocation28_spill] sm:$0xff] }
 0x3ed   : > { %v4245_v42 = vsel %vm10567_vm1, %v4242_v47, %v4239_v19  ;;  %v3954_v10 = vmul.f32 %v10039_v4, %v3953_v39  ;;  %v4106_v37 = vadd.f32 1.0, %v4105_v14  ;;  %v6294_v53 = vpop.eup %6293  ;;  %v4108_v22 = vand.u32 2147483647, %v10167_v2  ;;  %v11764_v39 = vld [vmem:[#allocation52_spill] sm:$0xff]  ;;  %v11768_v44 = vld [vmem:[#allocation101_spill] sm:$0xff] }
 0x3ee   : > { %5604 = vmatpush1.bf16.msra.mxu0 %v11757_v36  ;;  %v3970_v11 = vmul.f32 -0.5, %v10069_v52  ;;  %6301 = vlog2.f32 %v4120_v40  ;;  %v4255_v6 = vadd.f32 1.0, %v10226_v63  ;;  %v6296_v23 = vpop.eup %6295  ;;  %vm4525_vm0 = vcmp.gt.f32.partialorder %v11758_v9, 20.0 }
 0x3ef   : > { %v4623_v3 = vsel %vm4555_vm12, %v11759_v46, %v4487_v24  ;;  %v4640_v4 = vsel %vm4572_vm7, %v11760_v17, %v4504_v30  ;;  %v4392_v28 = vmul.f32 0.6931472, %v6294_v53  ;;  %v4123_v59 = vmul.f32 -0.5, %v10212_v43  ;;  %v11775_v46 = vld [vmem:[#allocation31_spill] sm:$0xff] }
 0x3f0   : > { %v5597_v1 = vpack.c.bf16 %v4640_v4, %v4623_v3  ;;  %v4489_v38 = vmul.f32 0.01, %v4245_v42  ;;  %v3951_v61 = vmul.f32 0.6931472, %v6296_v23  ;;  %vm10601_vm2 = vcmp.lt.f32.partialorder %v3955_v51, 0.0004427343 }
 0x3f1   : > { %v4398_v55 = vsel %vm10573_vm15, %v4395_v45, %v4392_v28  ;;  %v4107_v58 = vmul.f32 %v10167_v2, %v4106_v37  ;;  %v3973_v12 = vand.u32 2147483647, %v10069_v52  ;;  %6303 = vlog2.f32 %v4255_v6  ;;  %v6298_v8 = vpop.eup %6297  ;;  %v11774_v23 = vld [vmem:[#allocation16_spill] sm:$0xff] }
 0x3f2   : > { %5598 = vmatprep.subr.bf16.mxu1 %v5597_v1  ;;  %v4506_v0 = vmul.f32 0.01, %v4398_v55  ;;  %v3957_v35 = vsel %vm10601_vm2, %v3954_v10, %v3951_v61  ;;  %v3971_v57 = vadd.f32 1.0, %v3970_v11  ;;  %v4408_v32 = vadd.f32 1.0, %v10398_v49  ;;  %v11772_v11 = vld [vmem:[#allocation70_spill] sm:$0xff] }
 0x3f3   : > { %v11765_v14 = vpack.c.bf16 %v11763_v27, %v11764_v39  ;;  %v4104_v50 = vmul.f32 0.6931472, %v6298_v8  ;;  %vm4109_vm4 = vcmp.lt.f32.partialorder %v4108_v22, 0.0004427343  ;;  %v4124_v26 = vadd.f32 1.0, %v4123_v59  ;;  %v11771_v22 = vld [vmem:[#allocation100_spill] sm:$0xff] }
 0x3f4   : > { %v4258_v2 = vmul.f32 -0.5, %v10226_v63  ;;  %v4625_v47 = vsel %vm4557_vm13, %v11766_v15, %v4489_v38  ;;  %v4642_v24 = vsel %vm4574_vm14, %v11767_v33, %v4506_v0  ;;  %v4457_v19 = vmul.f32 0.01, %v3957_v35 }
 0x3f5   : > { %5600 = vmatpush1.bf16.msra.mxu1 %v11765_v14  ;;  %6305 = vlog2.f32 %v4408_v32  ;;  %v6300_v13 = vpop.eup %6299  ;;  %vm4542_vm9 = vcmp.gt.f32.partialorder %v11768_v44, 20.0  ;;  %v5605_v45 = vpack.c.bf16 %v4642_v24, %v4625_v47  ;;  %v4110_v51 = vsel %vm4109_vm4, %v4107_v58, %v4104_v50  ;;  %v11776_v58 = vld [vmem:[#allocation54_spill] sm:$0xff]  ;;  %v11779_v32 = vld [vmem:[#allocation25_spill] sm:$0xff] }
 0x3f6   : > { %vm10623_vm5 = vcmp.lt.f32.partialorder %v3973_v12, 0.0004427343  ;;  %v4474_v21 = vmul.f32 0.01, %v4110_v51  ;;  %v3969_v5 = vmul.f32 0.6931472, %v6300_v13  ;;  %v3972_v7 = vmul.f32 %v10069_v52, %v3971_v57 }
 0x3f7   : > { %v4126_v36 = vand.u32 2147483647, %v10212_v43  ;;  %5606 = vmatprep.subr.bf16.mxu0 %v5605_v45  ;;  %v4125_v30 = vmul.f32 %v10212_v43, %v4124_v26  ;;  %v4259_v42 = vadd.f32 1.0, %v4258_v2  ;;  %v4411_v10 = vmul.f32 -0.5, %v10398_v49  ;;  %v11778_v57 = vld [vmem:[#allocation99_spill] sm:$0xff]  ;;  %v11780_v14 = vld [vmem:[#allocation98_spill] sm:$0xff] }
 0x3f8   : > { %5501 = vmatmul.mubr.msk.f32.vlgmr.msra.gmra.mrb[70].mxu1 %vm4655_vm3, %v10630_v60  ;;  %v4273_v37 = vadd.f32 1.0, %v10368_v29  ;;  %v6302_v53 = vpop.eup %6301  ;;  %v11773_v6 = vpack.c.bf16 %v11771_v22, %v11772_v11  ;;  %v4593_v52 = vsel %vm4525_vm0, %v11774_v23, %v4457_v19  ;;  %v4610_v43 = vsel %vm4542_vm9, %v11775_v46, %v4474_v21  ;;  %v11781_v26 = vld [vmem:[#allocation18_spill] sm:$0xff]  ;;  %v11782_v45 = vld [vmem:[#allocation29_spill] sm:$0xff] }
 0x3f9   : > { %5149 = vmatprep.mubr.f32.mxu1 %v11620_v48  ;;  %v3975_v3 = vsel %vm10623_vm5, %v3972_v7, %v3969_v5  ;;  %v4426_v17 = vadd.f32 1.0, %v10577_v25  ;;  %v5609_v4 = vpack.c.bf16 %v4610_v43, %v4593_v52  ;;  %v4122_v28 = vmul.f32 0.6931472, %v6302_v53  ;;  %v11783_v51 = vld [vmem:[#allocation53_spill] sm:$0xff] }
 0x3fa   : > { %5608 = vmatpush1.bf16.msra.mxu0 %v11773_v6  ;;  %v4261_v59 = vand.u32 2147483647, %v10226_v63  ;;  %6307 = vlog2.f32 %v4273_v37  ;;  %vm4127_vm6 = vcmp.lt.f32.partialorder %v4126_v36, 0.0004427343  ;;  %v4459_v1 = vmul.f32 0.01, %v3975_v3 }
 0x3fb   : > { %6309 = vlog2.f32 %v4426_v17  ;;  %v6304_v38 = vpop.eup %6303  ;;  %5610 = vmatprep.subr.bf16.mxu1 %v5609_v4  ;;  %v4128_v9 = vsel %vm4127_vm6, %v4125_v30, %v4122_v28  ;;  %v4412_v61 = vadd.f32 1.0, %v4411_v10  ;;  %v4414_v16 = vand.u32 2147483647, %v10398_v49  ;;  %v11785_v36 = vld [vmem:[#allocation21_spill] sm:$0xff]  ;;  %v11786_v30 = vld [vmem:[#allocation80_spill] sm:$0xff]  ;;  %v11787_v10 = vld [vmem:[#allocation42_spill] sm:$0xff] }
 0x3fc   : > { %v4476_v55 = vmul.f32 0.01, %v4128_v9  ;;  %v11777_v12 = vpack.c.bf16 %v10121_v54, %v11776_v58  ;;  %v4257_v8 = vmul.f32 0.6931472, %v6304_v38  ;;  %v4260_v0 = vmul.f32 %v10226_v63, %v4259_v42  ;;  %v11789_v17 = vld [vmem:[#allocation61_spill] sm:$0xff]  ;;  %v11791_v28 = vld [vmem:[#allocation59_spill] sm:$0xff] }
 0x3fd   : > { %5502 = vmatmul.mubr.msk.f32.vlgmr.msra.gmra.mrb[74].mxu0 %vm4655_vm3, %v10630_v60  ;;  %v4276_v35 = vmul.f32 -0.5, %v10368_v29  ;;  %vm4527_vm8 = vcmp.gt.f32.partialorder %v11778_v57, 20.0  ;;  %vm4544_vm10 = vcmp.gt.f32.partialorder %v11779_v32, 20.0  ;;  %vm4262_vm11 = vcmp.lt.f32.partialorder %v4261_v59, 0.0004427343  ;;  %v11792_v59 = vld [vmem:[#allocation11_spill] sm:$0xff] }
 0x3fe   : > { %5612 = vmatpush1.bf16.msra.mxu1 %v11777_v12  ;;  %5220 = vmatprep.mubr.f32.mxu0 %v11620_v48  ;;  %v4429_v27 = vmul.f32 -0.5, %v10577_v25  ;;  %v4595_v50 = vsel %vm4527_vm8, %v11780_v14, %v4459_v1  ;;  %v4612_v54 = vsel %vm4544_vm10, %v11781_v26, %v4476_v55  ;;  %v4263_v2 = vsel %vm4262_vm11, %v4260_v0, %v4257_v8  ;;  %v11793_v1 = vld [vmem:[#allocation47_spill] sm:$0xff]  ;;  %v11796_v55 = vld [vmem:[#allocation41_spill] sm:$0xff] }
 0x3ff   : > { %v6306_v39 = vpop.eup %6305  ;;  %v5617_v15 = vpack.c.bf16 %v4612_v54, %v4595_v50  ;;  %v4413_v63 = vmul.f32 %v10398_v49, %v4412_v61  ;;  %vm4415_vm12 = vcmp.lt.f32.partialorder %v4414_v16, 0.0004427343  ;;  %v4491_v33 = vmul.f32 0.01, %v4263_v2  ;;  %v11795_v16 = vld [vmem:[#allocation63_spill] sm:$0xff] }
 0x400   : > { %v4410_v47 = vmul.f32 0.6931472, %v6306_v39  ;;  %v4277_v24 = vadd.f32 1.0, %v4276_v35  ;;  %v4279_v13 = vand.u32 2147483647, %v10368_v29  ;;  %v4430_v44 = vadd.f32 1.0, %v4429_v27 }
 0x401   : > { %5618 = vmatprep.subr.bf16.mxu0 %v5617_v15  ;;  %v11784_v40 = vpack.c.bf16 %v11782_v45, %v11783_v51  ;;  %v4432_v5 = vand.u32 2147483647, %v10577_v25  ;;  %vm4559_vm7 = vcmp.gt.f32.partialorder %v11785_v36, 20.0  ;;  %vm4576_vm1 = vcmp.gt.f32.partialorder %v10198_v62, 20.0  ;;  %v11788_v62 = vld [vmem:[#allocation23_spill] sm:$0xff] }
 0x402   : > { %v4416_v19 = vsel %vm4415_vm12, %v4413_v63, %v4410_v47  ;;  %v4627_v42 = vsel %vm4559_vm7, %v11786_v30, %v4491_v33  ;;  %v4278_v22 = vmul.f32 %v10368_v29, %v4277_v24  ;;  %vm4280_vm13 = vcmp.lt.f32.partialorder %v4279_v13, 0.0004427343 }
 0x403   : > { %5620 = vmatpush1.bf16.msra.mxu0 %v11784_v40  ;;  %v4508_v21 = vmul.f32 0.01, %v4416_v19  ;;  %v4431_v23 = vmul.f32 %v10577_v25, %v4430_v44  ;;  %vm4433_vm14 = vcmp.lt.f32.partialorder %v4432_v5, 0.0004427343  ;;  %v11790_v4 = vpack.c.bf16 %v11788_v62, %v11789_v17  ;;  %v11794_v25 = vld [vmem:[#allocation33_spill] sm:$0xff] }
 0x404   : > { %v6308_v7 = vpop.eup %6307  ;;  %vm4561_vm15 = vcmp.gt.f32.partialorder %v11791_v28, 20.0  ;;  %vm4578_vm0 = vcmp.gt.f32.partialorder %v11792_v59, 20.0  ;;  %v6417_v29 = vmov 0.0|0.0   ;;  %vm6418_vm2 = vmmov 0  }
 0x405   : > { %v6310_v49 = vpop.eup %6309  ;;  %v4644_v37 = vsel %vm4576_vm1, %v11787_v10, %v4508_v21  ;;  %v4275_v53 = vmul.f32 0.6931472, %v6308_v7  ;;  %v11797_v58 = vpack.c.bf16 %v11795_v16, %v11796_v55 }
 0x406   : > { %v5613_v11 = vpack.c.bf16 %v4644_v37, %v4627_v42  ;;  %v4428_v6 = vmul.f32 0.6931472, %v6310_v49 }
 0x407   : > { %v4281_v52 = vsel %vm4280_vm13, %v4278_v22, %v4275_v53 }
 0x408   : > { %5614 = vmatprep.subr.bf16.mxu1 %v5613_v11  ;;  %v4434_v46 = vsel %vm4433_vm14, %v4431_v23, %v4428_v6  ;;  %v4493_v43 = vmul.f32 0.01, %v4281_v52 }
 0x409   : > { %v4510_v3 = vmul.f32 0.01, %v4434_v46  ;;  %5616 = vmatpush1.bf16.msra.mxu1 %v11790_v4 }
 0x40a   : > { %5625 = vmatprep.subr.bf16.mxu1 %v6417_v29  ;;  %v4629_v38 = vsel %vm4561_vm15, %v11793_v1, %v4493_v43 }
 0x40b   : > { %v4646_v9 = vsel %vm4578_vm0, %v11794_v25, %v4510_v3 }
 0x40c   : > { %v5621_v61 = vpack.c.bf16 %v4646_v9, %v4629_v38  ;;  %5503 = vmatmul.mubr.msk.f32.vlgmr.msra.gmra.mrb[72].mxu1 %vm4655_vm3, %v10630_v60 }
 0x40d   : > { %5627 = vmatpush3.bf16.msra.mxu1 %v5626_v34  ;;  %5558 = vmatprep.mubr.msk.f32.mxu1 %vm6418_vm2, %v11620_v48 }
 0x40e   : > { %5622 = vmatprep.subr.bf16.mxu0 %v5621_v61  ;;  %5628 = vmatprep.subr.bf16.mxu1 %v6417_v29 }
 0x40f   : > { %5624 = vmatpush1.bf16.msra.mxu0 %v11797_v58 }
 0x411   : > { %5630 = vmatpush3.bf16.msra.mxu1 %v5629_v56 }
 0x412   : > { %5504 = vmatmul.mubr.msk.f32.vlgmr.msra.gmra.mrb[76].mxu0 %vm4655_vm3, %v10630_v60 }
 0x414   : > { %5559 = vmatmul.mubr.msk.f32.vlgmr.msra.gmra.mrb[74].mxu1 %vm4655_vm3, %v10630_v60 }
 0x456   : > { %v4725_v41 = vpop.f32.mrb[68].mxu0 }
 0x457   : > { %v4726_v48 = vadd.f32 %v4725_v41, %v4653_v18  ;;  %v4727_v34 = vpop.f32.mrb[69].mxu0 }
 0x458   : > { %v4728_v12 = vadd.f32 %v4727_v34, %v4653_v18 }
 0x459   : > { %5297 = vst [vmem:[%s10703_s21] sm:$0x1f] %v4726_v48 }
 0x45a   : > { %5298 = vst [vmem:[%s10703_s21 + $0x8] sm:$0x1f] %v4728_v12 }
 0x47f   : > { %v4796_v20 = vpop.f32.mrb[70].mxu0 }
 0x480   : > { %v4797_v31 = vadd.f32 %v4796_v20, %v4653_v18  ;;  %v4798_v56 = vpop.f32.mrb[71].mxu0 }
 0x481   : > { %v4799_v60 = vadd.f32 %v4798_v56, %v4653_v18 }
 0x482   : > { %5299 = vst [vmem:[%s10703_s21 + $0x10] sm:$0x1f] %v4797_v31 }
 0x483   : > { %5300 = vst [vmem:[%s10703_s21 + $0x18] sm:$0x1f] %v4799_v60 }
 0x4a8   : > { %v4867_v8 = vpop.f32.mrb[68].mxu1 }
 0x4a9   : > { %v4868_v0 = vadd.f32 %v4867_v8, %v4653_v18  ;;  %v4869_v35 = vpop.f32.mrb[69].mxu1 }
 0x4aa   : > { %v4870_v57 = vadd.f32 %v4869_v35, %v4653_v18 }
 0x4ab   : > { %5301 = vst [vmem:[%s10703_s21 + $0x20] sm:$0x1f] %v4868_v0 }
 0x4ac   : > { %5302 = vst [vmem:[%s10703_s21 + $0x28] sm:$0x1f] %v4870_v57 }
 0x4ae   : > { %v4938_v32 = vpop.f32.mrb[72].mxu0 }
 0x4af   : > { %v4939_v27 = vadd.f32 %v4938_v32, %v4653_v18  ;;  %v4940_v39 = vpop.f32.mrb[73].mxu0 }
 0x4b0   : > { %v4941_v14 = vadd.f32 %v4940_v39, %v4653_v18 }
 0x4b1   : > { %5303 = vst [vmem:[%s10703_s21 + $0x30] sm:$0x1f] %v4939_v27 }
 0x4b2   : > { %5304 = vst [vmem:[%s10703_s21 + $0x38] sm:$0x1f] %v4941_v14 }
 0x4cb   : > { %v5009_v50 = vpop.f32.mrb[70].mxu1 }
 0x4cc   : > { %v5010_v26 = vadd.f32 %v5009_v50, %v4653_v18  ;;  %v5011_v54 = vpop.f32.mrb[71].mxu1 }
 0x4cd   : > { %v5012_v2 = vadd.f32 %v5011_v54, %v4653_v18 }
 0x4ce   : > { %5305 = vst [vmem:[%s10703_s21 + $0x40] sm:$0x1f] %v5010_v26 }
 0x4cf   : > { %5306 = vst [vmem:[%s10703_s21 + $0x48] sm:$0x1f] %v5012_v2 }
 0x4d0   : > { %v5080_v15 = vpop.f32.mrb[74].mxu0 }
 0x4d1   : > { %v5081_v47 = vadd.f32 %v5080_v15, %v4653_v18  ;;  %v5082_v63 = vpop.f32.mrb[75].mxu0 }
 0x4d2   : > { %v5083_v33 = vadd.f32 %v5082_v63, %v4653_v18 }
 0x4d3   : > { %5307 = vst [vmem:[%s10703_s21 + $0x50] sm:$0x1f] %v5081_v47 }
 0x4d4   : > { %5308 = vst [vmem:[%s10703_s21 + $0x58] sm:$0x1f] %v5083_v33 }
 0x4df   : > { %v5151_v24 = vpop.f32.mrb[72].mxu1 }
 0x4e0   : > { %v5152_v19 = vadd.f32 %v5151_v24, %v4653_v18  ;;  %v5153_v13 = vpop.f32.mrb[73].mxu1 }
 0x4e1   : > { %v5154_v44 = vadd.f32 %v5153_v13, %v4653_v18 }
 0x4e2   : > { %5309 = vst [vmem:[%s10703_s21 + $0x60] sm:$0x1f] %v5152_v19 }
 0x4e3   : > { %5310 = vst [vmem:[%s10703_s21 + $0x68] sm:$0x1f] %v5154_v44 }
 0x4e5   : > { %v5222_v45 = vpop.f32.mrb[76].mxu0 }
 0x4e6   : > { %v5223_v51 = vadd.f32 %v5222_v45, %v4653_v18  ;;  %v5224_v40 = vpop.f32.mrb[77].mxu0 }
 0x4e7   : > { %v5225_v21 = vadd.f32 %v5224_v40, %v4653_v18  ;;  %v5293_v5 = vpop.f32.mrb[74].mxu1 }
 0x4e8   : > { %5311 = vst [vmem:[%s10703_s21 + $0x70] sm:$0x1f] %v5223_v51  ;;  %v5294_v7 = vadd.f32 %v5293_v5, %v4653_v18  ;;  %v5560_v36 = vpop.f32.mrb[75].mxu1 }
 0x4e9   : > { %5312 = vst [vmem:[%s10703_s21 + $0x78] sm:$0x1f] %v5225_v21 }
 0x4ea   : > { %5313 = vst [vmem:[%s10703_s21 + $0x80] sm:$0x1f] %v5294_v7 }
 0x4eb   : > { %6358 = shalt.err (!%p6355_p4)
}
 0x4ec   : > { %s6359_s12 = scalar_lea.hbm %s10725_s13, 2176  ;;  %s6363_s22 = scalar_lea.hbm %s10779_s8, 4352 }
 0x4ed   : > { %p6360_p7 = scmp.ne.s32.totalorder %s10725_s13, %s6359_s12  ;;  %p6364_p0 = scmp.lt.u32.totalorder %s10725_s13, %s10779_s8 }
 0x4ee   : > { %p6365_p1 = scmp.lt.u32.totalorder %s6363_s22, %s6359_s12  ;;  %p6367_p6 = scmp.lt.u32.totalorder %s6359_s12, %s10725_s13 }
 0x4ef   : > { %p6361_p8 = pnand %p6360_p7, %p11798_p11 }
 0x4f0   : > { %p6366_p3 = por %p6365_p1, %p6364_p0 }
 0x4f1   : > { %p6362_p9 = pneg %p6361_p8 }
 0x4f2   : > { %p6368_p12 = por %p6367_p6, %p6366_p3 }
 0x4f4   : > { %p6369_p13 = pnand %p6368_p12, %p6362_p9 }
 0x4f6   : > { %6372 = shalt.err (!%p6369_p13)
}
 0x4f7   : > { %5704 = dma.vmem_to_hbm [thread:$0]  (%p11798_p11), %s10727_s20, 2176, %s10725_s13, %s5315_s9  }
 0x4f8 PF: > { %s5341_s25 = sand.u32 1, %s6399_s27   ;;  %p11799_p5 = scmp.ne.s32.totalorder %s11032_s17, 0 }
 0x4f9   : > { %p11800_p10 = scmp.ge.s32.totalorder %s6411_s30, 2  ;;  %s5342_s14 = scalar_lea.sflag [#allocation4], %s5341_s25 }
 0x4fb   : > { %p5711_p2 = pnand %p11800_p10, %p11799_p5 }
 0x4fd   : > { %6394 = dma.done.wait (!%p5711_p2), %s5342_s14, 2176  }
 0x4fe   : > { %6396 = vsyncadd (!%p5711_p2), %s5342_s14, 4294965120  ;;  %s11801_s19 = sld [smem:[#allocation8_spill]]  ;;  %p21_p4 = scmp.ge.s32.totalorder %s6490_s11, 4  }
 0x4ff   : > { %s11802_s27 = smov %s6403_s28  ;;  %s11803_s28 = smov %s6407_s29 }
 0x500   : > { %s11805_s30 = smov %s6490_s11  ;;  %23 = sbr.rel (!%p21_p4) target bundleno = 5 (0x5), region = 97 }
 0x504   : > { %s11804_s29 = smov %s11801_s19 }
 0x507   :  { %5347 = vsyncpa [#allocation3], 1 }
 0x508   :  { %5349 = vsyncpa [#allocation3 + $0x1], 1 }
 0x509   :  { %5350 = vsyncpa [#allocation4], 1 }
 0x50a   :  { %5352 = vsyncpa [#allocation4 + $0x1], 1 }

// kernel: tpu_custom_call.1
= control target key start
LH: loop header
LB: loop body
LE: loop exit
PB: predicated region body
PF: predicated region fallthrough
CT: control target
= control target key end

     0   :  { %13 = vsyncpa [#allocation3], 0  ;;  %s10771_s0 = inlined_call_operand.hbm [shape: f32[3,4352], index: 0, kind: input, shape index: {}]   ;;  %s10772_s1 = inlined_call_operand.vmem [shape: f32[29,3], index: 1, kind: input, shape index: {}]   ;;  %s10773_s2 = inlined_call_operand.vmem [shape: f32[29,1], index: 2, kind: input, shape index: {}]   ;;  %s10774_s3 = inlined_call_operand.vmem [shape: bf16[32,29], index: 3, kind: input, shape index: {}]   ;;  %s10775_s4 = inlined_call_operand.vmem [shape: bf16[32,3], index: 4, kind: input, shape index: {}]   ;;  %s10776_s5 = inlined_call_operand.vmem [shape: f32[32,1], index: 5, kind: input, shape index: {}]   ;;  %s10777_s6 = inlined_call_operand.vmem [shape: f32[5,32], index: 6, kind: input, shape index: {}]   ;;  %s10778_s7 = inlined_call_operand.vmem [shape: f32[5,1], index: 7, kind: input, shape index: {}]   ;;  %s10779_s8 = inlined_call_operand.hbm [shape: f32[5,4352], index: 8, kind: output, shape index: {}]  }
   0x1   :  { %15 = vsyncpa [#allocation3 + $0x1], 0 }
   0x2   :  { %16 = vsyncpa [#allocation4], 0 }
   0x3   :  { %18 = vsyncpa [#allocation4 + $0x1], 0  ;;  %s6465_s27 = smov 0   ;;  %s6467_s28 = smov 0  }
   0x4   :  { %s6469_s29 = smov 0   ;;  %s6471_s30 = smov 0  }
   0x5 LB: > { %s6486_s9 = sadd.s32 4294967295, %s6411_s30   ;;  %s5399_s10 = sadd.s32 4294967294, %s6411_s30   ;;  %s6411_s30 = sphi %s6471_s30, %s11805_s30   ;;  %s6407_s29 = sphi %s6469_s29, %s11804_s29   ;;  %s6403_s28 = sphi %s6467_s28, %s11803_s28   ;;  %s6399_s27 = sphi %s6465_s27, %s11802_s27  }
   0x6   : > { %s6490_s11 = sadd.s32 1, %s6411_s30   ;;  %s31_s12 = sadd.s32 1, %s6407_s29 }
   0x7   : > { %s28_s13 = ssub.s32 %s6411_s30, %s6490_s11  ;;  %p38_p0 = scmp.ne.s32.totalorder %s6407_s29, %s6403_s28 }
   0x8   : > { %p29_p1 = scmp.eq.s32.totalorder %s28_s13, 0  ;;  %p39_p2 = scmp.eq.s32.totalorder %s6411_s30, 0 }
   0x9   : > { %p44_p3 = scmp.ne.s32.totalorder %s6403_s28, %s6399_s27  ;;  %p45_p4 = scmp.eq.s32.totalorder %s6486_s9, 0 }
   0xa   : > { %s6502_s14 = scalar_select %p29_p1, %s6407_s29, %s31_s12  }
   0xb   : > { %p40_p5 = por %p39_p2, %p38_p0  ;;  %p6504_p6 = por %p45_p4, %p44_p3 }
   0xc   : > { %11029 = sst [smem:[#allocation8_spill]] %s6502_s14  ;;  %p215_p7 = scmp.eq.s32.totalorder %s6486_s9, 1 }
   0xd   : > { %p221_p8 = scmp.eq.s32.totalorder %s5399_s10, 1  ;;  %p5714_p10 = scmp.lt.s32.totalorder %s6411_s30, 2 }
   0xe   : > { %p6511_p11 = por %p215_p7, %p38_p0  ;;  %s262_s18 = sand.u32 1, %s6407_s29  }
   0xf   : > { %p6515_p12 = por %p221_p8, %p44_p3  ;;  %s5509_s19 = smul.u32 1088, %s6411_s30 }
  0x10   : > { %s11031_s16 = scalar_select %p6511_p11, 1, 0 }
  0x11   : > { %s11032_s17 = scalar_select %p6515_p12, 1, 0 }
  0x12   : > { %s5699_s20 = smul.u32 68, %s262_s18  ;;  %s6524_s23 = scalar_lea.hbm %s10771_s0, %s5509_s19 }
  0x13   : > { %p6526_p13 = pnand %p5714_p10, %p40_p5  ;;  %s263_s10 = scalar_lea.sflag [#allocation3], %s262_s18 }
  0x14   : > { %s266_s25 = scalar_lea.vmem [#allocation2], %s5699_s20  ;;  %s6315_s12 = scalar_lea.hbm %s6524_s23, 1088 }
  0x15   : > { %s274_s26 = sshll.u32 %s266_s25, 4  ;;  %p6316_p2 = scmp.ne.s32.totalorder %s6524_s23, %s6315_s12  ;;  %s6531_s26 = int_to_ptr.vmem [resolvable:$true] %s274_s26 }
  0x16   : > { %p6317_p3 = pneg %p6526_p13  ;;  %s6320_s21 = scalar_lea.hbm %s10771_s0, 2176 }
  0x17   : > { %p6321_p7 = scmp.lt.u32.totalorder %s6524_s23, %s10771_s0  ;;  %p6322_p8 = scmp.lt.u32.totalorder %s6320_s21, %s6315_s12 }
  0x18   : > { %p6318_p4 = pnand %p6317_p3, %p6316_p2  ;;  %p6324_p9 = scmp.lt.u32.totalorder %s6315_s12, %s6524_s23 }
  0x19   : > { %p6323_p10 = por %p6322_p8, %p6321_p7 }
  0x1a   : > { %p6319_p5 = pneg %p6318_p4 }
  0x1b   : > { %p6325_p0 = por %p6324_p9, %p6323_p10 }
  0x1d   : > { %p6326_p1 = pnand %p6325_p0, %p6319_p5 }
  0x1f   : > { %6329 = shalt.err (!%p6326_p1)
}
  0x20   : > { %s6330_s18 = scalar_lea.vmem %s6531_s26, 1088  ;;  %s6413_s20 = smov [#allocation2]  }
  0x21   : > { %p6331_p2 = scmp.ne.s32.totalorder %s6531_s26, %s6330_s18  ;;  %s6335_s25 = sshll.u32 %s6413_s20, 4  ;;  %s6336_s25 = int_to_ptr.vmem [resolvable:$false] %s6335_s25 }
  0x22   : > { %s6337_s14 = scalar_lea.vmem %s6336_s25, 2176  ;;  %p6338_p11 = scmp.lt.s32.totalorder %s6531_s26, %s6336_s25 }
  0x23   : > { %p6333_p4 = pnand %p6331_p2, %p6317_p3  ;;  %p6339_p7 = scmp.lt.s32.totalorder %s6337_s14, %s6330_s18 }
  0x25   : > { %p6334_p12 = pneg %p6333_p4  ;;  %p6340_p8 = por %p6339_p7, %p6338_p11 }
  0x27   : > { %p6341_p9 = pnand %p6340_p8, %p6334_p12 }
  0x29   : > { %6344 = shalt.err (!%p6341_p9)
}
  0x2a   : > { %5709 = dma.hbm_to_vmem [thread:$0]  (!%p6526_p13), %s6524_s23, 1088, %s6531_s26, %s263_s10  }
  0x2b   : > { %p11034_p0 = scmp.lt.s32.totalorder %s6411_s30, 3  ;;  %p11035_p1 = scmp.ge.s32.totalorder %s6411_s30, 1 }
  0x2d   : > { %p280_p3 = pnand %p11035_p1, %p11034_p0 }
  0x2f   : > { %283 = sbr.rel (%p280_p3) target bundleno = 1272 (0x4f8), region = 52 }
  0x36   : > { %s6564_s12 = sand.u32 1, %s6403_s28  }
  0x37   : > { %s5700_s13 = smul.u32 68, %s6564_s12  ;;  %s286_s19 = scalar_lea.sflag [#allocation3], %s6564_s12 }
  0x39   : > { %s6568_s21 = scalar_lea.vmem [#allocation2], %s5700_s13 }
  0x3a   : > { %6390 = dma.done.wait (%p6504_p6), %s286_s19, 1088  }
  0x3b   : > { %6392 = vsyncadd (%p6504_p6), %s286_s19, 4294966208  ;;  %v10781_v0 = vmov 0.0   ;;  %v10784_v1 = vmov 0   ;;  %v6579_v2 = vld [vmem:[%s6568_s21] sm:$0x77]  ;;  %vm392_vm0 = vcmask 1042432  }
  0x3c   : > { %491 = vmatprep.mubr.f32.mxu0 %v10781_v0  ;;  %580 = vmatprep.mubr.f32.mxu1 %v10781_v0  ;;  %v6582_v3 = vld [vmem:[%s6568_s21 + $0x8] sm:$0x77]  ;;  %v6586_v4 = vcombine.high %v6579_v2, %v6579_v2  ;;  %v6593_v6 = vld [vmem:[%s6568_s21 + $0x10] sm:$0x77]  ;;  %v6598_v7 = vld [vmem:[%s10772_s1] sm:$0xff]  ;;  %vm379_vm1 = vcmask 23552   ;;  %v2366_v37 = vpack.c.bf16 %v6579_v2, %v6579_v2 }
  0x3d   : > { %5753 = vset.pattern.permute.xlu0 %v10784_v1  ;;  %5754 = vset.pattern.permute.xlu1 %v10784_v1  ;;  %v6590_v5 = vcombine.high %v6582_v3, %v6582_v3  ;;  %v6601_v8 = vld [vmem:[%s6568_s21 + $0x18] sm:$0x77]  ;;  %v6609_v9 = vcombine.high %v6593_v6, %v6593_v6  ;;  %v6620_v11 = vld [vmem:[%s6568_s21 + $0x20] sm:$0x77]  ;;  %v6623_v12 = vld [vmem:[%s6568_s21 + $0x28] sm:$0x77]  ;;  %v2368_v43 = vpack.c.bf16 %v6582_v3, %v6582_v3 }
  0x3e   : > { %5404 = vmatprep.subr.msk.mxu0 %vm392_vm0, %v6586_v4  ;;  %v6613_v10 = vcombine.high %v6601_v8, %v6601_v8  ;;  %v6634_v13 = vld [vmem:[%s10772_s1 + $0x8] sm:$0xff]  ;;  %v6642_v14 = vcombine.high %v6620_v11, %v6620_v11  ;;  %v6646_v15 = vcombine.high %v6623_v12, %v6623_v12  ;;  %v338_v16 = vld [vmem:[%s10773_s2] sm:$0xff]  ;;  %v340_v17 = vld [vmem:[%s10773_s2 + $0x10] sm:$0xff]  ;;  %vm2399_vm2 = vcmask 1040384   ;;  %s5701_s22 = smul.u32 136, %s6564_s12  ;;  %p11798_p11 = scmp.ne.s32.totalorder %s11031_s16, 0 }
  0x3f   : > { %5410 = vmatprep.subr.msk.mxu1 %vm392_vm0, %v6590_v5  ;;  %5405 = vmatpush1.msk.msra.mxu0 %vm392_vm0, %v6579_v2  ;;  %v6667_v18 = vld [vmem:[%s10772_s1 + $0x10] sm:$0xff]  ;;  %v339_v19 = vld [vmem:[%s10773_s2 + $0x8] sm:$0xff]  ;;  %v341_v20 = vld [vmem:[%s10773_s2 + $0x18] sm:$0x1f]  ;;  %vm2400_vm3 = vcmask 1041408   ;;  %v10783_v31 = vmov 65535   ;;  %v2367_v33 = vpack.c.bf16 %v6586_v4, %v6586_v4  ;;  %v2369_v38 = vpack.c.bf16 %v6590_v5, %v6590_v5 }
  0x40   : > { %5411 = vmatpush1.msk.msra.mxu1 %vm392_vm0, %v6582_v3  ;;  %5406 = vmatmul.mubr.msk.f32.vlgmr.msra.gmra.mrb[0].mxu0 %vm379_vm1, %v6598_v7  ;;  %v6688_v21 = vld [vmem:[%s10772_s1 + $0x18] sm:$0x1f]  ;;  %v2320_v24 = vld [vmem:[%s10776_s5] sm:$0xff]  ;;  %v2321_v25 = vld [vmem:[%s10776_s5 + $0x8] sm:$0xff]  ;;  %v2401_v32 = vsel %vm2399_vm2, 4294967295, %v10783_v31  ;;  %v2371_v39 = vpack.c.bf16 %v6609_v9, %v6609_v9  ;;  %v2370_v44 = vpack.c.bf16 %v6593_v6, %v6593_v6  ;;  %v2373_v49 = vpack.c.bf16 %v6613_v10, %v6613_v10  ;;  %s5510_s18 = smul.u32 2176, %s6486_s9 }
  0x41   : > { %5412 = vmatmul.mubr.msk.f32.vlgmr.msra.gmra.mrb[0].mxu1 %vm379_vm1, %v6598_v7  ;;  %497 = vmatprep.mubr.f32.mxu0 %v10781_v0  ;;  %v6691_v22 = vld [vmem:[%s6568_s21 + $0x30] sm:$0x77]  ;;  %v332_v23 = vld [vmem:[%s6568_s21 + $0x38] sm:$0x77]  ;;  %v6754_v34 = vsel %vm2400_vm3, %v2401_v32, 0  ;;  %v5764_v48 = vld [vmem:[%s10775_s4 + $0x8] sm:$0xff]   ;;  %v2375_v51 = vpack.c.bf16 %v6642_v14, %v6642_v14  ;;  %v2372_v53 = vpack.c.bf16 %v6601_v8, %v6601_v8  ;;  %v2374_v55 = vpack.c.bf16 %v6620_v11, %v6620_v11 }
  0x42   : > { %586 = vmatprep.mubr.f32.mxu1 %v10781_v0  ;;  %5416 = vmatprep.subr.msk.mxu0 %vm392_vm0, %v6609_v9  ;;  %v6708_v26 = vcombine.high %v6691_v22, %v6691_v22  ;;  %v6710_v27 = vcombine.high %v332_v23, %v332_v23  ;;  %v2322_v28 = vld [vmem:[%s10776_s5 + $0x10] sm:$0xff]  ;;  %v2323_v29 = vld [vmem:[%s10776_s5 + $0x18] sm:$0xff]  ;;  %v4649_v30 = vld [vmem:[%s10778_s7] sm:$0x1f]  ;;  %11036 = vst [vmem:[#allocation9_spill] sm:$0xff] %v6754_v34  ;;  %s10725_s13 = scalar_lea.hbm %s10779_s8, %s5510_s18  ;;  %s5315_s9 = scalar_lea.sflag [#allocation4], %s6564_s12 }
  0x43   : > { %5422 = vmatprep.subr.msk.mxu1 %vm392_vm0, %v6613_v10  ;;  %5417 = vmatpush1.msk.msra.mxu0 %vm392_vm0, %v6593_v6  ;;  %v2407_v35 = vand.u32 %v6754_v34, %v2367_v33  ;;  %v6764_v36 = vld [vmem:[%s6568_s21 + $0x40] sm:$0x7]  ;;  %v2404_v40 = vand.u32 %v6754_v34, %v2366_v37  ;;  %v2413_v41 = vand.u32 %v6754_v34, %v2369_v38  ;;  %s6419_s15 = smov [#allocation5]  }
  0x44   : > { %5423 = vmatpush1.msk.msra.mxu1 %vm392_vm0, %v6601_v8  ;;  %5407 = vmatmul.mubr.msk.f32.gmra.mrb[2].mxu0 %vm379_vm1, %v6634_v13  ;;  %11037 = vst [vmem:[#allocation10_spill] sm:$0xff] %v6764_v36  ;;  %v2419_v42 = vand.u32 %v6754_v34, %v2371_v39  ;;  %v6831_v45 = vld [vmem:[%s10775_s4] sm:$0xff]   ;;  %v2410_v46 = vand.u32 %v6754_v34, %v2368_v43  ;;  %s6349_s23 = sshll.u32 %s6419_s15, 4  ;;  %s6350_s23 = int_to_ptr.vmem [resolvable:$false] %s6349_s23 }
  0x45   : > { %5413 = vmatmul.mubr.msk.f32.gmra.mrb[2].mxu1 %vm379_vm1, %v6634_v13  ;;  %503 = vmatprep.mubr.f32.mxu0 %v10781_v0  ;;  %v2416_v47 = vand.u32 %v6754_v34, %v2370_v44  ;;  %v2425_v50 = vand.u32 %v6754_v34, %v2373_v49  ;;  %v2431_v52 = vand.u32 %v6754_v34, %v2375_v51  ;;  %s6351_s24 = scalar_lea.vmem %s6350_s23, 4352 }
  0x46   : > { %592 = vmatprep.mubr.f32.mxu1 %v10781_v0  ;;  %5428 = vmatprep.subr.msk.mxu0 %vm392_vm0, %v6642_v14  ;;  %v2422_v54 = vand.u32 %v6754_v34, %v2372_v53  ;;  %v2428_v56 = vand.u32 %v6754_v34, %v2374_v55  ;;  %v2377_v57 = vpack.c.bf16 %v6646_v15, %v6646_v15 }
  0x47   : > { %5434 = vmatprep.subr.msk.mxu1 %vm392_vm0, %v6646_v15  ;;  %344 = vperm.xlu0 %5753, %v338_v16   ;;  %v2379_v59 = vpack.c.bf16 %v6708_v26, %v6708_v26  ;;  %v2376_v60 = vpack.c.bf16 %v6623_v12, %v6623_v12  ;;  %v2378_v63 = vpack.c.bf16 %v6691_v22, %v6691_v22 }
  0x48   : > { %354 = vperm.xlu1 %5754, %v340_v17   ;;  %5408 = vmatmul.mubr.msk.f32.gmra.mrb[4].mxu0 %vm379_vm1, %v6667_v18  ;;  %v2437_v58 = vand.u32 %v6754_v34, %v2377_v57  ;;  %v2381_v10 = vpack.c.bf16 %v6710_v27, %v6710_v27 }
  0x49   : > { %5414 = vmatmul.mubr.msk.f32.gmra.mrb[4].mxu1 %vm379_vm1, %v6667_v18  ;;  %509 = vmatprep.mubr.f32.mxu0 %v10781_v0  ;;  %v2443_v61 = vand.u32 %v6754_v34, %v2379_v59  ;;  %v2434_v62 = vand.u32 %v6754_v34, %v2376_v60  ;;  %v2440_v2 = vand.u32 %v6754_v34, %v2378_v63 }
  0x4a   : > { %598 = vmatprep.mubr.f32.mxu1 %v10781_v0 }
  0x4b   : > { %349 = vperm.xlu0 %5753, %v339_v19  }
  0x4c   : > { %359 = vperm.xlu1 %5754, %v341_v20   ;;  %5409 = vmatmul.mubr.msk.f32.gmra.mrb[6].mxu0 %vm379_vm1, %v6688_v21 }
  0x4d   : > { %5415 = vmatmul.mubr.msk.f32.gmra.mrb[6].mxu1 %vm379_vm1, %v6688_v21  ;;  %669 = vmatprep.mubr.f32.mxu0 %v10781_v0 }
  0x4e   : > { %758 = vmatprep.mubr.f32.mxu1 %v10781_v0 }
  0x4f   : > { %3474 = vperm.xlu0 %5753, %v2320_v24  }
  0x50   : > { %3479 = vperm.xlu1 %5754, %v2321_v25   ;;  %5418 = vmatmul.mubr.msk.f32.vlgmr.msra.gmra.mrb[8].mxu0 %vm379_vm1, %v6598_v7 }
  0x51   : > { %5424 = vmatmul.mubr.msk.f32.vlgmr.msra.gmra.mrb[8].mxu1 %vm379_vm1, %v6598_v7  ;;  %675 = vmatprep.mubr.f32.mxu0 %v10781_v0 }
  0x52   : > { %764 = vmatprep.mubr.f32.mxu1 %v10781_v0  ;;  %5429 = vmatpush1.msk.msra.mxu0 %vm392_vm0, %v6620_v11 }
  0x53   : > { %5435 = vmatpush1.msk.msra.mxu1 %vm392_vm0, %v6623_v12  ;;  %5440 = vmatprep.subr.msk.mxu0 %vm392_vm0, %v6708_v26 }
  0x54   : > { %5446 = vmatprep.subr.msk.mxu1 %vm392_vm0, %v6710_v27  ;;  %5419 = vmatmul.mubr.msk.f32.gmra.mrb[10].mxu0 %vm379_vm1, %v6634_v13 }
  0x55   : > { %5425 = vmatmul.mubr.msk.f32.gmra.mrb[10].mxu1 %vm379_vm1, %v6634_v13  ;;  %681 = vmatprep.mubr.f32.mxu0 %v10781_v0 }
  0x56   : > { %770 = vmatprep.mubr.f32.mxu1 %v10781_v0  ;;  %3484 = vperm.xlu0 %5753, %v2322_v28  }
  0x57   : > { %3489 = vperm.xlu1 %5754, %v2323_v29  }
  0x58   : > { %5420 = vmatmul.mubr.msk.f32.gmra.mrb[12].mxu0 %vm379_vm1, %v6667_v18 }
  0x59   : > { %5426 = vmatmul.mubr.msk.f32.gmra.mrb[12].mxu1 %vm379_vm1, %v6667_v18  ;;  %687 = vmatprep.mubr.f32.mxu0 %v10781_v0 }
  0x5a   : > { %776 = vmatprep.mubr.f32.mxu1 %v10781_v0  ;;  %4652 = vperm.xlu0 %5753, %v4649_v30  }
  0x5c   : > { %5421 = vmatmul.mubr.msk.f32.gmra.mrb[14].mxu0 %vm379_vm1, %v6688_v21 }
  0x5d   : > { %5427 = vmatmul.mubr.msk.f32.gmra.mrb[14].mxu1 %vm379_vm1, %v6688_v21  ;;  %847 = vmatprep.mubr.f32.mxu0 %v10781_v0 }
  0x5e   : > { %936 = vmatprep.mubr.f32.mxu1 %v10781_v0 }
  0x60   : > { %5430 = vmatmul.mubr.msk.f32.vlgmr.msra.gmra.mrb[16].mxu0 %vm379_vm1, %v6598_v7 }
  0x61   : > { %5436 = vmatmul.mubr.msk.f32.vlgmr.msra.gmra.mrb[16].mxu1 %vm379_vm1, %v6598_v7  ;;  %853 = vmatprep.mubr.f32.mxu0 %v10781_v0 }
  0x62   : > { %942 = vmatprep.mubr.f32.mxu1 %v10781_v0  ;;  %5441 = vmatpush1.msk.msra.mxu0 %vm392_vm0, %v6691_v22 }
  0x63   : > { %5447 = vmatpush1.msk.msra.mxu1 %vm392_vm0, %v332_v23  ;;  %5528 = vmatprep.subr.msk.mxu0 %vm392_vm0, %v6764_v36 }
  0x64   : > { %2454 = vmatprep.subr.bf16.mxu1 %v2407_v35  ;;  %5431 = vmatmul.mubr.msk.f32.gmra.mrb[18].mxu0 %vm379_vm1, %v6634_v13 }
  0x65   : > { %5437 = vmatmul.mubr.msk.f32.gmra.mrb[18].mxu1 %vm379_vm1, %v6634_v13  ;;  %859 = vmatprep.mubr.f32.mxu0 %v10781_v0 }
  0x66   : > { %948 = vmatprep.mubr.f32.mxu1 %v10781_v0 }
  0x68   : > { %5432 = vmatmul.mubr.msk.f32.gmra.mrb[20].mxu0 %vm379_vm1, %v6667_v18 }
  0x69   : > { %5438 = vmatmul.mubr.msk.f32.gmra.mrb[20].mxu1 %vm379_vm1, %v6667_v18  ;;  %865 = vmatprep.mubr.f32.mxu0 %v10781_v0 }
  0x6a   : > { %954 = vmatprep.mubr.f32.mxu1 %v10781_v0 }
  0x6c   : > { %5433 = vmatmul.mubr.msk.f32.gmra.mrb[22].mxu0 %vm379_vm1, %v6688_v21 }
  0x6d   : > { %5439 = vmatmul.mubr.msk.f32.gmra.mrb[22].mxu1 %vm379_vm1, %v6688_v21  ;;  %1025 = vmatprep.mubr.f32.mxu0 %v10781_v0 }
  0x6e   : > { %1114 = vmatprep.mubr.f32.mxu1 %v10781_v0 }
  0x70   : > { %5442 = vmatmul.mubr.msk.f32.vlgmr.msra.gmra.mrb[24].mxu0 %vm379_vm1, %v6598_v7 }
  0x71   : > { %5448 = vmatmul.mubr.msk.f32.vlgmr.msra.gmra.mrb[24].mxu1 %vm379_vm1, %v6598_v7  ;;  %1031 = vmatprep.mubr.f32.mxu0 %v10781_v0 }
  0x72   : > { %1120 = vmatprep.mubr.f32.mxu1 %v10781_v0  ;;  %5529 = vmatpush3.msk.msra.mxu0 %vm392_vm0, %v6764_v36 }
  0x73   : > { %2455 = vmatpush1.bf16.msra.mxu1 %v2404_v40  ;;  %2507 = vmatprep.subr.bf16.mxu0 %v2413_v41 }
  0x74   : > { %2560 = vmatprep.subr.bf16.mxu1 %v2419_v42  ;;  %5443 = vmatmul.mubr.msk.f32.gmra.mrb[26].mxu0 %vm379_vm1, %v6634_v13 }
  0x75   : > { %5449 = vmatmul.mubr.msk.f32.gmra.mrb[26].mxu1 %vm379_vm1, %v6634_v13  ;;  %1037 = vmatprep.mubr.f32.mxu0 %v10781_v0 }
  0x76   : > { %1126 = vmatprep.mubr.f32.mxu1 %v10781_v0 }
  0x78   : > { %5444 = vmatmul.mubr.msk.f32.gmra.mrb[28].mxu0 %vm379_vm1, %v6667_v18 }
  0x79   : > { %5450 = vmatmul.mubr.msk.f32.gmra.mrb[28].mxu1 %vm379_vm1, %v6667_v18  ;;  %1043 = vmatprep.mubr.f32.mxu0 %v10781_v0 }
  0x7a   : > { %1132 = vmatprep.mubr.f32.mxu1 %v10781_v0 }
  0x7c   : > { %5445 = vmatmul.mubr.msk.f32.gmra.mrb[30].mxu0 %vm379_vm1, %v6688_v21 }
  0x7d   : > { %5451 = vmatmul.mubr.msk.f32.gmra.mrb[30].mxu1 %vm379_vm1, %v6688_v21  ;;  %5530 = vmatprep.mubr.msk.f32.mxu0 %vm379_vm1, %v6598_v7 }
  0x7e   : > { %2486 = vmatprep.mubr.bf16.mxu1 %v10784_v1 }
  0x80   : > { %5531 = vmatmul.mubr.msk.f32.vlgmr.msra.gmra.mrb[32].mxu0 %vm379_vm1, %v6634_v13  ;;  %v2449_v13 = vand.u32 %v6754_v34, %v2381_v10 }
  0x81   : > { %5459 = vmatmul.mubr.msk.bf16.vlgmr.msra.gmra.mrb[32].mxu1 %vm379_vm1, %v6831_v45  ;;  %5533 = vmatprep.mubr.msk.f32.mxu0 %vm379_vm1, %v6667_v18 }
  0x82   : > { %2496 = vmatprep.mubr.bf16.mxu1 %v10784_v1  ;;  %2508 = vmatpush1.bf16.msra.mxu0 %v2410_v46 }
  0x83   : > { %2561 = vmatpush1.bf16.msra.mxu1 %v2416_v47  ;;  %2613 = vmatprep.subr.bf16.mxu0 %v2425_v50 }
  0x84   : > { %5534 = vmatmul.mubr.msk.f32.gmra.mrb[34].mxu0 %vm379_vm1, %v6688_v21  ;;  %2666 = vmatprep.subr.bf16.mxu1 %v2431_v52 }
  0x85   : > { %2539 = vmatprep.mubr.bf16.mxu0 %v10784_v1 }
  0x88   : > { %5461 = vmatmul.mubr.msk.bf16.vlgmr.msra.gmra.mrb[36].mxu0 %vm379_vm1, %v6831_v45 }
  0x89   : > { %5460 = vmatmul.mubr.msk.bf16.gmra.mrb[36].mxu1 %vm379_vm1, %v5764_v48  ;;  %2549 = vmatprep.mubr.bf16.mxu0 %v10784_v1 }
  0x8a   : > { %2592 = vmatprep.mubr.bf16.mxu1 %v10784_v1  ;;  %2614 = vmatpush1.bf16.msra.mxu0 %v2422_v54 }
  0x8b   : > { %2719 = vmatprep.subr.bf16.mxu0 %v2437_v58 }
  0x90   : > { %5462 = vmatmul.mubr.msk.bf16.gmra.mrb[40].mxu0 %vm379_vm1, %v5764_v48 }
  0x91   : > { %5463 = vmatmul.mubr.msk.bf16.vlgmr.msra.gmra.mrb[40].mxu1 %vm379_vm1, %v6831_v45  ;;  %2645 = vmatprep.mubr.bf16.mxu0 %v10784_v1 }
  0x92   : > { %2602 = vmatprep.mubr.bf16.mxu1 %v10784_v1  ;;  %2667 = vmatpush1.bf16.msra.mxu1 %v2428_v56 }
  0x93   : > { %2772 = vmatprep.subr.bf16.mxu1 %v2443_v61 }
  0x98   : > { %5465 = vmatmul.mubr.msk.bf16.vlgmr.msra.gmra.mrb[44].mxu0 %vm379_vm1, %v6831_v45 }
  0x99   : > { %5464 = vmatmul.mubr.msk.bf16.gmra.mrb[44].mxu1 %vm379_vm1, %v5764_v48  ;;  %2655 = vmatprep.mubr.bf16.mxu0 %v10784_v1 }
  0x9a   : > { %2698 = vmatprep.mubr.bf16.mxu1 %v10784_v1  ;;  %2720 = vmatpush1.bf16.msra.mxu0 %v2434_v62 }
  0x9b   : > { %2825 = vmatprep.subr.bf16.mxu0 %v2449_v13 }
  0xa0   : > { %5466 = vmatmul.mubr.msk.bf16.gmra.mrb[48].mxu0 %vm379_vm1, %v5764_v48 }
  0xa1   : > { %5467 = vmatmul.mubr.msk.bf16.vlgmr.msra.gmra.mrb[48].mxu1 %vm379_vm1, %v6831_v45  ;;  %2751 = vmatprep.mubr.bf16.mxu0 %v10784_v1 }
  0xa2   : > { %2708 = vmatprep.mubr.bf16.mxu1 %v10784_v1  ;;  %2773 = vmatpush1.bf16.msra.mxu1 %v2440_v2 }
  0xa8   : > { %5469 = vmatmul.mubr.msk.bf16.vlgmr.msra.gmra.mrb[52].mxu0 %vm379_vm1, %v6831_v45 }
  0xa9   : > { %5468 = vmatmul.mubr.msk.bf16.gmra.mrb[52].mxu1 %vm379_vm1, %v5764_v48  ;;  %2761 = vmatprep.mubr.bf16.mxu0 %v10784_v1 }
  0xaa   : > { %2804 = vmatprep.mubr.bf16.mxu1 %v10784_v1 }
  0xb0   : > { %5470 = vmatmul.mubr.msk.bf16.gmra.mrb[56].mxu0 %vm379_vm1, %v5764_v48 }
  0xb1   : > { %5471 = vmatmul.mubr.msk.bf16.vlgmr.msra.gmra.mrb[56].mxu1 %vm379_vm1, %v6831_v45  ;;  %2857 = vmatprep.mubr.bf16.mxu0 %v10784_v1 }
  0xb2   : > { %2814 = vmatprep.mubr.bf16.mxu1 %v10784_v1 }
  0xb9   : > { %5472 = vmatmul.mubr.msk.bf16.gmra.mrb[60].mxu1 %vm379_vm1, %v5764_v48 }
  0xba   : > { %5538 = vmatprep.mubr.msk.bf16.mxu1 %vm379_vm1, %v6831_v45 }
  0xc6   : > { %v6908_v3 = vpop.permute.xlu0 %344 }
  0xc7   : > { %v6937_v23 = vpop.permute.xlu1 %354 }
  0xca   : > { %v6935_v20 = vpop.permute.xlu0 %349 }
  0xcb   : > { %v6966_v46 = vpop.permute.xlu1 %359 }
 0x113   : > { %v493_v4 = vpop.f32.mrb[0].mxu0 }
 0x114   : > { %v582_v5 = vpop.f32.mrb[0].mxu1  ;;  %v6911_v6 = vadd.f32 %v493_v4, %v6908_v3  ;;  %v6916_v8 = vpop.f32.mrb[1].mxu0 }
 0x115   : > { %v6914_v7 = vadd.f32 %v582_v5, %v6908_v3  ;;  %v6918_v9 = vpop.f32.mrb[1].mxu1 }
 0x116   : > { %v6923_v11 = vmul.f32 100.0, %v6911_v6 }
 0x117   : > { %v6926_v12 = vmul.f32 100.0, %v6914_v7  ;;  %v499_v14 = vpop.f32.mrb[2].mxu0 }
 0x118   : > { %v588_v15 = vpop.f32.mrb[2].mxu1  ;;  %v1292_v16 = vmin.f32 %v6923_v11, 20.0  ;;  %v6931_v18 = vpop.f32.mrb[3].mxu0  ;;  %v6940_v24 = vadd.f32 %v499_v14, %v6935_v20  ;;  %vm2176_vm6 = vcmp.gt.f32.partialorder %v6923_v11, 20.0 }
 0x119   : > { %v1294_v17 = vmin.f32 %v6926_v12, 20.0  ;;  %v6933_v19 = vpop.f32.mrb[3].mxu1  ;;  %v6943_v25 = vadd.f32 %v588_v15, %v6935_v20  ;;  %vm2178_vm9 = vcmp.gt.f32.partialorder %v6926_v12, 20.0 }
 0x11a   : > { %v1360_v21 = vmul.f32 1.442695, %v1292_v16  ;;  %v6946_v28 = vmul.f32 100.0, %v6940_v24 }
 0x11b   : > { %v1364_v22 = vmul.f32 1.442695, %v1294_v17  ;;  %v505_v26 = vpop.f32.mrb[4].mxu0  ;;  %v6949_v29 = vmul.f32 100.0, %v6943_v25 }
 0x11c   : > { %v594_v27 = vpop.f32.mrb[4].mxu1  ;;  %5767 = vpow2.f32 %v1360_v21  ;;  %v507_v30 = vpop.f32.mrb[5].mxu0  ;;  %v6952_v33 = vadd.f32 %v505_v26, %v6937_v23  ;;  %v1309_v35 = vmin.f32 %v6946_v28, 20.0  ;;  %vm2193_vm10 = vcmp.gt.f32.partialorder %v6946_v28, 20.0 }
 0x11d   : > { %v596_v32 = vpop.f32.mrb[5].mxu1  ;;  %5769 = vpow2.f32 %v1364_v22  ;;  %v1311_v37 = vmin.f32 %v6949_v29, 20.0  ;;  %v6957_v38 = vadd.f32 %v594_v27, %v6937_v23  ;;  %v6990_v59 = vadd.f32 %v507_v30, %v6937_v23 }
 0x11e   : > { %v1394_v41 = vmul.f32 1.442695, %v1309_v35  ;;  %v6960_v43 = vmul.f32 100.0, %v6952_v33  ;;  %v7001_v2 = vadd.f32 %v596_v32, %v6937_v23  ;;  %vm2195_vm11 = vcmp.gt.f32.partialorder %v6949_v29, 20.0 }
 0x11f   : > { %v511_v39 = vpop.f32.mrb[6].mxu0  ;;  %v1398_v42 = vmul.f32 1.442695, %v1311_v37  ;;  %v6969_v47 = vmul.f32 100.0, %v6957_v38  ;;  %11038 = vst [vmem:[#allocation11_spill] sm:$0xff] %v6990_v59  ;;  %v7008_v13 = vmul.f32 100.0, %v6990_v59 }
 0x120   : > { %v600_v40 = vpop.f32.mrb[6].mxu1  ;;  %v6962_v44 = vpop.f32.mrb[7].mxu0  ;;  %5771 = vpow2.f32 %v1394_v41  ;;  %v1326_v48 = vmin.f32 %v6960_v43, 20.0  ;;  %v6973_v49 = vadd.f32 %v511_v39, %v6966_v46  ;;  %11039 = vst [vmem:[#allocation12_spill] sm:$0xff] %v7001_v2  ;;  %v7018_v21 = vmul.f32 100.0, %v7001_v2 }
 0x121   : > { %v6964_v45 = vpop.f32.mrb[7].mxu1  ;;  %5773 = vpow2.f32 %v1398_v42  ;;  %v1328_v56 = vmin.f32 %v6969_v47, 20.0  ;;  %11042 = vst [vmem:[#allocation15_spill] sm:$0xff] %v7008_v13  ;;  %v7021_v22 = vadd.f32 %v600_v40, %v6966_v46  ;;  %v1327_v40 = vmin.f32 %v7008_v13, 20.0 }
 0x122   : > { %v1428_v54 = vmul.f32 1.442695, %v1326_v48  ;;  %v6993_v60 = vmul.f32 100.0, %v6973_v49  ;;  %11043 = vst [vmem:[#allocation16_spill] sm:$0xff] %v7018_v21  ;;  %vm2210_vm13 = vcmp.gt.f32.partialorder %v6960_v43, 20.0  ;;  %vm2212_vm3 = vcmp.gt.f32.partialorder %v6969_v47, 20.0 }
 0x123   : > { %v6975_v50 = vpop.f32.mrb[8].mxu0  ;;  %v1432_v10 = vmul.f32 1.442695, %v1328_v56  ;;  %v7036_v48 = vmul.f32 100.0, %v7021_v22 }
 0x124   : > { %v6977_v51 = vpop.f32.mrb[8].mxu1  ;;  %v6979_v52 = vpop.f32.mrb[9].mxu0  ;;  %5775 = vpow2.f32 %v1428_v54  ;;  %v1343_v14 = vmin.f32 %v6993_v60, 20.0  ;;  %vm2227_vm15 = vcmp.gt.f32.partialorder %v6993_v60, 20.0 }
 0x125   : > { %v6981_v53 = vpop.f32.mrb[9].mxu1 }
 0x126   : > { %v6983_v55 = vpop.eup %5767  ;;  %v1462_v35 = vmul.f32 1.442695, %v1343_v14 }
 0x127   : > { %v6986_v57 = vpop.eup %5769  ;;  %v1496_v58 = vadd.f32 1.0, %v6983_v55  ;;  %v6995_v61 = vpop.f32.mrb[10].mxu0  ;;  %v1499_v37 = vmul.f32 -0.5, %v6983_v55  ;;  %v1502_v39 = vand.u32 2147483647, %v6983_v55 }
 0x128   : > { %v6997_v62 = vpop.f32.mrb[10].mxu1  ;;  %v1514_v63 = vadd.f32 1.0, %v6986_v57  ;;  %v7003_v4 = vpop.f32.mrb[11].mxu0  ;;  %v1517_v42 = vmul.f32 -0.5, %v6986_v57 }
 0x129   : > { %11040 = vst [vmem:[#allocation13_spill] sm:$0xff] %v7003_v4  ;;  %v7005_v5 = vpop.f32.mrb[11].mxu1  ;;  %5777 = vlog2.f32 %v1496_v58  ;;  %v1329_v58 = vmin.f32 %v7018_v21, 20.0  ;;  %v1500_v0 = vadd.f32 1.0, %v1499_v37  ;;  %vm7050_vm4 = vcmp.lt.f32.partialorder %v1502_v39, 0.0004427343 }
 0x12a   : > { %11041 = vst [vmem:[#allocation14_spill] sm:$0xff] %v7005_v5  ;;  %5779 = vlog2.f32 %v1514_v63  ;;  %v7015_v17 = vpop.eup %5771  ;;  %v1518_v2 = vadd.f32 1.0, %v1517_v42  ;;  %v7066_v5 = vadd.f32 %v6918_v9, %v6908_v3 }
 0x12b   : > { %v7011_v15 = vpop.f32.mrb[12].mxu0  ;;  %v7027_v30 = vpop.eup %5773  ;;  %v1649_v32 = vadd.f32 1.0, %v7015_v17  ;;  %5781 = vpow2.f32 %v1432_v10  ;;  %v1652_v1 = vmul.f32 -0.5, %v7015_v17  ;;  %v1434_v37 = vmul.f32 1.442695, %v1329_v58 }
 0x12c   : > { %v7013_v16 = vpop.f32.mrb[12].mxu1  ;;  %v7023_v26 = vpop.f32.mrb[13].mxu0  ;;  %v1667_v41 = vadd.f32 1.0, %v7027_v30  ;;  %v1670_v59 = vmul.f32 -0.5, %v7027_v30  ;;  %11054 = vst [vmem:[#allocation25_spill] sm:$0xff] %v7066_v5  ;;  %v7101_v31 = vmul.f32 100.0, %v7066_v5 }
 0x12d   : > { %11044 = vst [vmem:[#allocation17_spill] sm:$0xff] %v7023_v26  ;;  %v7025_v27 = vpop.f32.mrb[13].mxu1  ;;  %5783 = vlog2.f32 %v1649_v32  ;;  %v1520_v32 = vand.u32 2147483647, %v6986_v57  ;;  %v1655_v42 = vand.u32 2147483647, %v7015_v17 }
 0x12e   : > { %11045 = vst [vmem:[#allocation18_spill] sm:$0xff] %v7025_v27  ;;  %5785 = vlog2.f32 %v1667_v41  ;;  %v7047_v10 = vpop.eup %5775  ;;  %v1653_v4 = vadd.f32 1.0, %v1652_v1  ;;  %11061 = vst [vmem:[#allocation30_spill] sm:$0xff] %v7101_v31 }
 0x12f   : > { %v7038_v54 = vpop.f32.mrb[14].mxu0  ;;  %5787 = vpow2.f32 %v1462_v35  ;;  %v1802_v41 = vadd.f32 1.0, %v7047_v10  ;;  %v7060_v35 = vadd.f32 %v6916_v8, %v6908_v3  ;;  %vm7086_vm5 = vcmp.lt.f32.partialorder %v1520_v32, 0.0004427343 }
 0x130   : > { %11046 = vst [vmem:[#allocation19_spill] sm:$0xff] %v7038_v54  ;;  %v7040_v56 = vpop.f32.mrb[14].mxu1  ;;  %v7043_v63 = vpop.f32.mrb[15].mxu0  ;;  %vm1656_vm7 = vcmp.lt.f32.partialorder %v1655_v42, 0.0004427343 }
 0x131   : > { %11047 = vst [vmem:[#allocation20_spill] sm:$0xff] %v7040_v56  ;;  %11048 = vst [vmem:[#allocation21_spill] sm:$0xff] %v7043_v63  ;;  %v7045_v14 = vpop.f32.mrb[15].mxu1  ;;  %v1430_v63 = vmul.f32 1.442695, %v1327_v40  ;;  %v1501_v40 = vmul.f32 %v6983_v55, %v1500_v0  ;;  %5789 = vlog2.f32 %v1802_v41  ;;  %v7091_v55 = vmul.f32 100.0, %v7060_v35 }
 0x132   : > { %11049 = vst [vmem:[#allocation22_spill] sm:$0xff] %v7045_v14  ;;  %v1345_v14 = vmin.f32 %v7036_v48, 20.0  ;;  %11052 = vst [vmem:[#allocation23_spill] sm:$0xff] %v7060_v35  ;;  %v1654_v41 = vmul.f32 %v7015_v17, %v1653_v4 }
 0x133   : > { %v5778_v34 = vpop.eup %5777  ;;  %v7062_v39 = vpop.f32.mrb[16].mxu0  ;;  %11058 = vst [vmem:[#allocation27_spill] sm:$0xff] %v7091_v55  ;;  %5791 = vpow2.f32 %v1430_v63 }
 0x134   : > { %v5780_v21 = vpop.eup %5779  ;;  %v1498_v13 = vmul.f32 0.6931472, %v5778_v34  ;;  %11053 = vst [vmem:[#allocation24_spill] sm:$0xff] %v7062_v39  ;;  %v7069_v54 = vpop.f32.mrb[16].mxu1  ;;  %v1673_v34 = vand.u32 2147483647, %v7027_v30  ;;  %5793 = vpow2.f32 %v1434_v37 }
 0x135   : > { %v1516_v56 = vmul.f32 0.6931472, %v5780_v21  ;;  %v7073_v8 = vpop.f32.mrb[17].mxu0  ;;  %v7075_v58 = vpop.f32.mrb[17].mxu1  ;;  %v1519_v21 = vmul.f32 %v6986_v57, %v1518_v2  ;;  %v1671_v39 = vadd.f32 1.0, %v1670_v59 }
 0x136   : > { %11055 = vst [vmem:[#allocation26_spill] sm:$0xff] %v7075_v58  ;;  %v1466_v36 = vmul.f32 1.442695, %v1345_v14  ;;  %v7082_v26 = vpop.eup %5781  ;;  %v1504_v0 = vsel %vm7050_vm4, %v1501_v40, %v1498_v13  ;;  %vm7104_vm8 = vcmp.lt.f32.partialorder %v1673_v34, 0.0004427343  ;;  %vm2229_vm4 = vcmp.gt.f32.partialorder %v7036_v48, 20.0 }
 0x137   : > { %v7078_v9 = vpop.f32.mrb[18].mxu0  ;;  %v5784_v2 = vpop.eup %5783  ;;  %v1522_v14 = vsel %vm7086_vm5, %v1519_v21, %v1516_v56  ;;  %v2108_v35 = vmul.f32 0.01, %v1504_v0  ;;  %v1672_v1 = vmul.f32 %v7027_v30, %v1671_v39  ;;  %v1293_v39 = vmin.f32 %v7091_v55, 20.0  ;;  %v11132_v58 = vld [vmem:[#allocation16_spill] sm:$0xff] }
 0x138   : > { %v7080_v27 = vpop.f32.mrb[18].mxu1  ;;  %v7093_v57 = vpop.f32.mrb[19].mxu0  ;;  %v1651_v32 = vmul.f32 0.6931472, %v5784_v2  ;;  %5795 = vpow2.f32 %v1466_v36  ;;  %v2110_v21 = vmul.f32 0.01, %v1522_v14 }
 0x139   : > { %11059 = vst [vmem:[#allocation28_spill] sm:$0xff] %v7093_v57  ;;  %v7095_v59 = vpop.f32.mrb[19].mxu1  ;;  %v5786_v13 = vpop.eup %5785  ;;  %v1820_v2 = vadd.f32 1.0, %v7082_v26  ;;  %v1805_v36 = vmul.f32 -0.5, %v7047_v10  ;;  %v11117_v57 = vld [vmem:[#allocation14_spill] sm:$0xff] }
 0x13a   : > { %11060 = vst [vmem:[#allocation29_spill] sm:$0xff] %v7095_v59  ;;  %v7108_v40 = vpop.eup %5787  ;;  %v1669_v59 = vmul.f32 0.6931472, %v5786_v13  ;;  %v1657_v37 = vsel %vm1656_vm7, %v1654_v41, %v1651_v32  ;;  %v7130_v13 = vsel %vm2176_vm6, %v6911_v6, %v2108_v35  ;;  %v1295_v32 = vmin.f32 %v7101_v31, 20.0 }
 0x13b   : > { %v7111_v56 = vpop.f32.mrb[20].mxu0  ;;  %v1955_v4 = vadd.f32 1.0, %v7108_v40  ;;  %v2125_v34 = vmul.f32 0.01, %v1657_v37  ;;  %11068 = vst [vmem:[#allocation35_spill] sm:$0xff] %v7130_v13  ;;  %v7144_v28 = vsel %vm2178_vm9, %v6914_v7, %v2110_v21  ;;  %v1806_v37 = vadd.f32 1.0, %v1805_v36 }
 0x13c   : > { %11064 = vst [vmem:[#allocation31_spill] sm:$0xff] %v7111_v56  ;;  %v7115_v17 = vpop.f32.mrb[20].mxu1  ;;  %v7117_v42 = vpop.f32.mrb[21].mxu0  ;;  %v1675_v0 = vsel %vm7104_vm8, %v1672_v1, %v1669_v59  ;;  %11072 = vst [vmem:[#allocation39_spill] sm:$0xff] %v7144_v28  ;;  %v7160_v7 = vadd.f32 %v6975_v50, %v6908_v3  ;;  %v1823_v50 = vmul.f32 -0.5, %v7082_v26 }
 0x13d   : > { %11065 = vst [vmem:[#allocation32_spill] sm:$0xff] %v7115_v17  ;;  %11066 = vst [vmem:[#allocation33_spill] sm:$0xff] %v7117_v42  ;;  %v7123_v30 = vpop.f32.mrb[21].mxu1  ;;  %v2127_v14 = vmul.f32 0.01, %v1675_v0  ;;  %5797 = vlog2.f32 %v1955_v4  ;;  %v7134_v41 = vsel %vm2193_vm10, %v6940_v24, %v2125_v34  ;;  %v5790_v1 = vpop.eup %5789  ;;  %v1958_v4 = vmul.f32 -0.5, %v7108_v40 }
 0x13e   : > { %11067 = vst [vmem:[#allocation34_spill] sm:$0xff] %v7123_v30  ;;  %11069 = vst [vmem:[#allocation36_spill] sm:$0xff] %v7134_v41  ;;  %5799 = vlog2.f32 %v1820_v2  ;;  %v7162_v12 = vpop.eup %5791  ;;  %v7169_v2 = vadd.f32 %v6931_v18, %v6935_v20  ;;  %v1804_v34 = vmul.f32 0.6931472, %v5790_v1  ;;  %v7173_v0 = vadd.f32 %v6962_v44, %v6966_v46 }
 0x13f   : > { %v7137_v59 = vpop.f32.mrb[22].mxu0  ;;  %v7149_v11 = vsel %vm2195_vm11, %v6943_v25, %v2127_v14  ;;  %v1808_v25 = vand.u32 2147483647, %v7047_v10  ;;  %v7165_v21 = vpop.eup %5793  ;;  %v7176_v36 = vmul.f32 100.0, %v7160_v7  ;;  %v7181_v14 = vadd.f32 %v6977_v51, %v6908_v3 }
 0x140   : > { %11070 = vst [vmem:[#allocation37_spill] sm:$0xff] %v7137_v59  ;;  %v7139_v63 = vpop.f32.mrb[22].mxu1  ;;  %11073 = vst [vmem:[#allocation40_spill] sm:$0xff] %v7149_v11  ;;  %v7151_v24 = vpop.f32.mrb[23].mxu0  ;;  %v1362_v6 = vmul.f32 1.442695, %v1293_v39  ;;  %v1807_v18 = vmul.f32 %v7047_v10, %v1806_v37  ;;  %v7188_v44 = vadd.f32 %v6933_v19, %v6935_v20 }
 0x141   : > { %11071 = vst [vmem:[#allocation38_spill] sm:$0xff] %v7139_v63  ;;  %11074 = vst [vmem:[#allocation41_spill] sm:$0xff] %v7151_v24  ;;  %v7153_v29 = vpop.f32.mrb[23].mxu1  ;;  %v1366_v28 = vmul.f32 1.442695, %v1295_v32  ;;  %v1959_v1 = vadd.f32 1.0, %v1958_v4 }
 0x142   : > { %11075 = vst [vmem:[#allocation42_spill] sm:$0xff] %v7153_v29  ;;  %11076 = vst [vmem:[#allocation43_spill] sm:$0xff] %v7169_v2  ;;  %v7183_v35 = vpop.eup %5795  ;;  %vm7190_vm12 = vcmp.lt.f32.partialorder %v1808_v25, 0.0004427343  ;;  %v1961_v5 = vand.u32 2147483647, %v7108_v40 }
 0x143   : > { %11077 = vst [vmem:[#allocation44_spill] sm:$0xff] %v7188_v44  ;;  %v1973_v51 = vadd.f32 1.0, %v7183_v35  ;;  %v7197_v13 = vmul.f32 100.0, %v7169_v2  ;;  %v1810_v39 = vsel %vm7190_vm12, %v1807_v18, %v1804_v34  ;;  %v7202_v10 = vmul.f32 100.0, %v7173_v0 }
 0x144   : > { %v1296_v19 = vmin.f32 %v7176_v36, 20.0  ;;  %v1824_v37 = vadd.f32 1.0, %v1823_v50  ;;  %v1811_v4 = vadd.f32 1.0, %v7162_v12  ;;  %v7207_v25 = vmul.f32 100.0, %v7181_v14 }
 0x145   : > { %11080 = vst [vmem:[#allocation45_spill] sm:$0xff] %v7197_v13  ;;  %5801 = vlog2.f32 %v1973_v51  ;;  %v1829_v41 = vadd.f32 1.0, %v7165_v21  ;;  %v1960_v31 = vmul.f32 %v7108_v40, %v1959_v1  ;;  %v2142_v18 = vmul.f32 0.01, %v1810_v39 }
 0x146   : > { %v1368_v11 = vmul.f32 1.442695, %v1296_v19  ;;  %5803 = vpow2.f32 %v1362_v6  ;;  %vm1962_vm14 = vcmp.lt.f32.partialorder %v1961_v5, 0.0004427343  ;;  %v1976_v50 = vmul.f32 -0.5, %v7183_v35 }
 0x147   : > { %v5798_v32 = vpop.eup %5797  ;;  %v1826_v51 = vand.u32 2147483647, %v7082_v26  ;;  %v1825_v1 = vmul.f32 %v7082_v26, %v1824_v37  ;;  %v1344_v6 = vmin.f32 %v7202_v10, 20.0  ;;  %v7219_v43 = vsel %vm2210_vm13, %v6952_v33, %v2142_v18 }
 0x148   : > { %v1957_v2 = vmul.f32 0.6931472, %v5798_v32  ;;  %v5800_v34 = vpop.eup %5799  ;;  %5805 = vpow2.f32 %v1368_v11  ;;  %v1298_v32 = vmin.f32 %v7207_v25, 20.0  ;;  %11081 = vst [vmem:[#allocation46_spill] sm:$0xff] %v7219_v43  ;;  %v7226_v5 = vadd.f32 %v6964_v45, %v6966_v46 }
 0x149   : > { %5807 = vlog2.f32 %v1811_v4  ;;  %v1822_v40 = vmul.f32 0.6931472, %v5800_v34  ;;  %v7232_v26 = vadd.f32 %v6995_v61, %v6935_v20  ;;  %v7236_v33 = vadd.f32 %v6997_v62, %v6935_v20 }
 0x14a   : > { %v1963_v55 = vsel %vm1962_vm14, %v1960_v31, %v1957_v2  ;;  %5809 = vlog2.f32 %v1829_v41  ;;  %11083 = vst [vmem:[#allocation48_spill] sm:$0xff] %v7226_v5  ;;  %v1372_v31 = vmul.f32 1.442695, %v1298_v32  ;;  %v1977_v2 = vadd.f32 1.0, %v1976_v50 }
 0x14b   : > { %v2159_v29 = vmul.f32 0.01, %v1963_v55  ;;  %vm7241_vm0 = vcmp.lt.f32.partialorder %v1826_v51, 0.0004427343  ;;  %v1979_v45 = vand.u32 2147483647, %v7183_v35 }
 0x14c   : > { %5811 = vpow2.f32 %v1372_v31  ;;  %v1464_v39 = vmul.f32 1.442695, %v1344_v6  ;;  %v7249_v61 = vmul.f32 100.0, %v7232_v26  ;;  %v7252_v62 = vmul.f32 100.0, %v7236_v33 }
 0x14d   : > { %v7222_v60 = vsel %vm2227_vm15, %v6973_v49, %v2159_v29  ;;  %v7239_v49 = vmul.f32 100.0, %v7188_v44  ;;  %v1828_v29 = vsel %vm7241_vm0, %v1825_v1, %v1822_v40  ;;  %5813 = vpow2.f32 %v1366_v28 }
 0x14e   : > { %11082 = vst [vmem:[#allocation47_spill] sm:$0xff] %v7222_v60  ;;  %v1310_v37 = vmin.f32 %v7197_v13, 20.0  ;;  %v1814_v4 = vmul.f32 -0.5, %v7162_v12  ;;  %v7257_v11 = vmul.f32 100.0, %v7226_v5  ;;  %v1978_v18 = vmul.f32 %v7183_v35, %v1977_v2 }
 0x14f   : > { %11084 = vst [vmem:[#allocation49_spill] sm:$0xff] %v7239_v49  ;;  %v5802_v19 = vpop.eup %5801  ;;  %v1313_v50 = vmin.f32 %v7249_v61, 20.0  ;;  %v1315_v51 = vmin.f32 %v7252_v62, 20.0  ;;  %v1312_v40 = vmin.f32 %v7239_v49, 20.0  ;;  %v2144_v1 = vmul.f32 0.01, %v1828_v29 }
 0x150   : > { %v1975_v34 = vmul.f32 0.6931472, %v5802_v19  ;;  %v7262_v32 = vpop.eup %5803  ;;  %v1832_v28 = vmul.f32 -0.5, %v7165_v21  ;;  %vm1980_vm2 = vcmp.lt.f32.partialorder %v1979_v45, 0.0004427343  ;;  %5815 = vpow2.f32 %v1464_v39 }
 0x151   : > { %11087 = vst [vmem:[#allocation50_spill] sm:$0xff] %v7262_v32  ;;  %v1402_v41 = vmul.f32 1.442695, %v1313_v50  ;;  %v1346_v19 = vmin.f32 %v7257_v11, 20.0  ;;  %v1406_v55 = vmul.f32 1.442695, %v1315_v51  ;;  %v7275_v47 = vsel %vm2212_vm3, %v6957_v38, %v2144_v1 }
 0x152   : > { %v7266_v6 = vpop.eup %5805  ;;  %v1981_v31 = vsel %vm1980_vm2, %v1978_v18, %v1975_v34  ;;  %v1815_v60 = vadd.f32 1.0, %v1814_v4  ;;  %v1817_v29 = vand.u32 2147483647, %v7162_v12  ;;  %v1835_v45 = vand.u32 2147483647, %v7165_v21  ;;  %11088 = vst [vmem:[#allocation51_spill] sm:$0xff] %v7275_v47 }
 0x153   : > { %v5808_v35 = vpop.eup %5807  ;;  %v2161_v2 = vmul.f32 0.01, %v1981_v31  ;;  %v1532_v44 = vadd.f32 1.0, %v7266_v6  ;;  %v1833_v39 = vadd.f32 1.0, %v1832_v28  ;;  %5817 = vpow2.f32 %v1402_v41 }
 0x154   : > { %v5810_v43 = vpop.eup %5809  ;;  %v1813_v48 = vmul.f32 0.6931472, %v5808_v35  ;;  %v7284_v4 = vadd.f32 %v6979_v52, %v6908_v3  ;;  %v7288_v50 = vadd.f32 %v7011_v15, %v6937_v23  ;;  %v1468_v1 = vmul.f32 1.442695, %v1346_v19 }
 0x155   : > { %v7278_v34 = vsel %vm2229_vm4, %v7021_v22, %v2161_v2  ;;  %v1831_v38 = vmul.f32 0.6931472, %v5810_v43  ;;  %5819 = vpow2.f32 %v1406_v55  ;;  %v7294_v22 = vadd.f32 %v7013_v16, %v6937_v23  ;;  %v7330_v2 = vpop.f32.mrb[24].mxu0 }
 0x156   : > { %11089 = vst [vmem:[#allocation52_spill] sm:$0xff] %v7278_v34  ;;  %11090 = vst [vmem:[#allocation53_spill] sm:$0xff] %v7284_v4  ;;  %v7290_v51 = vpop.eup %5811  ;;  %v1816_v28 = vmul.f32 %v7162_v12, %v1815_v60  ;;  %5821 = vlog2.f32 %v1532_v44  ;;  %v7300_v52 = vadd.f32 %v6981_v53, %v6908_v3  ;;  %v1396_v41 = vmul.f32 1.442695, %v1310_v37  ;;  %v7352_v18 = vpop.f32.mrb[25].mxu0 }
 0x157   : > { %v1550_v31 = vadd.f32 1.0, %v7290_v51  ;;  %v7302_v15 = vpop.eup %5813  ;;  %v1400_v35 = vmul.f32 1.442695, %v1312_v40  ;;  %vm7304_vm5 = vcmp.lt.f32.partialorder %v1817_v29, 0.0004427343  ;;  %v1834_v16 = vmul.f32 %v7165_v21, %v1833_v39  ;;  %v11098_v21 = vld [vmem:[#allocation17_spill] sm:$0xff] }
 0x158   : > { %11091 = vst [vmem:[#allocation54_spill] sm:$0xff] %v7300_v52  ;;  %11092 = vst [vmem:[#allocation55_spill] sm:$0xff] %v7302_v15  ;;  %v1819_v12 = vsel %vm7304_vm5, %v1816_v28, %v1813_v48  ;;  %vm7311_vm6 = vcmp.lt.f32.partialorder %v1835_v45, 0.0004427343  ;;  %v7316_v53 = vmul.f32 100.0, %v7284_v4  ;;  %v7319_v60 = vmul.f32 100.0, %v7288_v50 }
 0x159   : > { %v1837_v55 = vsel %vm7311_vm6, %v1834_v16, %v1831_v38  ;;  %5823 = vpow2.f32 %v1468_v1  ;;  %v7324_v37 = vmul.f32 100.0, %v7294_v22  ;;  %v7328_v40 = vadd.f32 %v11098_v21, %v6937_v23  ;;  %11100 = vst [vmem:[#allocation57_spill] sm:$0xff] %v7330_v2  ;;  %v11102_v39 = vld [vmem:[#allocation18_spill] sm:$0xff]  ;;  %v7347_v16 = vpop.f32.mrb[24].mxu1  ;;  %11106 = vst [vmem:[#allocation60_spill] sm:$0xff] %v7352_v18  ;;  %v7379_v13 = vpop.f32.mrb[26].mxu0 }
 0x15a   : > { %11097 = vst [vmem:[#allocation56_spill] sm:$0xff] %v7316_v53  ;;  %v7332_v19 = vpop.eup %5815  ;;  %5825 = vlog2.f32 %v1550_v31  ;;  %v7335_v29 = vmul.f32 100.0, %v7300_v52  ;;  %v1330_v45 = vmin.f32 %v7319_v60, 20.0  ;;  %v7340_v48 = vadd.f32 %v11102_v39, %v6937_v23  ;;  %11105 = vst [vmem:[#allocation59_spill] sm:$0xff] %v7347_v16  ;;  %v7362_v4 = vpop.f32.mrb[25].mxu1 }
 0x15b   : > { %11099 = vst [vmem:[#allocation17_spill] sm:$0xff] %v7328_v40  ;;  %5827 = vpow2.f32 %v1396_v41  ;;  %v7344_v28 = vmul.f32 0.01, %v1819_v12  ;;  %v1332_v43 = vmin.f32 %v7324_v37, 20.0  ;;  %v7349_v31 = vmul.f32 0.01, %v1837_v55 }
 0x15c   : > { %11101 = vst [vmem:[#allocation58_spill] sm:$0xff] %v7335_v29  ;;  %11103 = vst [vmem:[#allocation18_spill] sm:$0xff] %v7340_v48  ;;  %5829 = vpow2.f32 %v1400_v35  ;;  %v1535_v44 = vmul.f32 -0.5, %v7266_v6  ;;  %v1436_v21 = vmul.f32 1.442695, %v1330_v45  ;;  %v1964_v52 = vadd.f32 1.0, %v7332_v19 }
 0x15d   : > { %v7354_v39 = vpop.eup %5817  ;;  %v1967_v41 = vmul.f32 -0.5, %v7332_v19  ;;  %v7360_v1 = vmul.f32 100.0, %v7328_v40  ;;  %11108 = vst [vmem:[#allocation62_spill] sm:$0xff] %v7362_v4  ;;  %v1297_v35 = vmin.f32 %v7316_v53, 20.0  ;;  %v1299_v55 = vmin.f32 %v7335_v29, 20.0  ;;  %v11110_v12 = vld [vmem:[#allocation13_spill] sm:$0xff] }
 0x15e   : > { %v1685_v45 = vadd.f32 1.0, %v7354_v39  ;;  %v7368_v47 = vmul.f32 100.0, %v7340_v48  ;;  %v1538_v49 = vand.u32 2147483647, %v7266_v6  ;;  %v7375_v18 = vadd.f32 %v11110_v12, %v6935_v20  ;;  %11112 = vst [vmem:[#allocation64_spill] sm:$0xff] %v7379_v13  ;;  %v7381_v15 = vpop.f32.mrb[26].mxu1 }
 0x15f   : > { %11107 = vst [vmem:[#allocation61_spill] sm:$0xff] %v7360_v1  ;;  %v7370_v34 = vpop.eup %5819  ;;  %5831 = vpow2.f32 %v1436_v21  ;;  %v1440_v16 = vmul.f32 1.442695, %v1332_v43  ;;  %v1536_v2 = vadd.f32 1.0, %v1535_v44  ;;  %v1553_v53 = vmul.f32 -0.5, %v7290_v51  ;;  %11113 = vst [vmem:[#allocation65_spill] sm:$0xff] %v7381_v15 }
 0x160   : > { %11109 = vst [vmem:[#allocation63_spill] sm:$0xff] %v7368_v47  ;;  %11111 = vst [vmem:[#allocation13_spill] sm:$0xff] %v7375_v18  ;;  %v5822_v4 = vpop.eup %5821  ;;  %5833 = vlog2.f32 %v1685_v45  ;;  %v1703_v29 = vadd.f32 1.0, %v7370_v34  ;;  %v7383_v32 = vadd.f32 1.0, %v1967_v41  ;;  %v1331_v24 = vmin.f32 %v7360_v1, 20.0  ;;  %v11114_v12 = vld [vmem:[#allocation19_spill] sm:$0xff] }
 0x161   : > { %5835 = vlog2.f32 %v1964_v52  ;;  %v7388_v21 = vadd.f32 %v11114_v12, %v6966_v46  ;;  %v7390_v43 = vpop.f32.mrb[27].mxu0  ;;  %v7392_v44 = vpop.f32.mrb[27].mxu1  ;;  %v7394_v45 = vmul.f32 1.442695, %v1297_v35  ;;  %v1688_v63 = vmul.f32 -0.5, %v7354_v39 }
 0x162   : > { %11115 = vst [vmem:[#allocation19_spill] sm:$0xff] %v7390_v43  ;;  %11116 = vst [vmem:[#allocation66_spill] sm:$0xff] %v7392_v44  ;;  %5837 = vlog2.f32 %v1703_v29  ;;  %v1333_v15 = vmin.f32 %v7368_v47, 20.0  ;;  %v1534_v41 = vmul.f32 0.6931472, %v5822_v4  ;;  %v7404_v12 = vadd.f32 %v11117_v57, %v6935_v20  ;;  %v7406_v43 = vpop.f32.mrb[28].mxu0 }
 0x163   : > { %v7398_v52 = vpop.eup %5823  ;;  %v7400_v13 = vmul.f32 1.442695, %v1299_v55  ;;  %5839 = vpow2.f32 %v1440_v16  ;;  %11119 = vst [vmem:[#allocation67_spill] sm:$0xff] %v7406_v43  ;;  %v1537_v35 = vmul.f32 %v7266_v6, %v1536_v2  ;;  %vm7409_vm7 = vcmp.lt.f32.partialorder %v1538_v49, 0.0004427343  ;;  %v7416_v4 = vpop.f32.mrb[28].mxu1 }
 0x164   : > { %11118 = vst [vmem:[#allocation14_spill] sm:$0xff] %v7404_v12  ;;  %v5826_v44 = vpop.eup %5825  ;;  %v1554_v29 = vadd.f32 1.0, %v1553_v53  ;;  %v7414_v30 = vmul.f32 100.0, %v7375_v18  ;;  %11123 = vst [vmem:[#allocation69_spill] sm:$0xff] %v7416_v4  ;;  %v7418_v55 = vpop.f32.mrb[29].mxu0  ;;  %v1706_v16 = vmul.f32 -0.5, %v7370_v34 }
 0x165   : > { %11124 = vst [vmem:[#allocation70_spill] sm:$0xff] %v7418_v55  ;;  %v7420_v57 = vpop.eup %5827  ;;  %v1438_v43 = vmul.f32 1.442695, %v1331_v24  ;;  %v7424_v42 = vmul.f32 100.0, %v7388_v21  ;;  %v11126_v49 = vld [vmem:[#allocation20_spill] sm:$0xff]  ;;  %v7430_v53 = vpop.f32.mrb[29].mxu1  ;;  %v1540_v24 = vsel %vm7409_vm7, %v1537_v35, %v1534_v41 }
 0x166   : > { %11122 = vst [vmem:[#allocation68_spill] sm:$0xff] %v7414_v30  ;;  %11125 = vst [vmem:[#allocation71_spill] sm:$0xff] %v7420_v57  ;;  %v7428_v6 = vadd.f32 %v11126_v49, %v6966_v46  ;;  %v7432_v2 = vpop.eup %5829  ;;  %v1982_v18 = vadd.f32 1.0, %v7398_v52  ;;  %vm2180_vm8 = vcmp.gt.f32.partialorder %v7176_v36, 20.0  ;;  %v1556_v55 = vand.u32 2147483647, %v7290_v51 }
 0x167   : > { %11127 = vst [vmem:[#allocation20_spill] sm:$0xff] %v7430_v53  ;;  %11128 = vst [vmem:[#allocation72_spill] sm:$0xff] %v7432_v2  ;;  %v1689_v4 = vadd.f32 1.0, %v1688_v63  ;;  %v1442_v57 = vmul.f32 1.442695, %v1333_v15  ;;  %vm2197_vm9 = vcmp.gt.f32.partialorder %v7249_v61, 20.0  ;;  %v1555_v48 = vmul.f32 %v7290_v51, %v1554_v29 }
 0x168   : > { %v1552_v38 = vmul.f32 0.6931472, %v5826_v44  ;;  %v1347_v49 = vmin.f32 %v7424_v42, 20.0  ;;  %v7442_v53 = vmul.f32 100.0, %v7428_v6  ;;  %v7445_v2 = vmul.f32 -0.5, %v7398_v52  ;;  %v11129_v47 = vld [vmem:[#allocation15_spill] sm:$0xff] }
 0x169   : > { %v1691_v40 = vand.u32 2147483647, %v7354_v39  ;;  %v1709_v63 = vand.u32 2147483647, %v7370_v34  ;;  %v7450_v15 = vpop.eup %5831  ;;  %vm2182_vm10 = vcmp.gt.f32.partialorder %v7207_v25, 20.0  ;;  %v1707_v59 = vadd.f32 1.0, %v1706_v16 }
 0x16a   : > { %5841 = vpow2.f32 %v1438_v43  ;;  %v1470_v44 = vmul.f32 1.442695, %v1347_v49  ;;  %v1349_v41 = vmin.f32 %v7442_v53, 20.0  ;;  %v5834_v35 = vpop.eup %5833  ;;  %vm2211_vm11 = vcmp.gt.f32.partialorder %v11129_v47, 20.0  ;;  %v11143_v61 = vld [vmem:[#allocation22_spill] sm:$0xff] }
 0x16b   : > { %v2112_v5 = vmul.f32 0.01, %v1540_v24  ;;  %vm7455_vm12 = vcmp.lt.f32.partialorder %v1556_v55, 0.0004427343  ;;  %v1690_v51 = vmul.f32 %v7354_v39, %v1689_v4  ;;  %5843 = vpow2.f32 %v1442_v57  ;;  %v5836_v29 = vpop.eup %5835 }
 0x16c   : > { %vm2213_vm13 = vcmp.gt.f32.partialorder %v11132_v58, 20.0  ;;  %v1558_v43 = vsel %vm7455_vm12, %v1555_v48, %v1552_v38  ;;  %v1687_v16 = vmul.f32 0.6931472, %v5834_v35  ;;  %5845 = vpow2.f32 %v1470_v44  ;;  %v5838_v1 = vpop.eup %5837  ;;  %v7472_v48 = vpop.f32.mrb[30].mxu0 }
 0x16d   : > { %v1474_v49 = vmul.f32 1.442695, %v1349_v41  ;;  %vm1692_vm14 = vcmp.lt.f32.partialorder %v1691_v40, 0.0004427343  ;;  %vm7463_vm15 = vcmp.lt.f32.partialorder %v1709_v63, 0.0004427343  ;;  %v7469_v4 = vpop.eup %5839  ;;  %v1708_v17 = vmul.f32 %v7370_v34, %v1707_v59 }
 0x16e   : > { %vm2199_vm0 = vcmp.gt.f32.partialorder %v7252_v62, 20.0  ;;  %v1838_v39 = vadd.f32 1.0, %v7450_v15  ;;  %v1693_v55 = vsel %vm1692_vm14, %v1690_v51, %v1687_v16  ;;  %v1705_v57 = vmul.f32 0.6931472, %v5838_v1  ;;  %11135 = vst [vmem:[#allocation15_spill] sm:$0xff] %v7472_v48  ;;  %v7474_v38 = vpop.f32.mrb[30].mxu1 }
 0x16f   : > { %5847 = vpow2.f32 %v1474_v49  ;;  %11136 = vst [vmem:[#allocation16_spill] sm:$0xff] %v7474_v38  ;;  %v1969_v40 = vmul.f32 %v7332_v19, %v7383_v32  ;;  %v2114_v63 = vmul.f32 0.01, %v1558_v43  ;;  %v2129_v44 = vmul.f32 0.01, %v1693_v55  ;;  %v7479_v35 = vpop.f32.mrb[31].mxu0 }
 0x170   : > { %v1856_v41 = vadd.f32 1.0, %v7469_v4  ;;  %11137 = vst [vmem:[#allocation73_spill] sm:$0xff] %v7479_v35  ;;  %v1966_v56 = vmul.f32 0.6931472, %v5836_v29  ;;  %5849 = vlog2.f32 %v1982_v18  ;;  %v7484_v34 = vsel %vm2180_vm8, %v7160_v7, %v2112_v5  ;;  %v11140_v51 = vld [vmem:[#allocation21_spill] sm:$0xff]  ;;  %v7497_v18 = vpop.f32.mrb[31].mxu1 }
 0x171   : > { %11138 = vst [vmem:[#allocation74_spill] sm:$0xff] %v7484_v34  ;;  %v1711_v1 = vsel %vm7463_vm15, %v1708_v17, %v1705_v57  ;;  %v7491_v32 = vsel %vm2197_vm9, %v7232_v26, %v2129_v44  ;;  %5851 = vlog2.f32 %v1838_v39  ;;  %v7495_v43 = vadd.f32 %v11140_v51, %v6966_v46  ;;  %11141 = vst [vmem:[#allocation21_spill] sm:$0xff] %v7497_v18  ;;  %v11146_v49 = vld [vmem:[#allocation24_spill] sm:$0xff]  ;;  %v11147_v55 = vld [vmem:[#allocation11_spill] sm:$0xff] }
 0x172   : > { %11139 = vst [vmem:[#allocation75_spill] sm:$0xff] %v7491_v32  ;;  %v2131_v59 = vmul.f32 0.01, %v1711_v1  ;;  %v1314_v36 = vmin.f32 %v7414_v30, 20.0  ;;  %v7503_v5 = vmul.f32 100.0, %v7404_v12  ;;  %v7507_v26 = vadd.f32 %v11143_v61, %v6966_v46  ;;  %v11151_v17 = vld [vmem:[#allocation12_spill] sm:$0xff] }
 0x173   : > { %v7512_v29 = vsel %vm2182_vm10, %v7181_v14, %v2114_v63  ;;  %5853 = vlog2.f32 %v1856_v41  ;;  %v7521_v24 = vadd.f32 %v11146_v49, %v6908_v3  ;;  %v7529_v57 = vsel %vm2211_vm11, %v11147_v55, %v7344_v28  ;;  %v6313_v30 = vld [vmem:[%s10775_s4] sm:$0xff]  }
 0x174   : > { %11142 = vst [vmem:[#allocation76_spill] sm:$0xff] %v7503_v5  ;;  %11144 = vst [vmem:[#allocation22_spill] sm:$0xff] %v7512_v29  ;;  %v7517_v16 = vsel %vm2199_vm0, %v7236_v33, %v2131_v59  ;;  %v7523_v39 = vpop.eup %5841  ;;  %v11148_v14 = vand.u32 2147483647, %v7332_v19  ;;  %vm2228_vm3 = vcmp.gt.f32.partialorder %v7202_v10, 20.0  ;;  %v7546_v47 = vsel %vm2213_vm13, %v11151_v17, %v7349_v31 }
 0x175   : > { %11145 = vst [vmem:[#allocation77_spill] sm:$0xff] %v7517_v16  ;;  %v7540_v62 = vpop.eup %5843  ;;  %5855 = vpow2.f32 %v7394_v45  ;;  %v7552_v28 = vmul.f32 100.0, %v7495_v43  ;;  %v1988_v44 = vand.u32 2147483647, %v7398_v52  ;;  %v1404_v41 = vmul.f32 1.442695, %v1314_v36 }
 0x176   : > { %vm7533_vm2 = vcmp.lt.f32.partialorder %v11148_v14, 0.0004427343  ;;  %v7554_v63 = vpop.eup %5845  ;;  %5857 = vpow2.f32 %v7400_v13  ;;  %v7559_v1 = vmul.f32 100.0, %v7507_v26  ;;  %v1986_v58 = vadd.f32 1.0, %v7445_v2 }
 0x177   : > { %v1972_v19 = vsel %vm7533_vm2, %v1969_v40, %v1966_v56  ;;  %v1316_v31 = vmin.f32 %v7503_v5, 20.0  ;;  %v1991_v56 = vadd.f32 1.0, %v7554_v63  ;;  %v7565_v45 = vmul.f32 100.0, %v7521_v24 }
 0x178   : > { %v2160_v59 = vmul.f32 0.01, %v1972_v19  ;;  %v1841_v51 = vmul.f32 -0.5, %v7450_v15  ;;  %v1847_v13 = vadd.f32 1.0, %v7523_v39  ;;  %v7573_v36 = vadd.f32 %v7069_v54, %v6908_v3 }
 0x179   : > { %v7567_v40 = vpop.eup %5847  ;;  %v1865_v2 = vadd.f32 1.0, %v7540_v62  ;;  %5859 = vlog2.f32 %v1991_v56  ;;  %v1348_v49 = vmin.f32 %v7552_v28, 20.0  ;;  %vm7578_vm4 = vcmp.lt.f32.partialorder %v1988_v44, 0.0004427343 }
 0x17a   : > { %v2009_v61 = vadd.f32 1.0, %v7567_v40  ;;  %v5850_v55 = vpop.eup %5849  ;;  %5861 = vpow2.f32 %v1404_v41  ;;  %v1859_v25 = vmul.f32 -0.5, %v7469_v4  ;;  %v1350_v17 = vmin.f32 %v7559_v1, 20.0 }
 0x17b   : > { %v5852_v19 = vpop.eup %5851  ;;  %v7585_v54 = vmul.f32 %v7398_v52, %v1986_v58  ;;  %v1408_v33 = vmul.f32 1.442695, %v1316_v31  ;;  %v1300_v56 = vmin.f32 %v7565_v45, 20.0  ;;  %v1842_v7 = vadd.f32 1.0, %v1841_v51 }
 0x17c   : > { %5863 = vlog2.f32 %v2009_v61  ;;  %v1994_v44 = vmul.f32 -0.5, %v7554_v63  ;;  %v7590_v29 = vmul.f32 100.0, %v7573_v36  ;;  %v7595_v16 = vsel %vm2228_vm3, %v7173_v0, %v2160_v59 }
 0x17d   : > { %5865 = vlog2.f32 %v1847_v13  ;;  %v5854_v41 = vpop.eup %5853  ;;  %v1844_v52 = vand.u32 2147483647, %v7450_v15  ;;  %v1472_v58 = vmul.f32 1.442695, %v1348_v49  ;;  %v1840_v31 = vmul.f32 0.6931472, %v5852_v19 }
 0x17e   : > { %5867 = vlog2.f32 %v1865_v2  ;;  %v1860_v61 = vadd.f32 1.0, %v1859_v25  ;;  %v2012_v51 = vmul.f32 -0.5, %v7567_v40  ;;  %v1476_v13 = vmul.f32 1.442695, %v1350_v17 }
 0x17f   : > { %v7599_v12 = vpop.eup %5855  ;;  %v7601_v34 = vmul.f32 0.6931472, %v5850_v55  ;;  %5869 = vpow2.f32 %v1408_v33  ;;  %v1862_v32 = vand.u32 2147483647, %v7469_v4  ;;  %v1376_v5 = vmul.f32 1.442695, %v1300_v56 }
 0x180   : > { %11154 = vst [vmem:[#allocation24_spill] sm:$0xff] %v7599_v12  ;;  %v7604_v10 = vpop.eup %5857  ;;  %v1843_v0 = vmul.f32 %v7450_v15, %v1842_v7  ;;  %vm2214_vm5 = vcmp.gt.f32.partialorder %v7319_v60, 20.0  ;;  %v1858_v59 = vmul.f32 0.6931472, %v5854_v41  ;;  %v1995_v2 = vadd.f32 1.0, %v1994_v44 }
 0x181   : > { %11155 = vst [vmem:[#allocation11_spill] sm:$0xff] %v7604_v10  ;;  %v1302_v49 = vmin.f32 %v7590_v29, 20.0  ;;  %vm7609_vm6 = vcmp.lt.f32.partialorder %v1844_v52, 0.0004427343  ;;  %v1850_v55 = vmul.f32 -0.5, %v7523_v39  ;;  %5871 = vpow2.f32 %v1472_v58  ;;  %v11203_v10 = vld [vmem:[#allocation41_spill] sm:$0xff] }
 0x182   : > { %v1997_v33 = vand.u32 2147483647, %v7554_v63  ;;  %v1846_v17 = vsel %vm7609_vm6, %v1843_v0, %v1840_v31  ;;  %v1861_v15 = vmul.f32 %v7469_v4, %v1860_v61  ;;  %vm2216_vm7 = vcmp.gt.f32.partialorder %v7324_v37, 20.0 }
 0x183   : > { %v2013_v7 = vadd.f32 1.0, %v2012_v51  ;;  %5873 = vpow2.f32 %v1476_v13  ;;  %v5860_v19 = vpop.eup %5859  ;;  %v1990_v56 = vsel %vm7578_vm4, %v7585_v54, %v7601_v34  ;;  %vm7623_vm8 = vcmp.lt.f32.partialorder %v1862_v32, 0.0004427343 }
 0x184   : > { %v2015_v41 = vand.u32 2147483647, %v7567_v40  ;;  %5875 = vpow2.f32 %v1376_v5  ;;  %v7628_v52 = vpop.eup %5861  ;;  %v1864_v4 = vsel %vm7623_vm8, %v1861_v15, %v1858_v59  ;;  %v1993_v58 = vmul.f32 0.6931472, %v5860_v19 }
 0x185   : > { %11160 = vst [vmem:[#allocation12_spill] sm:$0xff] %v7628_v52  ;;  %v1996_v31 = vmul.f32 %v7554_v63, %v1995_v2  ;;  %v1380_v61 = vmul.f32 1.442695, %v1302_v49  ;;  %v2146_v13 = vmul.f32 0.01, %v1846_v17  ;;  %v1868_v34 = vmul.f32 -0.5, %v7540_v62 }
 0x186   : > { %v5864_v51 = vpop.eup %5863  ;;  %vm1998_vm9 = vcmp.lt.f32.partialorder %v1997_v33, 0.0004427343  ;;  %vm2231_vm10 = vcmp.gt.f32.partialorder %v7424_v42, 20.0  ;;  %v1851_v14 = vadd.f32 1.0, %v1850_v55  ;;  %v2014_v0 = vmul.f32 %v7567_v40, %v2013_v7 }
 0x187   : > { %v5866_v32 = vpop.eup %5865  ;;  %v1999_v54 = vsel %vm1998_vm9, %v1996_v31, %v1993_v58  ;;  %v2011_v5 = vmul.f32 0.6931472, %v5864_v51  ;;  %v2148_v44 = vmul.f32 0.01, %v1864_v4  ;;  %vm2016_vm11 = vcmp.lt.f32.partialorder %v2015_v41, 0.0004427343 }
 0x188   : > { %v5868_v25 = vpop.eup %5867  ;;  %v2163_v59 = vmul.f32 0.01, %v1999_v54  ;;  %v7638_v63 = vadd.f32 %v7078_v9, %v6935_v20  ;;  %v1853_v2 = vand.u32 2147483647, %v7523_v39  ;;  %v1871_v49 = vand.u32 2147483647, %v7540_v62 }
 0x189   : > { %v2017_v33 = vsel %vm2016_vm11, %v2014_v0, %v2011_v5  ;;  %5877 = vpow2.f32 %v1380_v61  ;;  %v7642_v17 = vpop.eup %5869  ;;  %v7647_v40 = vsel %vm2214_vm5, %v7288_v50, %v2146_v13  ;;  %v1869_v55 = vadd.f32 1.0, %v1868_v34  ;;  %v11176_v61 = vld [vmem:[#allocation32_spill] sm:$0xff] }
 0x18a   : > { %11161 = vst [vmem:[#allocation78_spill] sm:$0xff] %v7642_v17  ;;  %11162 = vst [vmem:[#allocation79_spill] sm:$0xff] %v7647_v40  ;;  %v7652_v15 = vsel %vm2231_vm10, %v7388_v21, %v2163_v59  ;;  %v2165_v9 = vmul.f32 0.01, %v2017_v33  ;;  %v1849_v7 = vmul.f32 0.6931472, %v5866_v32  ;;  %v7663_v50 = vsel %vm2216_vm7, %v7294_v22, %v2148_v44 }
 0x18b   : > { %11163 = vst [vmem:[#allocation80_spill] sm:$0xff] %v7652_v15  ;;  %v1867_v19 = vmul.f32 0.6931472, %v5868_v25  ;;  %vm2233_vm12 = vcmp.gt.f32.partialorder %v7442_v53, 20.0  ;;  %v7657_v4 = vpop.eup %5871  ;;  %vm2230_vm13 = vcmp.gt.f32.partialorder %v7257_v11, 20.0  ;;  %11164 = vst [vmem:[#allocation81_spill] sm:$0xff] %v7663_v50  ;;  %v7673_v21 = vadd.f32 %v7080_v27, %v6935_v20 }
 0x18c   : > { %v7666_v42 = vsel %vm2233_vm12, %v7428_v6, %v2165_v9  ;;  %v7669_v60 = vmul.f32 100.0, %v7638_v63  ;;  %v1852_v58 = vmul.f32 %v7523_v39, %v1851_v14  ;;  %vm7678_vm14 = vcmp.lt.f32.partialorder %v1853_v2, 0.0004427343  ;;  %v11171_v32 = vld [vmem:[#allocation31_spill] sm:$0xff]  ;;  %v11172_v44 = vld [vmem:[#allocation61_spill] sm:$0xff]  ;;  %v11174_v2 = vld [vmem:[#allocation26_spill] sm:$0xff] }
 0x18d   : > { %11165 = vst [vmem:[#allocation82_spill] sm:$0xff] %v7666_v42  ;;  %v7675_v53 = vpop.eup %5873  ;;  %v7686_v37 = vadd.f32 %v7073_v8, %v6908_v3  ;;  %v1870_v27 = vmul.f32 %v7540_v62, %v1869_v55  ;;  %vm7691_vm15 = vcmp.lt.f32.partialorder %v1871_v49, 0.0004427343  ;;  %v7697_v51 = vmul.f32 100.0, %v7673_v21  ;;  %v11186_v22 = vld [vmem:[#allocation9_spill] sm:$0xff]  ;;  %v11214_v42 = vld [vmem:[#allocation42_spill] sm:$0xff] }
 0x18e   : > { %v7688_v6 = vpop.eup %5875  ;;  %v1317_v39 = vmin.f32 %v7669_v60, 20.0  ;;  %v1855_v13 = vsel %vm7678_vm14, %v1852_v58, %v1849_v7  ;;  %v2000_v34 = vadd.f32 1.0, %v7657_v4  ;;  %v2003_v8 = vmul.f32 -0.5, %v7657_v4  ;;  %v11187_v11 = vld [vmem:[#allocation33_spill] sm:$0xff] }
 0x18f   : > { %11168 = vst [vmem:[#allocation83_spill] sm:$0xff] %v7686_v37  ;;  %v7705_v14 = vadd.f32 %v11171_v32, %v6937_v23  ;;  %v1873_v62 = vsel %vm7691_vm15, %v1870_v27, %v1867_v19  ;;  %v2018_v54 = vadd.f32 1.0, %v7675_v53  ;;  %v1319_v0 = vmin.f32 %v7697_v51, 20.0 }
 0x190   : > { %v1410_v5 = vmul.f32 1.442695, %v1317_v39  ;;  %v2162_v25 = vmul.f32 0.01, %v1990_v56  ;;  %vm2215_vm0 = vcmp.gt.f32.partialorder %v11172_v44, 20.0  ;;  %v7713_v59 = vmul.f32 100.0, %v7686_v37 }
 0x191   : > { %v7717_v49 = vadd.f32 %v11174_v2, %v6908_v3  ;;  %v2147_v33 = vmul.f32 0.01, %v1855_v13  ;;  %v1568_v55 = vadd.f32 1.0, %v7688_v6  ;;  %v1414_v9 = vmul.f32 1.442695, %v1319_v0  ;;  %v11177_v13 = vld [vmem:[#allocation48_spill] sm:$0xff] }
 0x192   : > { %11173 = vst [vmem:[#allocation31_spill] sm:$0xff] %v7713_v59  ;;  %5879 = vpow2.f32 %v1410_v5  ;;  %v2149_v19 = vmul.f32 0.01, %v1873_v62  ;;  %v2021_v56 = vmul.f32 -0.5, %v7675_v53  ;;  %v7724_v58 = vmul.f32 100.0, %v7705_v14  ;;  %v11178_v62 = vld [vmem:[#allocation63_spill] sm:$0xff] }
 0x193   : > { %11175 = vst [vmem:[#allocation61_spill] sm:$0xff] %v7717_v49  ;;  %v7720_v7 = vpop.eup %5877  ;;  %5881 = vlog2.f32 %v2000_v34  ;;  %v2004_v31 = vadd.f32 1.0, %v2003_v8  ;;  %v1571_v27 = vmul.f32 -0.5, %v7688_v6  ;;  %v7729_v39 = vadd.f32 %v11176_v61, %v6937_v23  ;;  %v11179_v5 = vld [vmem:[#allocation17_spill] sm:$0xff] }
 0x194   : > { %5883 = vlog2.f32 %v2018_v54  ;;  %v7734_v32 = vsel %vm2230_vm13, %v11177_v13, %v2162_v25  ;;  %vm2217_vm2 = vcmp.gt.f32.partialorder %v11178_v62, 20.0  ;;  %v1301_v34 = vmin.f32 %v7713_v59, 20.0 }
 0x195   : > { %5885 = vpow2.f32 %v1414_v9  ;;  %v7741_v8 = vsel %vm2215_vm0, %v11179_v5, %v2147_v33  ;;  %v2006_v54 = vand.u32 2147483647, %v7657_v4  ;;  %v1586_v0 = vadd.f32 1.0, %v7720_v7  ;;  %v11182_v9 = vld [vmem:[#allocation18_spill] sm:$0xff] }
 0x196   : > { %11180 = vst [vmem:[#allocation26_spill] sm:$0xff] %v7741_v8  ;;  %5887 = vlog2.f32 %v1568_v55  ;;  %v2022_v2 = vadd.f32 1.0, %v2021_v56  ;;  %v7747_v25 = vmul.f32 100.0, %v7717_v49  ;;  %v1334_v61 = vmin.f32 %v7724_v58, 20.0  ;;  %v11184_v5 = vld [vmem:[#allocation10_spill] sm:$0xff] }
 0x197   : > { %v7751_v13 = vsel %vm2217_vm2, %v11182_v9, %v2149_v19  ;;  %v7754_v44 = vmul.f32 %v7657_v4, %v2004_v31  ;;  %v1572_v33 = vadd.f32 1.0, %v1571_v27  ;;  %v7757_v55 = vmul.f32 100.0, %v7729_v39  ;;  %v11189_v19 = vld [vmem:[#allocation34_spill] sm:$0xff] }
 0x198   : > { %11181 = vst [vmem:[#allocation32_spill] sm:$0xff] %v7747_v25  ;;  %11183 = vst [vmem:[#allocation48_spill] sm:$0xff] %v7751_v13  ;;  %v1444_v62 = vmul.f32 1.442695, %v1334_v61  ;;  %v11185_v56 = vpack.c.bf16 %v11184_v5, %v11184_v5  ;;  %v7765_v49 = vadd.f32 %v11187_v11, %v6937_v23  ;;  %v7769_v9 = vadd.f32 %v11189_v19, %v6937_v23  ;;  %v6311_v31 = vld [vmem:[%s6568_s21 + $0x38] sm:$0x77] }
 0x199   : > { %5889 = vlog2.f32 %v1586_v0  ;;  %v1336_v4 = vmin.f32 %v7757_v55, 20.0  ;;  %v2380_v27 = vpack.c.bf16 %v6311_v31, %v6311_v31  ;;  %v11191_v61 = vld [vmem:[#allocation37_spill] sm:$0xff]  ;;  %v1574_v5 = vand.u32 2147483647, %v7688_v6  ;;  %s10703_s21 = scalar_lea.vmem [#allocation5], %s5701_s22 }
 0x19a   : > { %v2452_v41 = vand.u32 %v11186_v22, %v11185_v56  ;;  %11188 = vst [vmem:[#allocation63_spill] sm:$0xff] %v7765_v49  ;;  %11190 = vst [vmem:[#allocation17_spill] sm:$0xff] %v7769_v9  ;;  %v7775_v37 = vadd.f32 %v11191_v61, %v6966_v46  ;;  %v1303_v56 = vmin.f32 %v7747_v25, 20.0  ;;  %5891 = vpow2.f32 %v1444_v62  ;;  %v11194_v25 = vld [vmem:[#allocation28_spill] sm:$0xff]  ;;  %s5329_s20 = sshll.u32 %s10703_s21, 4  ;;  %s10727_s20 = int_to_ptr.vmem [resolvable:$true] %s5329_s20 }
 0x19b   : > { %v7780_v11 = vmul.f32 100.0, %v7765_v49  ;;  %v1378_v0 = vmul.f32 1.442695, %v1301_v34  ;;  %v1448_v59 = vmul.f32 1.442695, %v1336_v4  ;;  %v7785_v50 = vmul.f32 100.0, %v7769_v9  ;;  %p6352_p5 = scmp.lt.s32.totalorder %s10727_s20, %s6350_s23 }
 0x19c   : > { %5536 = vmatprep.subr.bf16.mxu1 %v2452_v41  ;;  %v7782_v19 = vpop.eup %5879  ;;  %v2446_v31 = vand.u32 %v11186_v22, %v2380_v27  ;;  %vm7788_vm3 = vcmp.lt.f32.partialorder %v2006_v54, 0.0004427343  ;;  %v7795_v40 = vadd.f32 %v11194_v25, %v6935_v20  ;;  %v7799_v4 = vmul.f32 100.0, %v7775_v37  ;;  %v11196_v54 = vld [vmem:[#allocation29_spill] sm:$0xff]  ;;  %s6345_s19 = scalar_lea.vmem %s10727_s20, 2176 }
 0x19d   : > { %5537 = vmatpush3.bf16.msra.mxu1 %v2452_v41  ;;  %v5882_v61 = vpop.eup %5881  ;;  %v1721_v62 = vadd.f32 1.0, %v7782_v19  ;;  %v1335_v34 = vmin.f32 %v7780_v11, 20.0  ;;  %v7802_v22 = vmul.f32 %v7675_v53, %v2022_v2  ;;  %v7805_v41 = vmul.f32 %v7688_v6, %v1572_v33  ;;  %v11200_v2 = vld [vmem:[#allocation38_spill] sm:$0xff]  ;;  %v6312_v6 = vld [vmem:[%s10775_s4 + $0x8] sm:$0xff]   ;;  %p6346_p6 = scmp.ne.s32.totalorder %s10727_s20, %s6345_s19  ;;  %p6353_p10 = scmp.lt.s32.totalorder %s6351_s24, %s6345_s19 }
 0x19e   : > { %11195 = vst [vmem:[#allocation18_spill] sm:$0xff] %v7795_v40  ;;  %v5884_v15 = vpop.eup %5883  ;;  %v7809_v27 = vadd.f32 %v11196_v54, %v6935_v20  ;;  %5893 = vpow2.f32 %v1448_v59  ;;  %2826 = vmatpush1.bf16.msra.mxu0 %v2446_v31  ;;  %vm7813_vm4 = vcmp.lt.f32.partialorder %v1574_v5, 0.0004427343  ;;  %v1382_v8 = vmul.f32 1.442695, %v1303_v56 }
 0x19f   : > { %v7811_v25 = vpop.eup %5885  ;;  %5895 = vlog2.f32 %v1721_v62  ;;  %v7819_v17 = vadd.f32 %v11200_v2, %v6966_v46  ;;  %v1589_v33 = vmul.f32 -0.5, %v7720_v7  ;;  %v1446_v31 = vmul.f32 1.442695, %v1335_v34  ;;  %v7841_v34 = vpop.f32.mrb[32].mxu0  ;;  %p6347_p12 = pnand %p6346_p6, %p11798_p11  ;;  %p6354_p2 = por %p6353_p10, %p6352_p5 }
 0x1a0   : > { %11197 = vst [vmem:[#allocation10_spill] sm:$0xff] %v7809_v27  ;;  %5539 = vmatmul.mubr.msk.bf16.vlgmr.msra.gmra.mrb[64].mxu1 %vm379_vm1, %v6312_v6  ;;  %v5888_v59 = vpop.eup %5887  ;;  %v1739_v5 = vadd.f32 1.0, %v7811_v25  ;;  %v1337_v54 = vmin.f32 %v7785_v50, 20.0  ;;  %v11201_v56 = vmov 0   ;;  %5897 = vpow2.f32 %v1378_v0  ;;  %11205 = vst [vmem:[#allocation34_spill] sm:$0xff] %v7841_v34  ;;  %v7850_v18 = vpop.f32.mrb[33].mxu0 }
 0x1a1   : > { %3031 = vmatprep.mubr.bf16.mxu1 %v11201_v56  ;;  %v7830_v62 = vmul.f32 100.0, %v7795_v40  ;;  %v1351_v2 = vmin.f32 %v7799_v4, 20.0  ;;  %5473 = vmatmul.mubr.msk.bf16.vlgmr.msra.gmra.mrb[60].mxu0 %vm379_vm1, %v6313_v30  ;;  %v7839_v52 = vadd.f32 %v11203_v10, %v6966_v46  ;;  %v7843_v12 = vmul.f32 0.6931472, %v5882_v61  ;;  %11207 = vst [vmem:[#allocation28_spill] sm:$0xff] %v7850_v18  ;;  %p6348_p13 = pneg %p6347_p12 }
 0x1a2   : > { %v1724_v0 = vmul.f32 -0.5, %v7782_v19  ;;  %5899 = vlog2.f32 %v1739_v5  ;;  %v7847_v40 = vmul.f32 100.0, %v7809_v27  ;;  %2867 = vmatprep.mubr.bf16.mxu0 %v11201_v56  ;;  %v11208_v30 = vand.u32 2147483647, %v7675_v53  ;;  %v7861_v5 = vpop.f32.mrb[34].mxu0 }
 0x1a3   : > { %11202 = vst [vmem:[#allocation9_spill] sm:$0xff] %v7830_v62  ;;  %11204 = vst [vmem:[#allocation33_spill] sm:$0xff] %v7839_v52  ;;  %v1570_v10 = vmul.f32 0.6931472, %v5888_v59  ;;  %5901 = vpow2.f32 %v1382_v8  ;;  %v1478_v61 = vmul.f32 1.442695, %v1351_v2  ;;  %v5890_v27 = vpop.eup %5889  ;;  %v2008_v2 = vsel %vm7788_vm3, %v7754_v44, %v7843_v12  ;;  %p6355_p4 = pnand %p6354_p2, %p6348_p13 }
 0x1a4   : > { %11206 = vst [vmem:[#allocation37_spill] sm:$0xff] %v7847_v40  ;;  %vm7854_vm5 = vcmp.lt.f32.partialorder %v11208_v30, 0.0004427343  ;;  %v7859_v34 = vmul.f32 100.0, %v7819_v17  ;;  %11211 = vst [vmem:[#allocation29_spill] sm:$0xff] %v7861_v5  ;;  %v1590_v38 = vadd.f32 1.0, %v1589_v33  ;;  %5903 = vpow2.f32 %v1446_v31  ;;  %v7864_v9 = vpop.eup %5891 }
 0x1a5   : > { %v1592_v48 = vand.u32 2147483647, %v7720_v7  ;;  %v1450_v18 = vmul.f32 1.442695, %v1337_v54  ;;  %v1742_v53 = vmul.f32 -0.5, %v7811_v25  ;;  %5905 = vpow2.f32 %v1478_v61 }
 0x1a6   : > { %v1353_v59 = vmin.f32 %v7859_v34, 20.0  ;;  %v7869_v8 = vmul.f32 100.0, %v7839_v52  ;;  %v2020_v33 = vmul.f32 0.6931472, %v5884_v15  ;;  %vm2184_vm6 = vcmp.gt.f32.partialorder %v7565_v45, 20.0 }
 0x1a7   : > { %v1725_v31 = vadd.f32 1.0, %v1724_v0  ;;  %vm2201_vm7 = vcmp.gt.f32.partialorder %v7669_v60, 20.0  ;;  %v1874_v54 = vadd.f32 1.0, %v7864_v9  ;;  %v1576_v30 = vsel %vm7813_vm4, %v7805_v41, %v1570_v10 }
 0x1a8   : > { %v1588_v61 = vmul.f32 0.6931472, %v5890_v27  ;;  %v1727_v5 = vand.u32 2147483647, %v7782_v19  ;;  %v1482_v52 = vmul.f32 1.442695, %v1353_v59  ;;  %v7882_v49 = vpop.eup %5893  ;;  %v1591_v12 = vmul.f32 %v7720_v7, %v1590_v38 }
 0x1a9   : > { %vm7885_vm8 = vcmp.lt.f32.partialorder %v1592_v48, 0.0004427343  ;;  %5907 = vpow2.f32 %v1450_v18  ;;  %v7891_v44 = vadd.f32 %v11214_v42, %v6966_v46  ;;  %v5896_v0 = vpop.eup %5895  ;;  %vm2186_vm9 = vcmp.gt.f32.partialorder %v7590_v29, 20.0  ;;  %5474 = vmatmul.mubr.msk.bf16.gmra.mrb[64].mxu0 %vm379_vm1, %v6312_v6  ;;  %v7907_v6 = vpop.f32.mrb[35].mxu0 }
 0x1aa   : > { %v1743_v13 = vadd.f32 1.0, %v1742_v53  ;;  %vm2203_vm10 = vcmp.gt.f32.partialorder %v7697_v51, 20.0  ;;  %v1892_v41 = vadd.f32 1.0, %v7882_v49  ;;  %5909 = vpow2.f32 %v1482_v52  ;;  %3084 = vmatprep.mubr.bf16.mxu0 %v11201_v56  ;;  %v7901_v27 = vpop.eup %5897 }
 0x1ab   : > { %v1352_v38 = vmin.f32 %v7869_v8, 20.0  ;;  %v1723_v48 = vmul.f32 0.6931472, %v5896_v0  ;;  %v1726_v18 = vmul.f32 %v7782_v19, %v1725_v31  ;;  %v1745_v7 = vand.u32 2147483647, %v7811_v25 }
 0x1ac   : > { %5911 = vlog2.f32 %v1874_v54  ;;  %vm2232_vm11 = vcmp.gt.f32.partialorder %v7552_v28, 20.0  ;;  %v2116_v10 = vmul.f32 0.01, %v1576_v30  ;;  %v1594_v52 = vsel %vm7885_vm8, %v1591_v12, %v1588_v61  ;;  %v5900_v59 = vpop.eup %5899 }
 0x1ad   : > { %vm1728_vm12 = vcmp.lt.f32.partialorder %v1727_v5, 0.0004427343  ;;  %v1318_v53 = vmin.f32 %v7830_v62, 20.0  ;;  %v2026_v19 = vsel %vm7854_vm5, %v7802_v22, %v2020_v33  ;;  %vm2234_vm1 = vcmp.gt.f32.partialorder %v7559_v1, 20.0  ;;  %v7916_v30 = vpop.eup %5901  ;;  %v11215_v22 = vld [vmem:[#allocation50_spill] sm:$0xff] }
 0x1ae   : > { %v1729_v31 = vsel %vm1728_vm12, %v1726_v18, %v1723_v48  ;;  %5913 = vlog2.f32 %v1892_v41  ;;  %v7914_v54 = vmul.f32 100.0, %v7891_v44  ;;  %v1741_v5 = vmul.f32 0.6931472, %v5900_v59  ;;  %v7919_v42 = vpop.eup %5903 }
 0x1af   : > { %v2133_v61 = vmul.f32 0.01, %v1729_v31  ;;  %v1744_v12 = vmul.f32 %v7811_v25, %v1743_v13  ;;  %v1480_v15 = vmul.f32 1.442695, %v1352_v38  ;;  %v2118_v0 = vmul.f32 0.01, %v1594_v52  ;;  %v7923_v48 = vpop.eup %5905 }
 0x1b0   : > { %vm1746_vm13 = vcmp.lt.f32.partialorder %v1745_v7, 0.0004427343  ;;  %v1320_v35 = vmin.f32 %v7847_v40, 20.0  ;;  %v1505_v33 = vadd.f32 1.0, %v11215_v22  ;;  %v2164_v41 = vmul.f32 0.01, %v2008_v2 }
 0x1b1   : > { %v7928_v18 = vsel %vm2184_vm6, %v7521_v24, %v2116_v10  ;;  %v7933_v25 = vsel %vm2201_vm7, %v7638_v63, %v2133_v61  ;;  %v1747_v13 = vsel %vm1746_vm13, %v1744_v12, %v1741_v5  ;;  %v2166_v38 = vmul.f32 0.01, %v2026_v19  ;;  %v11270_v40 = vld [vmem:[#allocation44_spill] sm:$0xff] }
 0x1b2   : > { %11216 = vst [vmem:[#allocation38_spill] sm:$0xff] %v7928_v18  ;;  %11217 = vst [vmem:[#allocation41_spill] sm:$0xff] %v7933_v25  ;;  %v2135_v52 = vmul.f32 0.01, %v1747_v13  ;;  %v1877_v59 = vmul.f32 -0.5, %v7864_v9  ;;  %v1883_v2 = vadd.f32 1.0, %v7919_v42  ;;  %5915 = vpow2.f32 %v1480_v15 }
 0x1b3   : > { %v2027_v31 = vadd.f32 1.0, %v7923_v48  ;;  %v1354_v24 = vmin.f32 %v7914_v54, 20.0  ;;  %v7941_v45 = vpop.eup %5907  ;;  %v7946_v63 = vsel %vm2186_vm9, %v7573_v36, %v2118_v0  ;;  %v1895_v10 = vmul.f32 -0.5, %v7882_v49  ;;  %v11230_v18 = vld [vmem:[#allocation27_spill] sm:$0xff] }
 0x1b4   : > { %11218 = vst [vmem:[#allocation42_spill] sm:$0xff] %v7946_v63  ;;  %v7951_v60 = vsel %vm2203_vm10, %v7673_v21, %v2135_v52  ;;  %5917 = vlog2.f32 %v1505_v33  ;;  %v7954_v19 = vpop.eup %5909  ;;  %v1412_v5 = vmul.f32 1.442695, %v1318_v53  ;;  %v1880_v12 = vand.u32 2147483647, %v7864_v9 }
 0x1b5   : > { %11219 = vst [vmem:[#allocation50_spill] sm:$0xff] %v7951_v60  ;;  %5919 = vlog2.f32 %v2027_v31  ;;  %v7962_v36 = vsel %vm2232_vm11, %v7495_v43, %v2164_v41  ;;  %v1878_v21 = vadd.f32 1.0, %v1877_v59  ;;  %v1886_v51 = vmul.f32 -0.5, %v7919_v42 }
 0x1b6   : > { %v5912_v29 = vpop.eup %5911  ;;  %v2045_v15 = vadd.f32 1.0, %v7954_v19  ;;  %v7969_v0 = vsel %vm2234_vm1, %v7507_v26, %v2166_v38  ;;  %v1898_v53 = vand.u32 2147483647, %v7882_v49  ;;  %5921 = vlog2.f32 %v1883_v2 }
 0x1b7   : > { %v1484_v33 = vmul.f32 1.442695, %v1354_v24  ;;  %v7972_v52 = vmul.f32 1.442695, %v1320_v35  ;;  %v1896_v28 = vadd.f32 1.0, %v1895_v10  ;;  %v2030_v43 = vmul.f32 -0.5, %v7923_v48 }
 0x1b8   : > { %v5914_v13 = vpop.eup %5913  ;;  %5923 = vlog2.f32 %v2045_v15  ;;  %v1876_v41 = vmul.f32 0.6931472, %v5912_v29  ;;  %vm7975_vm14 = vcmp.lt.f32.partialorder %v1880_v12, 0.0004427343  ;;  %v1901_v26 = vadd.f32 1.0, %v7941_v45  ;;  %v11224_v29 = vld [vmem:[#allocation71_spill] sm:$0xff] }
 0x1b9   : > { %5925 = vpow2.f32 %v1412_v5  ;;  %v1879_v1 = vmul.f32 %v7864_v9, %v1878_v21  ;;  %v1887_v38 = vadd.f32 1.0, %v1886_v51  ;;  %v1904_v2 = vmul.f32 -0.5, %v7941_v45 }
 0x1ba   : > { %v1508_v35 = vmul.f32 -0.5, %v11215_v22  ;;  %vm2218_vm15 = vcmp.gt.f32.partialorder %v7724_v58, 20.0  ;;  %v1894_v31 = vmul.f32 0.6931472, %v5914_v13  ;;  %vm7984_vm0 = vcmp.lt.f32.partialorder %v1898_v53, 0.0004427343 }
 0x1bb   : > { %v2048_v10 = vmul.f32 -0.5, %v7954_v19  ;;  %5927 = vpow2.f32 %v1484_v33  ;;  %v1897_v5 = vmul.f32 %v7882_v49, %v1896_v28  ;;  %v1889_v12 = vand.u32 2147483647, %v7919_v42 }
 0x1bc   : > { %v2031_v9 = vadd.f32 1.0, %v2030_v43  ;;  %vm2235_vm2 = vcmp.gt.f32.partialorder %v7799_v4, 20.0  ;;  %v1658_v21 = vadd.f32 1.0, %v11224_v29  ;;  %v7993_v51 = vpop.eup %5915  ;;  %v1882_v15 = vsel %vm7975_vm14, %v1879_v1, %v1876_v41  ;;  %v11225_v1 = vld [vmem:[#allocation55_spill] sm:$0xff] }
 0x1bd   : > { %5929 = vlog2.f32 %v1901_v26  ;;  %v2033_v53 = vand.u32 2147483647, %v7923_v48  ;;  %v2051_v13 = vand.u32 2147483647, %v7954_v19  ;;  %vm2220_vm3 = vcmp.gt.f32.partialorder %v7757_v55, 20.0 }
 0x1be   : > { %v5918_v33 = vpop.eup %5917  ;;  %v8001_v49 = vmul.f32 %v7919_v42, %v1887_v38  ;;  %v8003_v28 = vadd.f32 1.0, %v1904_v2  ;;  %5931 = vlog2.f32 %v1658_v21  ;;  %v1900_v41 = vsel %vm7984_vm0, %v1897_v5, %v1894_v31 }
 0x1bf   : > { %v5920_v61 = vpop.eup %5919  ;;  %v2049_v59 = vadd.f32 1.0, %v2048_v10  ;;  %vm2237_vm4 = vcmp.gt.f32.partialorder %v7859_v34, 20.0  ;;  %v1509_v26 = vadd.f32 1.0, %v1508_v35  ;;  %v1523_v7 = vadd.f32 1.0, %v11225_v1 }
 0x1c0   : > { %v2150_v63 = vmul.f32 0.01, %v1882_v15  ;;  %v2029_v60 = vmul.f32 0.6931472, %v5920_v61  ;;  %v2032_v42 = vmul.f32 %v7923_v48, %v2031_v9  ;;  %v1661_v38 = vmul.f32 -0.5, %v11224_v29  ;;  %v5922_v2 = vpop.eup %5921 }
 0x1c1   : > { %vm2034_vm5 = vcmp.lt.f32.partialorder %v2033_v53, 0.0004427343  ;;  %vm8012_vm6 = vcmp.lt.f32.partialorder %v2051_v13, 0.0004427343  ;;  %v1511_v31 = vand.u32 2147483647, %v11215_v22  ;;  %5933 = vlog2.f32 %v1523_v7 }
 0x1c2   : > { %v5924_v24 = vpop.eup %5923  ;;  %v2152_v10 = vmul.f32 0.01, %v1900_v41  ;;  %v2035_v35 = vsel %vm2034_vm5, %v2032_v42, %v2029_v60  ;;  %v2036_v5 = vadd.f32 1.0, %v7993_v51  ;;  %v1507_v15 = vmul.f32 0.6931472, %v5918_v33  ;;  %v11232_v42 = vld [vmem:[#allocation45_spill] sm:$0xff] }
 0x1c3   : > { %v8018_v61 = vpop.eup %5925  ;;  %vm8020_vm7 = vcmp.lt.f32.partialorder %v1889_v12, 0.0004427343  ;;  %v2167_v9 = vmul.f32 0.01, %v2035_v35  ;;  %v2047_v53 = vmul.f32 0.6931472, %v5924_v24  ;;  %v2050_v13 = vmul.f32 %v7954_v19, %v2049_v59 }
 0x1c4   : > { %v1664_v43 = vand.u32 2147483647, %v11224_v29  ;;  %vm2177_vm8 = vcmp.gt.f32.partialorder %v11230_v18, 20.0  ;;  %v8030_v7 = vsel %vm2218_vm15, %v7705_v14, %v2150_v63  ;;  %v2039_v60 = vmul.f32 -0.5, %v7993_v51  ;;  %v11242_v14 = vld [vmem:[#allocation59_spill] sm:$0xff] }
 0x1c5   : > { %11231 = vst [vmem:[#allocation71_spill] sm:$0xff] %v8030_v7  ;;  %v1510_v12 = vmul.f32 %v11215_v22, %v1509_v26  ;;  %v1662_v33 = vadd.f32 1.0, %v1661_v38  ;;  %v8034_v41 = vpop.eup %5927  ;;  %vm2194_vm9 = vcmp.gt.f32.partialorder %v11232_v42, 20.0  ;;  %v1885_v24 = vmul.f32 0.6931472, %v5922_v2  ;;  %v11239_v2 = vld [vmem:[#allocation72_spill] sm:$0xff] }
 0x1c6   : > { %v8040_v19 = vsel %vm2235_vm2, %v7775_v37, %v2167_v9  ;;  %v2053_v58 = vsel %vm8012_vm6, %v2050_v13, %v2047_v53  ;;  %vm8044_vm10 = vcmp.lt.f32.partialorder %v1511_v31, 0.0004427343  ;;  %v1526_v26 = vmul.f32 -0.5, %v11225_v1  ;;  %v11300_v7 = vld [vmem:[#allocation15_spill] sm:$0xff] }
 0x1c7   : > { %11233 = vst [vmem:[#allocation55_spill] sm:$0xff] %v8040_v19  ;;  %v2169_v63 = vmul.f32 0.01, %v2053_v58  ;;  %v1513_v59 = vsel %vm8044_vm10, %v1510_v12, %v1507_v15  ;;  %v5930_v38 = vpop.eup %5929  ;;  %v8056_v37 = vsel %vm2220_vm3, %v7729_v39, %v2152_v10  ;;  %5935 = vlog2.f32 %v2036_v5  ;;  %v11241_v39 = vld [vmem:[#allocation57_spill] sm:$0xff] }
 0x1c8   : > { %11236 = vst [vmem:[#allocation27_spill] sm:$0xff] %v8056_v37  ;;  %vm8058_vm11 = vcmp.lt.f32.partialorder %v1664_v43, 0.0004427343  ;;  %v1676_v21 = vadd.f32 1.0, %v11239_v2  ;;  %v5932_v31 = vpop.eup %5931  ;;  %v2054_v15 = vadd.f32 1.0, %v8034_v41  ;;  %v1663_v9 = vmul.f32 %v11224_v29, %v1662_v33  ;;  %v11251_v43 = vld [vmem:[#allocation49_spill] sm:$0xff] }
 0x1c9   : > { %v8066_v35 = vsel %vm2237_vm4, %v7819_v17, %v2169_v63  ;;  %v8072_v55 = vadd.f32 %v11241_v39, %v6908_v3  ;;  %v1660_v10 = vmul.f32 0.6931472, %v5932_v31  ;;  %v2109_v5 = vmul.f32 0.01, %v1513_v59  ;;  %v11243_v39 = vld [vmem:[#allocation23_spill] sm:$0xff] }
 0x1ca   : > { %11240 = vst [vmem:[#allocation45_spill] sm:$0xff] %v8066_v35  ;;  %5937 = vlog2.f32 %v1676_v21  ;;  %v1527_v53 = vadd.f32 1.0, %v1526_v26  ;;  %v1529_v13 = vand.u32 2147483647, %v11225_v1  ;;  %v1679_v17 = vmul.f32 -0.5, %v11239_v2 }
 0x1cb   : > { %v8079_v34 = vmul.f32 100.0, %v8072_v55  ;;  %v5934_v12 = vpop.eup %5933  ;;  %v2040_v29 = vadd.f32 1.0, %v2039_v60  ;;  %v2042_v33 = vand.u32 2147483647, %v7993_v51  ;;  %v1666_v58 = vsel %vm8058_vm11, %v1663_v9, %v1660_v10  ;;  %v11244_v10 = vld [vmem:[#allocation30_spill] sm:$0xff] }
 0x1cc   : > { %v8086_v63 = vadd.f32 %v11242_v14, %v6908_v3  ;;  %v1891_v59 = vsel %vm8020_vm7, %v8001_v49, %v1885_v24  ;;  %v8091_v26 = vmul.f32 0.6931472, %v5930_v38  ;;  %v2126_v21 = vmul.f32 0.01, %v1666_v58  ;;  %v11245_v14 = vld [vmem:[#allocation43_spill] sm:$0xff]  ;;  %v11250_v58 = vld [vmem:[#allocation64_spill] sm:$0xff] }
 0x1cd   : > { %v1525_v31 = vmul.f32 0.6931472, %v5934_v12  ;;  %5939 = vlog2.f32 %v2054_v15  ;;  %v2245_v60 = vsel %vm2177_vm8, %v11243_v39, %v2109_v5  ;;  %v1304_v4 = vmin.f32 %v8079_v34, 20.0  ;;  %v11248_v5 = vld [vmem:[#allocation60_spill] sm:$0xff] }
 0x1ce   : > { %v8098_v9 = vmul.f32 100.0, %v8086_v63  ;;  %vm2179_vm12 = vcmp.gt.f32.partialorder %v11244_v10, 20.0  ;;  %v2262_v49 = vsel %vm2194_vm9, %v11245_v14, %v2126_v21  ;;  %v1528_v48 = vmul.f32 %v11225_v1, %v1527_v53 }
 0x1cf   : > { %vm8105_vm1 = vcmp.lt.f32.partialorder %v1529_v13, 0.0004427343  ;;  %v1680_v38 = vadd.f32 1.0, %v1679_v17  ;;  %v2325_v18 = vpack.c.bf16 %v2262_v49, %v2245_v60  ;;  %v1384_v15 = vmul.f32 1.442695, %v1304_v4  ;;  %v11252_v13 = vld [vmem:[#allocation62_spill] sm:$0xff] }
 0x1d0   : > { %v8111_v12 = vadd.f32 %v11248_v5, %v6908_v3  ;;  %v8115_v39 = vadd.f32 %v11250_v58, %v6935_v20  ;;  %vm2196_vm13 = vcmp.gt.f32.partialorder %v11251_v43, 20.0  ;;  %v1906_v1 = vmul.f32 %v7941_v45, %v8003_v28  ;;  %v11260_v5 = vld [vmem:[#allocation65_spill] sm:$0xff] }
 0x1d1   : > { %v1531_v42 = vsel %vm8105_vm1, %v1528_v48, %v1525_v31  ;;  %v1306_v53 = vmin.f32 %v8098_v9, 20.0  ;;  %v8125_v17 = vadd.f32 %v11252_v13, %v6908_v3  ;;  %v5936_v21 = vpop.eup %5935  ;;  %v8127_v60 = vmul.f32 0.01, %v1891_v59  ;;  %2999 = vmatprep.subr.bf16.mxu1 %v2325_v18  ;;  %v11257_v48 = vld [vmem:[#allocation36_spill] sm:$0xff]  ;;  %v11258_v59 = vld [vmem:[#allocation35_spill] sm:$0xff] }
 0x1d2   : > { %11249 = vst [vmem:[#allocation72_spill] sm:$0xff] %v8111_v12  ;;  %v11254_v4 = vand.u32 2147483647, %v7941_v45  ;;  %v1682_v28 = vand.u32 2147483647, %v11239_v2  ;;  %5941 = vpow2.f32 %v1384_v15  ;;  %v8140_v49 = vmul.f32 %v7993_v51, %v2040_v29 }
 0x1d3   : > { %11253 = vst [vmem:[#allocation57_spill] sm:$0xff] %v8125_v17  ;;  %v11259_v24 = vpack.c.bf16 %v11257_v48, %v11258_v59  ;;  %v1388_v45 = vmul.f32 1.442695, %v1306_v53  ;;  %v8147_v58 = vadd.f32 %v11260_v5, %v6935_v20  ;;  %vm8149_vm15 = vcmp.lt.f32.partialorder %v2042_v33, 0.0004427343 }
 0x1d4   : > { %vm8131_vm14 = vcmp.lt.f32.partialorder %v11254_v4, 0.0004427343  ;;  %v5938_v18 = vpop.eup %5937  ;;  %v1681_v15 = vmul.f32 %v11239_v2, %v1680_v38  ;;  %v8155_v51 = vmul.f32 100.0, %v8111_v12  ;;  %v8158_v29 = vmul.f32 100.0, %v8115_v39  ;;  %v11265_v38 = vld [vmem:[#allocation19_spill] sm:$0xff] }
 0x1d5   : > { %v1909_v31 = vsel %vm8131_vm14, %v1906_v1, %v8091_v26  ;;  %3000 = vmatpush1.bf16.msra.mxu1 %v11259_v24  ;;  %v2111_v26 = vmul.f32 0.01, %v1531_v42  ;;  %v1678_v1 = vmul.f32 0.6931472, %v5938_v18  ;;  %5943 = vpow2.f32 %v1388_v45  ;;  %v11267_v18 = vld [vmem:[#allocation25_spill] sm:$0xff] }
 0x1d6   : > { %11263 = vst [vmem:[#allocation59_spill] sm:$0xff] %v8155_v51  ;;  %v8161_v53 = vmul.f32 100.0, %v8125_v17  ;;  %v8164_v4 = vmul.f32 100.0, %v8147_v58  ;;  %v2057_v33 = vmul.f32 -0.5, %v8034_v41  ;;  %vm1683_vm0 = vcmp.lt.f32.partialorder %v1682_v28, 0.0004427343 }
 0x1d7   : > { %v1321_v2 = vmin.f32 %v8158_v29, 20.0  ;;  %v8170_v42 = vadd.f32 %v11265_v38, %v6935_v20  ;;  %v2038_v14 = vmul.f32 0.6931472, %v5936_v21  ;;  %v2060_v48 = vand.u32 2147483647, %v8034_v41  ;;  %v5940_v45 = vpop.eup %5939  ;;  %v11268_v38 = vld [vmem:[#allocation67_spill] sm:$0xff] }
 0x1d8   : > { %11264 = vst [vmem:[#allocation23_spill] sm:$0xff] %v8161_v53  ;;  %v1684_v59 = vsel %vm1683_vm0, %v1681_v15, %v1678_v1  ;;  %v1323_v24 = vmin.f32 %v8164_v4, 20.0  ;;  %v2247_v22 = vsel %vm2179_vm12, %v11267_v18, %v2111_v26  ;;  %v1305_v28 = vmin.f32 %v8155_v51, 20.0  ;;  %v11269_v15 = vld [vmem:[#allocation69_spill] sm:$0xff]  ;;  %v11297_v51 = vld [vmem:[#allocation52_spill] sm:$0xff] }
 0x1d9   : > { %11266 = vst [vmem:[#allocation30_spill] sm:$0xff] %v8170_v42  ;;  %v2128_v5 = vmul.f32 0.01, %v1684_v59  ;;  %v1418_v17 = vmul.f32 1.442695, %v1321_v2  ;;  %v1307_v12 = vmin.f32 %v8161_v53, 20.0  ;;  %v8181_v21 = vadd.f32 %v11268_v38, %v6937_v23 }
 0x1da   : > { %v1422_v25 = vmul.f32 1.442695, %v1323_v24  ;;  %v8185_v1 = vadd.f32 %v11269_v15, %v6937_v23  ;;  %v8191_v10 = vmul.f32 100.0, %v8170_v42  ;;  %v2342_v26 = vpack.c.bf16 %v7595_v16, %v7529_v57 }
 0x1db   : > { %v2264_v59 = vsel %vm2196_vm13, %v11270_v40, %v2128_v5  ;;  %5945 = vpow2.f32 %v1418_v17  ;;  %v2058_v2 = vadd.f32 1.0, %v2057_v33  ;;  %v8196_v18 = vmul.f32 100.0, %v8181_v21  ;;  %v11273_v17 = vld [vmem:[#allocation39_spill] sm:$0xff]  ;;  %v11275_v5 = vld [vmem:[#allocation66_spill] sm:$0xff] }
 0x1dc   : > { %11271 = vst [vmem:[#allocation43_spill] sm:$0xff] %v8191_v10  ;;  %v2327_v24 = vpack.c.bf16 %v2264_v59, %v2247_v22  ;;  %5947 = vpow2.f32 %v1422_v25  ;;  %v8198_v38 = vpop.eup %5941  ;;  %v2153_v15 = vmul.f32 0.01, %v1909_v31  ;;  %v1386_v43 = vmul.f32 1.442695, %v1305_v28 }
 0x1dd   : > { %5949 = vpow2.f32 %v7972_v52  ;;  %v8202_v40 = vmul.f32 100.0, %v8185_v1  ;;  %vm2219_vm2 = vcmp.gt.f32.partialorder %v7780_v11, 20.0  ;;  %v2044_v16 = vsel %vm8149_vm15, %v8140_v49, %v2038_v14  ;;  %v11272_v52 = vld [vmem:[#allocation40_spill] sm:$0xff] }
 0x1de   : > { %v2056_v57 = vmul.f32 0.6931472, %v5940_v45  ;;  %3052 = vmatprep.subr.bf16.mxu0 %v2327_v24  ;;  %v1604_v25 = vadd.f32 1.0, %v8198_v38  ;;  %v1390_v22 = vmul.f32 1.442695, %v1307_v12  ;;  %vm2221_vm3 = vcmp.gt.f32.partialorder %v7785_v50, 20.0 }
 0x1df   : > { %vm2236_vm4 = vcmp.gt.f32.partialorder %v7869_v8, 20.0  ;;  %v11274_v31 = vpack.c.bf16 %v11272_v52, %v11273_v17  ;;  %v1322_v33 = vmin.f32 %v8191_v10, 20.0  ;;  %v8217_v28 = vadd.f32 %v11275_v5, %v6935_v20  ;;  %v8221_v14 = vpop.eup %5943 }
 0x1e0   : > { %v1338_v49 = vmin.f32 %v8196_v18, 20.0  ;;  %v1340_v13 = vmin.f32 %v8202_v40, 20.0  ;;  %v2059_v12 = vmul.f32 %v8034_v41, %v2058_v2  ;;  %vm8224_vm5 = vcmp.lt.f32.partialorder %v2060_v48, 0.0004427343 }
 0x1e1   : > { %3053 = vmatpush1.bf16.msra.mxu0 %v11274_v31  ;;  %11276 = vst [vmem:[#allocation60_spill] sm:$0xff] %v8217_v28  ;;  %5951 = vlog2.f32 %v1604_v25  ;;  %vm2944_vm6 = vcmask 1045504   ;;  %v1622_v59 = vadd.f32 1.0, %v8221_v14  ;;  %vm2945_vm7 = vcmask 1046528  }
 0x1e2   : > { %5953 = vpow2.f32 %v1386_v43  ;;  %v1452_v24 = vmul.f32 1.442695, %v1338_v49  ;;  %v2168_v52 = vmul.f32 0.01, %v2044_v16  ;;  %v2062_v17 = vsel %vm8224_vm5, %v2059_v12, %v2056_v57  ;;  %v11281_v16 = vld [vmem:[#allocation70_spill] sm:$0xff] }
 0x1e3   : > { %5955 = vpow2.f32 %v1390_v22  ;;  %v1456_v31 = vmul.f32 1.442695, %v1340_v13  ;;  %v1420_v5 = vmul.f32 1.442695, %v1322_v33  ;;  %v8232_v41 = vmul.f32 100.0, %v8217_v28  ;;  %v11282_v13 = vld [vmem:[#allocation20_spill] sm:$0xff] }
 0x1e4   : > { %5957 = vlog2.f32 %v1622_v59  ;;  %v11280_v48 = vmov 65535   ;;  %v2344_v43 = vpack.c.bf16 %v7734_v32, %v7546_v47  ;;  %v8241_v49 = vadd.f32 %v11281_v16, %v6937_v23 }
 0x1e5   : > { %11279 = vst [vmem:[#allocation64_spill] sm:$0xff] %v8232_v41  ;;  %v2946_v2 = vsel %vm2944_vm6, 4294967295, %v11280_v48  ;;  %5959 = vpow2.f32 %v1452_v24  ;;  %v8243_v57 = vpop.eup %5945  ;;  %v1607_v22 = vmul.f32 -0.5, %v8198_v38  ;;  %v8249_v12 = vadd.f32 %v11282_v13, %v6937_v23  ;;  %v11286_v13 = vld [vmem:[#allocation17_spill] sm:$0xff] }
 0x1e6   : > { %v8235_v25 = vsel %vm2945_vm7, %v2946_v2, 0  ;;  %5961 = vpow2.f32 %v1456_v31  ;;  %v8251_v45 = vpop.eup %5947  ;;  %v1610_v59 = vand.u32 2147483647, %v8198_v38  ;;  %v1625_v47 = vmul.f32 -0.5, %v8221_v14  ;;  %v11284_v31 = vld [vmem:[#allocation63_spill] sm:$0xff] }
 0x1e7   : > { %v2952_v33 = vand.u32 %v8235_v25, %v2342_v26  ;;  %11283 = vst [vmem:[#allocation49_spill] sm:$0xff] %v8249_v12  ;;  %v1757_v32 = vadd.f32 1.0, %v8243_v57  ;;  %v2958_v24 = vand.u32 %v8235_v25, %v2344_v43  ;;  %v8257_v48 = vpop.eup %5949  ;;  %v8263_v26 = vsel %vm2219_vm2, %v11284_v31, %v8127_v60  ;;  %v11288_v43 = vld [vmem:[#allocation33_spill] sm:$0xff] }
 0x1e8   : > { %11285 = vst [vmem:[#allocation62_spill] sm:$0xff] %v8263_v26  ;;  %v1775_v2 = vadd.f32 1.0, %v8251_v45  ;;  %5963 = vpow2.f32 %v1420_v5  ;;  %v8267_v16 = vmul.f32 100.0, %v8241_v49  ;;  %v8272_v28 = vsel %vm2221_vm3, %v11286_v13, %v2153_v15  ;;  %v11293_v13 = vld [vmem:[#allocation47_spill] sm:$0xff] }
 0x1e9   : > { %3001 = vmatprep.subr.bf16.mxu1 %v2952_v33  ;;  %11287 = vst [vmem:[#allocation36_spill] sm:$0xff] %v8272_v28  ;;  %v8277_v53 = vsel %vm2236_vm4, %v11288_v43, %v2168_v52  ;;  %5965 = vlog2.f32 %v1757_v32  ;;  %3054 = vmatprep.subr.bf16.mxu0 %v2958_v24  ;;  %v8280_v11 = vmul.f32 100.0, %v8249_v12  ;;  %v8282_v60 = vmul.f32 0.01, %v2062_v17  ;;  %v11294_v43 = vld [vmem:[#allocation46_spill] sm:$0xff] }
 0x1ea   : > { %11289 = vst [vmem:[#allocation35_spill] sm:$0xff] %v8277_v53  ;;  %5967 = vlog2.f32 %v1775_v2  ;;  %v1324_v5 = vmin.f32 %v8232_v41, 20.0  ;;  %v1339_v33 = vmin.f32 %v8267_v16, 20.0  ;;  %v1608_v15 = vadd.f32 1.0, %v1607_v22 }
 0x1eb   : > { %v5952_v50 = vpop.eup %5951  ;;  %vm8286_vm8 = vcmp.lt.f32.partialorder %v1610_v59, 0.0004427343  ;;  %v1626_v8 = vadd.f32 1.0, %v1625_v47  ;;  %v1341_v52 = vmin.f32 %v8280_v11, 20.0  ;;  %v1760_v24 = vmul.f32 -0.5, %v8243_v57  ;;  %v11298_v47 = vld [vmem:[#allocation51_spill] sm:$0xff] }
 0x1ec   : > { %v8291_v32 = vpop.eup %5953  ;;  %v1778_v17 = vmul.f32 -0.5, %v8251_v45  ;;  %v1454_v2 = vmul.f32 1.442695, %v1339_v33  ;;  %v11295_v41 = vpack.c.bf16 %v11293_v13, %v11294_v43  ;;  %v1606_v59 = vmul.f32 0.6931472, %v5952_v50  ;;  %v8312_v33 = vld [vmem:[%s10774_s3] sm:$0xff]  }
 0x1ed   : > { %11292 = vst [vmem:[#allocation65_spill] sm:$0xff] %v8291_v32  ;;  %v8299_v22 = vpop.eup %5955  ;;  %v1458_v10 = vmul.f32 1.442695, %v1341_v52  ;;  %v11299_v37 = vpack.c.bf16 %v11297_v51, %v11298_v47  ;;  %v8307_v19 = vadd.f32 %v11300_v7, %v6966_v46  ;;  %v11301_v50 = vld [vmem:[#allocation16_spill] sm:$0xff]  ;;  %vm2937_vm9 = vcmask 236544  }
 0x1ee   : > { %v2949_v42 = vand.u32 %v8235_v25, %v11295_v41  ;;  %11296 = vst [vmem:[#allocation19_spill] sm:$0xff] %v8299_v22  ;;  %v5958_v13 = vpop.eup %5957  ;;  %v1628_v41 = vand.u32 2147483647, %v8221_v14  ;;  %5969 = vpow2.f32 %v1454_v2  ;;  %v8317_v52 = vadd.f32 %v11301_v50, %v6966_v46 }
 0x1ef   : > { %v2955_v35 = vand.u32 %v8235_v25, %v11299_v37  ;;  %v8319_v37 = vpop.eup %5959  ;;  %v1609_v7 = vmul.f32 %v8198_v38, %v1608_v15  ;;  %vm2188_vm10 = vcmp.gt.f32.partialorder %v8079_v34, 20.0  ;;  %v1624_v51 = vmul.f32 0.6931472, %v5958_v13 }
 0x1f0   : > { %3002 = vmatpush1.bf16.msra.mxu1 %v2949_v42  ;;  %5971 = vpow2.f32 %v1458_v10  ;;  %v8324_v43 = vmul.f32 100.0, %v8307_v19  ;;  %v8326_v47 = vpop.eup %5961  ;;  %v1627_v42 = vmul.f32 %v8221_v14, %v1626_v8  ;;  %v1761_v2 = vadd.f32 1.0, %v1760_v24  ;;  %v11305_v24 = vld [vmem:[#allocation73_spill] sm:$0xff] }
 0x1f1   : > { %3055 = vmatpush1.bf16.msra.mxu0 %v2955_v35  ;;  %v1763_v50 = vand.u32 2147483647, %v8243_v57  ;;  %vm2205_vm11 = vcmp.gt.f32.partialorder %v8158_v29, 20.0  ;;  %v1910_v22 = vadd.f32 1.0, %v8319_v37  ;;  %v1612_v38 = vsel %vm8286_vm8, %v1609_v7, %v1606_v59  ;;  %v8363_v7 = vld [vmem:[%s10774_s3 + $0x8] sm:$0xff]  }
 0x1f2   : > { %vm2190_vm12 = vcmp.gt.f32.partialorder %v8098_v9, 20.0  ;;  %v1779_v35 = vadd.f32 1.0, %v1778_v17  ;;  %v1781_v10 = vand.u32 2147483647, %v8251_v45  ;;  %vm2207_vm1 = vcmp.gt.f32.partialorder %v8164_v4, 20.0  ;;  %v8340_v14 = vpop.eup %5963  ;;  %11306 = vst [vmem:[#allocation67_spill] sm:$0xff] %v8363_v7 }
 0x1f3   : > { %v1928_v15 = vadd.f32 1.0, %v8326_v47  ;;  %5479 = vmatmul.mubr.msk.bf16.vlgmr.msra.gmra.mrb[32].mxu1 %vm2937_vm9, %v8312_v33  ;;  %11302 = vst [vmem:[#allocation25_spill] sm:$0xff] %v8340_v14  ;;  %vm8342_vm13 = vcmp.lt.f32.partialorder %v1628_v41, 0.0004427343  ;;  %5973 = vlog2.f32 %v1910_v22  ;;  %v8347_v31 = vmul.f32 100.0, %v8317_v52  ;;  %v5966_v59 = vpop.eup %5965 }
 0x1f4   : > { %5481 = vmatmul.mubr.msk.bf16.vlgmr.msra.gmra.mrb[36].mxu0 %vm2937_vm9, %v8312_v33  ;;  %v8353_v17 = vadd.f32 %v11305_v24, %v6966_v46  ;;  %3041 = vmatprep.mubr.bf16.mxu1 %v11201_v56  ;;  %v1630_v13 = vsel %vm8342_vm13, %v1627_v42, %v1624_v51  ;;  %v1424_v41 = vmul.f32 1.442695, %v1324_v5  ;;  %v1355_v22 = vmin.f32 %v8324_v43, 20.0  ;;  %v5968_v14 = vpop.eup %5967 }
 0x1f5   : > { %5975 = vlog2.f32 %v1928_v15  ;;  %3094 = vmatprep.mubr.bf16.mxu0 %v11201_v56  ;;  %vm2238_vm14 = vcmp.gt.f32.partialorder %v7914_v54, 20.0  ;;  %v2120_v24 = vmul.f32 0.01, %v1612_v38  ;;  %v1759_v62 = vmul.f32 0.6931472, %v5966_v59 }
 0x1f6   : > { %v1762_v32 = vmul.f32 %v8243_v57, %v1761_v2  ;;  %vm1764_vm15 = vcmp.lt.f32.partialorder %v1763_v50, 0.0004427343  ;;  %v1777_v51 = vmul.f32 0.6931472, %v5968_v14  ;;  %v1780_v5 = vmul.f32 %v8251_v45, %v1779_v35  ;;  %v11309_v14 = vld [vmem:[#allocation21_spill] sm:$0xff] }
 0x1f7   : > { %vm1782_vm0 = vcmp.lt.f32.partialorder %v1781_v10, 0.0004427343  ;;  %v1486_v42 = vmul.f32 1.442695, %v1355_v22  ;;  %v2122_v15 = vmul.f32 0.01, %v1630_v13  ;;  %v8378_v57 = vsel %vm2188_vm10, %v8072_v55, %v2120_v24 }
 0x1f8   : > { %v1765_v8 = vsel %vm1764_vm15, %v1762_v32, %v1759_v62  ;;  %v1357_v28 = vmin.f32 %v8347_v31, 20.0  ;;  %v8370_v12 = vmul.f32 100.0, %v8353_v17  ;;  %v1783_v26 = vsel %vm1782_vm0, %v1780_v5, %v1777_v51  ;;  %v8373_v59 = vpop.eup %5969  ;;  %11307 = vst [vmem:[#allocation69_spill] sm:$0xff] %v8378_v57  ;;  %v11335_v57 = vld [vmem:[#allocation78_spill] sm:$0xff] }
 0x1f9   : > { %v2137_v53 = vmul.f32 0.01, %v1765_v8  ;;  %v1913_v38 = vmul.f32 -0.5, %v8319_v37  ;;  %5977 = vpow2.f32 %v1486_v42  ;;  %v2139_v45 = vmul.f32 0.01, %v1783_v26 }
 0x1fa   : > { %v1931_v62 = vmul.f32 -0.5, %v8326_v47  ;;  %v1356_v32 = vmin.f32 %v8370_v12, 20.0  ;;  %v8382_v2 = vpop.eup %5971  ;;  %v1919_v35 = vadd.f32 1.0, %v8373_v59  ;;  %v1490_v10 = vmul.f32 1.442695, %v1357_v28 }
 0x1fb   : > { %v8387_v50 = vsel %vm2205_vm11, %v8115_v39, %v2137_v53  ;;  %v8392_v34 = vadd.f32 %v11309_v14, %v6966_v46  ;;  %5480 = vmatmul.mubr.msk.bf16.gmra.mrb[36].mxu1 %vm2937_vm9, %v8363_v7  ;;  %v8399_v55 = vsel %vm2190_vm12, %v8086_v63, %v2122_v15  ;;  %v8406_v39 = vsel %vm2207_vm1, %v8147_v58, %v2139_v45  ;;  %v11318_v14 = vld [vmem:[#allocation12_spill] sm:$0xff] }
 0x1fc   : > { %11308 = vst [vmem:[#allocation44_spill] sm:$0xff] %v8387_v50  ;;  %11311 = vst [vmem:[#allocation39_spill] sm:$0xff] %v8399_v55  ;;  %v1937_v53 = vadd.f32 1.0, %v8382_v2  ;;  %5482 = vmatmul.mubr.msk.bf16.gmra.mrb[40].mxu0 %vm2937_vm9, %v8363_v7  ;;  %3137 = vmatprep.mubr.bf16.mxu1 %v11201_v56  ;;  %v1914_v63 = vadd.f32 1.0, %v1913_v38  ;;  %v1916_v28 = vand.u32 2147483647, %v8319_v37  ;;  %5979 = vlog2.f32 %v1919_v35 }
 0x1fd   : > { %11310 = vst [vmem:[#allocation40_spill] sm:$0xff] %v8392_v34  ;;  %11312 = vst [vmem:[#allocation66_spill] sm:$0xff] %v8406_v39  ;;  %3190 = vmatprep.mubr.bf16.mxu0 %v11201_v56  ;;  %v5974_v26 = vpop.eup %5973  ;;  %v1932_v4 = vadd.f32 1.0, %v1931_v62  ;;  %v1934_v58 = vand.u32 2147483647, %v8326_v47  ;;  %v8421_v24 = vsel %vm2238_vm14, %v7891_v44, %v8282_v60  ;;  %v8424_v5 = vmul.f32 100.0, %v8392_v34 }
 0x1fe   : > { %5981 = vlog2.f32 %v1937_v53  ;;  %v1488_v13 = vmul.f32 1.442695, %v1356_v32  ;;  %v1912_v51 = vmul.f32 0.6931472, %v5974_v26  ;;  %v1922_v15 = vmul.f32 -0.5, %v8373_v59  ;;  %v11313_v62 = vld [vmem:[#allocation24_spill] sm:$0xff] }
 0x1ff   : > { %v5976_v22 = vpop.eup %5975  ;;  %5983 = vpow2.f32 %v1490_v10  ;;  %v1940_v8 = vmul.f32 -0.5, %v8382_v2  ;;  %v1915_v38 = vmul.f32 %v8319_v37, %v1914_v63  ;;  %v1358_v45 = vmin.f32 %v8424_v5, 20.0 }
 0x200   : > { %v1930_v42 = vmul.f32 0.6931472, %v5976_v22  ;;  %5985 = vpow2.f32 %v1488_v13  ;;  %v1541_v54 = vadd.f32 1.0, %v11313_v62  ;;  %vm8431_vm2 = vcmp.lt.f32.partialorder %v1916_v28, 0.0004427343 }
 0x201   : > { %5987 = vpow2.f32 %v1424_v41  ;;  %v1933_v60 = vmul.f32 %v8326_v47, %v1932_v4  ;;  %vm8436_vm3 = vcmp.lt.f32.partialorder %v1934_v58, 0.0004427343  ;;  %v1925_v35 = vand.u32 2147483647, %v8373_v59 }
 0x202   : > { %v1918_v37 = vsel %vm8431_vm2, %v1915_v38, %v1912_v51  ;;  %v1492_v41 = vmul.f32 1.442695, %v1358_v45  ;;  %5989 = vlog2.f32 %v1541_v54  ;;  %v1694_v53 = vadd.f32 1.0, %v11318_v14 }
 0x203   : > { %v5978_v10 = vpop.eup %5977  ;;  %v1936_v63 = vsel %vm8436_vm3, %v1933_v60, %v1930_v42  ;;  %v1923_v28 = vadd.f32 1.0, %v1922_v15  ;;  %v1941_v26 = vadd.f32 1.0, %v1940_v8  ;;  %vm2222_vm4 = vcmp.gt.f32.partialorder %v8196_v18, 20.0  ;;  %v11321_v42 = vld [vmem:[#allocation11_spill] sm:$0xff] }
 0x204   : > { %v2063_v47 = vadd.f32 1.0, %v5978_v10  ;;  %v1943_v4 = vand.u32 2147483647, %v8382_v2  ;;  %5991 = vpow2.f32 %v1492_v41  ;;  %v1544_v58 = vmul.f32 -0.5, %v11313_v62 }
 0x205   : > { %v2154_v13 = vmul.f32 0.01, %v1918_v37  ;;  %vm2224_vm5 = vcmp.gt.f32.partialorder %v8202_v40, 20.0  ;;  %v2066_v22 = vmul.f32 -0.5, %v5978_v10  ;;  %v2156_v38 = vmul.f32 0.01, %v1936_v63 }
 0x206   : > { %5993 = vlog2.f32 %v2063_v47  ;;  %v5980_v51 = vpop.eup %5979  ;;  %vm8450_vm6 = vcmp.lt.f32.partialorder %v1925_v35, 0.0004427343  ;;  %v1559_v15 = vadd.f32 1.0, %v11321_v42  ;;  %v1924_v54 = vmul.f32 %v8373_v59, %v1923_v28  ;;  %v11363_v63 = vld [vmem:[#allocation82_spill] sm:$0xff] }
 0x207   : > { %5995 = vlog2.f32 %v1694_v53  ;;  %v8457_v44 = vmul.f32 %v8382_v2, %v1941_v26  ;;  %v2069_v60 = vand.u32 2147483647, %v5978_v10  ;;  %v1547_v32 = vand.u32 2147483647, %v11313_v62 }
 0x208   : > { %v5982_v8 = vpop.eup %5981  ;;  %v1921_v41 = vmul.f32 0.6931472, %v5980_v51  ;;  %vm8460_vm7 = vcmp.lt.f32.partialorder %v1943_v4, 0.0004427343  ;;  %v1545_v35 = vadd.f32 1.0, %v1544_v58  ;;  %5997 = vlog2.f32 %v1559_v15 }
 0x209   : > { %v5984_v37 = vpop.eup %5983  ;;  %v8469_v59 = vsel %vm2222_vm4, %v8181_v21, %v2154_v13  ;;  %v2067_v2 = vadd.f32 1.0, %v2066_v22  ;;  %v1697_v26 = vmul.f32 -0.5, %v11318_v14  ;;  %v8477_v4 = vsel %vm2224_vm5, %v8185_v1, %v2156_v38  ;;  %v11336_v21 = vld [vmem:[#allocation34_spill] sm:$0xff] }
 0x20a   : > { %v8464_v53 = vpop.eup %5985  ;;  %v2081_v28 = vadd.f32 1.0, %v5984_v37  ;;  %v2084_v58 = vmul.f32 -0.5, %v5984_v37  ;;  %v1700_v15 = vand.u32 2147483647, %v11318_v14  ;;  %v8481_v9 = vmul.f32 0.6931472, %v5982_v8 }
 0x20b   : > { %v8472_v47 = vpop.eup %5987  ;;  %v2072_v51 = vadd.f32 1.0, %v8464_v53  ;;  %vm8483_vm8 = vcmp.lt.f32.partialorder %v2069_v60, 0.0004427343  ;;  %vm8487_vm10 = vcmp.lt.f32.partialorder %v1547_v32, 0.0004427343  ;;  %v1927_v1 = vsel %vm8450_vm6, %v1924_v54, %v1921_v41  ;;  %v11329_v8 = vld [vmem:[#allocation56_spill] sm:$0xff] }
 0x20c   : > { %11324 = vst [vmem:[#allocation70_spill] sm:$0xff] %v8472_v47  ;;  %5999 = vlog2.f32 %v2081_v28  ;;  %v5990_v13 = vpop.eup %5989  ;;  %vm2239_vm11 = vcmp.gt.f32.partialorder %v8324_v43, 20.0  ;;  %v2087_v40 = vand.u32 2147483647, %v5984_v37  ;;  %v2075_v22 = vmul.f32 -0.5, %v8464_v53  ;;  %v11330_v60 = vld [vmem:[#allocation68_spill] sm:$0xff] }
 0x20d   : > { %v1546_v38 = vmul.f32 %v11313_v62, %v1545_v35  ;;  %vm2181_vm12 = vcmp.gt.f32.partialorder %v11329_v8, 20.0  ;;  %vm2198_vm1 = vcmp.gt.f32.partialorder %v11330_v60, 20.0  ;;  %v2068_v28 = vmul.f32 %v5978_v10, %v2067_v2  ;;  %v11340_v43 = vld [vmem:[#allocation13_spill] sm:$0xff] }
 0x20e   : > { %v1543_v32 = vmul.f32 0.6931472, %v5990_v13  ;;  %v1698_v29 = vadd.f32 1.0, %v1697_v26  ;;  %v1562_v55 = vmul.f32 -0.5, %v11321_v42  ;;  %v8499_v39 = vpop.eup %5991  ;;  %v2085_v45 = vadd.f32 1.0, %v2084_v58 }
 0x20f   : > { %6001 = vlog2.f32 %v2072_v51  ;;  %vm8501_vm13 = vcmp.lt.f32.partialorder %v1700_v15, 0.0004427343  ;;  %v1565_v41 = vand.u32 2147483647, %v11321_v42  ;;  %v8506_v35 = vmul.f32 0.01, %v1927_v1 }
 0x210   : > { %v5994_v62 = vpop.eup %5993  ;;  %v2090_v2 = vadd.f32 1.0, %v8499_v39  ;;  %v1549_v26 = vsel %vm8487_vm10, %v1546_v38, %v1543_v32  ;;  %vm8515_vm14 = vcmp.lt.f32.partialorder %v2087_v40, 0.0004427343  ;;  %v2076_v13 = vadd.f32 1.0, %v2075_v22 }
 0x211   : > { %v5996_v58 = vpop.eup %5995  ;;  %v2065_v51 = vmul.f32 0.6931472, %v5994_v62  ;;  %v1712_v1 = vadd.f32 1.0, %v11335_v57  ;;  %v2078_v50 = vand.u32 2147483647, %v8464_v53  ;;  %v1699_v10 = vmul.f32 %v11318_v14, %v1698_v29 }
 0x212   : > { %6003 = vlog2.f32 %v2090_v2  ;;  %v1696_v47 = vmul.f32 0.6931472, %v5996_v58  ;;  %v5998_v7 = vpop.eup %5997  ;;  %v2086_v38 = vmul.f32 %v5984_v37, %v2085_v45  ;;  %vm2241_vm15 = vcmp.gt.f32.partialorder %v8347_v31, 20.0  ;;  %v11339_v58 = vld [vmem:[#allocation53_spill] sm:$0xff] }
 0x213   : > { %v2071_v18 = vsel %vm8483_vm8, %v2068_v28, %v2065_v51  ;;  %v2113_v40 = vmul.f32 0.01, %v1549_v26  ;;  %6005 = vlog2.f32 %v1712_v1  ;;  %v1563_v62 = vadd.f32 1.0, %v1562_v55  ;;  %v11337_v55 = vld [vmem:[#allocation28_spill] sm:$0xff] }
 0x214   : > { %v2171_v32 = vmul.f32 0.01, %v2071_v18  ;;  %v1702_v22 = vsel %vm8501_vm13, %v1699_v10, %v1696_v47  ;;  %v1715_v34 = vmul.f32 -0.5, %v11335_v57  ;;  %v8529_v2 = vmul.f32 %v8464_v53, %v2076_v13  ;;  %v11338_v53 = vld [vmem:[#allocation29_spill] sm:$0xff] }
 0x215   : > { %v2093_v29 = vmul.f32 -0.5, %v8499_v39  ;;  %v2130_v14 = vmul.f32 0.01, %v1702_v22  ;;  %v8534_v37 = vadd.f32 %v11336_v21, %v6935_v20  ;;  %v1561_v47 = vmul.f32 0.6931472, %v5998_v7  ;;  %v11356_v7 = vld [vmem:[#allocation79_spill] sm:$0xff] }
 0x216   : > { %v6000_v28 = vpop.eup %5999  ;;  %v8539_v45 = vsel %vm2239_vm11, %v8307_v19, %v2171_v32  ;;  %v8543_v54 = vadd.f32 %v11337_v55, %v6908_v3  ;;  %v8547_v10 = vadd.f32 %v11338_v53, %v6966_v46  ;;  %v2249_v51 = vsel %vm2181_vm12, %v11339_v58, %v2113_v40  ;;  %v11345_v32 = vld [vmem:[#allocation58_spill] sm:$0xff] }
 0x217   : > { %v2353_v26 = vpack.c.bf16 %v8539_v45, %v8469_v59  ;;  %v2083_v20 = vmul.f32 0.6931472, %v6000_v28  ;;  %v2266_v19 = vsel %vm2198_vm1, %v11340_v43, %v2130_v14  ;;  %vm8557_vm0 = vcmp.lt.f32.partialorder %v2078_v50, 0.0004427343  ;;  %v11348_v14 = vld [vmem:[#allocation74_spill] sm:$0xff] }
 0x218   : > { %v2329_v3 = vpack.c.bf16 %v2266_v19, %v2249_v51  ;;  %v1564_v46 = vmul.f32 %v11321_v42, %v1563_v62  ;;  %vm8562_vm2 = vcmp.lt.f32.partialorder %v1565_v41, 0.0004427343  ;;  %v1716_v1 = vadd.f32 1.0, %v1715_v34  ;;  %v11346_v42 = vld [vmem:[#allocation76_spill] sm:$0xff]  ;;  %v11347_v62 = vld [vmem:[#allocation75_spill] sm:$0xff] }
 0x219   : > { %v6002_v18 = vpop.eup %6001  ;;  %vm2183_vm3 = vcmp.gt.f32.partialorder %v11345_v32, 20.0  ;;  %v2089_v8 = vsel %vm8515_vm14, %v2086_v38, %v2083_v20  ;;  %v8570_v60 = vmul.f32 100.0, %v8534_v37  ;;  %v8573_v50 = vmul.f32 100.0, %v8543_v54 }
 0x21a   : > { %v8576_v40 = vmul.f32 100.0, %v8547_v10  ;;  %vm2200_vm4 = vcmp.gt.f32.partialorder %v11346_v42, 20.0  ;;  %v2173_v41 = vmul.f32 0.01, %v2089_v8  ;;  %v2094_v22 = vadd.f32 1.0, %v2093_v29  ;;  %3105 = vmatprep.subr.bf16.mxu1 %v2329_v3 }
 0x21b   : > { %v2096_v34 = vand.u32 2147483647, %v8499_v39  ;;  %v1567_v15 = vsel %vm8562_vm2, %v1564_v46, %v1561_v47  ;;  %v1718_v38 = vand.u32 2147483647, %v11335_v57  ;;  %v11349_v21 = vpack.c.bf16 %v11347_v62, %v11348_v14  ;;  %v11350_v62 = vld [vmem:[#allocation26_spill] sm:$0xff] }
 0x21c   : > { %v1325_v28 = vmin.f32 %v8570_v60, 20.0  ;;  %v1308_v55 = vmin.f32 %v8573_v50, 20.0  ;;  %v8590_v53 = vadd.f32 %v7907_v6, %v6937_v23  ;;  %v6004_v29 = vpop.eup %6003  ;;  %vm2223_vm5 = vcmp.gt.f32.partialorder %v8267_v16, 20.0 }
 0x21d   : > { %3106 = vmatpush1.bf16.msra.mxu1 %v11349_v21  ;;  %v8596_v47 = vsel %vm2241_vm15, %v8317_v52, %v2173_v41  ;;  %v2074_v20 = vmul.f32 0.6931472, %v6002_v18  ;;  %v1717_v58 = vmul.f32 %v11335_v57, %v1716_v1  ;;  %v1359_v51 = vmin.f32 %v8576_v40, 20.0  ;;  %v6006_v43 = vpop.eup %6005  ;;  %v11353_v1 = vld [vmem:[#allocation48_spill] sm:$0xff]  ;;  %v11360_v52 = vld [vmem:[#allocation77_spill] sm:$0xff] }
 0x21e   : > { %v2355_v19 = vpack.c.bf16 %v8596_v47, %v8477_v4  ;;  %v2092_v3 = vmul.f32 0.6931472, %v6004_v29  ;;  %v2115_v23 = vmul.f32 0.01, %v1567_v15  ;;  %v1426_v6 = vmul.f32 1.442695, %v1325_v28 }
 0x21f   : > { %v1714_v46 = vmul.f32 0.6931472, %v6006_v43  ;;  %v1392_v13 = vmul.f32 1.442695, %v1308_v55  ;;  %v1494_v8 = vmul.f32 1.442695, %v1359_v51  ;;  %v2346_v31 = vpack.c.bf16 %v7962_v36, %v11350_v62 }
 0x220   : > { %vm8604_vm6 = vcmp.lt.f32.partialorder %v2096_v34, 0.0004427343  ;;  %vm1719_vm8 = vcmp.lt.f32.partialorder %v1718_v38, 0.0004427343  ;;  %v8609_v57 = vmul.f32 100.0, %v8590_v53  ;;  %v2348_v18 = vpack.c.bf16 %v7969_v0, %v11353_v1  ;;  %v11355_v21 = vld [vmem:[#allocation80_spill] sm:$0xff] }
 0x221   : > { %v2095_v41 = vmul.f32 %v8499_v39, %v2094_v22  ;;  %v1720_v15 = vsel %vm1719_vm8, %v1717_v58, %v1714_v46  ;;  %6007 = vpow2.f32 %v1426_v6  ;;  %v2964_v14 = vand.u32 %v8235_v25, %v2346_v31  ;;  %v11354_v39 = vld [vmem:[#allocation54_spill] sm:$0xff] }
 0x222   : > { %vm2225_vm10 = vcmp.gt.f32.partialorder %v8280_v11, 20.0  ;;  %v2080_v36 = vsel %vm8557_vm0, %v8529_v2, %v2074_v20  ;;  %vm2240_vm11 = vcmp.gt.f32.partialorder %v8370_v12, 20.0  ;;  %v2132_v34 = vmul.f32 0.01, %v1720_v15  ;;  %v11358_v55 = vld [vmem:[#allocation14_spill] sm:$0xff] }
 0x223   : > { %6009 = vpow2.f32 %v1494_v8  ;;  %v1342_v38 = vmin.f32 %v8609_v57, 20.0  ;;  %v2098_v0 = vsel %vm8604_vm6, %v2095_v41, %v2092_v3  ;;  %vm2242_vm12 = vcmp.gt.f32.partialorder %v8424_v5, 20.0  ;;  %3107 = vmatprep.subr.bf16.mxu1 %v2964_v14  ;;  %v11361_v1 = vld [vmem:[#allocation22_spill] sm:$0xff] }
 0x224   : > { %v2251_v22 = vsel %vm2183_vm3, %v11354_v39, %v2115_v23  ;;  %6011 = vpow2.f32 %v1392_v13  ;;  %v11357_v2 = vpack.c.bf16 %v11355_v21, %v11356_v7  ;;  %v2268_v29 = vsel %vm2200_vm4, %v11358_v55, %v2132_v34  ;;  %v11367_v39 = vld [vmem:[#allocation35_spill] sm:$0xff]  ;;  %v11368_v7 = vld [vmem:[#allocation49_spill] sm:$0xff]  ;;  %v11369_v55 = vld [vmem:[#allocation36_spill] sm:$0xff] }
 0x225   : > { %v1460_v20 = vmul.f32 1.442695, %v1342_v38  ;;  %v1577_v58 = vadd.f32 1.0, %v7901_v27  ;;  %v1580_v51 = vmul.f32 -0.5, %v7901_v27  ;;  %v2331_v43 = vpack.c.bf16 %v2268_v29, %v2251_v22 }
 0x226   : > { %v2961_v28 = vand.u32 %v8235_v25, %v11357_v2  ;;  %v2970_v32 = vand.u32 %v8235_v25, %v2348_v18  ;;  %v1730_v3 = vadd.f32 1.0, %v8018_v61  ;;  %v1733_v23 = vmul.f32 -0.5, %v8018_v61 }
 0x227   : > { %v8643_v6 = vsel %vm2223_vm5, %v8241_v49, %v8506_v35  ;;  %v11359_v42 = vsel %vm8460_vm7, %v8457_v44, %v8481_v9  ;;  %6013 = vpow2.f32 %v1460_v20  ;;  %v1595_v13 = vadd.f32 1.0, %v7916_v30  ;;  %3158 = vmatprep.subr.bf16.mxu0 %v2331_v43  ;;  %v11364_v35 = vld [vmem:[#allocation81_spill] sm:$0xff] }
 0x228   : > { %3108 = vmatpush1.bf16.msra.mxu1 %v2961_v28  ;;  %v2157_v46 = vmul.f32 0.01, %v11359_v42  ;;  %v2172_v8 = vmul.f32 0.01, %v2080_v36  ;;  %v2174_v62 = vmul.f32 0.01, %v2098_v0  ;;  %6015 = vlog2.f32 %v1577_v58 }
 0x229   : > { %v1598_v31 = vmul.f32 -0.5, %v7916_v30  ;;  %v11362_v16 = vpack.c.bf16 %v11360_v52, %v11361_v1  ;;  %v1581_v49 = vadd.f32 1.0, %v1580_v51  ;;  %v1583_v9 = vand.u32 2147483647, %v7901_v27  ;;  %v11366_v0 = vld [vmem:[#allocation62_spill] sm:$0xff]  ;;  %v11370_v58 = vld [vmem:[#allocation40_spill] sm:$0xff] }
 0x22a   : > { %6017 = vlog2.f32 %v1730_v3  ;;  %v1736_v44 = vand.u32 2147483647, %v8018_v61  ;;  %v11365_v18 = vpack.c.bf16 %v11363_v63, %v11364_v35  ;;  %v1734_v15 = vadd.f32 1.0, %v1733_v23  ;;  %v11375_v23 = vld [vmem:[#allocation31_spill] sm:$0xff]  ;;  %v11380_v52 = vld [vmem:[#allocation25_spill] sm:$0xff] }
 0x22b   : > { %3159 = vmatpush1.bf16.msra.mxu0 %v11362_v16  ;;  %5483 = vmatmul.mubr.msk.bf16.vlgmr.msra.gmra.mrb[40].mxu1 %vm2937_vm9, %v8312_v33  ;;  %6019 = vlog2.f32 %v1595_v13  ;;  %v1748_v14 = vadd.f32 1.0, %v8257_v48  ;;  %v1599_v36 = vadd.f32 1.0, %v1598_v31  ;;  %v1601_v34 = vand.u32 2147483647, %v7916_v30  ;;  %v8669_v21 = vpop.eup %6007  ;;  %v11378_v13 = vld [vmem:[#allocation65_spill] sm:$0xff] }
 0x22c   : > { %3160 = vmatprep.subr.bf16.mxu0 %v2970_v32  ;;  %v2967_v41 = vand.u32 %v8235_v25, %v11365_v18  ;;  %3147 = vmatprep.mubr.bf16.mxu1 %v11201_v56  ;;  %v1751_v38 = vmul.f32 -0.5, %v8257_v48  ;;  %v2350_v22 = vpack.c.bf16 %v11367_v39, %v11366_v0  ;;  %v8674_v2 = vsel %vm2225_vm10, %v11368_v7, %v2157_v46 }
 0x22d   : > { %v8679_v28 = vsel %vm2240_vm11, %v8353_v17, %v2172_v8  ;;  %6021 = vlog2.f32 %v1748_v14  ;;  %v2352_v29 = vpack.c.bf16 %v8421_v24, %v11369_v55  ;;  %v6010_v20 = vpop.eup %6009  ;;  %v8686_v51 = vsel %vm2242_vm12, %v11370_v58, %v2174_v62  ;;  %v11379_v62 = vld [vmem:[#allocation9_spill] sm:$0xff]  ;;  %v11390_v55 = vld [vmem:[#allocation32_spill] sm:$0xff]  ;;  %v11415_v14 = vld [vmem:[#allocation30_spill] sm:$0xff] }
 0x22e   : > { %v1582_v11 = vmul.f32 %v7901_v27, %v1581_v49  ;;  %vm8689_vm7 = vcmp.lt.f32.partialorder %v1583_v9, 0.0004427343  ;;  %vm8693_vm1 = vcmp.lt.f32.partialorder %v1736_v44, 0.0004427343  ;;  %v8697_v17 = vpop.eup %6011  ;;  %v2099_v24 = vadd.f32 1.0, %v6010_v20  ;;  %v11381_v49 = vld [vmem:[#allocation67_spill] sm:$0xff] }
 0x22f   : > { %3161 = vmatpush1.bf16.msra.mxu0 %v2967_v41  ;;  %v2102_v32 = vmul.f32 -0.5, %v6010_v20  ;;  %v1735_v3 = vmul.f32 %v8018_v61, %v1734_v15  ;;  %v1754_v5 = vand.u32 2147483647, %v8257_v48  ;;  %vm2185_vm13 = vcmp.gt.f32.partialorder %v11375_v23, 20.0  ;;  %v11382_v9 = vld [vmem:[#allocation55_spill] sm:$0xff]  ;;  %v11391_v58 = vld [vmem:[#allocation37_spill] sm:$0xff] }
 0x230   : > { %v1600_v27 = vmul.f32 %v7916_v30, %v1599_v36  ;;  %vm8703_vm14 = vcmp.lt.f32.partialorder %v1601_v34, 0.0004427343  ;;  %v1752_v46 = vadd.f32 1.0, %v1751_v38  ;;  %v1613_v8 = vadd.f32 1.0, %v11378_v13  ;;  %v11383_v44 = vld [vmem:[#allocation71_spill] sm:$0xff]  ;;  %v11387_v34 = vld [vmem:[#allocation45_spill] sm:$0xff] }
 0x231   : > { %vm2202_vm15 = vcmp.gt.f32.partialorder %v11379_v62, 20.0  ;;  %6023 = vlog2.f32 %v2099_v24  ;;  %v2105_v31 = vand.u32 2147483647, %v6010_v20  ;;  %v1616_v61 = vmul.f32 -0.5, %v11378_v13  ;;  %v8713_v16 = vpop.eup %6013  ;;  %v11388_v38 = vld [vmem:[#allocation27_spill] sm:$0xff]  ;;  %v11399_v23 = vld [vmem:[#allocation70_spill] sm:$0xff] }
 0x232   : > { %5485 = vmatmul.mubr.msk.bf16.vlgmr.msra.gmra.mrb[44].mxu0 %vm2937_vm9, %v8312_v33  ;;  %v1766_v1 = vadd.f32 1.0, %v11380_v52  ;;  %v2103_v30 = vadd.f32 1.0, %v2102_v32  ;;  %v11384_v63 = vpack.c.bf16 %v11382_v9, %v11383_v44  ;;  %6025 = vlog2.f32 %v1613_v8  ;;  %v6016_v41 = vpop.eup %6015 }
 0x233   : > { %3200 = vmatprep.mubr.bf16.mxu0 %v11201_v56  ;;  %5484 = vmatmul.mubr.msk.bf16.gmra.mrb[44].mxu1 %vm2937_vm9, %v11381_v49  ;;  %v1619_v18 = vand.u32 2147483647, %v11378_v13  ;;  %v1946_v15 = vadd.f32 1.0, %v8713_v16  ;;  %vm8726_vm0 = vcmp.lt.f32.partialorder %v1754_v5, 0.0004427343  ;;  %v8731_v36 = vand.u32 %v8235_v25, %v2350_v22 }
 0x234   : > { %v8722_v35 = vand.u32 %v8235_v25, %v11384_v63  ;;  %v11389_v0 = vpack.c.bf16 %v11387_v34, %v11388_v38  ;;  %3243 = vmatprep.mubr.bf16.mxu1 %v11201_v56  ;;  %v6018_v7 = vpop.eup %6017  ;;  %vm2187_vm2 = vcmp.gt.f32.partialorder %v11390_v55, 20.0  ;;  %vm2204_vm3 = vcmp.gt.f32.partialorder %v11391_v58, 20.0 }
 0x235   : > { %v1579_v24 = vmul.f32 0.6931472, %v6016_v41  ;;  %v1753_v32 = vmul.f32 %v8257_v48, %v1752_v46  ;;  %v8744_v5 = vand.u32 %v8235_v25, %v2352_v29  ;;  %6027 = vlog2.f32 %v1766_v1  ;;  %v6020_v22 = vpop.eup %6019 }
 0x236   : > { %v8737_v39 = vand.u32 %v8235_v25, %v11389_v0  ;;  %vm8746_vm4 = vcmp.lt.f32.partialorder %v2105_v31, 0.0004427343  ;;  %6029 = vlog2.f32 %v1946_v15  ;;  %v1732_v9 = vmul.f32 0.6931472, %v6018_v7  ;;  %v11396_v15 = vld [vmem:[#allocation19_spill] sm:$0xff] }
 0x237   : > { %v1617_v44 = vadd.f32 1.0, %v1616_v61  ;;  %v2104_v63 = vmul.f32 %v6010_v20, %v2103_v30  ;;  %v1585_v34 = vsel %vm8689_vm7, %v1582_v11, %v1579_v24  ;;  %v1597_v38 = vmul.f32 0.6931472, %v6020_v22  ;;  %v6022_v29 = vpop.eup %6021 }
 0x238   : > { %vm8752_vm5 = vcmp.lt.f32.partialorder %v1619_v18, 0.0004427343  ;;  %v1769_v48 = vmul.f32 -0.5, %v11380_v52  ;;  %v1949_v46 = vmul.f32 -0.5, %v8713_v16  ;;  %v1738_v31 = vsel %vm8693_vm1, %v1735_v3, %v1732_v9  ;;  %v11397_v18 = vld [vmem:[#allocation83_spill] sm:$0xff]  ;;  %v11398_v3 = vld [vmem:[#allocation18_spill] sm:$0xff] }
 0x239   : > { %v2117_v1 = vmul.f32 0.01, %v1585_v34  ;;  %v1631_v61 = vadd.f32 1.0, %v11396_v15  ;;  %v1952_v20 = vand.u32 2147483647, %v8713_v16  ;;  %v1603_v11 = vsel %vm8703_vm14, %v1600_v27, %v1597_v38  ;;  %v11400_v34 = vld [vmem:[#allocation59_spill] sm:$0xff] }
 0x23a   : > { %v2134_v43 = vmul.f32 0.01, %v1738_v31  ;;  %v1750_v30 = vmul.f32 0.6931472, %v6022_v29  ;;  %v2119_v7 = vmul.f32 0.01, %v1603_v11  ;;  %5486 = vmatmul.mubr.msk.bf16.gmra.mrb[48].mxu0 %vm2937_vm9, %v11381_v49  ;;  %v1618_v12 = vmul.f32 %v11378_v13, %v1617_v44 }
 0x23b   : > { %v2253_v0 = vsel %vm2185_vm13, %v11397_v18, %v2117_v1  ;;  %6031 = vlog2.f32 %v1631_v61  ;;  %3296 = vmatprep.mubr.bf16.mxu0 %v11201_v56  ;;  %v1634_v27 = vmul.f32 -0.5, %v11396_v15  ;;  %v1784_v22 = vadd.f32 1.0, %v11399_v23  ;;  %v6024_v9 = vpop.eup %6023  ;;  %v11401_v38 = vld [vmem:[#allocation43_spill] sm:$0xff]  ;;  %v11404_v61 = vld [vmem:[#allocation61_spill] sm:$0xff] }
 0x23c   : > { %v2270_v24 = vsel %vm2202_vm15, %v11398_v3, %v2134_v43  ;;  %v1756_v42 = vsel %vm8726_vm0, %v1753_v32, %v1750_v30  ;;  %vm2189_vm6 = vcmp.gt.f32.partialorder %v11400_v34, 20.0  ;;  %vm2206_vm8 = vcmp.gt.f32.partialorder %v11401_v38, 20.0  ;;  %v6026_v62 = vpop.eup %6025  ;;  %v11405_v43 = vld [vmem:[#allocation10_spill] sm:$0xff]  ;;  %v11406_v3 = vld [vmem:[#allocation41_spill] sm:$0xff] }
 0x23d   : > { %v1950_v13 = vadd.f32 1.0, %v1949_v46  ;;  %v2333_v44 = vpack.c.bf16 %v2270_v24, %v2253_v0  ;;  %v2136_v29 = vmul.f32 0.01, %v1756_v42  ;;  %v1770_v31 = vadd.f32 1.0, %v1769_v48  ;;  %v11407_v24 = vld [vmem:[#allocation38_spill] sm:$0xff] }
 0x23e   : > { %v2101_v1 = vmul.f32 0.6931472, %v6024_v9  ;;  %vm2243_vm10 = vcmp.gt.f32.partialorder %v8576_v40, 20.0  ;;  %vm8781_vm11 = vcmp.lt.f32.partialorder %v1952_v20, 0.0004427343  ;;  %vm2226_vm12 = vcmp.gt.f32.partialorder %v8609_v57, 20.0 }
 0x23f   : > { %v1772_v32 = vand.u32 2147483647, %v11380_v52  ;;  %6033 = vlog2.f32 %v1784_v22  ;;  %3211 = vmatprep.subr.bf16.mxu1 %v2333_v44  ;;  %v2255_v46 = vsel %vm2187_vm2, %v11404_v61, %v2119_v7  ;;  %v2272_v48 = vsel %vm2204_vm3, %v11405_v43, %v2136_v29  ;;  %v6028_v30 = vpop.eup %6027  ;;  %v11416_v57 = vld [vmem:[#allocation44_spill] sm:$0xff] }
 0x240   : > { %v1615_v11 = vmul.f32 0.6931472, %v6026_v62  ;;  %v1637_v20 = vand.u32 2147483647, %v11396_v15  ;;  %v2107_v18 = vsel %vm8746_vm4, %v2104_v63, %v2101_v1  ;;  %v2335_v0 = vpack.c.bf16 %v2272_v48, %v2255_v46  ;;  %v6030_v7 = vpop.eup %6029  ;;  %v11409_v1 = vld [vmem:[#allocation50_spill] sm:$0xff] }
 0x241   : > { %v11408_v42 = vpack.c.bf16 %v11406_v3, %v11407_v24  ;;  %v1635_v22 = vadd.f32 1.0, %v1634_v27  ;;  %v2354_v55 = vpack.c.bf16 %v8679_v28, %v8643_v6  ;;  %v1768_v9 = vmul.f32 0.6931472, %v6028_v30  ;;  %v11410_v6 = vld [vmem:[#allocation42_spill] sm:$0xff] }
 0x242   : > { %v1621_v58 = vsel %vm8752_vm5, %v1618_v12, %v1615_v11  ;;  %v1771_v44 = vmul.f32 %v11380_v52, %v1770_v31  ;;  %v1787_v8 = vmul.f32 -0.5, %v11399_v23  ;;  %v1948_v63 = vmul.f32 0.6931472, %v6030_v7  ;;  %3264 = vmatprep.subr.bf16.mxu0 %v2335_v0  ;;  %v11420_v7 = vld [vmem:[#allocation64_spill] sm:$0xff] }
 0x243   : > { %3212 = vmatpush1.bf16.msra.mxu1 %v11408_v42  ;;  %v1951_v29 = vmul.f32 %v8713_v16, %v1950_v13  ;;  %vm1773_vm7 = vcmp.lt.f32.partialorder %v1772_v32, 0.0004427343  ;;  %v2121_v27 = vmul.f32 0.01, %v1621_v58  ;;  %v2175_v62 = vmul.f32 0.01, %v2107_v18 }
 0x244   : > { %3213 = vmatprep.subr.bf16.mxu1 %v8731_v36  ;;  %v11411_v28 = vpack.c.bf16 %v11409_v1, %v11410_v6  ;;  %v1774_v36 = vsel %vm1773_vm7, %v1771_v44, %v1768_v9  ;;  %vm8810_vm1 = vcmp.lt.f32.partialorder %v1637_v20, 0.0004427343  ;;  %v2356_v52 = vpack.c.bf16 %v8686_v51, %v8674_v2  ;;  %v11414_v2 = vld [vmem:[#allocation72_spill] sm:$0xff]  ;;  %v11421_v58 = vld [vmem:[#allocation57_spill] sm:$0xff]  ;;  %v11423_v6 = vld [vmem:[#allocation66_spill] sm:$0xff] }
 0x245   : > { %v1954_v12 = vsel %vm8781_vm11, %v1951_v29, %v1948_v63  ;;  %v2138_v16 = vmul.f32 0.01, %v1774_v36  ;;  %v1636_v13 = vmul.f32 %v11396_v15, %v1635_v22  ;;  %v1790_v31 = vand.u32 2147483647, %v11399_v23  ;;  %v6032_v32 = vpop.eup %6031  ;;  %v11422_v44 = vld [vmem:[#allocation60_spill] sm:$0xff] }
 0x246   : > { %3265 = vmatpush1.bf16.msra.mxu0 %v11411_v28  ;;  %v2158_v61 = vmul.f32 0.01, %v1954_v12  ;;  %v1788_v46 = vadd.f32 1.0, %v1787_v8  ;;  %v2988_v43 = vand.u32 %v8235_v25, %v2354_v55  ;;  %v1640_v48 = vadd.f32 1.0, %v8697_v17  ;;  %v11419_v55 = vld [vmem:[#allocation23_spill] sm:$0xff] }
 0x247   : > { %3266 = vmatprep.subr.bf16.mxu0 %v8744_v5  ;;  %3214 = vmatpush1.bf16.msra.mxu1 %v8722_v35  ;;  %v2257_v51 = vsel %vm2189_vm6, %v11414_v2, %v2121_v27  ;;  %v2274_v35 = vsel %vm2206_vm8, %v11415_v14, %v2138_v16  ;;  %v1633_v5 = vmul.f32 0.6931472, %v6032_v32  ;;  %v1793_v15 = vadd.f32 1.0, %v8669_v21  ;;  %v11424_v28 = vld [vmem:[#allocation39_spill] sm:$0xff] }
 0x248   : > { %v8834_v11 = vsel %vm2243_vm10, %v8547_v10, %v2175_v62  ;;  %v8839_v20 = vsel %vm2226_vm12, %v8590_v53, %v2158_v61  ;;  %v2337_v34 = vpack.c.bf16 %v2274_v35, %v2257_v51  ;;  %6035 = vlog2.f32 %v1640_v48 }
 0x249   : > { %v6034_v38 = vpop.eup %6033  ;;  %v1639_v30 = vsel %vm8810_vm1, %v1636_v13, %v1633_v5  ;;  %6037 = vlog2.f32 %v1793_v15  ;;  %v1789_v40 = vmul.f32 %v11399_v23, %v1788_v46  ;;  %vm1791_vm13 = vcmp.lt.f32.partialorder %v1790_v31, 0.0004427343 }
 0x24a   : > { %3267 = vmatpush1.bf16.msra.mxu0 %v8737_v39  ;;  %5487 = vmatmul.mubr.msk.bf16.vlgmr.msra.gmra.mrb[48].mxu1 %vm2937_vm9, %v8312_v33  ;;  %v1786_v10 = vmul.f32 0.6931472, %v6034_v38  ;;  %v2123_v53 = vmul.f32 0.01, %v1639_v30  ;;  %v11417_v39 = vld [vmem:[#allocation69_spill] sm:$0xff]  ;;  %v1643_v0 = vmul.f32 -0.5, %v8697_v17  ;;  %v2357_v3 = vpack.c.bf16 %v8834_v11, %v8839_v20 }
 0x24b   : > { %3253 = vmatprep.mubr.bf16.mxu1 %v11201_v56  ;;  %3317 = vmatprep.subr.bf16.mxu1 %v2337_v34  ;;  %v11418_v18 = vpack.c.bf16 %v11416_v57, %v11417_v39  ;;  %v1796_v23 = vmul.f32 -0.5, %v8669_v21  ;;  %v2985_v22 = vand.u32 %v8235_v25, %v2353_v26  ;;  %vm2191_vm14 = vcmp.gt.f32.partialorder %v11419_v55, 20.0 }
 0x24c   : > { %v1792_v24 = vsel %vm1791_vm13, %v1789_v40, %v1786_v10  ;;  %vm2208_vm15 = vcmp.gt.f32.partialorder %v11420_v7, 20.0  ;;  %v2259_v9 = vsel %vm2191_vm14, %v11421_v58, %v2123_v53  ;;  %v1644_v63 = vadd.f32 1.0, %v1643_v0 }
 0x24d   : > { %5489 = vmatmul.mubr.msk.bf16.vlgmr.msra.gmra.mrb[52].mxu0 %vm2937_vm9, %v8312_v33  ;;  %3318 = vmatpush1.bf16.msra.mxu1 %v11418_v18  ;;  %v2140_v42 = vmul.f32 0.01, %v1792_v24  ;;  %v2994_v27 = vand.u32 %v8235_v25, %v2356_v52  ;;  %v1646_v59 = vand.u32 2147483647, %v8697_v17  ;;  %v1797_v45 = vadd.f32 1.0, %v1796_v23 }
 0x24e   : > { %3306 = vmatprep.mubr.bf16.mxu0 %v11201_v56  ;;  %3319 = vmatprep.subr.bf16.mxu1 %v2988_v43  ;;  %v1799_v26 = vand.u32 2147483647, %v8669_v21  ;;  %v11425_v36 = vpack.c.bf16 %v11423_v6, %v11424_v28  ;;  %v1645_v12 = vmul.f32 %v8697_v17, %v1644_v63  ;;  %v2991_v13 = vand.u32 %v8235_v25, %v2355_v19 }
 0x24f   : > { %v2276_v8 = vsel %vm2208_vm15, %v11422_v44, %v2140_v42  ;;  %vm1647_vm0 = vcmp.lt.f32.partialorder %v1646_v59, 0.0004427343  ;;  %v1798_v16 = vmul.f32 %v8669_v21, %v1797_v45  ;;  %vm2192_vm3 = vcmp.gt.f32.partialorder %v8573_v50, 20.0 }
 0x250   : > { %v2339_v29 = vpack.c.bf16 %v2276_v8, %v2259_v9  ;;  %vm1800_vm2 = vcmp.lt.f32.partialorder %v1799_v26, 0.0004427343  ;;  %vm2209_vm4 = vcmp.gt.f32.partialorder %v8570_v60, 20.0  ;;  %v2997_v19 = vand.u32 %v8235_v25, %v2357_v3  ;;  %v8905_v25 = vpop.permute.xlu0 %3474 }
 0x251   : > { %3320 = vmatpush1.bf16.msra.mxu1 %v2985_v22 }
 0x252   : > { %5488 = vmatmul.mubr.msk.bf16.gmra.mrb[52].mxu1 %vm2937_vm9, %v11381_v49  ;;  %v6036_v62 = vpop.eup %6035  ;;  %3370 = vmatprep.subr.bf16.mxu0 %v2339_v29 }
 0x253   : > { %3349 = vmatprep.mubr.bf16.mxu1 %v11201_v56  ;;  %v6038_v1 = vpop.eup %6037  ;;  %3371 = vmatpush1.bf16.msra.mxu0 %v11425_v36  ;;  %v1642_v41 = vmul.f32 0.6931472, %v6036_v62 }
 0x254   : > { %3372 = vmatprep.subr.bf16.mxu0 %v2994_v27  ;;  %v1795_v52 = vmul.f32 0.6931472, %v6038_v1  ;;  %v8940_v53 = vpop.permute.xlu0 %3484 }
 0x255   : > { %5490 = vmatmul.mubr.msk.bf16.gmra.mrb[56].mxu0 %vm2937_vm9, %v11381_v49  ;;  %v1648_v31 = vsel %vm1647_vm0, %v1645_v12, %v1642_v41 }
 0x256   : > { %3402 = vmatprep.mubr.bf16.mxu0 %v11201_v56  ;;  %v1801_v32 = vsel %vm1800_vm2, %v1798_v16, %v1795_v52  ;;  %v2124_v61 = vmul.f32 0.01, %v1648_v31 }
 0x257   : > { %3373 = vmatpush1.bf16.msra.mxu0 %v2991_v13  ;;  %v2141_v17 = vmul.f32 0.01, %v1801_v32 }
 0x258   : > { %v2260_v46 = vsel %vm2192_vm3, %v8543_v54, %v2124_v61 }
 0x259   : > { %v2277_v4 = vsel %vm2209_vm4, %v8534_v37, %v2141_v17  ;;  %v11426_v37 = vmov 0.0  }
 0x25a   : > { %5491 = vmatmul.mubr.msk.bf16.vlgmr.msra.gmra.mrb[56].mxu1 %vm2937_vm9, %v8312_v33  ;;  %v2340_v47 = vpack.c.bf16 %v2277_v4, %v2260_v46 }
 0x25b   : > { %3359 = vmatprep.mubr.bf16.mxu1 %v11201_v56 }
 0x25c   : > { %5542 = vmatprep.subr.bf16.mxu1 %v2340_v47 }
 0x25d   : > { %5493 = vmatmul.mubr.msk.bf16.vlgmr.msra.gmra.mrb[60].mxu0 %vm2937_vm9, %v8312_v33  ;;  %5543 = vmatpush3.bf16.msra.mxu1 %v2340_v47 }
 0x25e   : > { %3412 = vmatprep.mubr.bf16.mxu0 %v11201_v56  ;;  %5544 = vmatprep.subr.bf16.mxu1 %v2997_v19  ;;  %v8907_v56 = vpop.permute.xlu1 %3479 }
 0x261   : > { %5545 = vmatpush3.bf16.msra.mxu1 %v2997_v19 }
 0x262   : > { %5492 = vmatmul.mubr.msk.bf16.gmra.mrb[60].mxu1 %vm2937_vm9, %v11381_v49  ;;  %v8963_v59 = vpop.permute.xlu1 %3489 }
 0x263   : > { %5546 = vmatprep.mubr.msk.bf16.mxu1 %vm2937_vm9, %v8312_v33 }
 0x265   : > { %5494 = vmatmul.mubr.msk.bf16.gmra.mrb[64].mxu0 %vm2937_vm9, %v11381_v49 }
 0x266   : > { %4723 = vmatprep.mubr.f32.mxu0 %v11426_v37 }
 0x26a   : > { %5547 = vmatmul.mubr.msk.bf16.vlgmr.msra.gmra.mrb[64].mxu1 %vm2937_vm9, %v11381_v49 }
 0x26b   : > { %4865 = vmatprep.mubr.f32.mxu1 %v11426_v37 }
 0x2c6   : > { %v3033_v54 = vpop.f32.mrb[32].mxu1 }
 0x2c7   : > { %v8910_v60 = vadd.f32 %v8905_v25, %v3033_v54  ;;  %v3086_v50 = vpop.f32.mrb[36].mxu0  ;;  %v3035_v33 = vpop.f32.mrb[33].mxu1 }
 0x2c8   : > { %v8913_v21 = vadd.f32 %v8905_v25, %v3086_v50  ;;  %v3088_v43 = vpop.f32.mrb[37].mxu0  ;;  %v3037_v48 = vpop.f32.mrb[34].mxu1  ;;  %v8969_v41 = vadd.f32 %v8905_v25, %v3035_v33 }
 0x2c9   : > { %v8916_v2 = vmul.f32 100.0, %v8910_v60  ;;  %v8919_v49 = vadd.f32 %v8907_v56, %v3037_v48  ;;  %v3090_v51 = vpop.f32.mrb[38].mxu0  ;;  %v8921_v14 = vpop.f32.mrb[35].mxu1  ;;  %v8981_v17 = vadd.f32 %v8905_v25, %v3088_v43 }
 0x2ca   : > { %v8924_v35 = vmul.f32 100.0, %v8913_v21  ;;  %v8927_v5 = vadd.f32 %v8907_v56, %v3090_v51  ;;  %v8929_v15 = vpop.f32.mrb[39].mxu0  ;;  %11427 = vst [vmem:[#allocation20_spill] sm:$0xff] %v8969_v41  ;;  %v8984_v46 = vmul.f32 100.0, %v8969_v41  ;;  %v8994_v48 = vadd.f32 %v8907_v56, %v8921_v14 }
 0x2cb   : > { %v3628_v11 = vmin.f32 %v8916_v2, 20.0  ;;  %v8933_v20 = vmul.f32 100.0, %v8919_v49  ;;  %11428 = vst [vmem:[#allocation63_spill] sm:$0xff] %v8981_v17  ;;  %vm4512_vm5 = vcmp.gt.f32.partialorder %v8916_v2, 20.0 }
 0x2cc   : > { %v3630_v34 = vmin.f32 %v8924_v35, 20.0  ;;  %v8938_v40 = vmul.f32 100.0, %v8927_v5  ;;  %11429 = vst [vmem:[#allocation17_spill] sm:$0xff] %v8994_v48  ;;  %vm4514_vm6 = vcmp.gt.f32.partialorder %v8924_v35, 20.0 }
 0x2cd   : > { %v3696_v38 = vmul.f32 1.442695, %v3628_v11  ;;  %v3645_v30 = vmin.f32 %v8933_v20, 20.0  ;;  %vm4529_vm10 = vcmp.gt.f32.partialorder %v8933_v20, 20.0 }
 0x2ce   : > { %v3700_v10 = vmul.f32 1.442695, %v3630_v34  ;;  %v3043_v39 = vpop.f32.mrb[36].mxu1  ;;  %v3647_v18 = vmin.f32 %v8938_v40, 20.0  ;;  %v8999_v34 = vmul.f32 100.0, %v8981_v17  ;;  %vm4531_vm7 = vcmp.gt.f32.partialorder %v8938_v40, 20.0 }
 0x2cf   : > { %6039 = vpow2.f32 %v3696_v38  ;;  %v3730_v57 = vmul.f32 1.442695, %v3645_v30  ;;  %v3096_v0 = vpop.f32.mrb[40].mxu0  ;;  %v3045_v3 = vpop.f32.mrb[37].mxu1  ;;  %v8944_v24 = vadd.f32 %v8940_v53, %v3043_v39 }
 0x2d0   : > { %6041 = vpow2.f32 %v3700_v10  ;;  %v8946_v23 = vpop.f32.mrb[41].mxu0  ;;  %v3047_v42 = vpop.f32.mrb[38].mxu1  ;;  %v3734_v22 = vmul.f32 1.442695, %v3647_v18  ;;  %v8949_v55 = vadd.f32 %v8940_v53, %v3096_v0  ;;  %11430 = vst [vmem:[#allocation33_spill] sm:$0xff] %v8999_v34  ;;  %v9005_v39 = vadd.f32 %v8940_v53, %v3045_v3 }
 0x2d1   : > { %v3100_v7 = vpop.f32.mrb[42].mxu0  ;;  %v8951_v58 = vpop.f32.mrb[39].mxu1  ;;  %6043 = vpow2.f32 %v3730_v57  ;;  %v8954_v9 = vmul.f32 100.0, %v8944_v24  ;;  %v8966_v62 = vadd.f32 %v8963_v59, %v3047_v42  ;;  %v3629_v57 = vmin.f32 %v8984_v46, 20.0 }
 0x2d2   : > { %v8956_v44 = vpop.f32.mrb[43].mxu0  ;;  %6045 = vpow2.f32 %v3734_v22  ;;  %v8959_v8 = vmul.f32 100.0, %v8949_v55  ;;  %v8977_v31 = vadd.f32 %v8963_v59, %v3100_v7  ;;  %11431 = vst [vmem:[#allocation47_spill] sm:$0xff] %v9005_v39 }
 0x2d3   : > { %v3662_v63 = vmin.f32 %v8954_v9, 20.0  ;;  %v8972_v12 = vmul.f32 100.0, %v8966_v62  ;;  %vm4546_vm1 = vcmp.gt.f32.partialorder %v8954_v9, 20.0 }
 0x2d4   : > { %v3664_v29 = vmin.f32 %v8959_v8, 20.0  ;;  %v8988_v54 = vmul.f32 100.0, %v8977_v31  ;;  %vm4548_vm0 = vcmp.gt.f32.partialorder %v8959_v8, 20.0 }
 0x2d5   : > { %v3764_v27 = vmul.f32 1.442695, %v3662_v63  ;;  %v3679_v4 = vmin.f32 %v8972_v12, 20.0  ;;  %vm4563_vm15 = vcmp.gt.f32.partialorder %v8972_v12, 20.0 }
 0x2d6   : > { %v3768_v45 = vmul.f32 1.442695, %v3664_v29  ;;  %v3681_v30 = vmin.f32 %v8988_v54, 20.0  ;;  %vm4565_vm3 = vcmp.gt.f32.partialorder %v8988_v54, 20.0 }
 0x2d7   : > { %6047 = vpow2.f32 %v3764_v27  ;;  %v3798_v43 = vmul.f32 1.442695, %v3679_v4 }
 0x2d8   : > { %6049 = vpow2.f32 %v3768_v45  ;;  %v3802_v22 = vmul.f32 1.442695, %v3681_v30 }
 0x2d9   : > { %v6040_v26 = vpop.eup %6039 }
 0x2da   : > { %v6042_v1 = vpop.eup %6041  ;;  %v3832_v6 = vadd.f32 1.0, %v6040_v26  ;;  %v3835_v16 = vmul.f32 -0.5, %v6040_v26  ;;  %v3838_v19 = vand.u32 2147483647, %v6040_v26 }
 0x2db   : > { %v3850_v28 = vadd.f32 1.0, %v6042_v1  ;;  %v6044_v36 = vpop.eup %6043  ;;  %v3853_v61 = vmul.f32 -0.5, %v6042_v1  ;;  %v3856_v10 = vand.u32 2147483647, %v6042_v1 }
 0x2dc   : > { %6051 = vlog2.f32 %v3832_v6  ;;  %v8974_v52 = vpop.eup %6045  ;;  %v3985_v13 = vadd.f32 1.0, %v6044_v36  ;;  %v3836_v47 = vadd.f32 1.0, %v3835_v16  ;;  %v3988_v33 = vmul.f32 -0.5, %v6044_v36 }
 0x2dd   : > { %6053 = vlog2.f32 %v3850_v28  ;;  %v4003_v32 = vadd.f32 1.0, %v8974_v52  ;;  %v3854_v11 = vadd.f32 1.0, %v3853_v61  ;;  %v4006_v38 = vmul.f32 -0.5, %v8974_v52 }
 0x2de   : > { %6055 = vlog2.f32 %v3985_v13  ;;  %v3837_v18 = vmul.f32 %v6040_v26, %v3836_v47  ;;  %vm9007_vm9 = vcmp.lt.f32.partialorder %v3838_v19, 0.0004427343  ;;  %v3989_v29 = vadd.f32 1.0, %v3988_v33 }
 0x2df   : > { %6057 = vlog2.f32 %v4003_v32  ;;  %v3991_v27 = vand.u32 2147483647, %v6044_v36  ;;  %v3855_v6 = vmul.f32 %v6042_v1, %v3854_v11  ;;  %v4007_v26 = vadd.f32 1.0, %v4006_v38 }
 0x2e0   : > { %6059 = vpow2.f32 %v3798_v43  ;;  %vm9017_vm8 = vcmp.lt.f32.partialorder %v3856_v10, 0.0004427343  ;;  %v3698_v13 = vmul.f32 1.442695, %v3629_v57  ;;  %v4009_v32 = vand.u32 2147483647, %v8974_v52 }
 0x2e1   : > { %v8990_v50 = vpop.eup %6047  ;;  %6061 = vpow2.f32 %v3802_v22  ;;  %v9026_v1 = vmul.f32 100.0, %v8994_v48  ;;  %v3990_v33 = vmul.f32 %v6044_v36, %v3989_v29  ;;  %v9029_v43 = vmul.f32 100.0, %v9005_v39 }
 0x2e2   : > { %v8996_v51 = vpop.eup %6049  ;;  %v4138_v42 = vadd.f32 1.0, %v8990_v50  ;;  %vm3992_vm11 = vcmp.lt.f32.partialorder %v3991_v27, 0.0004427343  ;;  %v4008_v30 = vmul.f32 %v8974_v52, %v4007_v26  ;;  %vm4010_vm12 = vcmp.lt.f32.partialorder %v4009_v32, 0.0004427343 }
 0x2e3   : > { %v4156_v45 = vadd.f32 1.0, %v8996_v51  ;;  %11436 = vst [vmem:[#allocation46_spill] sm:$0xff] %v9026_v1  ;;  %11437 = vst [vmem:[#allocation52_spill] sm:$0xff] %v9029_v43  ;;  %v9035_v36 = vadd.f32 %v8907_v56, %v8929_v15  ;;  %v3646_v22 = vmin.f32 %v9026_v1, 20.0  ;;  %v9043_v52 = vadd.f32 %v8940_v53, %v8946_v23 }
 0x2e4   : > { %6063 = vlog2.f32 %v4138_v42  ;;  %v9058_v27 = vadd.f32 %v8963_v59, %v8951_v58  ;;  %v3631_v58 = vmin.f32 %v8999_v34, 20.0 }
 0x2e5   : > { %6065 = vlog2.f32 %v4156_v45  ;;  %11438 = vst [vmem:[#allocation51_spill] sm:$0xff] %v9035_v36  ;;  %11439 = vst [vmem:[#allocation15_spill] sm:$0xff] %v9043_v52  ;;  %v3732_v35 = vmul.f32 1.442695, %v3646_v22  ;;  %v9088_v32 = vmul.f32 100.0, %v9043_v52 }
 0x2e6   : > { %v6052_v14 = vpop.eup %6051  ;;  %6067 = vpow2.f32 %v3698_v13  ;;  %11442 = vst [vmem:[#allocation21_spill] sm:$0xff] %v9058_v27  ;;  %v9085_v26 = vmul.f32 100.0, %v9058_v27 }
 0x2e7   : > { %v6054_v7 = vpop.eup %6053  ;;  %v3834_v63 = vmul.f32 0.6931472, %v6052_v14  ;;  %11447 = vst [vmem:[#allocation68_spill] sm:$0xff] %v9088_v32 }
 0x2e8   : > { %v3852_v3 = vmul.f32 0.6931472, %v6054_v7  ;;  %v6056_v61 = vpop.eup %6055  ;;  %v3663_v7 = vmin.f32 %v9029_v43, 20.0  ;;  %11446 = vst [vmem:[#allocation56_spill] sm:$0xff] %v9085_v26 }
 0x2e9   : > { %v3840_v28 = vsel %vm9007_vm9, %v3837_v18, %v3834_v63  ;;  %v6058_v47 = vpop.eup %6057  ;;  %v3987_v19 = vmul.f32 0.6931472, %v6056_v61  ;;  %v9090_v61 = vmul.f32 1.442695, %v3631_v58 }
 0x2ea   : > { %v3858_v4 = vsel %vm9017_vm8, %v3855_v6, %v3852_v3  ;;  %v4444_v11 = vmul.f32 0.01, %v3840_v28  ;;  %v4005_v38 = vmul.f32 0.6931472, %v6058_v47  ;;  %v9037_v0 = vpop.eup %6059  ;;  %v9080_v3 = vmul.f32 100.0, %v9035_v36 }
 0x2eb   : > { %v4446_v10 = vmul.f32 0.01, %v3858_v4  ;;  %v3993_v57 = vsel %vm3992_vm11, %v3990_v33, %v3987_v19  ;;  %v4291_v29 = vadd.f32 1.0, %v9037_v0  ;;  %v9073_v20 = vpop.eup %6061  ;;  %v4294_v6 = vmul.f32 -0.5, %v9037_v0 }
 0x2ec   : > { %v4461_v14 = vmul.f32 0.01, %v3993_v57  ;;  %v4011_v18 = vsel %vm4010_vm12, %v4008_v30, %v4005_v38  ;;  %v9048_v63 = vsel %vm4512_vm5, %v8910_v60, %v4444_v11  ;;  %11445 = vst [vmem:[#allocation11_spill] sm:$0xff] %v9080_v3  ;;  %v4309_v40 = vadd.f32 1.0, %v9073_v20 }
 0x2ed   : > { %v4463_v42 = vmul.f32 0.01, %v4011_v18  ;;  %11440 = vst [vmem:[#allocation16_spill] sm:$0xff] %v9048_v63  ;;  %v9063_v23 = vsel %vm4514_vm6, %v8913_v21, %v4446_v10  ;;  %v4159_v21 = vmul.f32 -0.5, %v8996_v51  ;;  %6069 = vlog2.f32 %v4291_v29 }
 0x2ee   : > { %v9053_v15 = vsel %vm4529_vm10, %v8919_v49, %v4461_v14  ;;  %11443 = vst [vmem:[#allocation24_spill] sm:$0xff] %v9063_v23  ;;  %v4141_v49 = vmul.f32 -0.5, %v8990_v50  ;;  %v3766_v13 = vmul.f32 1.442695, %v3663_v7  ;;  %6071 = vlog2.f32 %v4309_v40 }
 0x2ef   : > { %11441 = vst [vmem:[#allocation73_spill] sm:$0xff] %v9053_v15  ;;  %v9070_v2 = vsel %vm4531_vm7, %v8927_v5, %v4463_v42  ;;  %v6064_v5 = vpop.eup %6063  ;;  %v4144_v4 = vand.u32 2147483647, %v8990_v50  ;;  %v4160_v47 = vadd.f32 1.0, %v4159_v21  ;;  %6073 = vpow2.f32 %v3732_v35 }
 0x2f0   : > { %11444 = vst [vmem:[#allocation12_spill] sm:$0xff] %v9070_v2  ;;  %v6066_v28 = vpop.eup %6065  ;;  %v4142_v16 = vadd.f32 1.0, %v4141_v49  ;;  %v3648_v19 = vmin.f32 %v9080_v3, 20.0  ;;  %v4140_v33 = vmul.f32 0.6931472, %v6064_v5  ;;  %v4295_v10 = vadd.f32 1.0, %v4294_v6 }
 0x2f1   : > { %v4162_v11 = vand.u32 2147483647, %v8996_v51  ;;  %v9095_v38 = vpop.eup %6067  ;;  %v4158_v30 = vmul.f32 0.6931472, %v6066_v28  ;;  %v4312_v57 = vmul.f32 -0.5, %v9073_v20  ;;  %v3680_v14 = vmin.f32 %v9085_v26, 20.0 }
 0x2f2   : > { %v4143_v18 = vmul.f32 %v8990_v50, %v4142_v16  ;;  %6075 = vpow2.f32 %v3766_v13  ;;  %v3665_v42 = vmin.f32 %v9088_v32, 20.0  ;;  %vm9102_vm13 = vcmp.lt.f32.partialorder %v4144_v4, 0.0004427343 }
 0x2f3   : > { %v4161_v7 = vmul.f32 %v8996_v51, %v4160_v47  ;;  %v4297_v29 = vand.u32 2147483647, %v9037_v0  ;;  %v9110_v49 = vadd.f32 %v8963_v59, %v8956_v44  ;;  %vm9114_vm14 = vcmp.lt.f32.partialorder %v4162_v11, 0.0004427343 }
 0x2f4   : > { %v4146_v50 = vsel %vm9102_vm13, %v4143_v18, %v4140_v33  ;;  %v4296_v5 = vmul.f32 %v9037_v0, %v4295_v10  ;;  %v4313_v6 = vadd.f32 1.0, %v4312_v57  ;;  %v3800_v28 = vmul.f32 1.442695, %v3680_v14 }
 0x2f5   : > { %11450 = vst [vmem:[#allocation78_spill] sm:$0xff] %v9110_v49  ;;  %v4164_v44 = vsel %vm9114_vm14, %v4161_v7, %v4158_v30  ;;  %v4315_v4 = vand.u32 2147483647, %v9073_v20  ;;  %v4478_v18 = vmul.f32 0.01, %v4146_v50  ;;  %v9139_v0 = vmul.f32 100.0, %v9110_v49 }
 0x2f6   : > { %vm4298_vm2 = vcmp.lt.f32.partialorder %v4297_v29, 0.0004427343  ;;  %v3841_v22 = vadd.f32 1.0, %v9095_v38  ;;  %v4480_v7 = vmul.f32 0.01, %v4164_v44  ;;  %v4314_v50 = vmul.f32 %v9073_v20, %v4313_v6 }
 0x2f7   : > { %v6070_v40 = vpop.eup %6069  ;;  %11453 = vst [vmem:[#allocation34_spill] sm:$0xff] %v9139_v0  ;;  %vm4316_vm4 = vcmp.lt.f32.partialorder %v4315_v4, 0.0004427343  ;;  %6077 = vpow2.f32 %v3800_v28  ;;  %v3770_v8 = vmul.f32 1.442695, %v3665_v42 }
 0x2f8   : > { %v4293_v13 = vmul.f32 0.6931472, %v6070_v40  ;;  %v6072_v30 = vpop.eup %6071 }
 0x2f9   : > { %v4311_v21 = vmul.f32 0.6931472, %v6072_v30  ;;  %v9147_v29 = vpop.eup %6073 }
 0x2fa   : > { %v4299_v10 = vsel %vm4298_vm2, %v4296_v5, %v4293_v13  ;;  %11454 = vst [vmem:[#allocation28_spill] sm:$0xff] %v9147_v29  ;;  %v9153_v13 = vsel %vm4546_vm1, %v8944_v24, %v4478_v18  ;;  %v3682_v24 = vmin.f32 %v9139_v0, 20.0 }
 0x2fb   : > { %11455 = vst [vmem:[#allocation29_spill] sm:$0xff] %v9153_v13  ;;  %v4317_v30 = vsel %vm4316_vm4, %v4314_v50, %v4311_v21 }
 0x2fc   : > { %v9165_v4 = vpop.eup %6075  ;;  %v4497_v9 = vmul.f32 0.01, %v4317_v30 }
 0x2fd   : > { %11457 = vst [vmem:[#allocation13_spill] sm:$0xff] %v9165_v4 }
 0x2fe   : > { %v3139_v58 = vpop.f32.mrb[40].mxu1 }
 0x2ff   : > { %v9120_v35 = vadd.f32 %v8905_v25, %v3139_v58  ;;  %v9122_v51 = vpop.f32.mrb[41].mxu1  ;;  %v4495_v58 = vmul.f32 0.01, %v4299_v10 }
 0x300   : > { %v3143_v16 = vpop.f32.mrb[42].mxu1 }
 0x301   : > { %v9130_v47 = vmul.f32 100.0, %v9120_v35  ;;  %v9133_v33 = vadd.f32 %v8907_v56, %v3143_v16  ;;  %v9135_v11 = vpop.f32.mrb[43].mxu1  ;;  %v9158_v44 = vsel %vm4563_vm15, %v8966_v62, %v4495_v58 }
 0x302   : > { %11456 = vst [vmem:[#allocation53_spill] sm:$0xff] %v9158_v44  ;;  %v9244_v49 = vadd.f32 %v8907_v56, %v9135_v11 }
 0x303   : > { %v3632_v57 = vmin.f32 %v9130_v47, 20.0  ;;  %v9143_v14 = vmul.f32 100.0, %v9133_v33  ;;  %vm4516_vm5 = vcmp.gt.f32.partialorder %v9130_v47, 20.0 }
 0x304   : > { %11463 = vst [vmem:[#allocation48_spill] sm:$0xff] %v9244_v49  ;;  %v9268_v37 = vmul.f32 100.0, %v9244_v49 }
 0x305   : > { %v3704_v40 = vmul.f32 1.442695, %v3632_v57  ;;  %v3192_v16 = vpop.f32.mrb[44].mxu0  ;;  %v3649_v5 = vmin.f32 %v9143_v14, 20.0  ;;  %vm4533_vm6 = vcmp.gt.f32.partialorder %v9143_v14, 20.0 }
 0x306   : > { %v9161_v20 = vadd.f32 %v8905_v25, %v3192_v16  ;;  %v9163_v6 = vpop.f32.mrb[45].mxu0  ;;  %v3149_v28 = vpop.f32.mrb[44].mxu1  ;;  %v3736_v16 = vmul.f32 1.442695, %v3648_v19  ;;  %11468 = vst [vmem:[#allocation79_spill] sm:$0xff] %v9268_v37 }
 0x307   : > { %6079 = vpow2.f32 %v3704_v40  ;;  %v3196_v18 = vpop.f32.mrb[46].mxu0  ;;  %v9170_v12 = vpop.f32.mrb[45].mxu1  ;;  %v3738_v57 = vmul.f32 1.442695, %v3649_v5  ;;  %v9187_v40 = vsel %vm4548_vm0, %v8949_v55, %v4480_v7  ;;  %v9192_v5 = vsel %vm4565_vm3, %v8977_v31, %v4497_v9 }
 0x308   : > { %v9173_v62 = vmul.f32 100.0, %v9161_v20  ;;  %v9176_v58 = vadd.f32 %v8907_v56, %v3196_v18  ;;  %v9178_v21 = vpop.f32.mrb[47].mxu0  ;;  %v9180_v50 = vpop.f32.mrb[46].mxu1  ;;  %6081 = vlog2.f32 %v3841_v22  ;;  %11458 = vst [vmem:[#allocation58_spill] sm:$0xff] %v9187_v40  ;;  %11459 = vst [vmem:[#allocation76_spill] sm:$0xff] %v9192_v5  ;;  %v3844_v18 = vmul.f32 -0.5, %v9095_v38 }
 0x309   : > { %v9194_v30 = vpop.f32.mrb[47].mxu1  ;;  %6083 = vpow2.f32 %v3738_v57  ;;  %v3804_v31 = vmul.f32 1.442695, %v3682_v24  ;;  %v9207_v19 = vadd.f32 %v8940_v53, %v3149_v28  ;;  %v9212_v57 = vadd.f32 %v8905_v25, %v9122_v51  ;;  %v9222_v28 = vpop.eup %6077 }
 0x30a   : > { %v3634_v45 = vmin.f32 %v9173_v62, 20.0  ;;  %v9203_v55 = vmul.f32 100.0, %v9176_v58  ;;  %6085 = vpow2.f32 %v9090_v61  ;;  %v3845_v22 = vadd.f32 1.0, %v3844_v18  ;;  %11461 = vst [vmem:[#allocation74_spill] sm:$0xff] %v9222_v28 }
 0x30b   : > { %6087 = vpow2.f32 %v3736_v16  ;;  %11460 = vst [vmem:[#allocation75_spill] sm:$0xff] %v9212_v57  ;;  %v9215_v42 = vmul.f32 100.0, %v9207_v19  ;;  %v3847_v18 = vand.u32 2147483647, %v9095_v38  ;;  %v9277_v3 = vadd.f32 %v8905_v25, %v9163_v6 }
 0x30c   : > { %v3708_v54 = vmul.f32 1.442695, %v3634_v45  ;;  %v3651_v7 = vmin.f32 %v9203_v55, 20.0  ;;  %v9239_v5 = vmul.f32 %v9095_v38, %v3845_v22  ;;  %v4147_v22 = vadd.f32 1.0, %v9165_v4 }
 0x30d   : > { %v3202_v9 = vpop.f32.mrb[48].mxu0  ;;  %v3666_v51 = vmin.f32 %v9215_v42, 20.0  ;;  %vm9247_vm9 = vcmp.lt.f32.partialorder %v3847_v18, 0.0004427343  ;;  %v4300_v18 = vadd.f32 1.0, %v9222_v28  ;;  %11470 = vst [vmem:[#allocation77_spill] sm:$0xff] %v9277_v3 }
 0x30e   : > { %6089 = vpow2.f32 %v3708_v54  ;;  %v9218_v61 = vadd.f32 %v8940_v53, %v3202_v9  ;;  %v9220_v45 = vpop.f32.mrb[49].mxu0  ;;  %v3742_v24 = vmul.f32 1.442695, %v3651_v7  ;;  %v3994_v54 = vadd.f32 1.0, %v9147_v29 }
 0x30f   : > { %6091 = vpow2.f32 %v3770_v8  ;;  %v3206_v16 = vpop.f32.mrb[50].mxu0  ;;  %v9236_v7 = vmul.f32 100.0, %v9212_v57  ;;  %v3772_v52 = vmul.f32 1.442695, %v3666_v51  ;;  %v4150_v57 = vmul.f32 -0.5, %v9165_v4 }
 0x310   : > { %6093 = vpow2.f32 %v3804_v31  ;;  %v9227_v10 = vpop.f32.mrb[51].mxu0  ;;  %v9232_v9 = vmul.f32 100.0, %v9218_v61  ;;  %v3997_v31 = vmul.f32 -0.5, %v9147_v29  ;;  %v3650_v6 = vmin.f32 %v9268_v37, 20.0 }
 0x311   : > { %v9229_v60 = vpop.eup %6079  ;;  %6095 = vpow2.f32 %v3742_v24  ;;  %11462 = vst [vmem:[#allocation26_spill] sm:$0xff] %v9236_v7  ;;  %vm4518_vm7 = vcmp.gt.f32.partialorder %v9173_v62, 20.0  ;;  %vm4535_vm1 = vcmp.gt.f32.partialorder %v9203_v55, 20.0  ;;  %vm4550_vm14 = vcmp.gt.f32.partialorder %v9215_v42, 20.0 }
 0x312   : > { %v6082_v40 = vpop.eup %6081  ;;  %v3868_v8 = vadd.f32 1.0, %v9229_v60  ;;  %v3668_v24 = vmin.f32 %v9232_v9, 20.0  ;;  %6097 = vlog2.f32 %v3994_v54  ;;  %v3633_v54 = vmin.f32 %v9236_v7, 20.0 }
 0x313   : > { %v9251_v32 = vpop.eup %6083  ;;  %v9257_v23 = vmul.f32 0.6931472, %v6082_v40  ;;  %v3998_v36 = vadd.f32 1.0, %v3997_v31  ;;  %v3871_v17 = vmul.f32 -0.5, %v9229_v60  ;;  %v9271_v40 = vmul.f32 -0.5, %v9222_v28 }
 0x314   : > { %6099 = vlog2.f32 %v3868_v8  ;;  %v4021_v11 = vadd.f32 1.0, %v9251_v32  ;;  %v9261_v2 = vpop.eup %6085  ;;  %v3776_v8 = vmul.f32 1.442695, %v3668_v24  ;;  %v9284_v31 = vadd.f32 %v8963_v59, %v3206_v16 }
 0x315   : > { %11466 = vst [vmem:[#allocation54_spill] sm:$0xff] %v9261_v2  ;;  %6101 = vpow2.f32 %v3772_v52  ;;  %v9264_v38 = vpop.eup %6087  ;;  %11469 = vst [vmem:[#allocation14_spill] sm:$0xff] %v9271_v40  ;;  %v9281_v52 = vadd.f32 %v8963_v59, %v9180_v50  ;;  %v9291_v7 = vadd.f32 1.0, %v4150_v57  ;;  %v4024_v50 = vmul.f32 -0.5, %v9251_v32 }
 0x316   : > { %11467 = vst [vmem:[#allocation80_spill] sm:$0xff] %v9264_v38  ;;  %6103 = vlog2.f32 %v4021_v11  ;;  %v9301_v16 = vmul.f32 100.0, %v9284_v31  ;;  %v3874_v57 = vand.u32 2147483647, %v9229_v60  ;;  %v4027_v27 = vand.u32 2147483647, %v9251_v32 }
 0x317   : > { %6105 = vpow2.f32 %v3776_v8  ;;  %11472 = vst [vmem:[#allocation82_spill] sm:$0xff] %v9291_v7  ;;  %v3706_v8 = vmul.f32 1.442695, %v3633_v54  ;;  %v9298_v13 = vmul.f32 100.0, %v9281_v52  ;;  %v9312_v54 = vmul.f32 100.0, %v9277_v3 }
 0x318   : > { %v9273_v51 = vpop.eup %6089  ;;  %6107 = vlog2.f32 %v4147_v22  ;;  %v3872_v22 = vadd.f32 1.0, %v3871_v17  ;;  %v9329_v43 = vmul.f32 %v9147_v29, %v3998_v36  ;;  %v4025_v15 = vadd.f32 1.0, %v4024_v50 }
 0x319   : > { %v9286_v24 = vpop.eup %6091  ;;  %v3886_v11 = vadd.f32 1.0, %v9273_v51  ;;  %11474 = vst [vmem:[#allocation62_spill] sm:$0xff] %v9312_v54  ;;  %v3889_v37 = vmul.f32 -0.5, %v9273_v51  ;;  %v3683_v26 = vmin.f32 %v9298_v13, 20.0  ;;  %v3685_v17 = vmin.f32 %v9301_v16, 20.0 }
 0x31a   : > { %11471 = vst [vmem:[#allocation22_spill] sm:$0xff] %v9286_v24  ;;  %v9294_v34 = vpop.eup %6093  ;;  %11476 = vst [vmem:[#allocation49_spill] sm:$0xff] %v9329_v43  ;;  %v9337_v1 = vmul.f32 1.442695, %v3650_v6  ;;  %vm9341_vm8 = vcmp.lt.f32.partialorder %v3874_v57, 0.0004427343 }
 0x31b   : > { %11473 = vst [vmem:[#allocation81_spill] sm:$0xff] %v9294_v34  ;;  %v9305_v44 = vpop.eup %6095  ;;  %6109 = vlog2.f32 %v3886_v11  ;;  %v3806_v41 = vmul.f32 1.442695, %v3683_v26  ;;  %v3635_v50 = vmin.f32 %v9312_v54, 20.0  ;;  %vm9346_vm10 = vcmp.lt.f32.partialorder %v4027_v27, 0.0004427343 }
 0x31c   : > { %v4039_v39 = vadd.f32 1.0, %v9305_v44  ;;  %v9322_v11 = vpop.eup %6097  ;;  %6111 = vlog2.f32 %v4300_v18  ;;  %v3890_v26 = vadd.f32 1.0, %v3889_v37  ;;  %v4042_v6 = vmul.f32 -0.5, %v9305_v44 }
 0x31d   : > { %v9289_v49 = vpop.f32.mrb[48].mxu1  ;;  %11475 = vst [vmem:[#allocation35_spill] sm:$0xff] %v9322_v11  ;;  %v3873_v11 = vmul.f32 %v9229_v60, %v3872_v22  ;;  %v4026_v27 = vmul.f32 %v9251_v32, %v4025_v15  ;;  %v3810_v29 = vmul.f32 1.442695, %v3685_v17  ;;  %v3892_v37 = vand.u32 2147483647, %v9273_v51 }
 0x31e   : > { %v9303_v24 = vpop.f32.mrb[49].mxu1  ;;  %v6100_v63 = vpop.eup %6099  ;;  %6113 = vlog2.f32 %v4039_v39  ;;  %v3710_v15 = vmul.f32 1.442695, %v3635_v50  ;;  %v4045_v32 = vand.u32 2147483647, %v9305_v44  ;;  %v9387_v50 = vadd.f32 %v8905_v25, %v9289_v49 }
 0x31f   : > { %v9309_v34 = vpop.f32.mrb[50].mxu1  ;;  %v3870_v48 = vmul.f32 0.6931472, %v6100_v63  ;;  %v9339_v36 = vpop.eup %6101  ;;  %6115 = vpow2.f32 %v3706_v8  ;;  %vm3893_vm11 = vcmp.lt.f32.partialorder %v3892_v37, 0.0004427343  ;;  %v9408_v49 = vadd.f32 %v8940_v53, %v9220_v45 }
 0x320   : > { %v3298_v38 = vpop.f32.mrb[52].mxu0  ;;  %v9316_v2 = vpop.f32.mrb[51].mxu1  ;;  %v4174_v22 = vadd.f32 1.0, %v9339_v36  ;;  %6117 = vpow2.f32 %v3806_v41  ;;  %vm4046_vm12 = vcmp.lt.f32.partialorder %v4045_v32, 0.0004427343  ;;  %vm4567_vm15 = vcmp.gt.f32.partialorder %v9298_v13, 20.0 }
 0x321   : > { %v9326_v3 = vpop.f32.mrb[53].mxu0  ;;  %v6104_v63 = vpop.eup %6103  ;;  %v3876_v60 = vsel %vm9341_vm8, %v3873_v11, %v3870_v48  ;;  %v9368_v48 = vadd.f32 %v8907_v56, %v9178_v21  ;;  %v9372_v11 = vadd.f32 %v8940_v53, %v9170_v12  ;;  %11489 = vst [vmem:[#allocation71_spill] sm:$0xff] %v9408_v49  ;;  %v4180_v62 = vand.u32 2147483647, %v9339_v36 }
 0x322   : > { %v9334_v28 = vpop.f32.mrb[54].mxu0  ;;  %v9358_v8 = vpop.eup %6105  ;;  %v4023_v54 = vmul.f32 0.6931472, %v6104_v63  ;;  %v4448_v18 = vmul.f32 0.01, %v3876_v60  ;;  %6119 = vlog2.f32 %v4174_v22  ;;  %vm4552_vm2 = vcmp.gt.f32.partialorder %v9232_v9, 20.0 }
 0x323   : > { %v9350_v43 = vpop.f32.mrb[55].mxu0  ;;  %v9363_v4 = vpop.eup %6107  ;;  %11484 = vst [vmem:[#allocation65_spill] sm:$0xff] %v9368_v48  ;;  %11485 = vst [vmem:[#allocation9_spill] sm:$0xff] %v9372_v11  ;;  %v4192_v7 = vadd.f32 1.0, %v9358_v8  ;;  %6121 = vpow2.f32 %v3810_v29  ;;  %v9418_v47 = vmul.f32 100.0, %v9372_v11  ;;  %v9618_v13 = vadd.f32 %v8907_v56, %v9316_v2 }
 0x324   : > { %11481 = vst [vmem:[#allocation36_spill] sm:$0xff] %v9350_v43  ;;  %11483 = vst [vmem:[#allocation31_spill] sm:$0xff] %v9363_v4  ;;  %v4029_v41 = vsel %vm9346_vm10, %v4026_v27, %v4023_v54  ;;  %v3891_v4 = vmul.f32 %v9273_v51, %v3890_v26  ;;  %v9390_v54 = vadd.f32 %v8905_v25, %v3298_v38  ;;  %vm9508_vm13 = vcmp.lt.f32.partialorder %v4180_v62, 0.0004427343 }
 0x325   : > { %v9356_v57 = vpop.f32.mrb[52].mxu1  ;;  %v6110_v60 = vpop.eup %6109  ;;  %v4465_v21 = vmul.f32 0.01, %v4029_v41  ;;  %v9399_v51 = vsel %vm4516_vm5, %v9120_v35, %v4448_v18  ;;  %v9415_v35 = vmul.f32 100.0, %v9368_v48  ;;  %11491 = vst [vmem:[#allocation27_spill] sm:$0xff] %v9418_v47  ;;  %6123 = vlog2.f32 %v4192_v7  ;;  %11525 = vst [vmem:[#allocation86_spill] sm:$0xff] %v9618_v13 }
 0x326   : > { %v9361_v40 = vpop.f32.mrb[53].mxu1  ;;  %v3888_v43 = vmul.f32 0.6931472, %v6110_v60  ;;  %v9394_v22 = vpop.eup %6111  ;;  %11487 = vst [vmem:[#allocation67_spill] sm:$0xff] %v9399_v51  ;;  %6125 = vpow2.f32 %v9337_v1  ;;  %v9437_v7 = vmul.f32 100.0, %v9408_v49  ;;  %v3667_v1 = vmin.f32 %v9418_v47, 20.0 }
 0x327   : > { %11482 = vst [vmem:[#allocation40_spill] sm:$0xff] %v9361_v40  ;;  %v9374_v63 = vpop.f32.mrb[54].mxu1  ;;  %v4043_v40 = vadd.f32 1.0, %v4042_v6  ;;  %11486 = vst [vmem:[#allocation25_spill] sm:$0xff] %v9394_v22  ;;  %v9404_v29 = vsel %vm4533_vm6, %v9133_v33, %v4465_v21  ;;  %6127 = vpow2.f32 %v3710_v15  ;;  %vm4513_vm5 = vcmp.gt.f32.partialorder %v8984_v46, 20.0 }
 0x328   : > { %v9379_v17 = vpop.f32.mrb[55].mxu1  ;;  %v9383_v12 = vpop.f32.mrb[56].mxu0  ;;  %11488 = vst [vmem:[#allocation55_spill] sm:$0xff] %v9404_v29  ;;  %v3894_v6 = vsel %vm3893_vm11, %v3891_v4, %v3888_v43  ;;  %11490 = vst [vmem:[#allocation45_spill] sm:$0xff] %v9415_v35  ;;  %v9427_v43 = vmul.f32 100.0, %v9387_v50  ;;  %v9430_v4 = vmul.f32 100.0, %v9390_v54 }
 0x329   : > { %v9392_v39 = vpop.f32.mrb[57].mxu0  ;;  %v6114_v26 = vpop.eup %6113  ;;  %v4044_v18 = vmul.f32 %v9305_v44, %v4043_v40  ;;  %v4450_v37 = vmul.f32 0.01, %v3894_v6  ;;  %v4177_v44 = vmul.f32 -0.5, %v9339_v36  ;;  %11493 = vst [vmem:[#allocation37_spill] sm:$0xff] %v9437_v7  ;;  %v3669_v47 = vmin.f32 %v9437_v7, 20.0 }
 0x32a   : > { %v9410_v38 = vpop.f32.mrb[58].mxu0  ;;  %v4041_v33 = vmul.f32 0.6931472, %v6114_v26  ;;  %v9423_v45 = vpop.eup %6115  ;;  %v3652_v26 = vmin.f32 %v9415_v35, 20.0  ;;  %v3636_v6 = vmin.f32 %v9427_v43, 20.0  ;;  %v3638_v27 = vmin.f32 %v9430_v4, 20.0 }
 0x32b   : > { %v9420_v14 = vpop.f32.mrb[59].mxu0  ;;  %11492 = vst [vmem:[#allocation32_spill] sm:$0xff] %v9423_v45  ;;  %v9441_v32 = vpop.eup %6117  ;;  %v4178_v15 = vadd.f32 1.0, %v4177_v44  ;;  %v9651_v9 = vmul.f32 100.0, %v9618_v13  ;;  %vm4520_vm10 = vcmp.gt.f32.partialorder %v9427_v43, 20.0 }
 0x32c   : > { %v4047_v60 = vsel %vm4046_vm12, %v4044_v18, %v4041_v33  ;;  %v4327_v33 = vadd.f32 1.0, %v9441_v32  ;;  %v6120_v49 = vpop.eup %6119  ;;  %v3712_v35 = vmul.f32 1.442695, %v3636_v6  ;;  %v3716_v51 = vmul.f32 1.442695, %v3638_v27 }
 0x32d   : > { %v9432_v41 = vpop.f32.mrb[56].mxu1  ;;  %v4467_v21 = vmul.f32 0.01, %v4047_v60  ;;  %v9456_v60 = vsel %vm4518_vm7, %v9161_v20, %v4450_v37  ;;  %v9468_v22 = vpop.eup %6121  ;;  %v3744_v20 = vmul.f32 1.442695, %v3652_v26  ;;  %v4330_v44 = vmul.f32 -0.5, %v9441_v32 }
 0x32e   : > { %v9439_v40 = vpop.f32.mrb[57].mxu1  ;;  %11494 = vst [vmem:[#allocation19_spill] sm:$0xff] %v9456_v60  ;;  %6129 = vlog2.f32 %v4327_v33  ;;  %v4176_v37 = vmul.f32 0.6931472, %v6120_v49  ;;  %v9478_v6 = vadd.f32 %v8907_v56, %v9309_v34  ;;  %v9484_v26 = vmul.f32 1.442695, %v3667_v1 }
 0x32f   : > { %v9446_v11 = vpop.f32.mrb[58].mxu1  ;;  %v9459_v48 = vsel %vm4535_vm1, %v9176_v58, %v4467_v21  ;;  %v4195_v58 = vmul.f32 -0.5, %v9358_v8  ;;  %6131 = vpow2.f32 %v3712_v35  ;;  %v4345_v21 = vadd.f32 1.0, %v9468_v22  ;;  %v6124_v60 = vpop.eup %6123  ;;  %11533 = vst [vmem:[#allocation92_spill] sm:$0xff] %v9651_v9 }
 0x330   : > { %v9451_v18 = vpop.f32.mrb[60].mxu0  ;;  %11495 = vst [vmem:[#allocation83_spill] sm:$0xff] %v9459_v48  ;;  %v9466_v45 = vpop.f32.mrb[59].mxu1  ;;  %v9488_v35 = vadd.f32 %v8963_v59, %v9194_v30  ;;  %6133 = vpow2.f32 %v3716_v51  ;;  %v11500_v49 = vsel %vm9247_vm9, %v9239_v5, %v9257_v23  ;;  %v4179_v48 = vmul.f32 %v9339_v36, %v4178_v15 }
 0x331   : > { %v9464_v29 = vpop.f32.mrb[61].mxu0  ;;  %11496 = vst [vmem:[#allocation18_spill] sm:$0xff] %v9466_v45  ;;  %v9495_v7 = vmul.f32 0.01, %v11500_v49  ;;  %6135 = vlog2.f32 %v4345_v21  ;;  %v9504_v30 = vadd.f32 %v8963_v59, %v9227_v10  ;;  %v4196_v23 = vadd.f32 1.0, %v4195_v58 }
 0x332   : > { %v9472_v27 = vpop.f32.mrb[62].mxu0  ;;  %11499 = vst [vmem:[#allocation43_spill] sm:$0xff] %v9488_v35  ;;  %6137 = vpow2.f32 %v3744_v20  ;;  %v4198_v5 = vand.u32 2147483647, %v9358_v8  ;;  %v4182_v10 = vsel %vm9508_vm13, %v4179_v48, %v4176_v37  ;;  %v4331_v1 = vadd.f32 1.0, %v4330_v44 }
 0x333   : > { %v9480_v33 = vpop.f32.mrb[63].mxu0  ;;  %11502 = vst [vmem:[#allocation10_spill] sm:$0xff] %v9504_v30  ;;  %v9521_v15 = vmul.f32 100.0, %v9478_v6  ;;  %v9525_v20 = vadd.f32 %v8907_v56, %v9334_v28  ;;  %v4194_v58 = vmul.f32 0.6931472, %v6124_v60  ;;  %v4348_v21 = vmul.f32 -0.5, %v9468_v22 }
 0x334   : > { %11497 = vst [vmem:[#allocation70_spill] sm:$0xff] %v9480_v33  ;;  %v9532_v49 = vmul.f32 100.0, %v9488_v35  ;;  %v4333_v37 = vand.u32 2147483647, %v9441_v32  ;;  %v9540_v44 = vmul.f32 100.0, %v9504_v30  ;;  %v4197_v35 = vmul.f32 %v9358_v8, %v4196_v23 }
 0x335   : > { %v9482_v55 = vpop.f32.mrb[60].mxu1  ;;  %v3653_v28 = vmin.f32 %v9521_v15, 20.0  ;;  %v9544_v60 = vmul.f32 100.0, %v9525_v20  ;;  %vm9549_vm0 = vcmp.lt.f32.partialorder %v4198_v5, 0.0004427343  ;;  %v4349_v33 = vadd.f32 1.0, %v4348_v21 }
 0x336   : > { %11498 = vst [vmem:[#allocation59_spill] sm:$0xff] %v9482_v55  ;;  %v9497_v34 = vpop.f32.mrb[61].mxu1  ;;  %v9500_v55 = vmul.f32 1.442695, %v3669_v47  ;;  %v9516_v47 = vpop.eup %6125  ;;  %11509 = vst [vmem:[#allocation72_spill] sm:$0xff] %v9532_v49  ;;  %vm4569_vm9 = vcmp.gt.f32.partialorder %v9301_v16, 20.0 }
 0x337   : > { %11501 = vst [vmem:[#allocation61_spill] sm:$0xff] %v9497_v34  ;;  %v9506_v51 = vpop.f32.mrb[62].mxu1  ;;  %11507 = vst [vmem:[#allocation50_spill] sm:$0xff] %v9516_v47  ;;  %v9536_v48 = vpop.eup %6127  ;;  %v4482_v47 = vmul.f32 0.01, %v4182_v10  ;;  %v4332_v34 = vmul.f32 %v9441_v32, %v4331_v1  ;;  %v3655_v8 = vmin.f32 %v9544_v60, 20.0 }
 0x338   : > { %11503 = vst [vmem:[#allocation41_spill] sm:$0xff] %v9506_v51  ;;  %v9514_v36 = vpop.f32.mrb[63].mxu1  ;;  %v9527_v62 = vpop.f32.mrb[64].mxu0  ;;  %11511 = vst [vmem:[#allocation44_spill] sm:$0xff] %v9536_v48  ;;  %v9555_v48 = vadd.f32 %v8905_v25, %v9303_v24  ;;  %v3746_v10 = vmul.f32 1.442695, %v3653_v28  ;;  %v4200_v24 = vsel %vm9549_vm0, %v4197_v35, %v4194_v58  ;;  %v9582_v35 = vadd.f32 %v8905_v25, %v9326_v3 }
 0x339   : > { %11506 = vst [vmem:[#allocation38_spill] sm:$0xff] %v9514_v36  ;;  %11508 = vst [vmem:[#allocation42_spill] sm:$0xff] %v9527_v62  ;;  %v9534_v0 = vpop.f32.mrb[65].mxu0  ;;  %vm4334_vm3 = vcmp.lt.f32.partialorder %v4333_v37, 0.0004427343  ;;  %v3684_v32 = vmin.f32 %v9532_v49, 20.0 }
 0x33a   : > { %11510 = vst [vmem:[#allocation30_spill] sm:$0xff] %v9534_v0  ;;  %11512 = vst [vmem:[#allocation69_spill] sm:$0xff] %v9540_v44  ;;  %v9546_v36 = vpop.f32.mrb[66].mxu0  ;;  %v6130_v0 = vpop.eup %6129  ;;  %6139 = vpow2.f32 %v3746_v10  ;;  %v9578_v45 = vmul.f32 100.0, %v9555_v48  ;;  %v3750_v51 = vmul.f32 1.442695, %v3655_v8  ;;  %v4350_v10 = vmul.f32 %v9468_v22, %v4349_v33 }
 0x33b   : > { %11513 = vst [vmem:[#allocation23_spill] sm:$0xff] %v9546_v36  ;;  %11516 = vst [vmem:[#allocation64_spill] sm:$0xff] %v9555_v48  ;;  %v9557_v30 = vpop.f32.mrb[67].mxu0  ;;  %v4351_v36 = vand.u32 2147483647, %v9468_v22  ;;  %v9565_v5 = vpop.eup %6131  ;;  %v3654_v48 = vmin.f32 %v9651_v9, 20.0 }
 0x33c   : > { %11517 = vst [vmem:[#allocation57_spill] sm:$0xff] %v9557_v30  ;;  %v4329_v62 = vmul.f32 0.6931472, %v6130_v0  ;;  %v9571_v30 = vadd.f32 %v8940_v53, %v9356_v57  ;;  %v3904_v1 = vadd.f32 1.0, %v9565_v5  ;;  %v9575_v28 = vpop.eup %6133  ;;  %11519 = vst [vmem:[#allocation66_spill] sm:$0xff] %v9578_v45  ;;  %v9587_v57 = vsel %vm4550_vm14, %v9207_v19, %v4482_v47 }
 0x33d   : > { %v9563_v23 = vpop.f32.mrb[64].mxu1  ;;  %11520 = vst [vmem:[#allocation39_spill] sm:$0xff] %v9582_v35  ;;  %v6136_v58 = vpop.eup %6135  ;;  %11521 = vst [vmem:[#allocation84_spill] sm:$0xff] %v9587_v57  ;;  %v4484_v21 = vmul.f32 0.01, %v4200_v24  ;;  %v3922_v42 = vadd.f32 1.0, %v9575_v28 }
 0x33e   : > { %11518 = vst [vmem:[#allocation60_spill] sm:$0xff] %v9563_v23  ;;  %v4335_v23 = vsel %vm4334_vm3, %v4332_v34, %v4329_v62  ;;  %vm9589_vm4 = vcmp.lt.f32.partialorder %v4351_v36, 0.0004427343  ;;  %v9593_v34 = vpop.eup %6137  ;;  %v4347_v62 = vmul.f32 0.6931472, %v6136_v58  ;;  %6141 = vlog2.f32 %v3904_v1  ;;  %v9609_v47 = vpop.f32.mrb[65].mxu1 }
 0x33f   : > { %v4499_v0 = vmul.f32 0.01, %v4335_v23  ;;  %v9597_v3 = vmul.f32 100.0, %v9571_v30  ;;  %6143 = vpow2.f32 %v3750_v51  ;;  %v9607_v36 = vadd.f32 %v8940_v53, %v9383_v12 }
 0x340   : > { %v4353_v33 = vsel %vm9589_vm4, %v4350_v10, %v4347_v62  ;;  %6145 = vpow2.f32 %v9484_v26  ;;  %v3808_v8 = vmul.f32 1.442695, %v3684_v32  ;;  %v3686_v23 = vmin.f32 %v9540_v44, 20.0  ;;  %v11531_v32 = vld [vmem:[#allocation36_spill] sm:$0xff]  ;;  %v11534_v10 = vld [vmem:[#allocation82_spill] sm:$0xff] }
 0x341   : > { %v9602_v19 = vsel %vm4567_vm15, %v9281_v52, %v4499_v0  ;;  %v9620_v52 = vpop.f32.mrb[66].mxu1  ;;  %v4501_v12 = vmul.f32 0.01, %v4353_v33  ;;  %v9630_v16 = vsel %vm4552_vm2, %v9218_v61, %v4484_v21  ;;  %v3637_v2 = vmin.f32 %v9578_v45, 20.0  ;;  %v11540_v45 = vld [vmem:[#allocation28_spill] sm:$0xff] }
 0x342   : > { %11524 = vst [vmem:[#allocation85_spill] sm:$0xff] %v9602_v19  ;;  %11526 = vst [vmem:[#allocation87_spill] sm:$0xff] %v9620_v52  ;;  %v9625_v24 = vpop.f32.mrb[67].mxu1  ;;  %v9634_v1 = vmul.f32 100.0, %v9582_v35  ;;  %v3670_v51 = vmin.f32 %v9597_v3, 20.0  ;;  %6147 = vlog2.f32 %v3922_v42  ;;  %v9642_v58 = vadd.f32 %v8907_v56, %v11531_v32  ;;  %v11535_v42 = vld [vmem:[#allocation13_spill] sm:$0xff] }
 0x343   : > { %11527 = vst [vmem:[#allocation88_spill] sm:$0xff] %v9625_v24  ;;  %11528 = vst [vmem:[#allocation89_spill] sm:$0xff] %v9630_v16  ;;  %v9638_v26 = vsel %vm4569_vm9, %v9284_v31, %v4501_v12  ;;  %v9645_v0 = vmul.f32 100.0, %v9607_v36  ;;  %6149 = vpow2.f32 %v9500_v55  ;;  %v3907_v31 = vmul.f32 -0.5, %v9565_v5  ;;  %v11536_v32 = vld [vmem:[#allocation14_spill] sm:$0xff] }
 0x344   : > { %11529 = vst [vmem:[#allocation90_spill] sm:$0xff] %v9634_v1  ;;  %11530 = vst [vmem:[#allocation91_spill] sm:$0xff] %v9638_v26  ;;  %v3780_v21 = vmul.f32 1.442695, %v3670_v51  ;;  %v9653_v37 = vpop.eup %6139  ;;  %6151 = vpow2.f32 %v3808_v8  ;;  %v9659_v33 = vmul.f32 %v11535_v42, %v11534_v10  ;;  %v3812_v12 = vmul.f32 1.442695, %v3686_v23 }
 0x345   : > { %11532 = vst [vmem:[#allocation36_spill] sm:$0xff] %v9642_v58  ;;  %v3672_v62 = vmin.f32 %v9645_v0, 20.0  ;;  %v4057_v55 = vadd.f32 1.0, %v9653_v37  ;;  %v9663_v61 = vadd.f32 1.0, %v11536_v32  ;;  %v3714_v22 = vmul.f32 1.442695, %v3637_v2 }
 0x346   : > { %6153 = vpow2.f32 %v3780_v21  ;;  %v3639_v51 = vmin.f32 %v9634_v1, 20.0  ;;  %v9667_v8 = vmul.f32 100.0, %v9642_v58  ;;  %v9672_v23 = vadd.f32 %v8963_v59, %v9374_v63  ;;  %v11538_v63 = vld [vmem:[#allocation20_spill] sm:$0xff] }
 0x347   : > { %v3784_v35 = vmul.f32 1.442695, %v3672_v62  ;;  %6155 = vlog2.f32 %v4057_v55  ;;  %v9676_v21 = vadd.f32 %v8963_v59, %v9410_v38  ;;  %v3908_v2 = vadd.f32 1.0, %v3907_v31 }
 0x348   : > { %11537 = vst [vmem:[#allocation82_spill] sm:$0xff] %v9667_v8  ;;  %v6142_v13 = vpop.eup %6141  ;;  %v3910_v32 = vand.u32 2147483647, %v9565_v5  ;;  %v3925_v58 = vmul.f32 -0.5, %v9575_v28  ;;  %v3928_v62 = vand.u32 2147483647, %v9575_v28  ;;  %v9688_v1 = vsel %vm4513_vm5, %v11538_v63, %v9495_v7 }
 0x349   : > { %v9678_v10 = vpop.eup %6143  ;;  %6157 = vpow2.f32 %v3784_v35  ;;  %v3906_v16 = vmul.f32 0.6931472, %v6142_v13  ;;  %v3718_v31 = vmul.f32 1.442695, %v3639_v51  ;;  %v4060_v26 = vmul.f32 -0.5, %v9653_v37 }
 0x34a   : > { %6159 = vpow2.f32 %v3812_v12  ;;  %v4075_v55 = vadd.f32 1.0, %v9678_v10  ;;  %v9690_v38 = vpop.eup %6145  ;;  %v3748_v35 = vmul.f32 1.442695, %v3654_v48  ;;  %v9694_v12 = vmul.f32 100.0, %v9672_v23 }
 0x34b   : > { %11539 = vst [vmem:[#allocation13_spill] sm:$0xff] %v9690_v38  ;;  %6161 = vpow2.f32 %v3714_v22  ;;  %v9697_v9 = vmul.f32 100.0, %v9676_v21  ;;  %v11541_v57 = vand.u32 2147483647, %v11540_v45  ;;  %v3909_v22 = vmul.f32 %v9565_v5, %v3908_v2 }
 0x34c   : > { %6163 = vlog2.f32 %v4075_v55  ;;  %v6148_v7 = vpop.eup %6147  ;;  %vm9706_vm8 = vcmp.lt.f32.partialorder %v3910_v32, 0.0004427343  ;;  %v3926_v48 = vadd.f32 1.0, %v3925_v58  ;;  %v3656_v51 = vmin.f32 %v9667_v8, 20.0 }
 0x34d   : > { %vm9701_vm6 = vcmp.lt.f32.partialorder %v11541_v57, 0.0004427343  ;;  %v9711_v55 = vpop.eup %6149  ;;  %vm9714_vm11 = vcmp.lt.f32.partialorder %v3928_v62, 0.0004427343  ;;  %v11549_v57 = vld [vmem:[#allocation40_spill] sm:$0xff]  ;;  %v9724_v5 = vadd.f32 %v8940_v53, %v9392_v39  ;;  %v3687_v58 = vmin.f32 %v9694_v12, 20.0 }
 0x34e   : > { %11546 = vst [vmem:[#allocation14_spill] sm:$0xff] %v9711_v55  ;;  %v9720_v63 = vadd.f32 %v8940_v53, %v11549_v57  ;;  %v9727_v2 = vpop.eup %6151  ;;  %v3912_v32 = vsel %vm9706_vm8, %v3909_v22, %v3906_v16  ;;  %v4061_v8 = vadd.f32 1.0, %v4060_v26  ;;  %vm4537_vm12 = vcmp.gt.f32.partialorder %v9521_v15, 20.0  ;;  %v11553_v55 = vld [vmem:[#allocation46_spill] sm:$0xff]  ;;  %v11554_v22 = vld [vmem:[#allocation35_spill] sm:$0xff] }
 0x34f   : > { %11551 = vst [vmem:[#allocation28_spill] sm:$0xff] %v9724_v5  ;;  %11552 = vst [vmem:[#allocation40_spill] sm:$0xff] %v9727_v2  ;;  %v4078_v62 = vmul.f32 -0.5, %v9678_v10  ;;  %v3689_v19 = vmin.f32 %v9697_v9, 20.0  ;;  %v3924_v44 = vmul.f32 0.6931472, %v6148_v7  ;;  %6165 = vpow2.f32 %v3718_v31 }
 0x350   : > { %11550 = vst [vmem:[#allocation20_spill] sm:$0xff] %v9720_v63  ;;  %v9734_v57 = vpop.eup %6153  ;;  %v4063_v39 = vand.u32 2147483647, %v9653_v37  ;;  %v3814_v49 = vmul.f32 1.442695, %v3687_v58  ;;  %vm4530_vm7 = vcmp.gt.f32.partialorder %v11553_v55, 20.0  ;;  %v3927_v2 = vmul.f32 %v9575_v28, %v3926_v48 }
 0x351   : > { %v4210_v16 = vadd.f32 1.0, %v9734_v57  ;;  %v3818_v26 = vmul.f32 1.442695, %v3689_v19  ;;  %v3996_v13 = vmul.f32 0.6931472, %v11554_v22  ;;  %v6156_v38 = vpop.eup %6155  ;;  %v9742_v52 = vmul.f32 100.0, %v9720_v63 }
 0x352   : > { %v4452_v24 = vmul.f32 0.01, %v3912_v32  ;;  %v9745_v7 = vmul.f32 100.0, %v9724_v5  ;;  %6167 = vpow2.f32 %v3814_v49  ;;  %vm4522_vm1 = vcmp.gt.f32.partialorder %v9430_v4, 20.0 }
 0x353   : > { %11555 = vst [vmem:[#allocation46_spill] sm:$0xff] %v9742_v52  ;;  %v9747_v31 = vpop.eup %6157  ;;  %v4059_v58 = vmul.f32 0.6931472, %v6156_v38  ;;  %v4062_v28 = vmul.f32 %v9653_v37, %v4061_v8  ;;  %v4079_v48 = vadd.f32 1.0, %v4078_v62  ;;  %v4081_v19 = vand.u32 2147483647, %v9678_v10 }
 0x354   : > { %11556 = vst [vmem:[#allocation35_spill] sm:$0xff] %v9745_v7  ;;  %vm4539_vm13 = vcmp.gt.f32.partialorder %v9544_v60, 20.0  ;;  %v9753_v32 = vpop.eup %6159  ;;  %v3930_v22 = vsel %vm9714_vm11, %v3927_v2, %v3924_v44  ;;  %vm4064_vm14 = vcmp.lt.f32.partialorder %v4063_v39, 0.0004427343  ;;  %6169 = vpow2.f32 %v3818_v26  ;;  %v11558_v8 = vld [vmem:[#allocation49_spill] sm:$0xff] }
 0x355   : > { %11557 = vst [vmem:[#allocation93_spill] sm:$0xff] %v9753_v32  ;;  %v9759_v49 = vadd.f32 %v8905_v25, %v9432_v41  ;;  %v9761_v5 = vpop.eup %6161  ;;  %v4065_v38 = vsel %vm4064_vm14, %v4062_v28, %v4059_v58  ;;  %6171 = vlog2.f32 %v4210_v16  ;;  %v4228_v37 = vadd.f32 1.0, %v9747_v31 }
 0x356   : > { %v4002_v62 = vsel %vm9701_vm6, %v11558_v8, %v3996_v13  ;;  %v6164_v63 = vpop.eup %6163  ;;  %v4469_v32 = vmul.f32 0.01, %v4065_v38  ;;  %6173 = vpow2.f32 %v3748_v35  ;;  %v3752_v44 = vmul.f32 1.442695, %v3656_v51  ;;  %v11560_v13 = vld [vmem:[#allocation17_spill] sm:$0xff] }
 0x357   : > { %v3671_v45 = vmin.f32 %v9742_v52, 20.0  ;;  %v9771_v41 = vsel %vm4520_vm10, %v9387_v50, %v4452_v24  ;;  %v4077_v2 = vmul.f32 0.6931472, %v6164_v63  ;;  %v4080_v39 = vmul.f32 %v9678_v10, %v4079_v48  ;;  %v11566_v8 = vld [vmem:[#allocation73_spill] sm:$0xff] }
 0x358   : > { %11559 = vst [vmem:[#allocation49_spill] sm:$0xff] %v9771_v41  ;;  %vm4082_vm15 = vcmp.lt.f32.partialorder %v4081_v19, 0.0004427343  ;;  %v4454_v16 = vmul.f32 0.01, %v3930_v22  ;;  %v9777_v46 = vsel %vm4537_vm12, %v9478_v6, %v4469_v32  ;;  %v9780_v35 = vmul.f32 100.0, %v9759_v49 }
 0x359   : > { %v4462_v26 = vmul.f32 0.01, %v4002_v62  ;;  %v4083_v43 = vsel %vm4082_vm15, %v4080_v39, %v4077_v2  ;;  %6175 = vlog2.f32 %v4228_v37  ;;  %v3673_v50 = vmin.f32 %v9745_v7, 20.0  ;;  %v9785_v24 = vpop.eup %6165 }
 0x35a   : > { %v4471_v10 = vmul.f32 0.01, %v4083_v43  ;;  %v3782_v63 = vmul.f32 1.442695, %v3671_v45  ;;  %v3640_v15 = vmin.f32 %v9780_v35, 20.0  ;;  %v4213_v58 = vmul.f32 -0.5, %v9734_v57 }
 0x35b   : > { %v4598_v6 = vsel %vm4530_vm7, %v11560_v13, %v4462_v26  ;;  %v9794_v28 = vadd.f32 %v8963_v59, %v9379_v17  ;;  %v9799_v19 = vadd.f32 %v8905_v25, %v9451_v18  ;;  %v9806_v55 = vsel %vm4522_vm1, %v9390_v54, %v4454_v16  ;;  %v11565_v54 = vld [vmem:[#allocation74_spill] sm:$0xff] }
 0x35c   : > { %v5561_v48 = vpack.c.bf16 %v4598_v6, %v9688_v1  ;;  %v9801_v32 = vpop.eup %6167  ;;  %11562 = vst [vmem:[#allocation94_spill] sm:$0xff] %v9806_v55  ;;  %v9811_v22 = vsel %vm4539_vm13, %v9525_v20, %v4471_v10  ;;  %v9815_v17 = vadd.f32 %v8963_v59, %v9420_v14  ;;  %v3720_v1 = vmul.f32 1.442695, %v3640_v15  ;;  %v11567_v14 = vld [vmem:[#allocation16_spill] sm:$0xff] }
 0x35d   : > { %11561 = vst [vmem:[#allocation17_spill] sm:$0xff] %v9794_v28  ;;  %11563 = vst [vmem:[#allocation95_spill] sm:$0xff] %v9811_v22  ;;  %6177 = vpow2.f32 %v3752_v44  ;;  %v4363_v38 = vadd.f32 1.0, %v9801_v32  ;;  %v9822_v4 = vmul.f32 %v11565_v54, %v9663_v61  ;;  %v4216_v20 = vand.u32 2147483647, %v9734_v57 }
 0x35e   : > { %11564 = vst [vmem:[#allocation96_spill] sm:$0xff] %v9815_v17  ;;  %5562 = vmatprep.subr.bf16.mxu0 %v5561_v48  ;;  %v9824_v37 = vpop.eup %6169  ;;  %v3786_v60 = vmul.f32 1.442695, %v3673_v50  ;;  %v11568_v62 = vpack.c.bf16 %v11566_v8, %v11567_v14  ;;  %6179 = vpow2.f32 %v3720_v1  ;;  %v9831_v45 = vmul.f32 100.0, %v9799_v19 }
 0x35f   : > { %v6172_v44 = vpop.eup %6171  ;;  %v4214_v2 = vadd.f32 1.0, %v4213_v58  ;;  %6181 = vlog2.f32 %v4363_v38  ;;  %v4381_v39 = vadd.f32 1.0, %v9824_v37  ;;  %v9835_v61 = vmul.f32 100.0, %v9794_v28  ;;  %v11589_v38 = vld [vmem:[#allocation18_spill] sm:$0xff] }
 0x360   : > { %5564 = vmatpush1.bf16.msra.mxu0 %v11568_v62  ;;  %v9837_v16 = vpop.eup %6173  ;;  %v4231_v26 = vmul.f32 -0.5, %v9747_v31  ;;  %6183 = vpow2.f32 %v3782_v63  ;;  %v9841_v43 = vmul.f32 100.0, %v9815_v17  ;;  %v3642_v50 = vmin.f32 %v9831_v45, 20.0 }
 0x361   : > { %11569 = vst [vmem:[#allocation74_spill] sm:$0xff] %v9835_v61  ;;  %v4234_v10 = vand.u32 2147483647, %v9747_v31  ;;  %v4366_v13 = vmul.f32 -0.5, %v9801_v32  ;;  %6185 = vlog2.f32 %v4381_v39  ;;  %v9848_v6 = vadd.f32 %v8907_v56, %v9446_v11 }
 0x362   : > { %11570 = vst [vmem:[#allocation73_spill] sm:$0xff] %v9841_v43  ;;  %v4212_v15 = vmul.f32 0.6931472, %v6172_v44  ;;  %6187 = vpow2.f32 %v3786_v60  ;;  %v3724_v58 = vmul.f32 1.442695, %v3642_v50  ;;  %v9852_v63 = vadd.f32 %v8905_v25, %v9439_v40 }
 0x363   : > { %v6176_v48 = vpop.eup %6175  ;;  %v4215_v1 = vmul.f32 %v9734_v57, %v4214_v2  ;;  %vm9855_vm0 = vcmp.lt.f32.partialorder %v4216_v20, 0.0004427343  ;;  %v4384_v8 = vmul.f32 -0.5, %v9824_v37  ;;  %v3688_v14 = vmin.f32 %v9835_v61, 20.0 }
 0x364   : > { %11571 = vst [vmem:[#allocation16_spill] sm:$0xff] %v9852_v63  ;;  %v4232_v11 = vadd.f32 1.0, %v4231_v26  ;;  %v4369_v62 = vand.u32 2147483647, %v9801_v32  ;;  %v3690_v60 = vmin.f32 %v9841_v43, 20.0  ;;  %6189 = vpow2.f32 %v3724_v58 }
 0x365   : > { %vm9863_vm2 = vcmp.lt.f32.partialorder %v4234_v10, 0.0004427343  ;;  %v4367_v44 = vadd.f32 1.0, %v4366_v13  ;;  %v9868_v57 = vmul.f32 100.0, %v9848_v6  ;;  %v9872_v20 = vadd.f32 %v8907_v56, %v9472_v27 }
 0x366   : > { %v4218_v2 = vsel %vm9855_vm0, %v4215_v1, %v4212_v15  ;;  %vm4554_vm3 = vcmp.gt.f32.partialorder %v9597_v3, 20.0  ;;  %v4230_v39 = vmul.f32 0.6931472, %v6176_v48  ;;  %vm4571_vm4 = vcmp.gt.f32.partialorder %v9694_v12, 20.0 }
 0x367   : > { %v9879_v26 = vmul.f32 100.0, %v9852_v63  ;;  %v9883_v50 = vadd.f32 %v8905_v25, %v9464_v29  ;;  %v9885_v10 = vpop.eup %6177  ;;  %v4385_v13 = vadd.f32 1.0, %v4384_v8  ;;  %v4387_v27 = vand.u32 2147483647, %v9824_v37 }
 0x368   : > { %v3657_v58 = vmin.f32 %v9868_v57, 20.0  ;;  %v9890_v15 = vmul.f32 100.0, %v9872_v20  ;;  %v9892_v48 = vpop.eup %6179  ;;  %v4233_v1 = vmul.f32 %v9747_v31, %v4232_v11  ;;  %vm4556_vm9 = vcmp.gt.f32.partialorder %v9645_v0, 20.0 }
 0x369   : > { %11576 = vst [vmem:[#allocation97_spill] sm:$0xff] %v9879_v26  ;;  %11577 = vst [vmem:[#allocation98_spill] sm:$0xff] %v9883_v50  ;;  %vm9896_vm5 = vcmp.lt.f32.partialorder %v4369_v62, 0.0004427343  ;;  %vm4573_vm6 = vcmp.gt.f32.partialorder %v9697_v9, 20.0  ;;  %v6182_v63 = vpop.eup %6181  ;;  %v4368_v31 = vmul.f32 %v9801_v32, %v4367_v44  ;;  %v3940_v11 = vadd.f32 1.0, %v9892_v48 }
 0x36a   : > { %v3816_v29 = vmul.f32 1.442695, %v3688_v14  ;;  %v3820_v8 = vmul.f32 1.442695, %v3690_v60  ;;  %v11580_v18 = vand.u32 2147483647, %v11535_v42  ;;  %v9909_v28 = vpop.eup %6183  ;;  %v4236_v55 = vsel %vm9863_vm2, %v4233_v1, %v4230_v39 }
 0x36b   : > { %v4486_v17 = vmul.f32 0.01, %v4218_v2  ;;  %v3754_v62 = vmul.f32 1.442695, %v3657_v58  ;;  %v4365_v14 = vmul.f32 0.6931472, %v6182_v63  ;;  %v4386_v22 = vmul.f32 %v9824_v37, %v4385_v13 }
 0x36c   : > { %vm9903_vm8 = vcmp.lt.f32.partialorder %v11580_v18, 0.0004427343  ;;  %v3641_v60 = vmin.f32 %v9879_v26, 20.0  ;;  %v3659_v42 = vmin.f32 %v9890_v15, 20.0  ;;  %v6186_v18 = vpop.eup %6185  ;;  %vm9916_vm10 = vcmp.lt.f32.partialorder %v4387_v27, 0.0004427343 }
 0x36d   : > { %6191 = vlog2.f32 %v3940_v11  ;;  %v9921_v32 = vmul.f32 100.0, %v9883_v50  ;;  %v9923_v44 = vpop.eup %6187  ;;  %v4371_v63 = vsel %vm9896_vm5, %v4368_v31, %v4365_v14  ;;  %v4383_v40 = vmul.f32 0.6931472, %v6186_v18  ;;  %v11586_v37 = vld [vmem:[#allocation31_spill] sm:$0xff]  ;;  %v11587_v26 = vld [vmem:[#allocation52_spill] sm:$0xff] }
 0x36e   : > { %6193 = vpow2.f32 %v3754_v62  ;;  %v3758_v39 = vmul.f32 1.442695, %v3659_v42  ;;  %v4488_v58 = vmul.f32 0.01, %v4236_v55  ;;  %v4503_v1 = vmul.f32 0.01, %v4371_v63  ;;  %v9928_v27 = vpop.eup %6189 }
 0x36f   : > { %11585 = vst [vmem:[#allocation99_spill] sm:$0xff] %v9921_v32  ;;  %6195 = vpow2.f32 %v3816_v29  ;;  %v4149_v13 = vmul.f32 0.6931472, %v11586_v37  ;;  %vm4547_vm11 = vcmp.gt.f32.partialorder %v11587_v26, 20.0  ;;  %v11588_v11 = vld [vmem:[#allocation56_spill] sm:$0xff]  ;;  %v4389_v50 = vsel %vm9916_vm10, %v4386_v22, %v4383_v40  ;;  %v11593_v42 = vld [vmem:[#allocation70_spill] sm:$0xff] }
 0x370   : > { %vm4564_vm12 = vcmp.gt.f32.partialorder %v11588_v11, 20.0  ;;  %v3722_v43 = vmul.f32 1.442695, %v3641_v60  ;;  %6197 = vpow2.f32 %v3758_v39  ;;  %v9936_v31 = vadd.f32 %v8907_v56, %v11589_v38  ;;  %v11602_v40 = vld [vmem:[#allocation80_spill] sm:$0xff] }
 0x371   : > { %v9941_v55 = vsel %vm4554_vm3, %v9571_v30, %v4486_v17  ;;  %v9946_v29 = vsel %vm4571_vm4, %v9672_v23, %v4503_v1  ;;  %v4505_v62 = vmul.f32 0.01, %v4389_v50  ;;  %v3958_v14 = vadd.f32 1.0, %v9928_v27 }
 0x372   : > { %11590 = vst [vmem:[#allocation31_spill] sm:$0xff] %v9936_v31  ;;  %11591 = vst [vmem:[#allocation52_spill] sm:$0xff] %v9941_v55  ;;  %6199 = vpow2.f32 %v3820_v8  ;;  %v3643_v60 = vmin.f32 %v9921_v32, 20.0  ;;  %v9954_v18 = vadd.f32 %v8907_v56, %v11593_v42  ;;  %v9959_v30 = vsel %vm4556_vm9, %v9607_v36, %v4488_v58  ;;  %v11598_v36 = vld [vmem:[#allocation25_spill] sm:$0xff]  ;;  %v11600_v8 = vld [vmem:[#allocation54_spill] sm:$0xff] }
 0x373   : > { %11592 = vst [vmem:[#allocation56_spill] sm:$0xff] %v9946_v29  ;;  %11595 = vst [vmem:[#allocation70_spill] sm:$0xff] %v9959_v30  ;;  %v9964_v3 = vsel %vm4573_vm6, %v9676_v21, %v4505_v62  ;;  %v3943_v23 = vmul.f32 -0.5, %v9892_v48  ;;  %v4155_v12 = vsel %vm9903_vm8, %v9659_v33, %v4149_v13  ;;  %6201 = vpow2.f32 %v3722_v43  ;;  %v11603_v42 = vld [vmem:[#allocation47_spill] sm:$0xff] }
 0x374   : > { %11594 = vst [vmem:[#allocation18_spill] sm:$0xff] %v9954_v18  ;;  %11596 = vst [vmem:[#allocation100_spill] sm:$0xff] %v9964_v3  ;;  %v9973_v50 = vmul.f32 100.0, %v9936_v31  ;;  %v4302_v0 = vmul.f32 0.6931472, %v11598_v36  ;;  %6203 = vlog2.f32 %v3958_v14  ;;  %v3859_v2 = vadd.f32 1.0, %v11600_v8 }
 0x375   : > { %v11599_v9 = vand.u32 2147483647, %v11565_v54  ;;  %v4479_v21 = vmul.f32 0.01, %v4155_v12  ;;  %v3726_v63 = vmul.f32 1.442695, %v3643_v60 }
 0x376   : > { %11597 = vst [vmem:[#allocation101_spill] sm:$0xff] %v9973_v50  ;;  %v9980_v51 = vmul.f32 100.0, %v9954_v18  ;;  %v4012_v43 = vadd.f32 1.0, %v11602_v40  ;;  %v3944_v58 = vadd.f32 1.0, %v3943_v23  ;;  %v3946_v1 = vand.u32 2147483647, %v9892_v48 }
 0x377   : > { %vm4307_vm7 = vcmp.lt.f32.partialorder %v11599_v9, 0.0004427343  ;;  %v6192_v39 = vpop.eup %6191  ;;  %6205 = vlog2.f32 %v3859_v2  ;;  %v3961_v54 = vmul.f32 -0.5, %v9928_v27  ;;  %v3964_v38 = vand.u32 2147483647, %v9928_v27  ;;  %v11604_v12 = vld [vmem:[#allocation21_spill] sm:$0xff] }
 0x378   : > { %11601 = vst [vmem:[#allocation25_spill] sm:$0xff] %v9980_v51  ;;  %v4308_v33 = vsel %vm4307_vm7, %v9822_v4, %v4302_v0  ;;  %v9985_v13 = vpop.eup %6193  ;;  %v3658_v62 = vmin.f32 %v9973_v50, 20.0  ;;  %6207 = vlog2.f32 %v4012_v43  ;;  %v3942_v4 = vmul.f32 0.6931472, %v6192_v39 }
 0x379   : > { %v4496_v37 = vmul.f32 0.01, %v4308_v33  ;;  %v9990_v14 = vpop.eup %6195  ;;  %v4093_v60 = vadd.f32 1.0, %v9985_v13  ;;  %v4615_v23 = vsel %vm4547_vm11, %v11603_v42, %v4479_v21  ;;  %6209 = vpow2.f32 %v3726_v63 }
 0x37a   : > { %v9999_v0 = vpop.eup %6197  ;;  %v3862_v2 = vmul.f32 -0.5, %v11600_v8  ;;  %v3865_v33 = vand.u32 2147483647, %v11600_v8  ;;  %v3945_v43 = vmul.f32 %v9892_v48, %v3944_v58  ;;  %vm10004_vm1 = vcmp.lt.f32.partialorder %v3946_v1, 0.0004427343 }
 0x37b   : > { %v4632_v36 = vsel %vm4564_vm12, %v11604_v12, %v4496_v37  ;;  %vm4524_vm13 = vcmp.gt.f32.partialorder %v9780_v35, 20.0  ;;  %6211 = vlog2.f32 %v4093_v60  ;;  %v4015_v26 = vmul.f32 -0.5, %v11602_v40  ;;  %v11609_v60 = vld [vmem:[#allocation53_spill] sm:$0xff] }
 0x37c   : > { %v5565_v9 = vpack.c.bf16 %v4632_v36, %v4615_v23  ;;  %v10010_v11 = vpop.eup %6199  ;;  %v3962_v21 = vadd.f32 1.0, %v3961_v54  ;;  %v4096_v63 = vmul.f32 -0.5, %v9985_v13  ;;  %v4111_v37 = vadd.f32 1.0, %v9999_v0  ;;  %v11610_v23 = vld [vmem:[#allocation29_spill] sm:$0xff]  ;;  %v11612_v54 = vld [vmem:[#allocation59_spill] sm:$0xff] }
 0x37d   : > { %v10014_v42 = vmul.f32 1.442695, %v3658_v62  ;;  %v3948_v48 = vsel %vm10004_vm1, %v3945_v43, %v3942_v4  ;;  %vm10018_vm14 = vcmp.lt.f32.partialorder %v3964_v38, 0.0004427343  ;;  %v4099_v1 = vand.u32 2147483647, %v9985_v13  ;;  %v10039_v4 = vpop.eup %6201 }
 0x37e   : > { %5566 = vmatprep.subr.bf16.mxu0 %v5565_v9  ;;  %v11611_v12 = vpack.c.bf16 %v11609_v60, %v11610_v23  ;;  %v10028_v36 = vadd.f32 %v8940_v53, %v11612_v54  ;;  %v11613_v62 = vld [vmem:[#allocation42_spill] sm:$0xff]  ;;  %6213 = vlog2.f32 %v4111_v37  ;;  %v4114_v43 = vmul.f32 -0.5, %v9999_v0  ;;  %v6204_v23 = vpop.eup %6203  ;;  %v11617_v54 = vld [vmem:[#allocation11_spill] sm:$0xff] }
 0x37f   : > { %v10032_v9 = vadd.f32 %v8940_v53, %v11613_v62  ;;  %v10037_v38 = vld [vmem:[%s10777_s6] sm:$0x1f]  ;;  %v3863_v39 = vadd.f32 1.0, %v3862_v2  ;;  %vm10042_vm15 = vcmp.lt.f32.partialorder %v3865_v33, 0.0004427343  ;;  %vm4532_vm2 = vcmp.gt.f32.partialorder %v11617_v54, 20.0 }
 0x380   : > { %5568 = vmatpush1.bf16.msra.mxu0 %v11611_v12  ;;  %v11616_v12 = vld [vmem:[#allocation33_spill] sm:$0xff]  ;;  %v4016_v62 = vadd.f32 1.0, %v4015_v26  ;;  %v10049_v17 = vmul.f32 100.0, %v10028_v36  ;;  %vm4655_vm3 = vcmask 261120   ;;  %v4456_v37 = vmul.f32 0.01, %v3948_v48 }
 0x381   : > { %vm4515_vm0 = vcmp.gt.f32.partialorder %v11616_v12, 20.0  ;;  %v10052_v22 = vmul.f32 100.0, %v10032_v9  ;;  %v3963_v2 = vmul.f32 %v9928_v27, %v3962_v21  ;;  %v4097_v33 = vadd.f32 1.0, %v4096_v63  ;;  %v6206_v32 = vpop.eup %6205  ;;  %v11627_v60 = vld [vmem:[#allocation23_spill] sm:$0xff] }
 0x382   : > { %v4018_v18 = vand.u32 2147483647, %v11602_v40  ;;  %vm10058_vm4 = vcmp.lt.f32.partialorder %v4099_v1, 0.0004427343  ;;  %v4117_v26 = vand.u32 2147483647, %v9999_v0  ;;  %v6208_v27 = vpop.eup %6207  ;;  %v3864_v55 = vmul.f32 %v11600_v8, %v3863_v39 }
 0x383   : > { %5497 = vmatmul.mubr.msk.f32.vlgmr.msra.gmra.mrb[68].mxu0 %vm4655_vm3, %v10037_v38  ;;  %v3674_v30 = vmin.f32 %v10049_v17, 20.0  ;;  %v3676_v3 = vmin.f32 %v10052_v22, 20.0  ;;  %v11620_v48 = vmov 0.0   ;;  %v3960_v21 = vmul.f32 0.6931472, %v6204_v23  ;;  %v10069_v52 = vpop.eup %6209 }
 0x384   : > { %4794 = vmatprep.mubr.f32.mxu0 %v11620_v48  ;;  %vm4541_vm9 = vcmp.gt.f32.partialorder %v9868_v57, 20.0  ;;  %v4115_v63 = vadd.f32 1.0, %v4114_v43  ;;  %v3861_v50 = vmul.f32 0.6931472, %v6206_v32  ;;  %v4014_v1 = vmul.f32 0.6931472, %v6208_v27 }
 0x385   : > { %v4017_v29 = vmul.f32 %v11602_v40, %v4016_v62  ;;  %v3788_v7 = vmul.f32 1.442695, %v3674_v30  ;;  %v3792_v61 = vmul.f32 1.442695, %v3676_v3  ;;  %v10074_v41 = vsel %vm4524_vm13, %v9759_v49, %v4456_v37  ;;  %v6212_v32 = vpop.eup %6211  ;;  %v11628_v62 = vld [vmem:[#allocation63_spill] sm:$0xff] }
 0x386   : > { %11621 = vst [vmem:[#allocation54_spill] sm:$0xff] %v10074_v41  ;;  %v4098_v23 = vmul.f32 %v9985_v13, %v4097_v33  ;;  %v3867_v43 = vsel %vm10042_vm15, %v3864_v55, %v3861_v50  ;;  %vm4019_vm5 = vcmp.lt.f32.partialorder %v4018_v18, 0.0004427343  ;;  %vm4526_vm6 = vcmp.gt.f32.partialorder %v9831_v45, 20.0  ;;  %v11624_v55 = vld [vmem:[#allocation61_spill] sm:$0xff] }
 0x387   : > { %vm10080_vm8 = vcmp.lt.f32.partialorder %v4117_v26, 0.0004427343  ;;  %v4020_v30 = vsel %vm4019_vm5, %v4017_v29, %v4014_v1  ;;  %v4447_v3 = vmul.f32 0.01, %v3867_v43  ;;  %6215 = vpow2.f32 %v3788_v7  ;;  %v11626_v50 = vld [vmem:[#allocation41_spill] sm:$0xff] }
 0x388   : > { %v3966_v49 = vsel %vm10018_vm14, %v3963_v2, %v3960_v21  ;;  %v4095_v35 = vmul.f32 0.6931472, %v6212_v32  ;;  %v4464_v40 = vmul.f32 0.01, %v4020_v30  ;;  %6217 = vpow2.f32 %v3792_v61  ;;  %v6214_v7 = vpop.eup %6213  ;;  %v11630_v2 = vld [vmem:[#allocation22_spill] sm:$0xff]  ;;  %v11634_v30 = vld [vmem:[#allocation81_spill] sm:$0xff] }
 0x389   : > { %v4116_v13 = vmul.f32 %v9999_v0, %v4115_v63  ;;  %v10089_v18 = vadd.f32 %v8940_v53, %v11624_v55  ;;  %v10093_v39 = vadd.f32 %v8963_v59, %v11626_v50  ;;  %v10097_v29 = vadd.f32 %v8963_v59, %v11627_v60  ;;  %v11629_v0 = vld [vmem:[#allocation51_spill] sm:$0xff]  ;;  %v11631_v63 = vld [vmem:[#allocation30_spill] sm:$0xff]  ;;  %v11636_v55 = vld [vmem:[#allocation24_spill] sm:$0xff] }
 0x38a   : > { %v4101_v58 = vsel %vm10058_vm4, %v4098_v23, %v4095_v35  ;;  %v4583_v61 = vsel %vm4515_vm0, %v11628_v62, %v4447_v3  ;;  %v4600_v37 = vsel %vm4532_vm2, %v11629_v0, %v4464_v40  ;;  %v4165_v33 = vadd.f32 1.0, %v11630_v2  ;;  %v11635_v40 = vld [vmem:[#allocation12_spill] sm:$0xff] }
 0x38b   : > { %11625 = vst [vmem:[#allocation80_spill] sm:$0xff] %v10089_v18  ;;  %v4473_v26 = vmul.f32 0.01, %v4101_v58  ;;  %v4113_v27 = vmul.f32 0.6931472, %v6214_v7  ;;  %v5569_v21 = vpack.c.bf16 %v4600_v37, %v4583_v61  ;;  %v10110_v1 = vadd.f32 %v8940_v53, %v11631_v63 }
 0x38c   : > { %v4458_v43 = vmul.f32 0.01, %v3966_v49  ;;  %v10113_v31 = vmul.f32 100.0, %v10093_v39  ;;  %v10116_v12 = vmul.f32 100.0, %v10097_v29  ;;  %6219 = vlog2.f32 %v4165_v33 }
 0x38d   : > { %11632 = vst [vmem:[#allocation47_spill] sm:$0xff] %v10110_v1  ;;  %v10121_v54 = vsel %vm4541_vm9, %v9848_v6, %v4473_v26  ;;  %v4119_v23 = vsel %vm10080_vm8, %v4116_v13, %v4113_v27  ;;  %5570 = vmatprep.subr.bf16.mxu0 %v5569_v21  ;;  %v10126_v32 = vmul.f32 100.0, %v10089_v18  ;;  %v4318_v3 = vadd.f32 1.0, %v11634_v30 }
 0x38e   : > { %v4475_v35 = vmul.f32 0.01, %v4119_v23  ;;  %v11637_v50 = vpack.c.bf16 %v11635_v40, %v11636_v55  ;;  %v3691_v6 = vmin.f32 %v10113_v31, 20.0  ;;  %v4168_v57 = vmul.f32 -0.5, %v11630_v2 }
 0x38f   : > { %11633 = vst [vmem:[#allocation21_spill] sm:$0xff] %v10126_v32  ;;  %vm4543_vm10 = vcmp.gt.f32.partialorder %v9890_v15, 20.0  ;;  %6221 = vpow2.f32 %v10014_v42  ;;  %v3660_v8 = vmin.f32 %v9980_v51, 20.0  ;;  %v3693_v13 = vmin.f32 %v10116_v12, 20.0  ;;  %v11646_v15 = vld [vmem:[#allocation50_spill] sm:$0xff] }
 0x390   : > { %5572 = vmatpush1.bf16.msra.mxu0 %v11637_v50  ;;  %v10143_v60 = vsel %vm4526_vm6, %v9799_v19, %v4458_v43  ;;  %v10146_v7 = vsel %vm4543_vm10, %v9872_v20, %v4475_v35  ;;  %v3822_v58 = vmul.f32 1.442695, %v3691_v6  ;;  %6223 = vlog2.f32 %v4318_v3  ;;  %v11641_v6 = vld [vmem:[#allocation68_spill] sm:$0xff] }
 0x391   : > { %11638 = vst [vmem:[#allocation53_spill] sm:$0xff] %v10143_v60  ;;  %11639 = vst [vmem:[#allocation29_spill] sm:$0xff] %v10146_v7  ;;  %v6216_v62 = vpop.eup %6215  ;;  %v3675_v42 = vmin.f32 %v10126_v32, 20.0  ;;  %v10152_v61 = vmul.f32 100.0, %v10110_v1  ;;  %v3826_v0 = vmul.f32 1.442695, %v3693_v13 }
 0x392   : > { %v6218_v37 = vpop.eup %6217  ;;  %v4246_v33 = vadd.f32 1.0, %v6216_v62  ;;  %6225 = vpow2.f32 %v3822_v58  ;;  %v4169_v19 = vadd.f32 1.0, %v4168_v57  ;;  %v4249_v45 = vmul.f32 -0.5, %v6216_v62  ;;  %v11642_v58 = vld [vmem:[#allocation32_spill] sm:$0xff]  ;;  %v11658_v7 = vld [vmem:[#allocation78_spill] sm:$0xff] }
 0x393   : > { %11640 = vst [vmem:[#allocation59_spill] sm:$0xff] %v10152_v61  ;;  %v4264_v26 = vadd.f32 1.0, %v6218_v37  ;;  %6227 = vpow2.f32 %v3826_v0  ;;  %v4321_v20 = vmul.f32 -0.5, %v11634_v30  ;;  %v3760_v27 = vmul.f32 1.442695, %v3660_v8 }
 0x394   : > { %6229 = vlog2.f32 %v4246_v33  ;;  %v4267_v21 = vmul.f32 -0.5, %v6218_v37  ;;  %v4171_v63 = vand.u32 2147483647, %v11630_v2  ;;  %v3790_v43 = vmul.f32 1.442695, %v3675_v42  ;;  %v11643_v33 = vld [vmem:[#allocation34_spill] sm:$0xff] }
 0x395   : > { %6231 = vlog2.f32 %v4264_v26  ;;  %v3677_v23 = vmin.f32 %v10152_v61, 20.0  ;;  %v4252_v35 = vand.u32 2147483647, %v6216_v62  ;;  %v4270_v40 = vand.u32 2147483647, %v6218_v37  ;;  %v11655_v61 = vld [vmem:[#allocation57_spill] sm:$0xff] }
 0x396   : > { %v6220_v3 = vpop.eup %6219  ;;  %v4170_v55 = vmul.f32 %v11630_v2, %v4169_v19  ;;  %v4324_v50 = vand.u32 2147483647, %v11634_v30  ;;  %vm4549_vm11 = vcmp.gt.f32.partialorder %v11641_v6, 20.0  ;;  %v4250_v57 = vadd.f32 1.0, %v4249_v45  ;;  %v11660_v6 = vld [vmem:[#allocation26_spill] sm:$0xff] }
 0x397   : > { %v4167_v13 = vmul.f32 0.6931472, %v6220_v3  ;;  %v4322_v8 = vadd.f32 1.0, %v4321_v20  ;;  %v3877_v0 = vadd.f32 1.0, %v11642_v58  ;;  %vm4566_vm12 = vcmp.gt.f32.partialorder %v11643_v33, 20.0  ;;  %v11647_v20 = vld [vmem:[#allocation38_spill] sm:$0xff] }
 0x398   : > { %6233 = vpow2.f32 %v3760_v27  ;;  %v4268_v42 = vadd.f32 1.0, %v4267_v21  ;;  %vm10162_vm7 = vcmp.lt.f32.partialorder %v4171_v63, 0.0004427343  ;;  %v4030_v49 = vadd.f32 1.0, %v11646_v15  ;;  %v11661_v21 = vld [vmem:[#allocation79_spill] sm:$0xff] }
 0x399   : > { %v10167_v2 = vpop.eup %6221  ;;  %v10169_v19 = vmul.f32 1.442695, %v3677_v23  ;;  %v4173_v45 = vsel %vm10162_vm7, %v4170_v55, %v4167_v13  ;;  %v10175_v3 = vadd.f32 %v8963_v59, %v11647_v20  ;;  %6235 = vlog2.f32 %v3877_v0 }
 0x39a   : > { %v6224_v27 = vpop.eup %6223  ;;  %vm10177_vm1 = vcmp.lt.f32.partialorder %v4252_v35, 0.0004427343  ;;  %vm10181_vm13 = vcmp.lt.f32.partialorder %v4270_v40, 0.0004427343  ;;  %6237 = vpow2.f32 %v3790_v43  ;;  %vm10185_vm14 = vcmp.lt.f32.partialorder %v4324_v50, 0.0004427343 }
 0x39b   : > { %11648 = vst [vmem:[#allocation42_spill] sm:$0xff] %v10175_v3  ;;  %v4251_v55 = vmul.f32 %v6216_v62, %v4250_v57  ;;  %v4320_v13 = vmul.f32 0.6931472, %v6224_v27  ;;  %v4323_v26 = vmul.f32 %v11634_v30, %v4322_v8  ;;  %v3880_v0 = vmul.f32 -0.5, %v11642_v58 }
 0x39c   : > { %v6226_v20 = vpop.eup %6225  ;;  %v4269_v35 = vmul.f32 %v6218_v37, %v4268_v42  ;;  %v4481_v1 = vmul.f32 0.01, %v4173_v45  ;;  %v10193_v40 = vadd.f32 %v8963_v59, %v11655_v61  ;;  %6239 = vlog2.f32 %v4030_v49 }
 0x39d   : > { %v6228_v18 = vpop.eup %6227  ;;  %v4399_v43 = vadd.f32 1.0, %v6226_v20  ;;  %v4402_v50 = vmul.f32 -0.5, %v6226_v20  ;;  %v4326_v32 = vsel %vm10185_vm14, %v4323_v26, %v4320_v13  ;;  %v10198_v62 = vmul.f32 100.0, %v10175_v3  ;;  %v11657_v13 = vld [vmem:[#allocation15_spill] sm:$0xff] }
 0x39e   : > { %11656 = vst [vmem:[#allocation33_spill] sm:$0xff] %v10193_v40  ;;  %v6230_v30 = vpop.eup %6229  ;;  %v4417_v57 = vadd.f32 1.0, %v6228_v18  ;;  %v4420_v8 = vmul.f32 -0.5, %v6228_v18  ;;  %v4498_v27 = vmul.f32 0.01, %v4326_v32  ;;  %vm4558_vm15 = vcmp.gt.f32.partialorder %v10049_v17, 20.0 }
 0x39f   : > { %v3883_v37 = vand.u32 2147483647, %v11642_v58  ;;  %v6232_v42 = vpop.eup %6231  ;;  %v4248_v45 = vmul.f32 0.6931472, %v6230_v30  ;;  %6241 = vlog2.f32 %v4399_v43  ;;  %v3881_v49 = vadd.f32 1.0, %v3880_v0 }
 0x3a0   : > { %v4033_v61 = vmul.f32 -0.5, %v11646_v15  ;;  %v4266_v60 = vmul.f32 0.6931472, %v6232_v42  ;;  %vm4560_vm0 = vcmp.gt.f32.partialorder %v10052_v22, 20.0  ;;  %v4405_v23 = vand.u32 2147483647, %v6226_v20 }
 0x3a1   : > { %6243 = vlog2.f32 %v4417_v57  ;;  %v4617_v26 = vsel %vm4549_vm11, %v11657_v13, %v4481_v1  ;;  %v4254_v32 = vsel %vm10177_vm1, %v4251_v55, %v4248_v45  ;;  %v4403_v3 = vadd.f32 1.0, %v4402_v50 }
 0x3a2   : > { %v4423_v30 = vand.u32 2147483647, %v6228_v18  ;;  %v4634_v0 = vsel %vm4566_vm12, %v11658_v7, %v4498_v27  ;;  %v10212_v43 = vpop.eup %6233  ;;  %v4272_v42 = vsel %vm10181_vm13, %v4269_v35, %v4266_v60  ;;  %v4421_v51 = vadd.f32 1.0, %v4420_v8  ;;  %v11664_v8 = vld [vmem:[#allocation44_spill] sm:$0xff] }
 0x3a3   : > { %v5573_v57 = vpack.c.bf16 %v4634_v0, %v4617_v26  ;;  %v10217_v41 = vmul.f32 100.0, %v10193_v40  ;;  %v6236_v1 = vpop.eup %6235  ;;  %vm4517_vm2 = vcmp.gt.f32.partialorder %v11660_v6, 20.0  ;;  %vm4534_vm4 = vcmp.gt.f32.partialorder %v11661_v21, 20.0 }
 0x3a4   : > { %v4490_v55 = vmul.f32 0.01, %v4254_v32  ;;  %v3882_v50 = vmul.f32 %v11642_v58, %v3881_v49  ;;  %vm10222_vm9 = vcmp.lt.f32.partialorder %v3883_v37, 0.0004427343  ;;  %v4034_v33 = vadd.f32 1.0, %v4033_v61  ;;  %v10226_v63 = vpop.eup %6237  ;;  %v11669_v37 = vld [vmem:[#allocation76_spill] sm:$0xff] }
 0x3a5   : > { %11659 = vst [vmem:[#allocation11_spill] sm:$0xff] %v10217_v41  ;;  %5574 = vmatprep.subr.bf16.mxu0 %v5573_v57  ;;  %v3879_v60 = vmul.f32 0.6931472, %v6236_v1  ;;  %v4036_v35 = vand.u32 2147483647, %v11646_v15  ;;  %v3895_v27 = vadd.f32 1.0, %v11664_v8  ;;  %v4404_v26 = vmul.f32 %v6226_v20, %v4403_v3 }
 0x3a6   : > { %v3898_v45 = vmul.f32 -0.5, %v11664_v8  ;;  %v4492_v13 = vmul.f32 0.01, %v4272_v42  ;;  %vm10231_vm5 = vcmp.lt.f32.partialorder %v4405_v23, 0.0004427343  ;;  %v11670_v49 = vld [vmem:[#allocation58_spill] sm:$0xff]  ;;  %v6240_v0 = vpop.eup %6239  ;;  %v4422_v57 = vmul.f32 %v6228_v18, %v4421_v51 }
 0x3a7   : > { %vm10235_vm6 = vcmp.lt.f32.partialorder %v4423_v30, 0.0004427343  ;;  %v11671_v61 = vpack.c.bf16 %v11669_v37, %v11670_v49  ;;  %vm4575_vm8 = vcmp.gt.f32.partialorder %v10113_v31, 20.0  ;;  %v3885_v42 = vsel %vm10222_vm9, %v3882_v50, %v3879_v60  ;;  %v11672_v1 = vld [vmem:[#allocation60_spill] sm:$0xff]  ;;  %v11683_v31 = vld [vmem:[#allocation67_spill] sm:$0xff] }
 0x3a8   : > { %6245 = vlog2.f32 %v3895_v27  ;;  %v4048_v3 = vadd.f32 1.0, %v9593_v34  ;;  %vm4577_vm10 = vcmp.gt.f32.partialorder %v10116_v12, 20.0  ;;  %v4032_v20 = vmul.f32 0.6931472, %v6240_v0 }
 0x3a9   : > { %5576 = vmatpush1.bf16.msra.mxu0 %v11671_v61  ;;  %v4035_v23 = vmul.f32 %v11646_v15, %v4034_v33  ;;  %v3899_v30 = vadd.f32 1.0, %v3898_v45  ;;  %v10250_v37 = vadd.f32 %v11672_v1, %v8940_v53  ;;  %v10255_v51 = vsel %vm4558_vm15, %v10028_v36, %v4490_v55  ;;  %v6242_v50 = vpop.eup %6241  ;;  %v11677_v61 = vld [vmem:[#allocation48_spill] sm:$0xff] }
 0x3aa   : > { %11673 = vst [vmem:[#allocation61_spill] sm:$0xff] %v10255_v51  ;;  %vm4037_vm11 = vcmp.lt.f32.partialorder %v4036_v35, 0.0004427343  ;;  %v4449_v18 = vmul.f32 0.01, %v3885_v42  ;;  %6247 = vlog2.f32 %v4048_v3  ;;  %v10262_v15 = vsel %vm4560_vm0, %v10032_v9, %v4492_v13  ;;  %v11675_v35 = vld [vmem:[#allocation87_spill] sm:$0xff] }
 0x3ab   : > { %11674 = vst [vmem:[#allocation41_spill] sm:$0xff] %v10262_v15  ;;  %v4038_v7 = vsel %vm4037_vm11, %v4035_v23, %v4032_v20  ;;  %v10265_v53 = vmul.f32 100.0, %v10250_v37  ;;  %v10269_v17 = vadd.f32 %v8905_v25, %v9609_v47  ;;  %v6244_v36 = vpop.eup %6243  ;;  %v4401_v55 = vmul.f32 0.6931472, %v6242_v50  ;;  %v11676_v47 = vld [vmem:[#allocation75_spill] sm:$0xff] }
 0x3ac   : > { %5498 = vmatmul.mubr.msk.f32.vlgmr.msra.gmra.mrb[70].mxu0 %vm4655_vm3, %v10037_v38  ;;  %v4466_v33 = vmul.f32 0.01, %v4038_v7  ;;  %v3901_v60 = vand.u32 2147483647, %v11664_v8  ;;  %v10275_v22 = vadd.f32 %v11675_v35, %v8963_v59  ;;  %v4419_v9 = vmul.f32 0.6931472, %v6244_v36 }
 0x3ad   : > { %4936 = vmatprep.mubr.f32.mxu0 %v11620_v48  ;;  %v3900_v27 = vmul.f32 %v11664_v8, %v3899_v30  ;;  %v4051_v45 = vmul.f32 -0.5, %v9593_v34  ;;  %v3678_v13 = vmin.f32 %v10265_v53, 20.0  ;;  %v4407_v25 = vsel %vm10231_vm5, %v4404_v26, %v4401_v55  ;;  %v11678_v30 = vld [vmem:[#allocation62_spill] sm:$0xff]  ;;  %v11682_v36 = vld [vmem:[#allocation55_spill] sm:$0xff] }
 0x3ae   : > { %v4585_v49 = vsel %vm4517_vm2, %v11676_v47, %v4449_v18  ;;  %v4602_v0 = vsel %vm4534_vm4, %v11677_v61, %v4466_v33  ;;  %v10289_v59 = vmul.f32 100.0, %v10269_v17  ;;  %v4507_v42 = vmul.f32 0.01, %v4407_v25 }
 0x3af   : > { %v4425_v8 = vsel %vm10235_vm6, %v4422_v57, %v4419_v9  ;;  %v5577_v3 = vpack.c.bf16 %v4602_v0, %v4585_v49  ;;  %v3796_v20 = vmul.f32 1.442695, %v3678_v13  ;;  %v4054_v26 = vand.u32 2147483647, %v9593_v34  ;;  %v11680_v57 = vld [vmem:[#allocation88_spill] sm:$0xff] }
 0x3b0   : > { %v4509_v23 = vmul.f32 0.01, %v4425_v8  ;;  %v3644_v32 = vmin.f32 %v10289_v59, 20.0  ;;  %v10296_v6 = vmul.f32 100.0, %v10275_v22  ;;  %vm4519_vm12 = vcmp.gt.f32.partialorder %v11678_v30, 20.0 }
 0x3b1   : > { %v10302_v21 = vsel %vm4575_vm8, %v10093_v39, %v4507_v42  ;;  %5578 = vmatprep.subr.bf16.mxu1 %v5577_v3  ;;  %v4052_v58 = vadd.f32 1.0, %v4051_v45  ;;  %6249 = vpow2.f32 %v3796_v20  ;;  %v10306_v1 = vadd.f32 %v8907_v56, %v11680_v57  ;;  %v11685_v45 = vld [vmem:[#allocation13_spill] sm:$0xff] }
 0x3b2   : > { %11679 = vst [vmem:[#allocation23_spill] sm:$0xff] %v10302_v21  ;;  %v6246_v18 = vpop.eup %6245  ;;  %v10313_v7 = vsel %vm4577_vm10, %v10097_v29, %v4509_v23  ;;  %v11684_v39 = vpack.c.bf16 %v11682_v36, %v11683_v31  ;;  %v3728_v55 = vmul.f32 1.442695, %v3644_v32  ;;  %v3695_v33 = vmin.f32 %v10296_v6, 20.0  ;;  %v11686_v42 = vld [vmem:[#allocation45_spill] sm:$0xff]  ;;  %v11687_v23 = vld [vmem:[#allocation40_spill] sm:$0xff] }
 0x3b3   : > { %11681 = vst [vmem:[#allocation63_spill] sm:$0xff] %v10313_v7  ;;  %v3897_v35 = vmul.f32 0.6931472, %v6246_v18  ;;  %v10322_v9 = vmul.f32 100.0, %v10306_v1  ;;  %v4183_v13 = vadd.f32 1.0, %v11685_v45  ;;  %v3692_v29 = vmin.f32 %v10198_v62, 20.0 }
 0x3b4   : > { %5580 = vmatpush1.bf16.msra.mxu1 %v11684_v39  ;;  %v6248_v25 = vpop.eup %6247  ;;  %vm3902_vm7 = vcmp.lt.f32.partialorder %v3901_v60, 0.0004427343  ;;  %6251 = vpow2.f32 %v3728_v55  ;;  %v3830_v12 = vmul.f32 1.442695, %v3695_v33  ;;  %v4053_v61 = vmul.f32 %v9593_v34, %v4052_v58  ;;  %v11688_v18 = vld [vmem:[#allocation14_spill] sm:$0xff]  ;;  %v11689_v36 = vld [vmem:[#allocation77_spill] sm:$0xff] }
 0x3b5   : > { %v3903_v47 = vsel %vm3902_vm7, %v3900_v27, %v3897_v35  ;;  %v4050_v49 = vmul.f32 0.6931472, %v6248_v25  ;;  %v3661_v0 = vmin.f32 %v10322_v9, 20.0  ;;  %vm4536_vm1 = vcmp.gt.f32.partialorder %v11686_v42, 20.0  ;;  %v11690_v39 = vld [vmem:[#allocation65_spill] sm:$0xff] }
 0x3b6   : > { %vm4055_vm13 = vcmp.lt.f32.partialorder %v4054_v26, 0.0004427343  ;;  %v4451_v8 = vmul.f32 0.01, %v3903_v47  ;;  %6253 = vpow2.f32 %v3830_v12  ;;  %v4336_v32 = vadd.f32 1.0, %v11687_v23 }
 0x3b7   : > { %v4056_v3 = vsel %vm4055_vm13, %v4053_v61, %v4050_v49  ;;  %v3762_v20 = vmul.f32 1.442695, %v3661_v0  ;;  %6255 = vlog2.f32 %v4183_v13  ;;  %v3694_v60 = vmin.f32 %v10217_v41, 20.0  ;;  %v11693_v61 = vld [vmem:[#allocation93_spill] sm:$0xff] }
 0x3b8   : > { %6257 = vpow2.f32 %v10169_v19  ;;  %v4468_v27 = vmul.f32 0.01, %v4056_v3  ;;  %v4186_v57 = vmul.f32 -0.5, %v11685_v45  ;;  %v3824_v34 = vmul.f32 1.442695, %v3692_v29  ;;  %v11695_v3 = vld [vmem:[#allocation19_spill] sm:$0xff] }
 0x3b9   : > { %6259 = vpow2.f32 %v3762_v20  ;;  %v4189_v58 = vand.u32 2147483647, %v11685_v45  ;;  %v4201_v26 = vadd.f32 1.0, %v11688_v18  ;;  %v4587_v31 = vsel %vm4519_vm12, %v11689_v36, %v4451_v8  ;;  %v11694_v8 = vld [vmem:[#allocation83_spill] sm:$0xff] }
 0x3ba   : > { %v4604_v55 = vsel %vm4536_vm1, %v11690_v39, %v4468_v27  ;;  %6261 = vlog2.f32 %v4336_v32  ;;  %v4339_v19 = vmul.f32 -0.5, %v11687_v23  ;;  %v4204_v13 = vmul.f32 -0.5, %v11688_v18 }
 0x3bb   : > { %v6250_v33 = vpop.eup %6249  ;;  %v5585_v35 = vpack.c.bf16 %v4604_v55, %v4587_v31  ;;  %6263 = vlog2.f32 %v4201_v26  ;;  %v4187_v12 = vadd.f32 1.0, %v4186_v57  ;;  %v4342_v47 = vand.u32 2147483647, %v11687_v23  ;;  %v11711_v55 = vld [vmem:[#allocation9_spill] sm:$0xff] }
 0x3bc   : > { %v4282_v25 = vadd.f32 1.0, %v6250_v33  ;;  %v4285_v29 = vmul.f32 -0.5, %v6250_v33  ;;  %6265 = vpow2.f32 %v3824_v34  ;;  %v10344_v30 = vmul.f32 1.442695, %v3694_v60 }
 0x3bd   : > { %5586 = vmatprep.subr.bf16.mxu0 %v5585_v35  ;;  %vm10346_vm14 = vcmp.lt.f32.partialorder %v4189_v58, 0.0004427343  ;;  %v4354_v0 = vadd.f32 1.0, %v11693_v61  ;;  %v11696_v20 = vpack.c.bf16 %v11694_v8, %v11695_v3  ;;  %v4340_v32 = vadd.f32 1.0, %v4339_v19  ;;  %v11699_v19 = vld [vmem:[#allocation27_spill] sm:$0xff] }
 0x3be   : > { %v6252_v42 = vpop.eup %6251  ;;  %6267 = vlog2.f32 %v4282_v25  ;;  %v4207_v27 = vand.u32 2147483647, %v11688_v18  ;;  %v4357_v57 = vmul.f32 -0.5, %v11693_v61  ;;  %v4205_v26 = vadd.f32 1.0, %v4204_v13  ;;  %v11700_v25 = vld [vmem:[#allocation72_spill] sm:$0xff] }
 0x3bf   : > { %5588 = vmatpush1.bf16.msra.mxu0 %v11696_v20  ;;  %v3976_v60 = vadd.f32 1.0, %v6252_v42  ;;  %v3979_v34 = vmul.f32 -0.5, %v6252_v42  ;;  %6269 = vlog2.f32 %v4354_v0  ;;  %v4286_v36 = vadd.f32 1.0, %v4285_v29 }
 0x3c0   : > { %v10356_v58 = vpop.eup %6253  ;;  %v4288_v31 = vand.u32 2147483647, %v6250_v33  ;;  %v4188_v39 = vmul.f32 %v11685_v45, %v4187_v12  ;;  %vm10359_vm15 = vcmp.lt.f32.partialorder %v4342_v47, 0.0004427343  ;;  %vm4551_vm0 = vcmp.gt.f32.partialorder %v11699_v19, 20.0 }
 0x3c1   : > { %v6256_v35 = vpop.eup %6255  ;;  %vm4568_vm2 = vcmp.gt.f32.partialorder %v11700_v25, 20.0  ;;  %6271 = vlog2.f32 %v3976_v60  ;;  %v4435_v8 = vadd.f32 1.0, %v10356_v58  ;;  %v4360_v13 = vand.u32 2147483647, %v11693_v61 }
 0x3c2   : > { %v3913_v0 = vadd.f32 1.0, %v9761_v5  ;;  %v10368_v29 = vpop.eup %6257  ;;  %v3982_v3 = vand.u32 2147483647, %v6252_v42  ;;  %v4185_v45 = vmul.f32 0.6931472, %v6256_v35  ;;  %v4341_v12 = vmul.f32 %v11687_v23, %v4340_v32 }
 0x3c3   : > { %v4358_v47 = vadd.f32 1.0, %v4357_v57  ;;  %v10371_v20 = vpop.eup %6259  ;;  %v3980_v56 = vadd.f32 1.0, %v3979_v34  ;;  %6273 = vlog2.f32 %v4435_v8  ;;  %v4206_v50 = vmul.f32 %v11688_v18, %v4205_v26  ;;  %v11705_v57 = vld [vmem:[#allocation37_spill] sm:$0xff]  ;;  %v11719_v34 = vld [vmem:[#allocation84_spill] sm:$0xff] }
 0x3c4   : > { %vm10374_vm4 = vcmp.lt.f32.partialorder %v4207_v27, 0.0004427343  ;;  %v6262_v15 = vpop.eup %6261  ;;  %v4287_v7 = vmul.f32 %v6250_v33, %v4286_v36  ;;  %vm10378_vm9 = vcmp.lt.f32.partialorder %v4288_v31, 0.0004427343  ;;  %v4438_v35 = vmul.f32 -0.5, %v10356_v58  ;;  %v11708_v33 = vld [vmem:[#allocation69_spill] sm:$0xff] }
 0x3c5   : > { %v4129_v23 = vadd.f32 1.0, %v10371_v20  ;;  %v6264_v32 = vpop.eup %6263  ;;  %vm4553_vm5 = vcmp.gt.f32.partialorder %v11705_v57, 20.0  ;;  %v4191_v18 = vsel %vm10346_vm14, %v4188_v39, %v4185_v45  ;;  %v4338_v27 = vmul.f32 0.6931472, %v6262_v15 }
 0x3c6   : > { %vm10387_vm6 = vcmp.lt.f32.partialorder %v4360_v13, 0.0004427343  ;;  %6275 = vlog2.f32 %v3913_v0  ;;  %vm4570_vm8 = vcmp.gt.f32.partialorder %v11708_v33, 20.0  ;;  %vm10392_vm10 = vcmp.lt.f32.partialorder %v3982_v3, 0.0004427343  ;;  %v10398_v49 = vpop.eup %6265 }
 0x3c7   : > { %v4441_v36 = vand.u32 2147483647, %v10356_v58  ;;  %6277 = vlog2.f32 %v4129_v23  ;;  %v4483_v31 = vmul.f32 0.01, %v4191_v18  ;;  %v4359_v8 = vmul.f32 %v11693_v61, %v4358_v47  ;;  %v11712_v47 = vld [vmem:[#allocation43_spill] sm:$0xff] }
 0x3c8   : > { %v3981_v15 = vmul.f32 %v6252_v42, %v3980_v56  ;;  %v4344_v39 = vsel %vm10359_vm15, %v4341_v12, %v4338_v27  ;;  %v4203_v13 = vmul.f32 0.6931472, %v6264_v32  ;;  %v3916_v0 = vmul.f32 -0.5, %v9761_v5  ;;  %v6268_v45 = vpop.eup %6267 }
 0x3c9   : > { %v4439_v3 = vadd.f32 1.0, %v4438_v35  ;;  %v4132_v41 = vmul.f32 -0.5, %v10371_v20  ;;  %v4500_v51 = vmul.f32 0.01, %v4344_v39  ;;  %v3919_v21 = vand.u32 2147483647, %v9761_v5  ;;  %v6270_v23 = vpop.eup %6269 }
 0x3ca   : > { %v4284_v18 = vmul.f32 0.6931472, %v6268_v45  ;;  %v4135_v61 = vand.u32 2147483647, %v10371_v20  ;;  %v4209_v56 = vsel %vm10374_vm4, %v4206_v50, %v4203_v13  ;;  %v4066_v42 = vadd.f32 1.0, %v9837_v16 }
 0x3cb   : > { %vm4562_vm11 = vcmp.gt.f32.partialorder %v10265_v53, 20.0  ;;  %vm4579_vm12 = vcmp.gt.f32.partialorder %v10296_v6, 20.0  ;;  %v4619_v12 = vsel %vm4551_vm0, %v11711_v55, %v4483_v31  ;;  %v4636_v35 = vsel %vm4568_vm2, %v11712_v47, %v4500_v51  ;;  %v6272_v39 = vpop.eup %6271 }
 0x3cc   : > { %v4356_v32 = vmul.f32 0.6931472, %v6270_v23  ;;  %v4485_v27 = vmul.f32 0.01, %v4209_v56  ;;  %v4290_v50 = vsel %vm10378_vm9, %v4287_v7, %v4284_v18  ;;  %vm10419_vm7 = vcmp.lt.f32.partialorder %v4441_v36, 0.0004427343 }
 0x3cd   : > { %v5581_v13 = vpack.c.bf16 %v4636_v35, %v4619_v12  ;;  %6279 = vlog2.f32 %v4066_v42  ;;  %v3978_v45 = vmul.f32 0.6931472, %v6272_v39  ;;  %v4440_v19 = vmul.f32 %v10356_v58, %v4439_v3  ;;  %v6274_v51 = vpop.eup %6273  ;;  %v11717_v42 = vld [vmem:[#allocation71_spill] sm:$0xff]  ;;  %v11718_v58 = vld [vmem:[#allocation85_spill] sm:$0xff]  ;;  %v11721_v12 = vld [vmem:[#allocation10_spill] sm:$0xff] }
 0x3ce   : > { %v4133_v31 = vadd.f32 1.0, %v4132_v41  ;;  %v4362_v25 = vsel %vm10387_vm6, %v4359_v8, %v4356_v32  ;;  %vm4528_vm1 = vcmp.gt.f32.partialorder %v10289_v59, 20.0  ;;  %vm10427_vm13 = vcmp.lt.f32.partialorder %v4135_v61, 0.0004427343 }
 0x3cf   : > { %5582 = vmatprep.subr.bf16.mxu1 %v5581_v13  ;;  %v4502_v40 = vmul.f32 0.01, %v4362_v25  ;;  %v3917_v7 = vadd.f32 1.0, %v3916_v0  ;;  %v3931_v36 = vadd.f32 1.0, %v9785_v24  ;;  %v4494_v18 = vmul.f32 0.01, %v4290_v50 }
 0x3d0   : > { %v4437_v56 = vmul.f32 0.6931472, %v6274_v51  ;;  %v4621_v41 = vsel %vm4553_vm5, %v11717_v42, %v4485_v27  ;;  %v11720_v8 = vpack.c.bf16 %v11718_v58, %v11719_v34  ;;  %v4069_v3 = vmul.f32 -0.5, %v9837_v16  ;;  %v6276_v61 = vpop.eup %6275  ;;  %v11724_v13 = vld [vmem:[#allocation66_spill] sm:$0xff] }
 0x3d1   : > { %v3984_v55 = vsel %vm10392_vm10, %v3981_v15, %v3978_v45  ;;  %v4638_v0 = vsel %vm4570_vm8, %v11721_v12, %v4502_v40  ;;  %6281 = vlog2.f32 %v3931_v36  ;;  %v3934_v47 = vmul.f32 -0.5, %v9785_v24  ;;  %v6278_v35 = vpop.eup %6277  ;;  %v11725_v45 = vld [vmem:[#allocation92_spill] sm:$0xff]  ;;  %v11726_v40 = vld [vmem:[#allocation91_spill] sm:$0xff] }
 0x3d2   : > { %5584 = vmatpush1.bf16.msra.mxu1 %v11720_v8  ;;  %v4443_v57 = vsel %vm10419_vm7, %v4440_v19, %v4437_v56  ;;  %v5589_v32 = vpack.c.bf16 %v4638_v0, %v4621_v41  ;;  %v3915_v27 = vmul.f32 0.6931472, %v6276_v61  ;;  %vm10447_vm14 = vcmp.lt.f32.partialorder %v3919_v21, 0.0004427343 }
 0x3d3   : > { %v4511_v50 = vmul.f32 0.01, %v4443_v57  ;;  %v4131_v26 = vmul.f32 0.6931472, %v6278_v35  ;;  %v4134_v15 = vmul.f32 %v10371_v20, %v4133_v31  ;;  %v4072_v33 = vand.u32 2147483647, %v9837_v16 }
 0x3d4   : > { %vm4521_vm15 = vcmp.gt.f32.partialorder %v11724_v13, 20.0  ;;  %vm4538_vm0 = vcmp.gt.f32.partialorder %v11725_v45, 20.0  ;;  %v4460_v60 = vmul.f32 0.01, %v3984_v55  ;;  %5590 = vmatprep.subr.bf16.mxu0 %v5589_v32  ;;  %v3918_v21 = vmul.f32 %v9761_v5, %v3917_v7  ;;  %v11727_v5 = vld [vmem:[#allocation89_spill] sm:$0xff] }
 0x3d5   : > { %5499 = vmatmul.mubr.msk.f32.vlgmr.msra.gmra.mrb[68].mxu1 %vm4655_vm3, %v10037_v38  ;;  %v4070_v19 = vadd.f32 1.0, %v4069_v3  ;;  %v4084_v25 = vadd.f32 1.0, %v9885_v10  ;;  %v10463_v20 = vsel %vm4562_vm11, %v10250_v37, %v4494_v18  ;;  %v10468_v31 = vsel %vm4579_vm12, %v10275_v22, %v4511_v50  ;;  %v11734_v50 = vld [vmem:[#allocation86_spill] sm:$0xff] }
 0x3d6   : > { %5007 = vmatprep.mubr.f32.mxu1 %v11620_v48  ;;  %v4137_v51 = vsel %vm10427_vm13, %v4134_v15, %v4131_v26  ;;  %v11728_v7 = vpack.c.bf16 %v11726_v40, %v11727_v5  ;;  %v3935_v36 = vadd.f32 1.0, %v3934_v47  ;;  %v5629_v56 = vpack.c.bf16 %v10468_v31, %v10463_v20  ;;  %v11731_v47 = vld [vmem:[#allocation90_spill] sm:$0xff]  ;;  %v11755_v5 = vld [vmem:[#allocation95_spill] sm:$0xff] }
 0x3d7   : > { %v4477_v42 = vmul.f32 0.01, %v4137_v51  ;;  %v3921_v37 = vsel %vm10447_vm14, %v3918_v21, %v3915_v27  ;;  %6283 = vlog2.f32 %v4084_v25  ;;  %v6280_v53 = vpop.eup %6279  ;;  %vm4545_vm2 = vcmp.gt.f32.partialorder %v10322_v9, 20.0  ;;  %v11733_v27 = vld [vmem:[#allocation64_spill] sm:$0xff] }
 0x3d8   : > { %5592 = vmatpush1.bf16.msra.mxu0 %v11728_v7  ;;  %vm10480_vm4 = vcmp.lt.f32.partialorder %v4072_v33, 0.0004427343  ;;  %v4087_v6 = vmul.f32 -0.5, %v9885_v10  ;;  %v4219_v23 = vadd.f32 1.0, %v9909_v28  ;;  %v10489_v18 = vsel %vm4528_vm1, %v10269_v17, %v4460_v60 }
 0x3d9   : > { %v10492_v41 = vsel %vm4545_vm2, %v10306_v1, %v4477_v42  ;;  %v4068_v9 = vmul.f32 0.6931472, %v6280_v53  ;;  %v4071_v58 = vmul.f32 %v9837_v16, %v4070_v19  ;;  %v4453_v8 = vmul.f32 0.01, %v3921_v37 }
 0x3da   : > { %v5626_v34 = vpack.c.bf16 %v10492_v41, %v10489_v18  ;;  %v3937_v3 = vand.u32 2147483647, %v9785_v24  ;;  %6285 = vlog2.f32 %v4219_v23  ;;  %v3936_v59 = vmul.f32 %v9785_v24, %v3935_v36  ;;  %v11732_v24 = vld [vmem:[#allocation82_spill] sm:$0xff]  ;;  %v4653_v18 = vpop.permute.xlu0 %4652 }
 0x3db   : > { %5500 = vmatmul.mubr.msk.f32.vlgmr.msra.gmra.mrb[72].mxu0 %vm4655_vm3, %v10037_v38  ;;  %v4074_v17 = vsel %vm10480_vm4, %v4071_v58, %v4068_v9  ;;  %v4222_v1 = vmul.f32 -0.5, %v9909_v28  ;;  %v4372_v38 = vadd.f32 1.0, %v9990_v14  ;;  %v6282_v61 = vpop.eup %6281  ;;  %v4088_v55 = vadd.f32 1.0, %v4087_v6  ;;  %v11745_v58 = vld [vmem:[#allocation46_spill] sm:$0xff] }
 0x3dc   : > { %5078 = vmatprep.mubr.f32.mxu0 %v11620_v48  ;;  %v4470_v16 = vmul.f32 0.01, %v4074_v17  ;;  %v4090_v12 = vand.u32 2147483647, %v9885_v10  ;;  %v4237_v0 = vadd.f32 1.0, %v9923_v44  ;;  %vm4523_vm9 = vcmp.gt.f32.partialorder %v11731_v47, 20.0 }
 0x3dd   : > { %v3933_v35 = vmul.f32 0.6931472, %v6282_v61  ;;  %v4225_v57 = vand.u32 2147483647, %v9909_v28  ;;  %6287 = vlog2.f32 %v4372_v38  ;;  %v4375_v32 = vmul.f32 -0.5, %v9990_v14 }
 0x3de   : > { %vm4540_vm5 = vcmp.gt.f32.partialorder %v11732_v24, 20.0  ;;  %v4589_v39 = vsel %vm4521_vm15, %v11733_v27, %v4453_v8  ;;  %v4606_v26 = vsel %vm4538_vm0, %v11734_v50, %v4470_v16  ;;  %vm10518_vm6 = vcmp.lt.f32.partialorder %v3937_v3, 0.0004427343  ;;  %v11746_v8 = vld [vmem:[#allocation74_spill] sm:$0xff]  ;;  %v11747_v16 = vld [vmem:[#allocation39_spill] sm:$0xff] }
 0x3df   : > { %6289 = vlog2.f32 %v4237_v0  ;;  %v5593_v33 = vpack.c.bf16 %v4606_v26, %v4589_v39  ;;  %v3939_v60 = vsel %vm10518_vm6, %v3936_v59, %v3933_v35  ;;  %v4223_v21 = vadd.f32 1.0, %v4222_v1 }
 0x3e0   : > { %v4378_v19 = vand.u32 2147483647, %v9990_v14  ;;  %6291 = vpow2.f32 %v10344_v30  ;;  %v4089_v13 = vmul.f32 %v9885_v10, %v4088_v55  ;;  %v4240_v25 = vmul.f32 -0.5, %v9923_v44  ;;  %v11741_v10 = vld [vmem:[#allocation49_spill] sm:$0xff] }
 0x3e1   : > { %v4390_v45 = vadd.f32 1.0, %v10010_v11  ;;  %v6284_v51 = vpop.eup %6283  ;;  %5594 = vmatprep.subr.bf16.mxu1 %v5593_v33  ;;  %vm10529_vm8 = vcmp.lt.f32.partialorder %v4090_v12, 0.0004427343  ;;  %vm10533_vm10 = vcmp.lt.f32.partialorder %v4225_v57, 0.0004427343  ;;  %v4376_v7 = vadd.f32 1.0, %v4375_v32 }
 0x3e2   : > { %v3949_v36 = vadd.f32 1.0, %v10039_v4  ;;  %v4086_v30 = vmul.f32 0.6931472, %v6284_v51  ;;  %v4455_v42 = vmul.f32 0.01, %v3939_v60  ;;  %v11742_v37 = vpack.c.bf16 %v9777_v46, %v11741_v10  ;;  %v11748_v57 = vld [vmem:[#allocation36_spill] sm:$0xff] }
 0x3e3   : > { %6293 = vlog2.f32 %v4390_v45  ;;  %v4393_v53 = vmul.f32 -0.5, %v10010_v11  ;;  %v4224_v22 = vmul.f32 %v9909_v28, %v4223_v21  ;;  %vm10543_vm11 = vcmp.lt.f32.partialorder %v4378_v19, 0.0004427343  ;;  %v11751_v60 = vld [vmem:[#allocation35_spill] sm:$0xff]  ;;  %v11752_v21 = vld [vmem:[#allocation73_spill] sm:$0xff]  ;;  %v11767_v33 = vld [vmem:[#allocation96_spill] sm:$0xff] }
 0x3e4   : > { %5596 = vmatpush1.bf16.msra.mxu1 %v11742_v37  ;;  %6295 = vlog2.f32 %v3949_v36  ;;  %v3952_v23 = vmul.f32 -0.5, %v10039_v4  ;;  %v6286_v9 = vpop.eup %6285  ;;  %vm4555_vm12 = vcmp.gt.f32.partialorder %v11745_v58, 20.0  ;;  %vm4572_vm7 = vcmp.gt.f32.partialorder %v11746_v8, 20.0 }
 0x3e5   : > { %v4092_v46 = vsel %vm10529_vm8, %v4089_v13, %v4086_v30  ;;  %v4241_v3 = vadd.f32 1.0, %v4240_v25  ;;  %v4243_v17 = vand.u32 2147483647, %v9923_v44  ;;  %v4102_v28 = vadd.f32 1.0, %v10167_v2 }
 0x3e6   : > { %v4472_v59 = vmul.f32 0.01, %v4092_v46  ;;  %v4221_v1 = vmul.f32 0.6931472, %v6286_v9  ;;  %v4377_v38 = vmul.f32 %v9990_v14, %v4376_v7  ;;  %v4396_v61 = vand.u32 2147483647, %v10010_v11 }
 0x3e7   : > { %v4591_v55 = vsel %vm4523_vm9, %v11747_v16, %v4455_v42  ;;  %v4394_v12 = vadd.f32 1.0, %v4393_v53  ;;  %6297 = vlog2.f32 %v4102_v28  ;;  %v3967_v0 = vadd.f32 1.0, %v10069_v52  ;;  %v6288_v35 = vpop.eup %6287  ;;  %v11756_v7 = vld [vmem:[#allocation94_spill] sm:$0xff]  ;;  %v11758_v9 = vld [vmem:[#allocation97_spill] sm:$0xff]  ;;  %v11759_v46 = vld [vmem:[#allocation20_spill] sm:$0xff] }
 0x3e8   : > { %v4608_v32 = vsel %vm4540_vm5, %v11748_v57, %v4472_v59  ;;  %v4227_v27 = vsel %vm10533_vm10, %v4224_v22, %v4221_v1  ;;  %v3953_v39 = vadd.f32 1.0, %v3952_v23  ;;  %v4105_v14 = vmul.f32 -0.5, %v10167_v2 }
 0x3e9   : > { %v6290_v50 = vpop.eup %6289  ;;  %v5601_v26 = vpack.c.bf16 %v4608_v32, %v4591_v55  ;;  %v4374_v15 = vmul.f32 0.6931472, %v6288_v35  ;;  %v4242_v47 = vmul.f32 %v9923_v44, %v4241_v3  ;;  %vm10567_vm1 = vcmp.lt.f32.partialorder %v4243_v17, 0.0004427343  ;;  %v11760_v17 = vld [vmem:[#allocation17_spill] sm:$0xff] }
 0x3ea   : > { %vm4557_vm13 = vcmp.gt.f32.partialorder %v11751_v60, 20.0  ;;  %vm4574_vm14 = vcmp.gt.f32.partialorder %v11752_v21, 20.0  ;;  %v4487_v24 = vmul.f32 0.01, %v4227_v27  ;;  %v4239_v19 = vmul.f32 0.6931472, %v6290_v50  ;;  %v10577_v25 = vpop.eup %6291 }
 0x3eb   : > { %vm10573_vm15 = vcmp.lt.f32.partialorder %v4396_v61, 0.0004427343  ;;  %6299 = vlog2.f32 %v3967_v0  ;;  %5602 = vmatprep.subr.bf16.mxu0 %v5601_v26  ;;  %v4380_v44 = vsel %vm10543_vm11, %v4377_v38, %v4374_v15  ;;  %v4395_v45 = vmul.f32 %v10010_v11, %v4394_v12  ;;  %v11763_v27 = vld [vmem:[#allocation56_spill] sm:$0xff]  ;;  %v10630_v60 = vld [vmem:[%s10777_s6] sm:$0x1f] }
 0x3ec   : > { %v3955_v51 = vand.u32 2147483647, %v10039_v4  ;;  %v4120_v40 = vadd.f32 1.0, %v10212_v43  ;;  %v11757_v36 = vpack.c.bf16 %v11755_v5, %v11756_v7  ;;  %v4504_v30 = vmul.f32 0.01, %v4380_v44  ;;  %v11766_v15 = vld [vmem:[#allocation28_spill] sm:$0xff] }
 0x3ed   : > { %v4245_v42 = vsel %vm10567_vm1, %v4242_v47, %v4239_v19  ;;  %v3954_v10 = vmul.f32 %v10039_v4, %v3953_v39  ;;  %v4106_v37 = vadd.f32 1.0, %v4105_v14  ;;  %v6294_v53 = vpop.eup %6293  ;;  %v4108_v22 = vand.u32 2147483647, %v10167_v2  ;;  %v11764_v39 = vld [vmem:[#allocation52_spill] sm:$0xff]  ;;  %v11768_v44 = vld [vmem:[#allocation101_spill] sm:$0xff] }
 0x3ee   : > { %5604 = vmatpush1.bf16.msra.mxu0 %v11757_v36  ;;  %v3970_v11 = vmul.f32 -0.5, %v10069_v52  ;;  %6301 = vlog2.f32 %v4120_v40  ;;  %v4255_v6 = vadd.f32 1.0, %v10226_v63  ;;  %v6296_v23 = vpop.eup %6295  ;;  %vm4525_vm0 = vcmp.gt.f32.partialorder %v11758_v9, 20.0 }
 0x3ef   : > { %v4623_v3 = vsel %vm4555_vm12, %v11759_v46, %v4487_v24  ;;  %v4640_v4 = vsel %vm4572_vm7, %v11760_v17, %v4504_v30  ;;  %v4392_v28 = vmul.f32 0.6931472, %v6294_v53  ;;  %v4123_v59 = vmul.f32 -0.5, %v10212_v43  ;;  %v11775_v46 = vld [vmem:[#allocation31_spill] sm:$0xff] }
 0x3f0   : > { %v5597_v1 = vpack.c.bf16 %v4640_v4, %v4623_v3  ;;  %v4489_v38 = vmul.f32 0.01, %v4245_v42  ;;  %v3951_v61 = vmul.f32 0.6931472, %v6296_v23  ;;  %vm10601_vm2 = vcmp.lt.f32.partialorder %v3955_v51, 0.0004427343 }
 0x3f1   : > { %v4398_v55 = vsel %vm10573_vm15, %v4395_v45, %v4392_v28  ;;  %v4107_v58 = vmul.f32 %v10167_v2, %v4106_v37  ;;  %v3973_v12 = vand.u32 2147483647, %v10069_v52  ;;  %6303 = vlog2.f32 %v4255_v6  ;;  %v6298_v8 = vpop.eup %6297  ;;  %v11774_v23 = vld [vmem:[#allocation16_spill] sm:$0xff] }
 0x3f2   : > { %5598 = vmatprep.subr.bf16.mxu1 %v5597_v1  ;;  %v4506_v0 = vmul.f32 0.01, %v4398_v55  ;;  %v3957_v35 = vsel %vm10601_vm2, %v3954_v10, %v3951_v61  ;;  %v3971_v57 = vadd.f32 1.0, %v3970_v11  ;;  %v4408_v32 = vadd.f32 1.0, %v10398_v49  ;;  %v11772_v11 = vld [vmem:[#allocation70_spill] sm:$0xff] }
 0x3f3   : > { %v11765_v14 = vpack.c.bf16 %v11763_v27, %v11764_v39  ;;  %v4104_v50 = vmul.f32 0.6931472, %v6298_v8  ;;  %vm4109_vm4 = vcmp.lt.f32.partialorder %v4108_v22, 0.0004427343  ;;  %v4124_v26 = vadd.f32 1.0, %v4123_v59  ;;  %v11771_v22 = vld [vmem:[#allocation100_spill] sm:$0xff] }
 0x3f4   : > { %v4258_v2 = vmul.f32 -0.5, %v10226_v63  ;;  %v4625_v47 = vsel %vm4557_vm13, %v11766_v15, %v4489_v38  ;;  %v4642_v24 = vsel %vm4574_vm14, %v11767_v33, %v4506_v0  ;;  %v4457_v19 = vmul.f32 0.01, %v3957_v35 }
 0x3f5   : > { %5600 = vmatpush1.bf16.msra.mxu1 %v11765_v14  ;;  %6305 = vlog2.f32 %v4408_v32  ;;  %v6300_v13 = vpop.eup %6299  ;;  %vm4542_vm9 = vcmp.gt.f32.partialorder %v11768_v44, 20.0  ;;  %v5605_v45 = vpack.c.bf16 %v4642_v24, %v4625_v47  ;;  %v4110_v51 = vsel %vm4109_vm4, %v4107_v58, %v4104_v50  ;;  %v11776_v58 = vld [vmem:[#allocation54_spill] sm:$0xff]  ;;  %v11779_v32 = vld [vmem:[#allocation25_spill] sm:$0xff] }
 0x3f6   : > { %vm10623_vm5 = vcmp.lt.f32.partialorder %v3973_v12, 0.0004427343  ;;  %v4474_v21 = vmul.f32 0.01, %v4110_v51  ;;  %v3969_v5 = vmul.f32 0.6931472, %v6300_v13  ;;  %v3972_v7 = vmul.f32 %v10069_v52, %v3971_v57 }
 0x3f7   : > { %v4126_v36 = vand.u32 2147483647, %v10212_v43  ;;  %5606 = vmatprep.subr.bf16.mxu0 %v5605_v45  ;;  %v4125_v30 = vmul.f32 %v10212_v43, %v4124_v26  ;;  %v4259_v42 = vadd.f32 1.0, %v4258_v2  ;;  %v4411_v10 = vmul.f32 -0.5, %v10398_v49  ;;  %v11778_v57 = vld [vmem:[#allocation99_spill] sm:$0xff]  ;;  %v11780_v14 = vld [vmem:[#allocation98_spill] sm:$0xff] }
 0x3f8   : > { %5501 = vmatmul.mubr.msk.f32.vlgmr.msra.gmra.mrb[70].mxu1 %vm4655_vm3, %v10630_v60  ;;  %v4273_v37 = vadd.f32 1.0, %v10368_v29  ;;  %v6302_v53 = vpop.eup %6301  ;;  %v11773_v6 = vpack.c.bf16 %v11771_v22, %v11772_v11  ;;  %v4593_v52 = vsel %vm4525_vm0, %v11774_v23, %v4457_v19  ;;  %v4610_v43 = vsel %vm4542_vm9, %v11775_v46, %v4474_v21  ;;  %v11781_v26 = vld [vmem:[#allocation18_spill] sm:$0xff]  ;;  %v11782_v45 = vld [vmem:[#allocation29_spill] sm:$0xff] }
 0x3f9   : > { %5149 = vmatprep.mubr.f32.mxu1 %v11620_v48  ;;  %v3975_v3 = vsel %vm10623_vm5, %v3972_v7, %v3969_v5  ;;  %v4426_v17 = vadd.f32 1.0, %v10577_v25  ;;  %v5609_v4 = vpack.c.bf16 %v4610_v43, %v4593_v52  ;;  %v4122_v28 = vmul.f32 0.6931472, %v6302_v53  ;;  %v11783_v51 = vld [vmem:[#allocation53_spill] sm:$0xff] }
 0x3fa   : > { %5608 = vmatpush1.bf16.msra.mxu0 %v11773_v6  ;;  %v4261_v59 = vand.u32 2147483647, %v10226_v63  ;;  %6307 = vlog2.f32 %v4273_v37  ;;  %vm4127_vm6 = vcmp.lt.f32.partialorder %v4126_v36, 0.0004427343  ;;  %v4459_v1 = vmul.f32 0.01, %v3975_v3 }
 0x3fb   : > { %6309 = vlog2.f32 %v4426_v17  ;;  %v6304_v38 = vpop.eup %6303  ;;  %5610 = vmatprep.subr.bf16.mxu1 %v5609_v4  ;;  %v4128_v9 = vsel %vm4127_vm6, %v4125_v30, %v4122_v28  ;;  %v4412_v61 = vadd.f32 1.0, %v4411_v10  ;;  %v4414_v16 = vand.u32 2147483647, %v10398_v49  ;;  %v11785_v36 = vld [vmem:[#allocation21_spill] sm:$0xff]  ;;  %v11786_v30 = vld [vmem:[#allocation80_spill] sm:$0xff]  ;;  %v11787_v10 = vld [vmem:[#allocation42_spill] sm:$0xff] }
 0x3fc   : > { %v4476_v55 = vmul.f32 0.01, %v4128_v9  ;;  %v11777_v12 = vpack.c.bf16 %v10121_v54, %v11776_v58  ;;  %v4257_v8 = vmul.f32 0.6931472, %v6304_v38  ;;  %v4260_v0 = vmul.f32 %v10226_v63, %v4259_v42  ;;  %v11789_v17 = vld [vmem:[#allocation61_spill] sm:$0xff]  ;;  %v11791_v28 = vld [vmem:[#allocation59_spill] sm:$0xff] }
 0x3fd   : > { %5502 = vmatmul.mubr.msk.f32.vlgmr.msra.gmra.mrb[74].mxu0 %vm4655_vm3, %v10630_v60  ;;  %v4276_v35 = vmul.f32 -0.5, %v10368_v29  ;;  %vm4527_vm8 = vcmp.gt.f32.partialorder %v11778_v57, 20.0  ;;  %vm4544_vm10 = vcmp.gt.f32.partialorder %v11779_v32, 20.0  ;;  %vm4262_vm11 = vcmp.lt.f32.partialorder %v4261_v59, 0.0004427343  ;;  %v11792_v59 = vld [vmem:[#allocation11_spill] sm:$0xff] }
 0x3fe   : > { %5612 = vmatpush1.bf16.msra.mxu1 %v11777_v12  ;;  %5220 = vmatprep.mubr.f32.mxu0 %v11620_v48  ;;  %v4429_v27 = vmul.f32 -0.5, %v10577_v25  ;;  %v4595_v50 = vsel %vm4527_vm8, %v11780_v14, %v4459_v1  ;;  %v4612_v54 = vsel %vm4544_vm10, %v11781_v26, %v4476_v55  ;;  %v4263_v2 = vsel %vm4262_vm11, %v4260_v0, %v4257_v8  ;;  %v11793_v1 = vld [vmem:[#allocation47_spill] sm:$0xff]  ;;  %v11796_v55 = vld [vmem:[#allocation41_spill] sm:$0xff] }
 0x3ff   : > { %v6306_v39 = vpop.eup %6305  ;;  %v5617_v15 = vpack.c.bf16 %v4612_v54, %v4595_v50  ;;  %v4413_v63 = vmul.f32 %v10398_v49, %v4412_v61  ;;  %vm4415_vm12 = vcmp.lt.f32.partialorder %v4414_v16, 0.0004427343  ;;  %v4491_v33 = vmul.f32 0.01, %v4263_v2  ;;  %v11795_v16 = vld [vmem:[#allocation63_spill] sm:$0xff] }
 0x400   : > { %v4410_v47 = vmul.f32 0.6931472, %v6306_v39  ;;  %v4277_v24 = vadd.f32 1.0, %v4276_v35  ;;  %v4279_v13 = vand.u32 2147483647, %v10368_v29  ;;  %v4430_v44 = vadd.f32 1.0, %v4429_v27 }
 0x401   : > { %5618 = vmatprep.subr.bf16.mxu0 %v5617_v15  ;;  %v11784_v40 = vpack.c.bf16 %v11782_v45, %v11783_v51  ;;  %v4432_v5 = vand.u32 2147483647, %v10577_v25  ;;  %vm4559_vm7 = vcmp.gt.f32.partialorder %v11785_v36, 20.0  ;;  %vm4576_vm1 = vcmp.gt.f32.partialorder %v10198_v62, 20.0  ;;  %v11788_v62 = vld [vmem:[#allocation23_spill] sm:$0xff] }
 0x402   : > { %v4416_v19 = vsel %vm4415_vm12, %v4413_v63, %v4410_v47  ;;  %v4627_v42 = vsel %vm4559_vm7, %v11786_v30, %v4491_v33  ;;  %v4278_v22 = vmul.f32 %v10368_v29, %v4277_v24  ;;  %vm4280_vm13 = vcmp.lt.f32.partialorder %v4279_v13, 0.0004427343 }
 0x403   : > { %5620 = vmatpush1.bf16.msra.mxu0 %v11784_v40  ;;  %v4508_v21 = vmul.f32 0.01, %v4416_v19  ;;  %v4431_v23 = vmul.f32 %v10577_v25, %v4430_v44  ;;  %vm4433_vm14 = vcmp.lt.f32.partialorder %v4432_v5, 0.0004427343  ;;  %v11790_v4 = vpack.c.bf16 %v11788_v62, %v11789_v17  ;;  %v11794_v25 = vld [vmem:[#allocation33_spill] sm:$0xff] }
 0x404   : > { %v6308_v7 = vpop.eup %6307  ;;  %vm4561_vm15 = vcmp.gt.f32.partialorder %v11791_v28, 20.0  ;;  %vm4578_vm0 = vcmp.gt.f32.partialorder %v11792_v59, 20.0  ;;  %v6417_v29 = vmov 0.0|0.0   ;;  %vm6418_vm2 = vmmov 0  }
 0x405   : > { %v6310_v49 = vpop.eup %6309  ;;  %v4644_v37 = vsel %vm4576_vm1, %v11787_v10, %v4508_v21  ;;  %v4275_v53 = vmul.f32 0.6931472, %v6308_v7  ;;  %v11797_v58 = vpack.c.bf16 %v11795_v16, %v11796_v55 }
 0x406   : > { %v5613_v11 = vpack.c.bf16 %v4644_v37, %v4627_v42  ;;  %v4428_v6 = vmul.f32 0.6931472, %v6310_v49 }
 0x407   : > { %v4281_v52 = vsel %vm4280_vm13, %v4278_v22, %v4275_v53 }
 0x408   : > { %5614 = vmatprep.subr.bf16.mxu1 %v5613_v11  ;;  %v4434_v46 = vsel %vm4433_vm14, %v4431_v23, %v4428_v6  ;;  %v4493_v43 = vmul.f32 0.01, %v4281_v52 }
 0x409   : > { %v4510_v3 = vmul.f32 0.01, %v4434_v46  ;;  %5616 = vmatpush1.bf16.msra.mxu1 %v11790_v4 }
 0x40a   : > { %5625 = vmatprep.subr.bf16.mxu1 %v6417_v29  ;;  %v4629_v38 = vsel %vm4561_vm15, %v11793_v1, %v4493_v43 }
 0x40b   : > { %v4646_v9 = vsel %vm4578_vm0, %v11794_v25, %v4510_v3 }
 0x40c   : > { %v5621_v61 = vpack.c.bf16 %v4646_v9, %v4629_v38  ;;  %5503 = vmatmul.mubr.msk.f32.vlgmr.msra.gmra.mrb[72].mxu1 %vm4655_vm3, %v10630_v60 }
 0x40d   : > { %5627 = vmatpush3.bf16.msra.mxu1 %v5626_v34  ;;  %5558 = vmatprep.mubr.msk.f32.mxu1 %vm6418_vm2, %v11620_v48 }
 0x40e   : > { %5622 = vmatprep.subr.bf16.mxu0 %v5621_v61  ;;  %5628 = vmatprep.subr.bf16.mxu1 %v6417_v29 }
 0x40f   : > { %5624 = vmatpush1.bf16.msra.mxu0 %v11797_v58 }
 0x411   : > { %5630 = vmatpush3.bf16.msra.mxu1 %v5629_v56 }
 0x412   : > { %5504 = vmatmul.mubr.msk.f32.vlgmr.msra.gmra.mrb[76].mxu0 %vm4655_vm3, %v10630_v60 }
 0x414   : > { %5559 = vmatmul.mubr.msk.f32.vlgmr.msra.gmra.mrb[74].mxu1 %vm4655_vm3, %v10630_v60 }
 0x456   : > { %v4725_v41 = vpop.f32.mrb[68].mxu0 }
 0x457   : > { %v4726_v48 = vadd.f32 %v4725_v41, %v4653_v18  ;;  %v4727_v34 = vpop.f32.mrb[69].mxu0 }
 0x458   : > { %v4728_v12 = vadd.f32 %v4727_v34, %v4653_v18 }
 0x459   : > { %5297 = vst [vmem:[%s10703_s21] sm:$0x1f] %v4726_v48 }
 0x45a   : > { %5298 = vst [vmem:[%s10703_s21 + $0x8] sm:$0x1f] %v4728_v12 }
 0x47f   : > { %v4796_v20 = vpop.f32.mrb[70].mxu0 }
 0x480   : > { %v4797_v31 = vadd.f32 %v4796_v20, %v4653_v18  ;;  %v4798_v56 = vpop.f32.mrb[71].mxu0 }
 0x481   : > { %v4799_v60 = vadd.f32 %v4798_v56, %v4653_v18 }
 0x482   : > { %5299 = vst [vmem:[%s10703_s21 + $0x10] sm:$0x1f] %v4797_v31 }
 0x483   : > { %5300 = vst [vmem:[%s10703_s21 + $0x18] sm:$0x1f] %v4799_v60 }
 0x4a8   : > { %v4867_v8 = vpop.f32.mrb[68].mxu1 }
 0x4a9   : > { %v4868_v0 = vadd.f32 %v4867_v8, %v4653_v18  ;;  %v4869_v35 = vpop.f32.mrb[69].mxu1 }
 0x4aa   : > { %v4870_v57 = vadd.f32 %v4869_v35, %v4653_v18 }
 0x4ab   : > { %5301 = vst [vmem:[%s10703_s21 + $0x20] sm:$0x1f] %v4868_v0 }
 0x4ac   : > { %5302 = vst [vmem:[%s10703_s21 + $0x28] sm:$0x1f] %v4870_v57 }
 0x4ae   : > { %v4938_v32 = vpop.f32.mrb[72].mxu0 }
 0x4af   : > { %v4939_v27 = vadd.f32 %v4938_v32, %v4653_v18  ;;  %v4940_v39 = vpop.f32.mrb[73].mxu0 }
 0x4b0   : > { %v4941_v14 = vadd.f32 %v4940_v39, %v4653_v18 }
 0x4b1   : > { %5303 = vst [vmem:[%s10703_s21 + $0x30] sm:$0x1f] %v4939_v27 }
 0x4b2   : > { %5304 = vst [vmem:[%s10703_s21 + $0x38] sm:$0x1f] %v4941_v14 }
 0x4cb   : > { %v5009_v50 = vpop.f32.mrb[70].mxu1 }
 0x4cc   : > { %v5010_v26 = vadd.f32 %v5009_v50, %v4653_v18  ;;  %v5011_v54 = vpop.f32.mrb[71].mxu1 }
 0x4cd   : > { %v5012_v2 = vadd.f32 %v5011_v54, %v4653_v18 }
 0x4ce   : > { %5305 = vst [vmem:[%s10703_s21 + $0x40] sm:$0x1f] %v5010_v26 }
 0x4cf   : > { %5306 = vst [vmem:[%s10703_s21 + $0x48] sm:$0x1f] %v5012_v2 }
 0x4d0   : > { %v5080_v15 = vpop.f32.mrb[74].mxu0 }
 0x4d1   : > { %v5081_v47 = vadd.f32 %v5080_v15, %v4653_v18  ;;  %v5082_v63 = vpop.f32.mrb[75].mxu0 }
 0x4d2   : > { %v5083_v33 = vadd.f32 %v5082_v63, %v4653_v18 }
 0x4d3   : > { %5307 = vst [vmem:[%s10703_s21 + $0x50] sm:$0x1f] %v5081_v47 }
 0x4d4   : > { %5308 = vst [vmem:[%s10703_s21 + $0x58] sm:$0x1f] %v5083_v33 }
 0x4df   : > { %v5151_v24 = vpop.f32.mrb[72].mxu1 }
 0x4e0   : > { %v5152_v19 = vadd.f32 %v5151_v24, %v4653_v18  ;;  %v5153_v13 = vpop.f32.mrb[73].mxu1 }
 0x4e1   : > { %v5154_v44 = vadd.f32 %v5153_v13, %v4653_v18 }
 0x4e2   : > { %5309 = vst [vmem:[%s10703_s21 + $0x60] sm:$0x1f] %v5152_v19 }
 0x4e3   : > { %5310 = vst [vmem:[%s10703_s21 + $0x68] sm:$0x1f] %v5154_v44 }
 0x4e5   : > { %v5222_v45 = vpop.f32.mrb[76].mxu0 }
 0x4e6   : > { %v5223_v51 = vadd.f32 %v5222_v45, %v4653_v18  ;;  %v5224_v40 = vpop.f32.mrb[77].mxu0 }
 0x4e7   : > { %v5225_v21 = vadd.f32 %v5224_v40, %v4653_v18  ;;  %v5293_v5 = vpop.f32.mrb[74].mxu1 }
 0x4e8   : > { %5311 = vst [vmem:[%s10703_s21 + $0x70] sm:$0x1f] %v5223_v51  ;;  %v5294_v7 = vadd.f32 %v5293_v5, %v4653_v18  ;;  %v5560_v36 = vpop.f32.mrb[75].mxu1 }
 0x4e9   : > { %5312 = vst [vmem:[%s10703_s21 + $0x78] sm:$0x1f] %v5225_v21 }
 0x4ea   : > { %5313 = vst [vmem:[%s10703_s21 + $0x80] sm:$0x1f] %v5294_v7 }
 0x4eb   : > { %6358 = shalt.err (!%p6355_p4)
}
 0x4ec   : > { %s6359_s12 = scalar_lea.hbm %s10725_s13, 2176  ;;  %s6363_s22 = scalar_lea.hbm %s10779_s8, 4352 }
 0x4ed   : > { %p6360_p7 = scmp.ne.s32.totalorder %s10725_s13, %s6359_s12  ;;  %p6364_p0 = scmp.lt.u32.totalorder %s10725_s13, %s10779_s8 }
 0x4ee   : > { %p6365_p1 = scmp.lt.u32.totalorder %s6363_s22, %s6359_s12  ;;  %p6367_p6 = scmp.lt.u32.totalorder %s6359_s12, %s10725_s13 }
 0x4ef   : > { %p6361_p8 = pnand %p6360_p7, %p11798_p11 }
 0x4f0   : > { %p6366_p3 = por %p6365_p1, %p6364_p0 }
 0x4f1   : > { %p6362_p9 = pneg %p6361_p8 }
 0x4f2   : > { %p6368_p12 = por %p6367_p6, %p6366_p3 }
 0x4f4   : > { %p6369_p13 = pnand %p6368_p12, %p6362_p9 }
 0x4f6   : > { %6372 = shalt.err (!%p6369_p13)
}
 0x4f7   : > { %5704 = dma.vmem_to_hbm [thread:$0]  (%p11798_p11), %s10727_s20, 2176, %s10725_s13, %s5315_s9  }
 0x4f8 PF: > { %s5341_s25 = sand.u32 1, %s6399_s27   ;;  %p11799_p5 = scmp.ne.s32.totalorder %s11032_s17, 0 }
 0x4f9   : > { %p11800_p10 = scmp.ge.s32.totalorder %s6411_s30, 2  ;;  %s5342_s14 = scalar_lea.sflag [#allocation4], %s5341_s25 }
 0x4fb   : > { %p5711_p2 = pnand %p11800_p10, %p11799_p5 }
 0x4fd   : > { %6394 = dma.done.wait (!%p5711_p2), %s5342_s14, 2176  }
 0x4fe   : > { %6396 = vsyncadd (!%p5711_p2), %s5342_s14, 4294965120  ;;  %s11801_s19 = sld [smem:[#allocation8_spill]]  ;;  %p21_p4 = scmp.ge.s32.totalorder %s6490_s11, 4  }
 0x4ff   : > { %s11802_s27 = smov %s6403_s28  ;;  %s11803_s28 = smov %s6407_s29 }
 0x500   : > { %s11805_s30 = smov %s6490_s11  ;;  %23 = sbr.rel (!%p21_p4) target bundleno = 5 (0x5), region = 97 }
 0x504   : > { %s11804_s29 = smov %s11801_s19 }
 0x507   :  { %5347 = vsyncpa [#allocation3], 1 }
 0x508   :  { %5349 = vsyncpa [#allocation3 + $0x1], 1 }
 0x509   :  { %5350 = vsyncpa [#allocation4], 1 }
 0x50a   :  { %5352 = vsyncpa [#allocation4 + $0x1], 1 }

</bundles_post_ra>
